<compile_context>
chip_gen: v5e
topology: v5e:2x2
jax: 0.10.0
libtpu: 0.0.40
codegen_flags: <defaults>
</compile_context>

<pallas_src>
import functools

import jax
import jax.numpy as jnp
import numpy as np
from jax.experimental import pallas as pl
from jax.experimental.pallas import tpu as pltpu

_VMEM = pltpu.MemorySpace.VMEM


def _vmem_specs(n):
    return [pl.BlockSpec(memory_space=_VMEM) for _ in range(n)]


# ----------------------------------------------------------------------------
# Kernel 1: temporal_conv1 + GCN + concat + temporal_conv2 (everything small)
# ----------------------------------------------------------------------------
def _stconv_front_kernel(xcol1_ref, xgt_ref, a_ref, wg1_ref, bg1_ref,
                         gw0t_ref, gb0c_ref, gs0c_ref, gt0c_ref,
                         gw1t_ref, gb1c_ref, gs1c_ref, gt1c_ref,
                         wg2_ref, bg2_ref, out_ref, *, B, N, H, T1):
    f32 = jnp.float32

    # --- gated temporal conv 1: one fused (k*C, 3H) matmul, slice P|Q|R -----
    y1 = (jnp.dot(xcol1_ref[...], wg1_ref[...], preferred_element_type=f32)
          + bg1_ref[...])
    p, q, r = y1[:, 0:H], y1[:, H:2 * H], y1[:, 2 * H:3 * H]
    t0 = jnp.maximum(p * jax.nn.sigmoid(q) + r, 0.0)        # (B*T1*N, H)

    # --- 2-layer dense GCN (BN folded), computed transposed so that gfeat
    #     directly equals gcn_out.T as needed by the reference permute(1,0) ---
    a = a_ref[...]                                           # symmetric A_hat
    h = jnp.dot(gw0t_ref[...], xgt_ref[...], preferred_element_type=f32)
    h = jnp.dot(h, a, preferred_element_type=f32) + gb0c_ref[...]
    h = jnp.maximum(h * gs0c_ref[...] + gt0c_ref[...], 0.0)
    h = jnp.dot(gw1t_ref[...], h, preferred_element_type=f32)
    h = jnp.dot(h, a, preferred_element_type=f32) + gb1c_ref[...]
    gfeat = jnp.maximum(h * gs1c_ref[...] + gt1c_ref[...], 0.0)   # (H, B*N) = gcn.T

    # --- concat along the time axis; rows are flattened (b, t, n).
    #     (The reference's relu(T0) / relu(cat) are no-ops: both inputs >= 0.)
    tpb = T1 * N
    pieces = []
    for b in range(B):
        pieces.append(t0[b * tpb:(b + 1) * tpb])
        pieces.append(gfeat[b * N:(b + 1) * N])
    tcat = jnp.concatenate(pieces, axis=0)                   # (B*(T1+1)*N, H)

    # --- gated temporal conv 2: in-kernel im2col via +-N row shifts with zero
    #     time padding per batch; 3 tap matmuls against the fused gate weight --
    rpb = (T1 + 1) * N
    z = jnp.zeros((N, H), f32)
    prev_parts, next_parts = [], []
    for b in range(B):
        blk = tcat[b * rpb:(b + 1) * rpb]
        prev_parts += [z, blk[:rpb - N]]                     # tap at t-1
        next_parts += [blk[N:], z]                           # tap at t+1
    prev = jnp.concatenate(prev_parts, axis=0)
    nxt = jnp.concatenate(next_parts, axis=0)

    wg2 = wg2_ref[...]
    y2 = (jnp.dot(prev, wg2[0:H, :], preferred_element_type=f32)
          + jnp.dot(tcat, wg2[H:2 * H, :], preferred_element_type=f32)
          + jnp.dot(nxt, wg2[2 * H:3 * H, :], preferred_element_type=f32)
          + bg2_ref[...])
    p2, q2, r2 = y2[:, 0:H], y2[:, H:2 * H], y2[:, 2 * H:3 * H]
    out_ref[...] = jnp.maximum(p2 * jax.nn.sigmoid(q2) + r2,
                               0.0).astype(out_ref.dtype)


# ----------------------------------------------------------------------------
# Kernel 2: fc (BN2d pre-folded into weights) + relu + fc4, bf16 weights
# ----------------------------------------------------------------------------
def _fc_head_kernel(x_ref, fcw_ref, fcb_ref, fc4w_ref, fc4b_ref, out_ref):
    x = x_ref[...].astype(jnp.bfloat16)
    y = (jnp.dot(x, fcw_ref[...], preferred_element_type=jnp.float32)
         + fcb_ref[...])
    y = jnp.maximum(y, 0.0)
    y = (jnp.dot(y.astype(jnp.bfloat16), fc4w_ref[...],
                 preferred_element_type=jnp.float32)
         + fc4b_ref[...])
    out_ref[...] = y.astype(out_ref.dtype)


# ----------------------------------------------------------------------------
# Forward wrapper (2 pallas_calls, tiny plain-JAX glue on the raw input only)
# ----------------------------------------------------------------------------
def stconv_forward(q, x_data, a_hat, *, num_nodes, in_channels, hidden, k):
    B = x_data.size // (12 * num_nodes * in_channels)
    N, H, C, T1 = num_nodes, hidden, in_channels, 12
    T2 = T1 + 1
    # The reference's gcn_feature.permute(1,0).reshape(-1,1,N,H) only lines up
    # with row-block slices of gcn_out.T when hidden == num_graph_nodes.
    assert hidden == B * num_nodes * in_channels

    # conv1 im2col on the raw (tiny, few-KB) input; all later layout work is
    # done inside the front kernel.
    X = x_data.reshape(B, T1, N, C)
    pad = k // 2
    Xp = jnp.pad(X, ((0, 0), (pad, pad), (0, 0), (0, 0)))
    xcol1 = jnp.stack([Xp[:, d:d + T1] for d in range(k)],
                      axis=3).reshape(B * T1 * N, k * C)
    xgt = x_data.T                                     # (12, num_graph_nodes)

    front = pl.pallas_call(
        functools.partial(_stconv_front_kernel, B=B, N=N, H=H, T1=T1),
        out_shape=jax.ShapeDtypeStruct((B * T2 * N, H), jnp.float32),
        in_specs=_vmem_specs(15),
        out_specs=pl.BlockSpec(memory_space=_VMEM),
        compiler_params=pltpu.CompilerParams(vmem_limit_bytes=32 * 1024 * 1024),
    )
    t2 = front(xcol1, xgt, a_hat, q["wg1"], q["bg1"],
               q["g_w0t"], q["g_b0c"], q["g_s0c"], q["g_t0c"],
               q["g_w1t"], q["g_b1c"], q["g_s1c"], q["g_t1c"],
               q["wg2"], q["bg2"])

    # (B*T2*N, H) -> (B, T2*N*H); matches torch `.reshape(T.size(0), -1)`.
    tf = t2.reshape(B, T2 * N * H)

    head = pl.pallas_call(
        _fc_head_kernel,
        out_shape=jax.ShapeDtypeStruct((B, q["fc4_b"].shape[1]), jnp.float32),
        in_specs=_vmem_specs(5),
        out_specs=pl.BlockSpec(memory_space=_VMEM),
        compiler_params=pltpu.CompilerParams(vmem_limit_bytes=32 * 1024 * 1024),
    )
    return head(tf, q["fc_w"], q["fc_b"], q["fc4_w"], q["fc4_b"])


# ----------------------------------------------------------------------------
# Parameter construction (raw "PyTorch-like" params) + one-time fusion/folding
# ----------------------------------------------------------------------------
def _bn_fold(key, dim, eps=1e-5):
    k1, k2, k3, k4 = jax.random.split(key, 4)
    gamma = jax.random.uniform(k1, (dim,), jnp.float32, 0.5, 1.5)
    beta = 0.1 * jax.random.normal(k2, (dim,), jnp.float32)
    mean = 0.1 * jax.random.normal(k3, (dim,), jnp.float32)
    var = jax.random.uniform(k4, (dim,), jnp.float32, 0.5, 1.5)
    scale = gamma / jnp.sqrt(var + eps)
    shift = beta - mean * scale
    return scale, shift


def make_params(key, *, in_channels, hidden, out_channels, num_nodes, k, t_in=12):
    keys = jax.random.split(key, 32)
    ki = iter(keys)

    def w(shape, s=0.1):
        return s * jax.random.normal(next(ki), shape, jnp.float32)

    p = {}
    for i in (1, 2, 3):                      # TemporalConv1: Conv2d(Cin,H,(1,k)) x3
        p[f"t1_w{i}"] = w((k * in_channels, hidden))
        p[f"t1_b{i}"] = w((1, hidden), 0.01)
    p["g_w0"] = w((t_in, hidden))            # GCNConv(12, H) + BN1d
    p["g_b0"] = w((1, hidden), 0.01)
    s0, t0 = _bn_fold(next(ki), hidden)
    p["g_s0"], p["g_t0"] = s0.reshape(1, -1), t0.reshape(1, -1)
    p["g_w1"] = w((hidden, hidden))          # GCNConv(H, H) + BN1d
    p["g_b1"] = w((1, hidden), 0.01)
    s1, t1 = _bn_fold(next(ki), hidden)
    p["g_s1"], p["g_t1"] = s1.reshape(1, -1), t1.reshape(1, -1)
    for i in (1, 2, 3):                      # TemporalConv2: Conv2d(H,H,(1,k)) x3
        p[f"t2_w{i}"] = w((k * hidden, hidden))
        p[f"t2_b{i}"] = w((1, hidden), 0.01)
    s2, t2 = _bn_fold(next(ki), num_nodes)   # BatchNorm2d(num_nodes), inference
    p["bn2_scale"], p["bn2_shift"] = s2, t2
    fc_in = (t_in + 1) * num_nodes * hidden  # fc: Linear(13*N*H, out*1024)
    fc_out = out_channels * 1024
    p["fc_w"] = w((fc_in, fc_out), 0.02)
    p["fc_b"] = w((1, fc_out), 0.01)
    p["fc4_w"] = w((1024, 72), 0.05)         # fc4: Linear(1024, 72)
    p["fc4_b"] = w((1, 72), 0.01)
    return p


def prepare_params(p, *, num_nodes, hidden, t_in=12):
    """One-time fusion/folding of raw params into the fused-kernel layout."""
    q = {}
    # Fused gate weights: W = [W_P | W_Q | W_R]   -> one matmul per conv.
    q["wg1"] = jnp.concatenate([p["t1_w1"], p["t1_w2"], p["t1_w3"]], axis=1)
    q["bg1"] = jnp.concatenate([p["t1_b1"], p["t1_b2"], p["t1_b3"]], axis=1)
    q["wg2"] = jnp.concatenate([p["t2_w1"], p["t2_w2"], p["t2_w3"]], axis=1)
    q["bg2"] = jnp.concatenate([p["t2_b1"], p["t2_b2"], p["t2_b3"]], axis=1)
    # GCN params pre-transposed / column-shaped for the transposed formulation.
    for i in (0, 1):
        q[f"g_w{i}t"] = p[f"g_w{i}"].T
        q[f"g_b{i}c"] = p[f"g_b{i}"].reshape(-1, 1)
        q[f"g_s{i}c"] = p[f"g_s{i}"].reshape(-1, 1)
        q[f"g_t{i}c"] = p[f"g_t{i}"].reshape(-1, 1)
    # Fold inference-mode BatchNorm2d(num_nodes) into fc:
    #   relu((x*cs+ct) @ W + b) == relu(x @ (cs^T * W) + (ct @ W + b)),
    # then cast the big streamed weights to bf16 (f32 accumulation in-kernel).
    T2 = t_in + 1
    cs = jnp.broadcast_to(p["bn2_scale"][None, :, None],
                          (T2, num_nodes, hidden)).reshape(-1)
    ct = jnp.broadcast_to(p["bn2_shift"][None, :, None],
                          (T2, num_nodes, hidden)).reshape(1, -1)
    q["fc_w"] = (cs[:, None] * p["fc_w"]).astype(jnp.bfloat16)
    q["fc_b"] = p["fc_b"] + ct @ p["fc_w"]
    q["fc4_w"] = p["fc4_w"].astype(jnp.bfloat16)
    q["fc4_b"] = p["fc4_b"]
    return q


def make_a_hat(num_graph_nodes):
    """Dense normalized adjacency D^-1/2 (A + I) D^-1/2 of a ring graph."""
    n = num_graph_nodes
    A = np.zeros((n, n), np.float32)
    for i in range(n):
        A[i, (i + 1) % n] = 1.0
        A[(i + 1) % n, i] = 1.0
    A = A + np.eye(n, dtype=np.float32)
    d = A.sum(axis=1)
    dinv = 1.0 / np.sqrt(d)
    return jnp.asarray(dinv[:, None] * A * dinv[None, :])


# ----------------------------------------------------------------------------
# Pure-JAX f32 reference of the same forward (for a numerical cross-check)
# ----------------------------------------------------------------------------
def reference_forward(p, x_data, a_hat, *, num_nodes, in_channels, hidden, k):
    B = x_data.size // (12 * num_nodes * in_channels)
    N, H, C = num_nodes, hidden, in_channels

    def temporal_conv(x_btnc, w1, w2, w3, b1, b2, b3):
        Bb, T, Nn, Cc = x_btnc.shape
        pad = k // 2
        xp = jnp.pad(x_btnc, ((0, 0), (pad, pad), (0, 0), (0, 0)))
        xcol = jnp.stack([xp[:, d:d + T] for d in range(k)],
                         axis=3).reshape(Bb * T * Nn, k * Cc)
        P = xcol @ w1 + b1
        Q = jax.nn.sigmoid(xcol @ w2 + b2)
        R = xcol @ w3 + b3
        return jnp.maximum(P * Q + R, 0.0).reshape(Bb, T, Nn, -1)

    X = x_data.reshape(B, 12, N, C)
    T0 = temporal_conv(X, p["t1_w1"], p["t1_w2"], p["t1_w3"],
                       p["t1_b1"], p["t1_b2"], p["t1_b3"])
    h = a_hat @ (x_data @ p["g_w0"]) + p["g_b0"]
    h = jnp.maximum(h * p["g_s0"] + p["g_t0"], 0.0)
    h = a_hat @ (h @ p["g_w1"]) + p["g_b1"]
    h = jnp.maximum(h * p["g_s1"] + p["g_t1"], 0.0)
    gfeat = jnp.transpose(h).reshape(B, 1, N, H)
    T = jnp.maximum(T0, 0.0)
    T = jnp.concatenate([T, gfeat], axis=1)
    T = jnp.maximum(T, 0.0)
    T = temporal_conv(T, p["t2_w1"], p["t2_w2"], p["t2_w3"],
                      p["t2_b1"], p["t2_b2"], p["t2_b3"])
    Tt = T.shape[1]
    cs = jnp.broadcast_to(p["bn2_scale"][None, :, None], (Tt, N, H)).reshape(1, -1)
    ct = jnp.broadcast_to(p["bn2_shift"][None, :, None], (Tt, N, H)).reshape(1, -1)
    Tf = T.reshape(B, -1)
    y = jnp.maximum((Tf * cs + ct) @ p["fc_w"] + p["fc_b"], 0.0)
    return y @ p["fc4_w"] + p["fc4_b"]


if __name__ == "__main__":
    B = 2
    NUM_NODES = 8
    IN_CHANNELS = 1          # required so cat((T_0, gcn_feature), dim=1) lines up
    HIDDEN = 16
    OUT_CHANNELS = 1         # required so fc4 = Linear(1024, 72) applies
    K_SIZE = 3
    T_IN = 12

    key = jax.random.PRNGKey(0)
    k_params, k_x = jax.random.split(key)

    # data.x: (num_graph_nodes, 12)
    num_graph_nodes = B * NUM_NODES * IN_CHANNELS
    x_data = jax.random.normal(k_x, (num_graph_nodes, T_IN), jnp.float32)
    a_hat = make_a_hat(num_graph_nodes)

    raw = make_params(k_params, in_channels=IN_CHANNELS, hidden=HIDDEN,
                      out_channels=OUT_CHANNELS, num_nodes=NUM_NODES,
                      k=K_SIZE, t_in=T_IN)
    params = prepare_params(raw, num_nodes=NUM_NODES, hidden=HIDDEN, t_in=T_IN)

    fwd = jax.jit(functools.partial(stconv_forward, num_nodes=NUM_NODES,
                                    in_channels=IN_CHANNELS, hidden=HIDDEN,
                                    k=K_SIZE))
    out = jax.block_until_ready(fwd(params, x_data, a_hat))

    assert out.shape == (B, 72), out.shape
    assert bool(jnp.all(jnp.isfinite(out)))

    # Numerical cross-check vs the pure-JAX f32 reference (bf16 fc weights are
    # the only approximation in the Pallas path -> loose tolerance).
    ref = reference_forward(raw, x_data, a_hat, num_nodes=NUM_NODES,
                            in_channels=IN_CHANNELS, hidden=HIDDEN, k=K_SIZE)
    np.testing.assert_allclose(np.asarray(out), np.asarray(ref),
                               rtol=5e-2, atol=5e-2)
    print("KERNEL_OK")
</pallas_src>

<mosaic_0001>
module attributes {stable_mosaic.version = 11 : i64} {
  func.func @_stconv_front_kernel(%arg0: memref<192x3xf32, #tpu.memory_space<vmem>>, %arg1: memref<12x16xf32, #tpu.memory_space<vmem>>, %arg2: memref<16x16xf32, #tpu.memory_space<vmem>>, %arg3: memref<3x48xf32, #tpu.memory_space<vmem>>, %arg4: memref<1x48xf32, #tpu.memory_space<vmem>>, %arg5: memref<16x12xf32, #tpu.memory_space<vmem>>, %arg6: memref<16x1xf32, #tpu.memory_space<vmem>>, %arg7: memref<16x1xf32, #tpu.memory_space<vmem>>, %arg8: memref<16x1xf32, #tpu.memory_space<vmem>>, %arg9: memref<16x16xf32, #tpu.memory_space<vmem>>, %arg10: memref<16x1xf32, #tpu.memory_space<vmem>>, %arg11: memref<16x1xf32, #tpu.memory_space<vmem>>, %arg12: memref<16x1xf32, #tpu.memory_space<vmem>>, %arg13: memref<48x48xf32, #tpu.memory_space<vmem>>, %arg14: memref<1x48xf32, #tpu.memory_space<vmem>>, %arg15: memref<208x16xf32, #tpu.memory_space<vmem>>) attributes {dimension_semantics = [], scalar_prefetch = 0 : i64, scratch_operands = 0 : i64, tpu.core_type = #tpu.core_type<tc>} {
    %c0 = arith.constant 0 : index
    %c0_0 = arith.constant 0 : index
    %0 = vector.load %arg0[%c0, %c0_0] : memref<192x3xf32, #tpu.memory_space<vmem>>, vector<192x3xf32>
    %c0_1 = arith.constant 0 : index
    %c0_2 = arith.constant 0 : index
    %1 = vector.load %arg3[%c0_1, %c0_2] : memref<3x48xf32, #tpu.memory_space<vmem>>, vector<3x48xf32>
    %cst = arith.constant dense<0.000000e+00> : vector<192x48xf32>
    %2 = tpu.matmul %0, %1, %cst {dimension_numbers = #tpu.dot_dimension_numbers<[1], [0], [0], [1], [0, 0, 1, 1], [], []>} : vector<192x3xf32>, vector<3x48xf32>, vector<192x48xf32> -> vector<192x48xf32>
    %c0_3 = arith.constant 0 : index
    %c0_4 = arith.constant 0 : index
    %3 = vector.load %arg4[%c0_3, %c0_4] : memref<1x48xf32, #tpu.memory_space<vmem>>, vector<1x48xf32>
    %4 = vector.broadcast %3 : vector<1x48xf32> to vector<192x48xf32>
    %5 = arith.addf %2, %4 : vector<192x48xf32>
    %6 = vector.extract_strided_slice %5 {offsets = [0, 0], sizes = [192, 16], strides = [1, 1]} : vector<192x48xf32> to vector<192x16xf32>
    %7 = vector.extract_strided_slice %5 {offsets = [0, 16], sizes = [192, 16], strides = [1, 1]} : vector<192x48xf32> to vector<192x16xf32>
    %8 = vector.extract_strided_slice %5 {offsets = [0, 32], sizes = [192, 16], strides = [1, 1]} : vector<192x48xf32> to vector<192x16xf32>
    %9 = arith.negf %7 : vector<192x16xf32>
    %10 = math.exp %9 : vector<192x16xf32>
    %cst_5 = arith.constant 1.000000e+00 : f32
    %11 = vector.broadcast %cst_5 : f32 to vector<192x16xf32>
    %12 = arith.addf %11, %10 : vector<192x16xf32>
    %13 = arith.divf %11, %12 : vector<192x16xf32>
    %14 = arith.mulf %6, %13 : vector<192x16xf32>
    %15 = arith.addf %14, %8 : vector<192x16xf32>
    %cst_6 = arith.constant 0.000000e+00 : f32
    %16 = vector.broadcast %cst_6 : f32 to vector<192x16xf32>
    %17 = arith.maximumf %15, %16 : vector<192x16xf32>
    %c0_7 = arith.constant 0 : index
    %c0_8 = arith.constant 0 : index
    %18 = vector.load %arg2[%c0_7, %c0_8] : memref<16x16xf32, #tpu.memory_space<vmem>>, vector<16x16xf32>
    %c0_9 = arith.constant 0 : index
    %c0_10 = arith.constant 0 : index
    %19 = vector.load %arg5[%c0_9, %c0_10] : memref<16x12xf32, #tpu.memory_space<vmem>>, vector<16x12xf32>
    %c0_11 = arith.constant 0 : index
    %c0_12 = arith.constant 0 : index
    %20 = vector.load %arg1[%c0_11, %c0_12] : memref<12x16xf32, #tpu.memory_space<vmem>>, vector<12x16xf32>
    %cst_13 = arith.constant dense<0.000000e+00> : vector<16x16xf32>
    %21 = tpu.matmul %19, %20, %cst_13 {dimension_numbers = #tpu.dot_dimension_numbers<[1], [0], [0], [1], [0, 0, 1, 1], [], []>} : vector<16x12xf32>, vector<12x16xf32>, vector<16x16xf32> -> vector<16x16xf32>
    %cst_14 = arith.constant dense<0.000000e+00> : vector<16x16xf32>
    %22 = tpu.matmul %21, %18, %cst_14 {dimension_numbers = #tpu.dot_dimension_numbers<[1], [0], [0], [1], [0, 0, 1, 1], [], []>} : vector<16x16xf32>, vector<16x16xf32>, vector<16x16xf32> -> vector<16x16xf32>
    %c0_15 = arith.constant 0 : index
    %c0_16 = arith.constant 0 : index
    %23 = vector.load %arg6[%c0_15, %c0_16] : memref<16x1xf32, #tpu.memory_space<vmem>>, vector<16x1xf32>
    %24 = vector.broadcast %23 : vector<16x1xf32> to vector<16x16xf32>
    %25 = arith.addf %22, %24 : vector<16x16xf32>
    %c0_17 = arith.constant 0 : index
    %c0_18 = arith.constant 0 : index
    %26 = vector.load %arg7[%c0_17, %c0_18] : memref<16x1xf32, #tpu.memory_space<vmem>>, vector<16x1xf32>
    %27 = vector.broadcast %26 : vector<16x1xf32> to vector<16x16xf32>
    %28 = arith.mulf %25, %27 : vector<16x16xf32>
    %c0_19 = arith.constant 0 : index
    %c0_20 = arith.constant 0 : index
    %29 = vector.load %arg8[%c0_19, %c0_20] : memref<16x1xf32, #tpu.memory_space<vmem>>, vector<16x1xf32>
    %30 = vector.broadcast %29 : vector<16x1xf32> to vector<16x16xf32>
    %31 = arith.addf %28, %30 : vector<16x16xf32>
    %cst_21 = arith.constant 0.000000e+00 : f32
    %32 = vector.broadcast %cst_21 : f32 to vector<16x16xf32>
    %33 = arith.maximumf %31, %32 : vector<16x16xf32>
    %c0_22 = arith.constant 0 : index
    %c0_23 = arith.constant 0 : index
    %34 = vector.load %arg9[%c0_22, %c0_23] : memref<16x16xf32, #tpu.memory_space<vmem>>, vector<16x16xf32>
    %cst_24 = arith.constant dense<0.000000e+00> : vector<16x16xf32>
    %35 = tpu.matmul %34, %33, %cst_24 {dimension_numbers = #tpu.dot_dimension_numbers<[1], [0], [0], [1], [0, 0, 1, 1], [], []>} : vector<16x16xf32>, vector<16x16xf32>, vector<16x16xf32> -> vector<16x16xf32>
    %cst_25 = arith.constant dense<0.000000e+00> : vector<16x16xf32>
    %36 = tpu.matmul %35, %18, %cst_25 {dimension_numbers = #tpu.dot_dimension_numbers<[1], [0], [0], [1], [0, 0, 1, 1], [], []>} : vector<16x16xf32>, vector<16x16xf32>, vector<16x16xf32> -> vector<16x16xf32>
    %c0_26 = arith.constant 0 : index
    %c0_27 = arith.constant 0 : index
    %37 = vector.load %arg10[%c0_26, %c0_27] : memref<16x1xf32, #tpu.memory_space<vmem>>, vector<16x1xf32>
    %38 = vector.broadcast %37 : vector<16x1xf32> to vector<16x16xf32>
    %39 = arith.addf %36, %38 : vector<16x16xf32>
    %c0_28 = arith.constant 0 : index
    %c0_29 = arith.constant 0 : index
    %40 = vector.load %arg11[%c0_28, %c0_29] : memref<16x1xf32, #tpu.memory_space<vmem>>, vector<16x1xf32>
    %41 = vector.broadcast %40 : vector<16x1xf32> to vector<16x16xf32>
    %42 = arith.mulf %39, %41 : vector<16x16xf32>
    %c0_30 = arith.constant 0 : index
    %c0_31 = arith.constant 0 : index
    %43 = vector.load %arg12[%c0_30, %c0_31] : memref<16x1xf32, #tpu.memory_space<vmem>>, vector<16x1xf32>
    %44 = vector.broadcast %43 : vector<16x1xf32> to vector<16x16xf32>
    %45 = arith.addf %42, %44 : vector<16x16xf32>
    %cst_32 = arith.constant 0.000000e+00 : f32
    %46 = vector.broadcast %cst_32 : f32 to vector<16x16xf32>
    %47 = arith.maximumf %45, %46 : vector<16x16xf32>
    %48 = vector.extract_strided_slice %17 {offsets = [0, 0], sizes = [96, 16], strides = [1, 1]} : vector<192x16xf32> to vector<96x16xf32>
    %49 = vector.extract_strided_slice %47 {offsets = [0, 0], sizes = [8, 16], strides = [1, 1]} : vector<16x16xf32> to vector<8x16xf32>
    %50 = vector.extract_strided_slice %17 {offsets = [96, 0], sizes = [96, 16], strides = [1, 1]} : vector<192x16xf32> to vector<96x16xf32>
    %51 = vector.extract_strided_slice %47 {offsets = [8, 0], sizes = [8, 16], strides = [1, 1]} : vector<16x16xf32> to vector<8x16xf32>
    %52 = tpu.concatenate %48, %49, %50, %51 in 0 : vector<96x16xf32>, vector<8x16xf32>, vector<96x16xf32>, vector<8x16xf32> -> vector<208x16xf32>
    %cst_33 = arith.constant 0.000000e+00 : f32
    %53 = vector.broadcast %cst_33 : f32 to vector<8x16xf32>
    %54 = vector.extract_strided_slice %52 {offsets = [0, 0], sizes = [104, 16], strides = [1, 1]} : vector<208x16xf32> to vector<104x16xf32>
    %55 = vector.extract_strided_slice %54 {offsets = [0, 0], sizes = [96, 16], strides = [1, 1]} : vector<104x16xf32> to vector<96x16xf32>
    %56 = vector.extract_strided_slice %54 {offsets = [8, 0], sizes = [96, 16], strides = [1, 1]} : vector<104x16xf32> to vector<96x16xf32>
    %57 = vector.extract_strided_slice %52 {offsets = [104, 0], sizes = [104, 16], strides = [1, 1]} : vector<208x16xf32> to vector<104x16xf32>
    %58 = vector.extract_strided_slice %57 {offsets = [0, 0], sizes = [96, 16], strides = [1, 1]} : vector<104x16xf32> to vector<96x16xf32>
    %59 = vector.extract_strided_slice %57 {offsets = [8, 0], sizes = [96, 16], strides = [1, 1]} : vector<104x16xf32> to vector<96x16xf32>
    %60 = tpu.concatenate %53, %55, %53, %58 in 0 : vector<8x16xf32>, vector<96x16xf32>, vector<8x16xf32>, vector<96x16xf32> -> vector<208x16xf32>
    %61 = tpu.concatenate %56, %53, %59, %53 in 0 : vector<96x16xf32>, vector<8x16xf32>, vector<96x16xf32>, vector<8x16xf32> -> vector<208x16xf32>
    %c0_34 = arith.constant 0 : index
    %c0_35 = arith.constant 0 : index
    %62 = vector.load %arg13[%c0_34, %c0_35] : memref<48x48xf32, #tpu.memory_space<vmem>>, vector<48x48xf32>
    %63 = vector.extract_strided_slice %62 {offsets = [0, 0], sizes = [16, 48], strides = [1, 1]} : vector<48x48xf32> to vector<16x48xf32>
    %cst_36 = arith.constant dense<0.000000e+00> : vector<208x48xf32>
    %64 = tpu.matmul %60, %63, %cst_36 {dimension_numbers = #tpu.dot_dimension_numbers<[1], [0], [0], [1], [0, 0, 1, 1], [], []>} : vector<208x16xf32>, vector<16x48xf32>, vector<208x48xf32> -> vector<208x48xf32>
    %65 = vector.extract_strided_slice %62 {offsets = [16, 0], sizes = [16, 48], strides = [1, 1]} : vector<48x48xf32> to vector<16x48xf32>
    %cst_37 = arith.constant dense<0.000000e+00> : vector<208x48xf32>
    %66 = tpu.matmul %52, %65, %cst_37 {dimension_numbers = #tpu.dot_dimension_numbers<[1], [0], [0], [1], [0, 0, 1, 1], [], []>} : vector<208x16xf32>, vector<16x48xf32>, vector<208x48xf32> -> vector<208x48xf32>
    %67 = arith.addf %64, %66 : vector<208x48xf32>
    %68 = vector.extract_strided_slice %62 {offsets = [32, 0], sizes = [16, 48], strides = [1, 1]} : vector<48x48xf32> to vector<16x48xf32>
    %cst_38 = arith.constant dense<0.000000e+00> : vector<208x48xf32>
    %69 = tpu.matmul %61, %68, %cst_38 {dimension_numbers = #tpu.dot_dimension_numbers<[1], [0], [0], [1], [0, 0, 1, 1], [], []>} : vector<208x16xf32>, vector<16x48xf32>, vector<208x48xf32> -> vector<208x48xf32>
    %70 = arith.addf %67, %69 : vector<208x48xf32>
    %c0_39 = arith.constant 0 : index
    %c0_40 = arith.constant 0 : index
    %71 = vector.load %arg14[%c0_39, %c0_40] : memref<1x48xf32, #tpu.memory_space<vmem>>, vector<1x48xf32>
    %72 = vector.broadcast %71 : vector<1x48xf32> to vector<208x48xf32>
    %73 = arith.addf %70, %72 : vector<208x48xf32>
    %74 = vector.extract_strided_slice %73 {offsets = [0, 0], sizes = [208, 16], strides = [1, 1]} : vector<208x48xf32> to vector<208x16xf32>
    %75 = vector.extract_strided_slice %73 {offsets = [0, 16], sizes = [208, 16], strides = [1, 1]} : vector<208x48xf32> to vector<208x16xf32>
    %76 = vector.extract_strided_slice %73 {offsets = [0, 32], sizes = [208, 16], strides = [1, 1]} : vector<208x48xf32> to vector<208x16xf32>
    %77 = arith.negf %75 : vector<208x16xf32>
    %78 = math.exp %77 : vector<208x16xf32>
    %cst_41 = arith.constant 1.000000e+00 : f32
    %79 = vector.broadcast %cst_41 : f32 to vector<208x16xf32>
    %80 = arith.addf %79, %78 : vector<208x16xf32>
    %81 = arith.divf %79, %80 : vector<208x16xf32>
    %82 = arith.mulf %74, %81 : vector<208x16xf32>
    %83 = arith.addf %82, %76 : vector<208x16xf32>
    %cst_42 = arith.constant 0.000000e+00 : f32
    %84 = vector.broadcast %cst_42 : f32 to vector<208x16xf32>
    %85 = arith.maximumf %83, %84 : vector<208x16xf32>
    %c0_43 = arith.constant 0 : index
    %c0_44 = arith.constant 0 : index
    %86 = vector.load %arg15[%c0_43, %c0_44] : memref<208x16xf32, #tpu.memory_space<vmem>>, vector<208x16xf32>
    tpu.vector_store %arg15[%c0_43, %c0_44], %85 {strides = array<i32>} : memref<208x16xf32, #tpu.memory_space<vmem>>, vector<208x16xf32>,
    return
  }
}

module attributes {stable_mosaic.version = 11 : i64} {
  func.func @_fc_head_kernel(%arg0: memref<2x1664xf32, #tpu.memory_space<vmem>>, %arg1: memref<1664x1024xbf16, #tpu.memory_space<vmem>>, %arg2: memref<1x1024xf32, #tpu.memory_space<vmem>>, %arg3: memref<1024x72xbf16, #tpu.memory_space<vmem>>, %arg4: memref<1x72xf32, #tpu.memory_space<vmem>>, %arg5: memref<2x72xf32, #tpu.memory_space<vmem>>) attributes {dimension_semantics = [], scalar_prefetch = 0 : i64, scratch_operands = 0 : i64, tpu.core_type = #tpu.core_type<tc>} {
    %c0 = arith.constant 0 : index
    %c0_0 = arith.constant 0 : index
    %0 = vector.load %arg0[%c0, %c0_0] : memref<2x1664xf32, #tpu.memory_space<vmem>>, vector<2x1664xf32>
    %1 = arith.truncf %0 : vector<2x1664xf32> to vector<2x1664xbf16>
    %c0_1 = arith.constant 0 : index
    %c0_2 = arith.constant 0 : index
    %2 = vector.load %arg1[%c0_1, %c0_2] : memref<1664x1024xbf16, #tpu.memory_space<vmem>>, vector<1664x1024xbf16>
    %cst = arith.constant dense<0.000000e+00> : vector<2x1024xf32>
    %3 = tpu.matmul %1, %2, %cst {dimension_numbers = #tpu.dot_dimension_numbers<[1], [0], [0], [1], [0, 0, 1, 1], [], []>} : vector<2x1664xbf16>, vector<1664x1024xbf16>, vector<2x1024xf32> -> vector<2x1024xf32>
    %c0_3 = arith.constant 0 : index
    %c0_4 = arith.constant 0 : index
    %4 = vector.load %arg2[%c0_3, %c0_4] : memref<1x1024xf32, #tpu.memory_space<vmem>>, vector<1x1024xf32>
    %5 = vector.broadcast %4 : vector<1x1024xf32> to vector<2x1024xf32>
    %6 = arith.addf %3, %5 : vector<2x1024xf32>
    %cst_5 = arith.constant 0.000000e+00 : f32
    %7 = vector.broadcast %cst_5 : f32 to vector<2x1024xf32>
    %8 = arith.maximumf %6, %7 : vector<2x1024xf32>
    %9 = arith.truncf %8 : vector<2x1024xf32> to vector<2x1024xbf16>
    %c0_6 = arith.constant 0 : index
    %c0_7 = arith.constant 0 : index
    %10 = vector.load %arg3[%c0_6, %c0_7] : memref<1024x72xbf16, #tpu.memory_space<vmem>>, vector<1024x72xbf16>
    %cst_8 = arith.constant dense<0.000000e+00> : vector<2x72xf32>
    %11 = tpu.matmul %9, %10, %cst_8 {dimension_numbers = #tpu.dot_dimension_numbers<[1], [0], [0], [1], [0, 0, 1, 1], [], []>} : vector<2x1024xbf16>, vector<1024x72xbf16>, vector<2x72xf32> -> vector<2x72xf32>
    %c0_9 = arith.constant 0 : index
    %c0_10 = arith.constant 0 : index
    %12 = vector.load %arg4[%c0_9, %c0_10] : memref<1x72xf32, #tpu.memory_space<vmem>>, vector<1x72xf32>
    %13 = vector.broadcast %12 : vector<1x72xf32> to vector<2x72xf32>
    %14 = arith.addf %11, %13 : vector<2x72xf32>
    %c0_11 = arith.constant 0 : index
    %c0_12 = arith.constant 0 : index
    %15 = vector.load %arg5[%c0_11, %c0_12] : memref<2x72xf32, #tpu.memory_space<vmem>>, vector<2x72xf32>
    tpu.vector_store %arg5[%c0_11, %c0_12], %14 {strides = array<i32>} : memref<2x72xf32, #tpu.memory_space<vmem>>, vector<2x72xf32>,
    return
  }
}

</mosaic_0001>

<bundles_post_ra>
// kernel: stconv_forward.2
= control target key start
LH: loop header
LB: loop body
LE: loop exit
PB: predicated region body
PF: predicated region fallthrough
CT: control target
= control target key end

     0   :  { %20 = vsyncpa [#allocation3], 0  ;;  %s4250_s0 = inlined_call_operand.vmem [shape: f32[192,3], index: 0, kind: input, shape index: {}]   ;;  %s4251_s1 = inlined_call_operand.vmem [shape: f32[12,16], index: 1, kind: input, shape index: {}]   ;;  %s4252_s2 = inlined_call_operand.hbm [shape: f32[16,16], index: 2, kind: input, shape index: {}]   ;;  %s4253_s3 = inlined_call_operand.hbm [shape: f32[3,48], index: 3, kind: input, shape index: {}]   ;;  %s4254_s4 = inlined_call_operand.hbm [shape: f32[1,48], index: 4, kind: input, shape index: {}]   ;;  %s4255_s5 = inlined_call_operand.hbm [shape: f32[16,12], index: 5, kind: input, shape index: {}]   ;;  %s4256_s6 = inlined_call_operand.vmem [shape: f32[16,1], index: 6, kind: input, shape index: {}]   ;;  %s4257_s7 = inlined_call_operand.vmem [shape: f32[16,1], index: 7, kind: input, shape index: {}]   ;;  %s4258_s8 = inlined_call_operand.vmem [shape: f32[16,1], index: 8, kind: input, shape index: {}]   ;;  %s4259_s9 = inlined_call_operand.hbm [shape: f32[16,16], index: 9, kind: input, shape index: {}]   ;;  %s4260_s10 = inlined_call_operand.vmem [shape: f32[16,1], index: 10, kind: input, shape index: {}]   ;;  %s4261_s11 = inlined_call_operand.vmem [shape: f32[16,1], index: 11, kind: input, shape index: {}]   ;;  %s4262_s12 = inlined_call_operand.vmem [shape: f32[16,1], index: 12, kind: input, shape index: {}]   ;;  %s4263_s13 = inlined_call_operand.hbm [shape: f32[48,48], index: 13, kind: input, shape index: {}]   ;;  %s4264_s14 = inlined_call_operand.hbm [shape: f32[1,48], index: 14, kind: input, shape index: {}]   ;;  %s4265_s15 = inlined_call_operand.vmem [shape: f32[208,16], index: 15, kind: output, shape index: {}]  }
   0x1   :  { %21 = vsyncpa [#allocation5], 0 }
   0x2   :  { %22 = vsyncpa [#allocation8], 0  ;;  %s46_s20 = sshll.u32 %s4253_s3, 4  ;;  %s47_s20 = int_to_ptr.hbm [resolvable:$true] %s46_s20 }
   0x3   :  { %23 = vsyncpa [#allocation11], 0  ;;  %s3082_s21 = smov [#allocation4]   ;;  %s67_s25 = sshll.u32 %s4255_s5, 4  ;;  %s68_s25 = int_to_ptr.hbm [resolvable:$true] %s67_s25 }
   0x4   :  { %s48_s22 = sshll.u32 %s3082_s21, 4  ;;  %s3083_s26 = smov [#allocation7]   ;;  %s49_s22 = int_to_ptr.vmem [resolvable:$true] %s48_s22 }
   0x5   :  { %51 = dma.hbm_to_vmem [thread:$0]  %s47_s20, 64, %s49_s22, [#allocation5]  }
   0x6   :  { %s69_s27 = sshll.u32 %s3083_s26, 4  ;;  %s105_s30 = sshll.u32 %s4263_s13, 4  ;;  %s70_s27 = int_to_ptr.vmem [resolvable:$true] %s69_s27  ;;  %s106_s30 = int_to_ptr.hbm [resolvable:$true] %s105_s30 }
   0x7   :  { %s3084_s3 = smov 128   ;;  %s3085_s16 = smov 8  }
   0x8   :  { %75 = dma.hbm_to_vmem [thread:$0]  %s68_s25, 256, %s70_s27, [#allocation8], %s3084_s3, %s3084_s3, %s3085_s16  }
   0x9   :  { %s32_s19 = sshll.u32 %s4252_s2, 4  ;;  %s3086_s20 = smov [#allocation10]   ;;  %s33_s19 = int_to_ptr.hbm [resolvable:$true] %s32_s19 }
   0xa   :  { %s107_s21 = sshll.u32 %s3086_s20, 4  ;;  %s3087_s5 = smov [#allocation2]   ;;  %s108_s21 = int_to_ptr.vmem [resolvable:$true] %s107_s21 }
   0xb   :  { %113 = dma.hbm_to_vmem [thread:$0]  %s106_s30, 768, %s108_s21, [#allocation11], %s3084_s3, %s3084_s3, %s3085_s16  }
   0xc   :  { %s34_s22 = sshll.u32 %s3087_s5, 4  ;;  %s57_s13 = sshll.u32 %s4254_s4, 4  ;;  %s35_s22 = int_to_ptr.vmem [resolvable:$true] %s34_s22  ;;  %s58_s13 = int_to_ptr.hbm [resolvable:$true] %s57_s13 }
   0xd   :  { %40 = dma.hbm_to_vmem [thread:$0]  %s33_s19, 256, %s35_s22, [#allocation3], %s3084_s3, %s3084_s3, %s3085_s16  }
   0xe   :  { %s86_s27 = sshll.u32 %s4259_s9, 4  ;;  %s3088_s28 = smov [#allocation6]   ;;  %s87_s27 = int_to_ptr.hbm [resolvable:$true] %s86_s27 }
   0xf   :  { %s59_s2 = sshll.u32 %s3088_s28, 4  ;;  %s3089_s29 = smov [#allocation9]   ;;  %s60_s2 = int_to_ptr.vmem [resolvable:$true] %s59_s2 }
  0x10   :  { %62 = dma.hbm_to_vmem [thread:$0]  %s58_s13, 16, %s60_s2, [#allocation5]  }
  0x11   :  { %s88_s30 = sshll.u32 %s3089_s29, 4  ;;  %s119_s20 = sshll.u32 %s4264_s14, 4  ;;  %s89_s30 = int_to_ptr.vmem [resolvable:$true] %s88_s30  ;;  %s120_s20 = int_to_ptr.hbm [resolvable:$true] %s119_s20 }
  0x12   :  { %94 = dma.hbm_to_vmem [thread:$0]  %s87_s27, 256, %s89_s30, [#allocation8], %s3084_s3, %s3084_s3, %s3085_s16  }
  0x13   :  { %s3090_s4 = smov [#allocation12]  }
  0x14   :  { %s121_s19 = sshll.u32 %s3090_s4, 4  ;;  %s122_s19 = int_to_ptr.vmem [resolvable:$true] %s121_s19 }
  0x15   :  { %124 = dma.hbm_to_vmem [thread:$0]  %s120_s20, 16, %s122_s19, [#allocation11]  }
  0x16   :  { %3074 = dma.done.wait [#allocation3], 256  }
  0x17   :  { %3075 = vsyncadd [#allocation3], 4294967040 }
  0x18   :  { %3076 = dma.done.wait [#allocation5], 80  }
  0x19   :  { %3077 = vsyncadd [#allocation5], 4294967216 }
  0x1a   :  { %3078 = dma.done.wait [#allocation8], 512  }
  0x1b   :  { %3079 = vsyncadd [#allocation8], 4294966784 }
  0x1c   :  { %3080 = dma.done.wait [#allocation11], 784  }
  0x1d   :  { %3081 = vsyncadd [#allocation11], 4294966512  ;;  %vm255_vm0 = vcmask 1042432   ;;  %vm182_vm1 = vcmask 23552   ;;  %v177_v0 = vld [vmem:[#allocation4] sm:$0x7] }
  0x1e   :  { %v153_v1 = vld [vmem:[%s4250_s0] sm:$0xff]  ;;  %v1073_v2 = vld [vmem:[%s4251_s1 + $0x8] sm:$0xf]  ;;  %vm1081_vm2 = vcmask 1043456   ;;  %2524 = vmatpush.msk.msra.mxu0 %vm255_vm0, %v177_v0  ;;  %v155_v4 = vld [vmem:[%s4250_s0 + $0x10] sm:$0xff]  ;;  %v3091_v14 = vmov 0  }
  0x1f   :  { %2525 = vmatmul.msk.f32.vlgmr.msra.gmra.mxu0 %vm182_vm1, %v153_v1  ;;  %v154_v3 = vld [vmem:[%s4250_s0 + $0x8] sm:$0xff]  ;;  %v156_v5 = vld [vmem:[%s4250_s0 + $0x18] sm:$0xff]  ;;  %v157_v6 = vld [vmem:[%s4250_s0 + $0x20] sm:$0xff]  ;;  %2700 = vset.pattern.permute.xlu1 %v3091_v14  ;;  %s3093_s24 = smov 112  }
  0x20   :  { %2573 = vmatpush.msk.msrb.mxu0 %vm1081_vm2, %v1073_v2  ;;  %v158_v7 = vld [vmem:[%s4250_s0 + $0x28] sm:$0xff]  ;;  %v159_v8 = vld [vmem:[%s4250_s0 + $0x30] sm:$0xff]  ;;  %v160_v9 = vld [vmem:[%s4250_s0 + $0x38] sm:$0xff]  ;;  %2699 = vset.pattern.permute.xlu0 %v3091_v14 }
  0x21   :  { %v161_v10 = vld [vmem:[%s4250_s0 + $0x40] sm:$0xff]  ;;  %v162_v12 = vld [vmem:[%s4250_s0 + $0x48] sm:$0xff]  ;;  %2701 = vset.pattern.permute.xlu2 %v3091_v14  ;;  %v163_v15 = vld [vmem:[%s4250_s0 + $0x50] sm:$0xff] }
  0x22   :  { %v1072_v11 = vld [vmem:[%s4251_s1] sm:$0xff]  ;;  %v1151_v13 = vld [vmem:[%s4257_s7 + $0x8] sm:$0xff]  ;;  %v164_v17 = vld [vmem:[%s4250_s0 + $0x58] sm:$0xff] }
  0x23   :  { %1100 = vmatpush.msrb.mxu0 %v1072_v11  ;;  %1159 = vperm.xlu1 %2700, %v1151_v13   ;;  %v1150_v16 = vld [vmem:[%s4257_s7] sm:$0xff]  ;;  %v166_v19 = vld [vmem:[%s4250_s0 + $0x68] sm:$0xff]  ;;  %v167_v21 = vld [vmem:[%s4250_s0 + $0x70] sm:$0xff] }
  0x24   :  { %v165_v18 = vld [vmem:[%s4250_s0 + $0x60] sm:$0xff]  ;;  %v1109_v20 = vld [vmem:[%s4256_s6 + $0x8] sm:$0xff]  ;;  %v168_v24 = vld [vmem:[%s4250_s0 + $0x78] sm:$0xff] }
  0x25   :  { %1117 = vperm.xlu0 %2699, %v1109_v20   ;;  %v1165_v22 = vld [vmem:[%s4258_s8 + $0x8] sm:$0xff]  ;;  %v1108_v23 = vld [vmem:[%s4256_s6] sm:$0xff]  ;;  %v3281_v25 = vld [vmem:[#allocation6] ss:$0 sm:$0xff]  ;;  %s3092_s6 = smov 96  }
  0x26   :  { %1173 = vperm.xlu2 %2701, %v1165_v22   ;;  %v1164_v26 = vld [vmem:[%s4258_s8] sm:$0xff]  ;;  %v170_v32 = vld [vmem:[%s4250_s0 + $0x88] sm:$0xff]  ;;  %v171_v38 = vld [vmem:[%s4250_s0 + $0x90] sm:$0xff] }
  0x27   :  { %2526 = vmatmul.msk.f32.gmra.mxu0 %vm182_vm1, %v154_v3  ;;  %v169_v28 = vld [vmem:[%s4250_s0 + $0x80] sm:$0xff]  ;;  %v172_v47 = vld [vmem:[%s4250_s0 + $0x98] sm:$0xff] }
  0x28   :  { %v173_v63 = vld [vmem:[%s4250_s0 + $0xa0] sm:$0xff] }
  0x2b   :  { %1154 = vperm.xlu1 %2700, %v1150_v16  }
  0x2d   :  { %1112 = vperm.xlu0 %2699, %v1108_v23  }
  0x2e   :  { %1168 = vperm.xlu2 %2701, %v1164_v26  }
  0x2f   :  { %2527 = vmatmul.msk.f32.gmra.mxu0 %vm182_vm1, %v155_v4 }
  0x37   :  { %2528 = vmatmul.msk.f32.gmra.mxu0 %vm182_vm1, %v156_v5 }
  0x3f   :  { %2529 = vmatmul.msk.f32.gmra.mxu0 %vm182_vm1, %v157_v6 }
  0x47   :  { %2530 = vmatmul.msk.f32.gmra.mxu0 %vm182_vm1, %v158_v7 }
  0x4f   :  { %2531 = vmatmul.msk.f32.gmra.mxu0 %vm182_vm1, %v159_v8 }
  0x57   :  { %2532 = vmatmul.msk.f32.gmra.mxu0 %vm182_vm1, %v160_v9 }
  0x5f   :  { %2533 = vmatmul.msk.f32.gmra.mxu0 %vm182_vm1, %v161_v10 }
  0x67   :  { %2534 = vmatmul.msk.f32.gmra.mxu0 %vm182_vm1, %v162_v12 }
  0x6f   :  { %2535 = vmatmul.msk.f32.gmra.mxu0 %vm182_vm1, %v163_v15  ;;  %v174_v15 = vld [vmem:[%s4250_s0 + $0xa8] sm:$0xff] }
  0x77   :  { %2536 = vmatmul.msk.f32.gmra.mxu0 %vm182_vm1, %v164_v17 }
  0x7f   :  { %2537 = vmatmul.msk.f32.gmra.mxu0 %vm182_vm1, %v165_v18 }
  0x87   :  { %2538 = vmatmul.msk.f32.gmra.mxu0 %vm182_vm1, %v166_v19 }
  0x8f   :  { %2539 = vmatmul.msk.f32.gmra.mxu0 %vm182_vm1, %v167_v21 }
  0x97   :  { %2540 = vmatmul.msk.f32.gmra.mxu0 %vm182_vm1, %v168_v24 }
  0x9c   :  { %v276_v27 = vpop.f32.mrf.mxu0 }
  0x9d   :  { %v3290_v29 = vadd.f32 %v3281_v25, %v276_v27 }
  0x9f   :  { %v2549_v30 = vmul.f32 -1.442695, %v3290_v29  ;;  %2541 = vmatmul.msk.f32.gmra.mxu0 %vm182_vm1, %v169_v28  ;;  %948 = vrot.lane.b32.xlu1 %v3290_v29, %s3092_s6 }
  0xa1   :  { %2704 = vpow2.f32 %v2549_v30 }
  0xa4   :  { %v279_v31 = vpop.f32.mrf.mxu0 }
  0xa5   :  { %v3300_v33 = vadd.f32 %v3281_v25, %v279_v31 }
  0xa7   :  { %v2705_v34 = vpop.eup %2704  ;;  %v2550_v35 = vmul.f32 -1.442695, %v3300_v33  ;;  %2542 = vmatmul.msk.f32.gmra.mxu0 %vm182_vm1, %v170_v32 }
  0xa8   :  { %v420_v36 = vadd.f32 1.0, %v2705_v34  ;;  %v175_v34 = vld [vmem:[%s4250_s0 + $0xb0] sm:$0xff] }
  0xa9   :  { %2706 = vpow2.f32 %v2550_v35 }
  0xaa   :  { %2708 = vrcp.f32 %v420_v36  ;;  %v455_v48 = vand.u32 2147483648, %v420_v36  ;;  %v453_v51 = vand.u32 2147483647, %v420_v36  ;;  %vm449_vm4 = vweird.f32 %v420_v36 }
  0xac   :  { %v282_v37 = vpop.f32.mrf.mxu0  ;;  %v456_v57 = vor.u32 1.1754944e-38, %v455_v48  ;;  %vm454_vm6 = vcmp.eq.f32.partialorder %v453_v51, 8.507059e+37 }
  0xad   :  { %v3308_v39 = vadd.f32 %v3281_v25, %v282_v37 }
  0xaf   :  { %v2707_v40 = vpop.eup %2706  ;;  %v2551_v41 = vmul.f32 -1.442695, %v3308_v39  ;;  %2543 = vmatmul.msk.f32.gmra.mxu0 %vm182_vm1, %v171_v38 }
  0xb0   :  { %v2709_v42 = vpop.eup %2708  ;;  %v421_v43 = vadd.f32 1.0, %v2707_v40 }
  0xb1   :  { %2710 = vpow2.f32 %v2551_v41  ;;  %v445_v44 = vmul.f32 %v2709_v42, %v420_v36  ;;  %vm450_vm3 = vweird.f32 %v2709_v42 }
  0xb2   :  { %2712 = vrcp.f32 %v421_v43  ;;  %vm451_vm5 = vmor %vm449_vm4, %vm450_vm3  ;;  %v470_v0 = vand.u32 2147483648, %v421_v43  ;;  %v468_v3 = vand.u32 2147483647, %v421_v43  ;;  %vm464_vm8 = vweird.f32 %v421_v43 }
  0xb3   :  { %v446_v45 = vsub.f32 1.0, %v445_v44 }
  0xb4   :  { %v285_v46 = vpop.f32.mrf.mxu0  ;;  %v471_v9 = vor.u32 1.1754944e-38, %v470_v0  ;;  %vm469_vm10 = vcmp.eq.f32.partialorder %v468_v3, 8.507059e+37 }
  0xb5   :  { %v3316_v49 = vadd.f32 %v3281_v25, %v285_v46  ;;  %v447_v50 = vmul.f32 %v2709_v42, %v446_v45 }
  0xb7   :  { %v2711_v52 = vpop.eup %2710  ;;  %v2552_v53 = vmul.f32 -1.442695, %v3316_v49  ;;  %2544 = vmatmul.msk.f32.gmra.mxu0 %vm182_vm1, %v172_v47  ;;  %v448_v54 = vadd.f32 %v2709_v42, %v447_v50 }
  0xb8   :  { %v2713_v55 = vpop.eup %2712  ;;  %v422_v56 = vadd.f32 1.0, %v2711_v52  ;;  %v176_v52 = vld [vmem:[%s4250_s0 + $0xb8] sm:$0xff] }
  0xb9   :  { %2714 = vpow2.f32 %v2552_v53  ;;  %v452_v58 = vsel %vm451_vm5, %v2709_v42, %v448_v54  ;;  %v460_v59 = vmul.f32 %v2713_v55, %v421_v43  ;;  %vm465_vm7 = vweird.f32 %v2713_v55 }
  0xba   :  { %2716 = vrcp.f32 %v422_v56  ;;  %v457_v60 = vsel %vm454_vm6, %v456_v57, %v452_v58  ;;  %vm466_vm9 = vmor %vm464_vm8, %vm465_vm7  ;;  %v485_v16 = vand.u32 2147483648, %v422_v56  ;;  %v483_v19 = vand.u32 2147483647, %v422_v56 }
  0xbb   :  { %828 = vrot.lane.b32.xlu0 %v457_v60, %s3093_s24  ;;  %v461_v61 = vsub.f32 1.0, %v460_v59  ;;  %vm479_vm12 = vweird.f32 %v422_v56 }
  0xbc   :  { %v288_v62 = vpop.f32.mrf.mxu0  ;;  %v486_v26 = vor.u32 1.1754944e-38, %v485_v16  ;;  %vm484_vm14 = vcmp.eq.f32.partialorder %v483_v19, 8.507059e+37 }
  0xbd   :  { %v3325_v1 = vadd.f32 %v3281_v25, %v288_v62  ;;  %v462_v2 = vmul.f32 %v2713_v55, %v461_v61 }
  0xbf   :  { %v2715_v4 = vpop.eup %2714  ;;  %v2553_v5 = vmul.f32 -1.442695, %v3325_v1  ;;  %2545 = vmatmul.msk.f32.gmra.mxu0 %vm182_vm1, %v173_v63  ;;  %v463_v6 = vadd.f32 %v2713_v55, %v462_v2 }
  0xc0   :  { %v2717_v7 = vpop.eup %2716  ;;  %v423_v8 = vadd.f32 1.0, %v2715_v4 }
  0xc1   :  { %2718 = vpow2.f32 %v2553_v5  ;;  %v467_v10 = vsel %vm466_vm9, %v2713_v55, %v463_v6  ;;  %v475_v11 = vmul.f32 %v2717_v7, %v422_v56  ;;  %vm480_vm11 = vweird.f32 %v2717_v7  ;;  %v1070_v5 = vld [vmem:[#allocation7] sm:$0xff] }
  0xc2   :  { %2720 = vrcp.f32 %v423_v8  ;;  %v472_v12 = vsel %vm469_vm10, %v471_v9, %v467_v10  ;;  %vm481_vm13 = vmor %vm479_vm12, %vm480_vm11  ;;  %v500_v35 = vand.u32 2147483648, %v423_v8  ;;  %v498_v38 = vand.u32 2147483647, %v423_v8 }
  0xc3   :  { %830 = vrot.lane.b32.xlu2 %v472_v12, %s3093_s24  ;;  %950 = vrot.lane.b32.xlu0 %v3300_v33, %s3092_s6  ;;  %v476_v13 = vsub.f32 1.0, %v475_v11  ;;  %vm494_vm0 = vweird.f32 %v423_v8 }
  0xc4   :  { %v291_v14 = vpop.f32.mrf.mxu0  ;;  %v501_v45 = vor.u32 1.1754944e-38, %v500_v35  ;;  %vm499_vm3 = vcmp.eq.f32.partialorder %v498_v38, 8.507059e+37 }
  0xc5   :  { %v3336_v17 = vadd.f32 %v3281_v25, %v291_v14  ;;  %v477_v18 = vmul.f32 %v2717_v7, %v476_v13 }
  0xc7   :  { %v2719_v20 = vpop.eup %2718  ;;  %v2554_v21 = vmul.f32 -1.442695, %v3336_v17  ;;  %2546 = vmatmul.msk.f32.gmra.mxu0 %vm182_vm1, %v174_v15  ;;  %v478_v22 = vadd.f32 %v2717_v7, %v477_v18 }
  0xc8   :  { %v2721_v23 = vpop.eup %2720  ;;  %v424_v24 = vadd.f32 1.0, %v2719_v20 }
  0xc9   :  { %2722 = vpow2.f32 %v2554_v21  ;;  %v482_v27 = vsel %vm481_vm13, %v2717_v7, %v478_v22  ;;  %v490_v28 = vmul.f32 %v2721_v23, %v423_v8  ;;  %vm495_vm15 = vweird.f32 %v2721_v23  ;;  %v1071_v22 = vld [vmem:[#allocation7 + $0x8] sm:$0xff] }
  0xca   :  { %2724 = vrcp.f32 %v424_v24  ;;  %v487_v30 = vsel %vm484_vm14, %v486_v26, %v482_v27  ;;  %vm496_vm2 = vmor %vm494_vm0, %vm495_vm15  ;;  %v515_v53 = vand.u32 2147483648, %v424_v24  ;;  %v513_v56 = vand.u32 2147483647, %v424_v24 }
  0xcb   :  { %952 = vrot.lane.b32.xlu2 %v3308_v39, %s3092_s6  ;;  %832 = vrot.lane.b32.xlu1 %v487_v30, %s3093_s24  ;;  %v491_v31 = vsub.f32 1.0, %v490_v28  ;;  %vm509_vm5 = vweird.f32 %v424_v24 }
  0xcc   :  { %v294_v32 = vpop.f32.mrf.mxu0  ;;  %v516_v62 = vor.u32 1.1754944e-38, %v515_v53  ;;  %vm514_vm7 = vcmp.eq.f32.partialorder %v513_v56, 8.507059e+37 }
  0xcd   :  { %v3347_v36 = vadd.f32 %v3281_v25, %v294_v32  ;;  %v492_v37 = vmul.f32 %v2721_v23, %v491_v31 }
  0xcf   :  { %v2723_v40 = vpop.eup %2722  ;;  %v2555_v41 = vmul.f32 -1.442695, %v3347_v36  ;;  %2547 = vmatmul.msk.f32.gmra.mxu0 %vm182_vm1, %v175_v34  ;;  %v493_v42 = vadd.f32 %v2721_v23, %v492_v37 }
  0xd0   :  { %v2725_v43 = vpop.eup %2724  ;;  %v425_v44 = vadd.f32 1.0, %v2723_v40 }
  0xd1   :  { %2726 = vpow2.f32 %v2555_v41  ;;  %v497_v46 = vsel %vm496_vm2, %v2721_v23, %v493_v42  ;;  %v505_v47 = vmul.f32 %v2725_v43, %v424_v24  ;;  %vm510_vm4 = vweird.f32 %v2725_v43 }
  0xd2   :  { %2728 = vrcp.f32 %v425_v44  ;;  %v502_v48 = vsel %vm499_vm3, %v501_v45, %v497_v46  ;;  %vm511_vm6 = vmor %vm509_vm5, %vm510_vm4  ;;  %v530_v6 = vand.u32 2147483648, %v425_v44  ;;  %v528_v9 = vand.u32 2147483647, %v425_v44 }
  0xd3   :  { %954 = vrot.lane.b32.xlu1 %v3316_v49, %s3092_s6  ;;  %834 = vrot.lane.b32.xlu0 %v502_v48, %s3093_s24  ;;  %v506_v50 = vsub.f32 1.0, %v505_v47  ;;  %vm524_vm9 = vweird.f32 %v425_v44 }
  0xd4   :  { %v297_v51 = vpop.f32.mrf.mxu0  ;;  %v531_v15 = vor.u32 1.1754944e-38, %v530_v6  ;;  %vm529_vm11 = vcmp.eq.f32.partialorder %v528_v9, 8.507059e+37 }
  0xd5   :  { %v3358_v54 = vadd.f32 %v3281_v25, %v297_v51  ;;  %v507_v55 = vmul.f32 %v2725_v43, %v506_v50 }
  0xd7   :  { %v2727_v57 = vpop.eup %2726  ;;  %v2556_v58 = vmul.f32 -1.442695, %v3358_v54  ;;  %2548 = vmatmul.msk.f32.gmra.mxu0 %vm182_vm1, %v176_v52  ;;  %v508_v59 = vadd.f32 %v2725_v43, %v507_v55  ;;  %vm1074_vm1 = vcmask 97280  }
  0xd8   :  { %v2729_v60 = vpop.eup %2728  ;;  %v426_v61 = vadd.f32 1.0, %v2727_v57 }
  0xd9   :  { %2730 = vpow2.f32 %v2556_v58  ;;  %v512_v63 = vsel %vm511_vm6, %v2725_v43, %v508_v59  ;;  %v520_v0 = vmul.f32 %v2729_v60, %v425_v44  ;;  %vm525_vm8 = vweird.f32 %v2729_v60 }
  0xda   :  { %2732 = vrcp.f32 %v426_v61  ;;  %v517_v2 = vsel %vm514_vm7, %v516_v62, %v512_v63  ;;  %vm526_vm10 = vmor %vm524_vm9, %vm525_vm8  ;;  %v545_v23 = vand.u32 2147483648, %v426_v61  ;;  %v543_v27 = vand.u32 2147483647, %v426_v61 }
  0xdb   :  { %836 = vrot.lane.b32.xlu2 %v517_v2, %s3093_s24  ;;  %956 = vrot.lane.b32.xlu0 %v3325_v1, %s3092_s6  ;;  %v521_v3 = vsub.f32 1.0, %v520_v0  ;;  %vm539_vm13 = vweird.f32 %v426_v61 }
  0xdc   :  { %v300_v4 = vpop.f32.mrf.mxu0  ;;  %v546_v35 = vor.u32 1.1754944e-38, %v545_v23  ;;  %vm544_vm15 = vcmp.eq.f32.partialorder %v543_v27, 8.507059e+37 }
  0xdd   :  { %v3366_v7 = vadd.f32 %v3281_v25, %v300_v4  ;;  %v522_v8 = vmul.f32 %v2729_v60, %v521_v3 }
  0xdf   :  { %v2731_v10 = vpop.eup %2730  ;;  %v2557_v11 = vmul.f32 -1.442695, %v3366_v7  ;;  %2574 = vmatmul.msk.f32.vlgmr.msrb.gmra.mxu0 %vm1074_vm1, %v1070_v5  ;;  %v523_v12 = vadd.f32 %v2729_v60, %v522_v8 }
  0xe0   :  { %v2733_v13 = vpop.eup %2732  ;;  %v427_v14 = vadd.f32 1.0, %v2731_v10 }
  0xe1   :  { %2734 = vpow2.f32 %v2557_v11  ;;  %v527_v16 = vsel %vm526_vm10, %v2729_v60, %v523_v12  ;;  %v535_v18 = vmul.f32 %v2733_v13, %v426_v61  ;;  %vm540_vm12 = vweird.f32 %v2733_v13 }
  0xe2   :  { %2736 = vrcp.f32 %v427_v14  ;;  %v532_v19 = vsel %vm529_vm11, %v531_v15, %v527_v16  ;;  %vm541_vm14 = vmor %vm539_vm13, %vm540_vm12  ;;  %v560_v43 = vand.u32 2147483648, %v427_v14  ;;  %v558_v46 = vand.u32 2147483647, %v427_v14 }
  0xe3   :  { %958 = vrot.lane.b32.xlu2 %v3336_v17, %s3092_s6  ;;  %838 = vrot.lane.b32.xlu1 %v532_v19, %s3093_s24  ;;  %v536_v20 = vsub.f32 1.0, %v535_v18  ;;  %vm554_vm2 = vweird.f32 %v427_v14 }
  0xe4   :  { %v303_v21 = vpop.f32.mrf.mxu0  ;;  %v561_v53 = vor.u32 1.1754944e-38, %v560_v43  ;;  %vm559_vm4 = vcmp.eq.f32.partialorder %v558_v46, 8.507059e+37 }
  0xe5   :  { %v3374_v24 = vadd.f32 %v3281_v25, %v303_v21  ;;  %v537_v26 = vmul.f32 %v2733_v13, %v536_v20 }
  0xe7   :  { %v2735_v28 = vpop.eup %2734  ;;  %v2558_v30 = vmul.f32 -1.442695, %v3374_v24  ;;  %2575 = vmatmul.msk.f32.gmra.mxu0 %vm1074_vm1, %v1071_v22  ;;  %v538_v31 = vadd.f32 %v2733_v13, %v537_v26 }
  0xe8   :  { %v2737_v32 = vpop.eup %2736  ;;  %v428_v34 = vadd.f32 1.0, %v2735_v28 }
  0xe9   :  { %2738 = vpow2.f32 %v2558_v30  ;;  %v542_v37 = vsel %vm541_vm14, %v2733_v13, %v538_v31  ;;  %v550_v38 = vmul.f32 %v2737_v32, %v427_v14  ;;  %vm555_vm0 = vweird.f32 %v2737_v32 }
  0xea   :  { %2740 = vrcp.f32 %v428_v34  ;;  %v547_v40 = vsel %vm544_vm15, %v546_v35, %v542_v37  ;;  %vm556_vm3 = vmor %vm554_vm2, %vm555_vm0  ;;  %v575_v60 = vand.u32 2147483648, %v428_v34  ;;  %v573_v63 = vand.u32 2147483647, %v428_v34 }
  0xeb   :  { %960 = vrot.lane.b32.xlu1 %v3347_v36, %s3092_s6  ;;  %840 = vrot.lane.b32.xlu0 %v547_v40, %s3093_s24  ;;  %v551_v41 = vsub.f32 1.0, %v550_v38  ;;  %vm569_vm6 = vweird.f32 %v428_v34 }
  0xec   :  { %v306_v42 = vpop.f32.mrf.mxu0  ;;  %v576_v6 = vor.u32 1.1754944e-38, %v575_v60  ;;  %vm574_vm1 = vcmp.eq.f32.partialorder %v573_v63, 8.507059e+37 }
  0xed   :  { %v3382_v44 = vadd.f32 %v3281_v25, %v306_v42  ;;  %v552_v45 = vmul.f32 %v2737_v32, %v551_v41 }
  0xef   :  { %v2739_v47 = vpop.eup %2738  ;;  %v2559_v48 = vmul.f32 -1.442695, %v3382_v44  ;;  %v553_v50 = vadd.f32 %v2737_v32, %v552_v45 }
  0xf0   :  { %v2741_v51 = vpop.eup %2740  ;;  %v429_v52 = vadd.f32 1.0, %v2739_v47 }
  0xf1   :  { %2742 = vpow2.f32 %v2559_v48  ;;  %v557_v55 = vsel %vm556_vm3, %v2737_v32, %v553_v50  ;;  %v565_v56 = vmul.f32 %v2741_v51, %v428_v34  ;;  %vm570_vm5 = vweird.f32 %v2741_v51 }
  0xf2   :  { %2744 = vrcp.f32 %v429_v52  ;;  %v562_v57 = vsel %vm559_vm4, %v561_v53, %v557_v55  ;;  %vm571_vm7 = vmor %vm569_vm6, %vm570_vm5  ;;  %v590_v13 = vand.u32 2147483648, %v429_v52  ;;  %v588_v16 = vand.u32 2147483647, %v429_v52 }
  0xf3   :  { %842 = vrot.lane.b32.xlu2 %v562_v57, %s3093_s24  ;;  %962 = vrot.lane.b32.xlu0 %v3358_v54, %s3092_s6  ;;  %v566_v58 = vsub.f32 1.0, %v565_v56  ;;  %vm584_vm9 = vweird.f32 %v429_v52 }
  0xf4   :  { %v309_v59 = vpop.f32.mrf.mxu0  ;;  %v591_v23 = vor.u32 1.1754944e-38, %v590_v13  ;;  %vm589_vm11 = vcmp.eq.f32.partialorder %v588_v16, 8.507059e+37 }
  0xf5   :  { %v3389_v61 = vadd.f32 %v3281_v25, %v309_v59  ;;  %v567_v62 = vmul.f32 %v2741_v51, %v566_v58 }
  0xf7   :  { %v2743_v0 = vpop.eup %2742  ;;  %v2560_v2 = vmul.f32 -1.442695, %v3389_v61  ;;  %v568_v3 = vadd.f32 %v2741_v51, %v567_v62 }
  0xf8   :  { %v2745_v4 = vpop.eup %2744  ;;  %v430_v5 = vadd.f32 1.0, %v2743_v0 }
  0xf9   :  { %2746 = vpow2.f32 %v2560_v2  ;;  %v572_v8 = vsel %vm571_vm7, %v2741_v51, %v568_v3  ;;  %v580_v9 = vmul.f32 %v2745_v4, %v429_v52  ;;  %vm585_vm8 = vweird.f32 %v2745_v4  ;;  %v1211_v2 = vld [vmem:[%s4260_s10] sm:$0xff] }
  0xfa   :  { %2748 = vrcp.f32 %v430_v5  ;;  %v577_v10 = vsel %vm574_vm1, %v576_v6, %v572_v8  ;;  %vm586_vm10 = vmor %vm584_vm9, %vm585_vm8  ;;  %v605_v32 = vand.u32 2147483648, %v430_v5  ;;  %v603_v37 = vand.u32 2147483647, %v430_v5 }
  0xfb   :  { %964 = vrot.lane.b32.xlu2 %v3366_v7, %s3092_s6  ;;  %844 = vrot.lane.b32.xlu1 %v577_v10, %s3093_s24  ;;  %v581_v11 = vsub.f32 1.0, %v580_v9  ;;  %vm599_vm13 = vweird.f32 %v430_v5 }
  0xfc   :  { %v312_v12 = vpop.f32.mrf.mxu0  ;;  %v606_v45 = vor.u32 1.1754944e-38, %v605_v32  ;;  %vm604_vm15 = vcmp.eq.f32.partialorder %v603_v37, 8.507059e+37 }
  0xfd   :  { %v3396_v14 = vadd.f32 %v3281_v25, %v312_v12  ;;  %v582_v15 = vmul.f32 %v2745_v4, %v581_v11 }
  0xff   :  { %v2747_v18 = vpop.eup %2746  ;;  %v2561_v19 = vmul.f32 -1.442695, %v3396_v14  ;;  %v583_v20 = vadd.f32 %v2745_v4, %v582_v15 }
 0x100   :  { %v2749_v21 = vpop.eup %2748  ;;  %v431_v22 = vadd.f32 1.0, %v2747_v18 }
 0x101   :  { %2750 = vpow2.f32 %v2561_v19  ;;  %v587_v26 = vsel %vm586_vm10, %v2745_v4, %v583_v20  ;;  %v595_v27 = vmul.f32 %v2749_v21, %v430_v5  ;;  %vm600_vm12 = vweird.f32 %v2749_v21  ;;  %v1266_v19 = vld [vmem:[%s4262_s12] sm:$0xff] }
 0x102   :  { %2752 = vrcp.f32 %v431_v22  ;;  %v592_v28 = vsel %vm589_vm11, %v591_v23, %v587_v26  ;;  %vm601_vm14 = vmor %vm599_vm13, %vm600_vm12  ;;  %v620_v52 = vand.u32 2147483648, %v431_v22  ;;  %v618_v56 = vand.u32 2147483647, %v431_v22  ;;  %v1252_v20 = vld [vmem:[%s4261_s11] sm:$0xff] }
 0x103   :  { %966 = vrot.lane.b32.xlu1 %v3374_v24, %s3092_s6  ;;  %846 = vrot.lane.b32.xlu0 %v592_v28, %s3093_s24  ;;  %v596_v30 = vsub.f32 1.0, %v595_v27  ;;  %vm614_vm2 = vweird.f32 %v431_v22 }
 0x104   :  { %v315_v31 = vpop.f32.mrf.mxu0  ;;  %v621_v63 = vor.u32 1.1754944e-38, %v620_v52  ;;  %vm619_vm4 = vcmp.eq.f32.partialorder %v618_v56, 8.507059e+37 }
 0x105   :  { %v3403_v34 = vadd.f32 %v3281_v25, %v315_v31  ;;  %v597_v35 = vmul.f32 %v2749_v21, %v596_v30 }
 0x107   :  { %v2751_v38 = vpop.eup %2750  ;;  %v2562_v40 = vmul.f32 -1.442695, %v3403_v34  ;;  %v598_v41 = vadd.f32 %v2749_v21, %v597_v35 }
 0x108   :  { %v2753_v42 = vpop.eup %2752  ;;  %v432_v43 = vadd.f32 1.0, %v2751_v38 }
 0x109   :  { %2754 = vpow2.f32 %v2562_v40  ;;  %v602_v46 = vsel %vm601_vm14, %v2749_v21, %v598_v41  ;;  %v610_v47 = vmul.f32 %v2753_v42, %v431_v22  ;;  %vm615_vm0 = vweird.f32 %v2753_v42 }
 0x10a   :  { %2756 = vrcp.f32 %v432_v43  ;;  %v607_v48 = vsel %vm604_vm15, %v606_v45, %v602_v46  ;;  %vm616_vm3 = vmor %vm614_vm2, %vm615_vm0  ;;  %v635_v8 = vand.u32 2147483648, %v432_v43  ;;  %v633_v11 = vand.u32 2147483647, %v432_v43 }
 0x10b   :  { %848 = vrot.lane.b32.xlu2 %v607_v48, %s3093_s24  ;;  %968 = vrot.lane.b32.xlu0 %v3382_v44, %s3092_s6  ;;  %v611_v50 = vsub.f32 1.0, %v610_v47  ;;  %vm629_vm6 = vweird.f32 %v432_v43 }
 0x10c   :  { %v318_v51 = vpop.f32.mrf.mxu0  ;;  %v636_v21 = vor.u32 1.1754944e-38, %v635_v8  ;;  %vm634_vm1 = vcmp.eq.f32.partialorder %v633_v11, 8.507059e+37 }
 0x10d   :  { %v3410_v53 = vadd.f32 %v3281_v25, %v318_v51  ;;  %v612_v55 = vmul.f32 %v2753_v42, %v611_v50 }
 0x10f   :  { %v2755_v57 = vpop.eup %2754  ;;  %v2563_v58 = vmul.f32 -1.442695, %v3410_v53  ;;  %v613_v59 = vadd.f32 %v2753_v42, %v612_v55 }
 0x110   :  { %v2757_v60 = vpop.eup %2756  ;;  %v433_v62 = vadd.f32 1.0, %v2755_v57 }
 0x111   :  { %2758 = vpow2.f32 %v2563_v58  ;;  %v617_v0 = vsel %vm616_vm3, %v2753_v42, %v613_v59  ;;  %v625_v3 = vmul.f32 %v2757_v60, %v432_v43  ;;  %vm630_vm5 = vweird.f32 %v2757_v60 }
 0x112   :  { %2760 = vrcp.f32 %v433_v62  ;;  %v622_v4 = vsel %vm619_vm4, %v621_v63, %v617_v0  ;;  %vm631_vm7 = vmor %vm629_vm6, %vm630_vm5  ;;  %v650_v30 = vand.u32 2147483648, %v433_v62  ;;  %v648_v35 = vand.u32 2147483647, %v433_v62 }
 0x113   :  { %970 = vrot.lane.b32.xlu2 %v3389_v61, %s3092_s6  ;;  %850 = vrot.lane.b32.xlu1 %v622_v4, %s3093_s24  ;;  %v626_v5 = vsub.f32 1.0, %v625_v3  ;;  %vm644_vm9 = vweird.f32 %v433_v62 }
 0x114   :  { %1215 = vperm.xlu0 %2699, %v1211_v2   ;;  %v321_v6 = vpop.f32.mrf.mxu0  ;;  %v651_v43 = vor.u32 1.1754944e-38, %v650_v30  ;;  %vm649_vm11 = vcmp.eq.f32.partialorder %v648_v35, 8.507059e+37 }
 0x115   :  { %v3420_v9 = vadd.f32 %v3281_v25, %v321_v6  ;;  %v627_v10 = vmul.f32 %v2757_v60, %v626_v5 }
 0x117   :  { %v2759_v12 = vpop.eup %2758  ;;  %v2564_v13 = vmul.f32 -1.442695, %v3420_v9  ;;  %v628_v15 = vadd.f32 %v2757_v60, %v627_v10 }
 0x118   :  { %v2761_v16 = vpop.eup %2760  ;;  %v434_v18 = vadd.f32 1.0, %v2759_v12 }
 0x119   :  { %2762 = vpow2.f32 %v2564_v13  ;;  %v632_v22 = vsel %vm631_vm7, %v2757_v60, %v628_v15  ;;  %v640_v23 = vmul.f32 %v2761_v16, %v433_v62  ;;  %vm645_vm8 = vweird.f32 %v2761_v16 }
 0x11a   :  { %2764 = vrcp.f32 %v434_v18  ;;  %v637_v26 = vsel %vm634_vm1, %v636_v21, %v632_v22  ;;  %vm646_vm10 = vmor %vm644_vm9, %vm645_vm8  ;;  %v665_v51 = vand.u32 2147483648, %v434_v18  ;;  %v663_v56 = vand.u32 2147483647, %v434_v18 }
 0x11b   :  { %1270 = vperm.xlu2 %2701, %v1266_v19   ;;  %1256 = vperm.xlu1 %2700, %v1252_v20   ;;  %v641_v27 = vsub.f32 1.0, %v640_v23  ;;  %vm659_vm13 = vweird.f32 %v434_v18 }
 0x11c   :  { %852 = vrot.lane.b32.xlu0 %v637_v26, %s3093_s24  ;;  %v324_v28 = vpop.f32.mrf.mxu0  ;;  %v666_v63 = vor.u32 1.1754944e-38, %v665_v51  ;;  %vm664_vm15 = vcmp.eq.f32.partialorder %v663_v56, 8.507059e+37 }
 0x11d   :  { %v3431_v31 = vadd.f32 %v3281_v25, %v324_v28  ;;  %v642_v32 = vmul.f32 %v2761_v16, %v641_v27 }
 0x11f   :  { %v2763_v37 = vpop.eup %2762  ;;  %v2565_v38 = vmul.f32 -1.442695, %v3431_v31  ;;  %v643_v40 = vadd.f32 %v2761_v16, %v642_v32 }
 0x120   :  { %v2765_v41 = vpop.eup %2764  ;;  %v435_v42 = vadd.f32 1.0, %v2763_v37 }
 0x121   :  { %2766 = vpow2.f32 %v2565_v38  ;;  %v647_v45 = vsel %vm646_vm10, %v2761_v16, %v643_v40  ;;  %v655_v46 = vmul.f32 %v2765_v41, %v434_v18  ;;  %vm660_vm12 = vweird.f32 %v2765_v41 }
 0x122   :  { %2768 = vrcp.f32 %v435_v42  ;;  %v652_v47 = vsel %vm649_vm11, %v651_v43, %v647_v45  ;;  %vm661_vm14 = vmor %vm659_vm13, %vm660_vm12  ;;  %v680_v6 = vand.u32 2147483648, %v435_v42  ;;  %v678_v11 = vand.u32 2147483647, %v435_v42 }
 0x123   :  { %854 = vrot.lane.b32.xlu2 %v652_v47, %s3093_s24  ;;  %972 = vrot.lane.b32.xlu1 %v3396_v14, %s3092_s6  ;;  %v656_v48 = vsub.f32 1.0, %v655_v46  ;;  %vm674_vm2 = vweird.f32 %v435_v42  ;;  %v1069_v47 = vld [vmem:[#allocation2 + $0x8] sm:$0xff] }
 0x124   :  { %974 = vrot.lane.b32.xlu0 %v3403_v34, %s3092_s6  ;;  %v327_v50 = vpop.f32.mrf.mxu0  ;;  %v681_v19 = vor.u32 1.1754944e-38, %v680_v6  ;;  %vm679_vm4 = vcmp.eq.f32.partialorder %v678_v11, 8.507059e+37  ;;  %1141 = vmatpush.msra.mxu0 %v1069_v47 }
 0x125   :  { %v3440_v52 = vadd.f32 %v3281_v25, %v327_v50  ;;  %v657_v55 = vmul.f32 %v2765_v41, %v656_v48  ;;  %2682 = vmatpush.msra.mxu2 %v1069_v47  ;;  %2684 = vmatpush.msra.mxu1 %v1069_v47 }
 0x127   :  { %v2767_v57 = vpop.eup %2766  ;;  %v2566_v58 = vmul.f32 -1.442695, %v3440_v52  ;;  %v658_v59 = vadd.f32 %v2765_v41, %v657_v55  ;;  %v1068_v55 = vld [vmem:[#allocation2] sm:$0xff] }
 0x128   :  { %v2769_v60 = vpop.eup %2768  ;;  %v436_v62 = vadd.f32 1.0, %v2767_v57  ;;  %1142 = vmatpush.msra.mxu0 %v1068_v55  ;;  %2683 = vmatpush.msra.mxu2 %v1068_v55 }
 0x129   :  { %2770 = vpow2.f32 %v2566_v58  ;;  %v662_v0 = vsel %vm661_vm14, %v2765_v41, %v658_v59  ;;  %v670_v2 = vmul.f32 %v2769_v60, %v435_v42  ;;  %vm675_vm0 = vweird.f32 %v2769_v60  ;;  %2685 = vmatpush.msra.mxu1 %v1068_v55 }
 0x12a   :  { %2772 = vrcp.f32 %v436_v62  ;;  %v667_v3 = vsel %vm664_vm15, %v666_v63, %v662_v0  ;;  %vm676_vm3 = vmor %vm674_vm2, %vm675_vm0  ;;  %v695_v27 = vand.u32 2147483648, %v436_v62  ;;  %v693_v32 = vand.u32 2147483647, %v436_v62  ;;  %1243 = vmatpush.msrb.mxu0 %v1069_v47 }
 0x12b   :  { %976 = vrot.lane.b32.xlu2 %v3410_v53, %s3092_s6  ;;  %856 = vrot.lane.b32.xlu1 %v667_v3, %s3093_s24  ;;  %v671_v4 = vsub.f32 1.0, %v670_v2  ;;  %vm689_vm6 = vweird.f32 %v436_v62 }
 0x12c   :  { %v330_v5 = vpop.f32.mrf.mxu0  ;;  %v696_v42 = vor.u32 1.1754944e-38, %v695_v27  ;;  %vm694_vm1 = vcmp.eq.f32.partialorder %v693_v32, 8.507059e+37  ;;  %1244 = vmatpush.msrb.mxu0 %v1068_v55 }
 0x12d   :  { %v3447_v8 = vadd.f32 %v3281_v25, %v330_v5  ;;  %v672_v10 = vmul.f32 %v2769_v60, %v671_v4 }
 0x12f   :  { %v2771_v12 = vpop.eup %2770  ;;  %v2567_v13 = vmul.f32 -1.442695, %v3447_v8  ;;  %v673_v15 = vadd.f32 %v2769_v60, %v672_v10 }
 0x130   :  { %v2773_v16 = vpop.eup %2772  ;;  %v437_v18 = vadd.f32 1.0, %v2771_v12 }
 0x131   :  { %2774 = vpow2.f32 %v2567_v13  ;;  %v677_v20 = vsel %vm676_vm3, %v2769_v60, %v673_v15  ;;  %v685_v21 = vmul.f32 %v2773_v16, %v436_v62  ;;  %vm690_vm5 = vweird.f32 %v2773_v16 }
 0x132   :  { %2776 = vrcp.f32 %v437_v18  ;;  %v682_v22 = vsel %vm679_vm4, %v681_v19, %v677_v20  ;;  %vm691_vm7 = vmor %vm689_vm6, %vm690_vm5  ;;  %v710_v51 = vand.u32 2147483648, %v437_v18  ;;  %v708_v58 = vand.u32 2147483647, %v437_v18 }
 0x133   :  { %978 = vrot.lane.b32.xlu1 %v3420_v9, %s3092_s6  ;;  %858 = vrot.lane.b32.xlu0 %v682_v22, %s3093_s24  ;;  %v686_v23 = vsub.f32 1.0, %v685_v21  ;;  %vm704_vm9 = vweird.f32 %v437_v18 }
 0x134   :  { %v333_v26 = vpop.f32.mrf.mxu0  ;;  %v711_v2 = vor.u32 1.1754944e-38, %v710_v51  ;;  %vm709_vm11 = vcmp.eq.f32.partialorder %v708_v58, 8.507059e+37  ;;  %v3487_v58 = vpop.permute.xlu1 %1159 }
 0x135   :  { %v3454_v28 = vadd.f32 %v3281_v25, %v333_v26  ;;  %v687_v30 = vmul.f32 %v2773_v16, %v686_v23  ;;  %v1285_v23 = vld [vmem:[#allocation10 + $0x18] sm:$0xff] }
 0x136   :  { %1380 = vmatpush.msrb.mxu2 %v1285_v23 }
 0x137   :  { %v2775_v35 = vpop.eup %2774  ;;  %v2568_v37 = vmul.f32 -1.442695, %v3454_v28  ;;  %v688_v38 = vadd.f32 %v2773_v16, %v687_v30 }
 0x138   :  { %v2777_v40 = vpop.eup %2776  ;;  %v3457_v41 = vadd.f32 1.0, %v2775_v35  ;;  %v1284_v35 = vld [vmem:[#allocation10 + $0x10] sm:$0xff] }
 0x139   :  { %2778 = vpow2.f32 %v2568_v37  ;;  %v692_v43 = vsel %vm691_vm7, %v2773_v16, %v688_v38  ;;  %v700_v45 = vmul.f32 %v2777_v40, %v437_v18  ;;  %vm705_vm8 = vweird.f32 %v2777_v40  ;;  %v3481_v37 = vpop.permute.xlu0 %1117  ;;  %1381 = vmatpush.msrb.mxu2 %v1284_v35 }
 0x13a   :  { %2780 = vrcp.f32 %v3457_v41  ;;  %v697_v46 = vsel %vm694_vm1, %v696_v42, %v692_v43  ;;  %vm706_vm10 = vmor %vm704_vm9, %vm705_vm8  ;;  %v725_v11 = vand.u32 2147483648, %v3457_v41  ;;  %v723_v15 = vand.u32 2147483647, %v3457_v41 }
 0x13b   :  { %860 = vrot.lane.b32.xlu2 %v697_v46, %s3093_s24  ;;  %980 = vrot.lane.b32.xlu0 %v3431_v31, %s3092_s6  ;;  %v701_v48 = vsub.f32 1.0, %v700_v45  ;;  %vm719_vm13 = vweird.f32 %v3457_v41  ;;  %vm1120_vm8 = vcmask 130048  }
 0x13c   :  { %v336_v50 = vpop.f32.mrf.mxu0  ;;  %v726_v22 = vor.u32 1.1754944e-38, %v725_v11  ;;  %vm724_vm15 = vcmp.eq.f32.partialorder %v723_v15, 8.507059e+37  ;;  %v3502_v23 = vpop.permute.xlu1 %1154 }
 0x13d   :  { %v3464_v56 = vadd.f32 %v3281_v25, %v336_v50  ;;  %v702_v57 = vmul.f32 %v2777_v40, %v701_v48 }
 0x13f   :  { %v2779_v59 = vpop.eup %2778  ;;  %v2569_v60 = vmul.f32 -1.442695, %v3464_v56  ;;  %v703_v62 = vadd.f32 %v2777_v40, %v702_v57 }
 0x140   :  { %v2781_v63 = vpop.eup %2780  ;;  %v439_v0 = vadd.f32 1.0, %v2779_v59 }
 0x141   :  { %2782 = vpow2.f32 %v2569_v60  ;;  %v707_v3 = vsel %vm706_vm10, %v2777_v40, %v703_v62  ;;  %v715_v4 = vmul.f32 %v2781_v63, %v3457_v41  ;;  %vm720_vm12 = vweird.f32 %v2781_v63 }
 0x142   :  { %2784 = vrcp.f32 %v439_v0  ;;  %v712_v5 = vsel %vm709_vm11, %v711_v2, %v707_v3  ;;  %vm721_vm14 = vmor %vm719_vm13, %vm720_vm12  ;;  %v740_v40 = vand.u32 2147483648, %v439_v0  ;;  %v738_v43 = vand.u32 2147483647, %v439_v0 }
 0x143   :  { %982 = vrot.lane.b32.xlu2 %v3440_v52, %s3092_s6  ;;  %862 = vrot.lane.b32.xlu1 %v712_v5, %s3093_s24  ;;  %v716_v6 = vsub.f32 1.0, %v715_v4  ;;  %vm734_vm2 = vweird.f32 %v439_v0  ;;  %v3494_v4 = vpop.permute.xlu2 %1173  ;;  %v3496_v5 = vpop.permute.xlu0 %1112 }
 0x144   :  { %v339_v10 = vpop.f32.mrf.mxu0  ;;  %v741_v51 = vor.u32 1.1754944e-38, %v740_v40  ;;  %vm739_vm4 = vcmp.eq.f32.partialorder %v738_v43, 8.507059e+37 }
 0x145   :  { %v3473_v12 = vadd.f32 %v3281_v25, %v339_v10  ;;  %v717_v13 = vmul.f32 %v2781_v63, %v716_v6 }
 0x147   :  { %v2783_v16 = vpop.eup %2782  ;;  %v2570_v18 = vmul.f32 -1.442695, %v3473_v12  ;;  %v718_v19 = vadd.f32 %v2781_v63, %v717_v13 }
 0x148   :  { %v2785_v20 = vpop.eup %2784  ;;  %v440_v21 = vadd.f32 1.0, %v2783_v16 }
 0x149   :  { %2786 = vpow2.f32 %v2570_v18  ;;  %v722_v26 = vsel %vm721_vm14, %v2781_v63, %v718_v19  ;;  %v730_v27 = vmul.f32 %v2785_v20, %v439_v0  ;;  %vm735_vm0 = vweird.f32 %v2785_v20  ;;  %v2904_v63 = vld [vmem:[#allocation6] ss:$0 sm:$0xff] }
 0x14a   :  { %2788 = vrcp.f32 %v440_v21  ;;  %v727_v30 = vsel %vm724_vm15, %v726_v22, %v722_v26  ;;  %vm736_vm3 = vmor %vm734_vm2, %vm735_vm0  ;;  %v755_v62 = vand.u32 2147483648, %v440_v21  ;;  %v753_v3 = vand.u32 2147483647, %v440_v21 }
 0x14b   :  { %984 = vrot.lane.b32.xlu1 %v3447_v8, %s3092_s6  ;;  %864 = vrot.lane.b32.xlu0 %v727_v30, %s3093_s24  ;;  %v731_v32 = vsub.f32 1.0, %v730_v27  ;;  %vm749_vm6 = vweird.f32 %v440_v21  ;;  %v3505_v40 = vpop.permute.xlu2 %1168 }
 0x14c   :  { %v342_v38 = vpop.f32.mrf.mxu0  ;;  %v756_v16 = vor.u32 1.1754944e-38, %v755_v62  ;;  %vm754_vm1 = vcmp.eq.f32.partialorder %v753_v3, 8.507059e+37 }
 0x14d   :  { %v3484_v41 = vadd.f32 %v3281_v25, %v342_v38  ;;  %v732_v42 = vmul.f32 %v2785_v20, %v731_v32 }
 0x14f   :  { %v2787_v45 = vpop.eup %2786  ;;  %v2571_v46 = vmul.f32 -1.442695, %v3484_v41  ;;  %v733_v47 = vadd.f32 %v2785_v20, %v732_v42  ;;  %v829_v42 = vpop.permute.xlu0 %828 }
 0x150   :  { %v2789_v48 = vpop.eup %2788  ;;  %v441_v50 = vadd.f32 1.0, %v2787_v45 }
 0x151   :  { %2790 = vpow2.f32 %v2571_v46  ;;  %v737_v55 = vsel %vm736_vm3, %v2785_v20, %v733_v47  ;;  %v745_v57 = vmul.f32 %v2789_v48, %v440_v21  ;;  %vm750_vm5 = vweird.f32 %v2789_v48 }
 0x152   :  { %2792 = vrcp.f32 %v441_v50  ;;  %v742_v25 = vsel %vm739_vm4, %v741_v51, %v737_v55  ;;  %vm751_vm7 = vmor %vm749_vm6, %vm750_vm5  ;;  %v770_v26 = vand.u32 2147483648, %v441_v50  ;;  %v768_v30 = vand.u32 2147483647, %v441_v50 }
 0x153   :  { %866 = vrot.lane.b32.xlu2 %v742_v25, %s3093_s24  ;;  %986 = vrot.lane.b32.xlu0 %v3454_v28, %s3092_s6  ;;  %v746_v59 = vsub.f32 1.0, %v745_v57  ;;  %vm764_vm10 = vweird.f32 %v441_v50  ;;  %v900_v51 = vmul.f32 %v829_v42, %v3290_v29 }
 0x154   :  { %v345_v60 = vpop.f32.mrf.mxu0  ;;  %v771_v45 = vor.u32 1.1754944e-38, %v770_v26  ;;  %vm769_vm12 = vcmp.eq.f32.partialorder %v768_v30, 8.507059e+37 }
 0x155   :  { %v3492_v0 = vadd.f32 %v2904_v63, %v345_v60  ;;  %v747_v2 = vmul.f32 %v2789_v48, %v746_v59  ;;  %v949_v60 = vpop.permute.xlu1 %948 }
 0x156   :  { %v3512_v62 = vadd.f32 %v949_v60, %v900_v51 }
 0x157   :  { %v2791_v6 = vpop.eup %2790  ;;  %v2572_v10 = vmul.f32 -1.442695, %v3492_v0  ;;  %v748_v11 = vadd.f32 %v2789_v48, %v747_v2 }
 0x158   :  { %v2793_v13 = vpop.eup %2792  ;;  %v442_v15 = vadd.f32 1.0, %v2791_v6 }
 0x159   :  { %2794 = vpow2.f32 %v2572_v10  ;;  %v752_v18 = vsel %vm751_vm7, %v2789_v48, %v748_v11  ;;  %v760_v19 = vmul.f32 %v2793_v13, %v441_v50  ;;  %vm765_vm9 = vweird.f32 %v2793_v13  ;;  %v831_v10 = vpop.permute.xlu2 %830 }
 0x15a   :  { %2796 = vrcp.f32 %v442_v15  ;;  %v757_v20 = vsel %vm754_vm1, %v756_v16, %v752_v18  ;;  %vm766_vm11 = vmor %vm764_vm10, %vm765_vm9  ;;  %v785_v57 = vand.u32 2147483648, %v442_v15  ;;  %v783_v59 = vand.u32 2147483647, %v442_v15  ;;  %v951_v18 = vpop.permute.xlu0 %950 }
 0x15b   :  { %988 = vrot.lane.b32.xlu2 %v3464_v56, %s3092_s6  ;;  %868 = vrot.lane.b32.xlu1 %v757_v20, %s3093_s24  ;;  %v761_v22 = vsub.f32 1.0, %v760_v19  ;;  %vm779_vm14 = vweird.f32 %v442_v15 }
 0x15c   :  { %v1102_v21 = vpop.f32.mrf.mxu0  ;;  %v786_v29 = vor.u32 1.1754944e-38, %v785_v57  ;;  %vm784_vm0 = vcmp.eq.f32.partialorder %v783_v59, 8.507059e+37 }
 0x15d   :  { %2576 = vmatmul.msk.f32.vlgmr.msra.gmra.mxu0 %vm1120_vm8, %v1102_v21  ;;  %v762_v27 = vmul.f32 %v2793_v13, %v761_v22 }
 0x15f   :  { %v2795_v32 = vpop.eup %2794  ;;  %v763_v35 = vadd.f32 %v2793_v13, %v762_v27  ;;  %v833_v27 = vpop.permute.xlu1 %832 }
 0x160   :  { %v2797_v38 = vpop.eup %2796  ;;  %v443_v43 = vadd.f32 1.0, %v2795_v32  ;;  %v902_v42 = vmul.f32 %v833_v27, %v3308_v39  ;;  %v1267_v39 = vld [vmem:[%s4262_s12 + $0x8] sm:$0xff] }
 0x161   :  { %v767_v46 = vsel %vm766_vm11, %v2793_v13, %v763_v35  ;;  %v775_v47 = vmul.f32 %v2797_v38, %v442_v15  ;;  %vm780_vm13 = vweird.f32 %v2797_v38  ;;  %v1044_v13 = vmax.f32 %v3512_v62, 0.0  ;;  %v1212_v35 = vld [vmem:[%s4260_s10 + $0x8] sm:$0xff] }
 0x162   :  { %2798 = vrcp.f32 %v443_v43  ;;  %v772_v48 = vsel %vm769_vm12, %v771_v45, %v767_v46  ;;  %vm781_vm15 = vmor %vm779_vm14, %vm780_vm13  ;;  %v800_v19 = vand.u32 2147483648, %v443_v43  ;;  %v901_v15 = vmul.f32 %v831_v10, %v3300_v33  ;;  %v835_v46 = vpop.permute.xlu0 %834 }
 0x163   :  { %990 = vrot.lane.b32.xlu1 %v3473_v12, %s3092_s6  ;;  %870 = vrot.lane.b32.xlu0 %v772_v48, %s3093_s24  ;;  %v776_v50 = vsub.f32 1.0, %v775_v47  ;;  %v798_v22 = vand.u32 2147483647, %v443_v43  ;;  %vm794_vm3 = vweird.f32 %v443_v43  ;;  %v1253_v47 = vld [vmem:[%s4261_s11 + $0x8] sm:$0xff]  ;;  %v903_v51 = vmul.f32 %v835_v46, %v3316_v49 }
 0x164   :  { %v1105_v55 = vpop.f32.mrf.mxu0  ;;  %v1021_v21 = vadd.f32 %v951_v18, %v901_v15  ;;  %v801_v30 = vor.u32 1.1754944e-38, %v800_v19 }
 0x165   :  { %2577 = vmatmul.msk.f32.vlgmr.msra.gmra.mxu2 %vm1120_vm8, %v1105_v55  ;;  %v777_v25 = vmul.f32 %v2797_v38, %v776_v50  ;;  %vm799_vm5 = vcmp.eq.f32.partialorder %v798_v22, 8.507059e+37 }
 0x167   :  { %v778_v63 = vadd.f32 %v2797_v38, %v777_v25  ;;  %v955_v50 = vpop.permute.xlu1 %954 }
 0x168   :  { %v2799_v2 = vpop.eup %2798  ;;  %v1023_v55 = vadd.f32 %v955_v50, %v903_v51 }
 0x169   :  { %v782_v3 = vsel %vm781_vm15, %v2797_v38, %v778_v63  ;;  %v790_v6 = vmul.f32 %v2799_v2, %v443_v43  ;;  %vm795_vm2 = vweird.f32 %v2799_v2  ;;  %v3525_v38 = vmax.f32 %v1021_v21, 0.0  ;;  %v953_v43 = vpop.permute.xlu2 %952 }
 0x16a   :  { %v787_v11 = vsel %vm784_vm0, %v786_v29, %v782_v3  ;;  %vm796_vm4 = vmor %vm794_vm3, %vm795_vm2  ;;  %v1022_v45 = vadd.f32 %v953_v43, %v902_v42  ;;  %v3544_v25 = vmax.f32 %v1023_v55, 0.0  ;;  %v957_v59 = vpop.permute.xlu0 %956 }
 0x16b   :  { %872 = vrot.lane.b32.xlu2 %v787_v11, %s3093_s24  ;;  %992 = vrot.lane.b32.xlu0 %v3484_v41, %s3092_s6  ;;  %v791_v16 = vsub.f32 1.0, %v790_v6 }
 0x16c   :  { %v3539_v48 = vmax.f32 %v1022_v45, 0.0 }
 0x16d   :  { %2582 = vmatmul.msk.f32.vlgmr.msrb.gmra.mxu2 %vm1120_vm8, %v1044_v13  ;;  %v792_v20 = vmul.f32 %v2799_v2, %v791_v16 }
 0x16f   :  { %v793_v26 = vadd.f32 %v2799_v2, %v792_v20 }
 0x171   :  { %v797_v32 = vsel %vm796_vm4, %v2799_v2, %v793_v26  ;;  %v837_v57 = vpop.permute.xlu2 %836  ;;  %v839_v2 = vpop.permute.xlu1 %838 }
 0x172   :  { %v802_v33 = vsel %vm799_vm5, %v801_v30, %v797_v32  ;;  %v904_v60 = vmul.f32 %v837_v57, %v3325_v1  ;;  %v905_v49 = vmul.f32 %v839_v2, %v3336_v17  ;;  %v841_v10 = vpop.permute.xlu0 %840 }
 0x173   :  { %994 = vrot.lane.b32.xlu2 %v3492_v0, %s3092_s6  ;;  %874 = vrot.lane.b32.xlu1 %v802_v33, %s3093_s24  ;;  %v906_v16 = vmul.f32 %v841_v10, %v3347_v36 }
 0x174   :  { %1220 = vperm.xlu0 %2699, %v1212_v35   ;;  %v1024_v63 = vadd.f32 %v957_v59, %v904_v60 }
 0x175   :  { %2583 = vmatmul.msk.f32.gmra.mxu2 %vm1120_vm8, %v3525_v38 }
 0x176   :  { %v3549_v29 = vmax.f32 %v1024_v63, 0.0 }
 0x179   :  { %v959_v3 = vpop.permute.xlu2 %958  ;;  %v961_v1 = vpop.permute.xlu1 %960 }
 0x17a   :  { %v1025_v6 = vadd.f32 %v959_v3, %v905_v49  ;;  %v1026_v18 = vadd.f32 %v961_v1, %v906_v16  ;;  %v963_v20 = vpop.permute.xlu0 %962  ;;  %v1180_v16 = vld [vmem:[#allocation9] sm:$0xff]  ;;  %v1283_v1 = vld [vmem:[#allocation10 + $0x8] sm:$0xff] }
 0x17b   :  { %1261 = vperm.xlu1 %2700, %v1253_v47   ;;  %1275 = vperm.xlu2 %2701, %v1267_v39  }
 0x17c   :  { %v3554_v11 = vmax.f32 %v1025_v6, 0.0  ;;  %v3559_v15 = vmax.f32 %v1026_v18, 0.0 }
 0x17d   :  { %2584 = vmatmul.msk.f32.gmra.mxu2 %vm1120_vm8, %v3539_v48 }
 0x181   :  { %v843_v19 = vpop.permute.xlu2 %842  ;;  %v845_v21 = vpop.permute.xlu1 %844 }
 0x182   :  { %v907_v17 = vmul.f32 %v843_v19, %v3358_v54  ;;  %v908_v36 = vmul.f32 %v845_v21, %v3366_v7  ;;  %v847_v32 = vpop.permute.xlu0 %846 }
 0x183   :  { %v909_v33 = vmul.f32 %v847_v32, %v3374_v24 }
 0x184   :  { %v1027_v22 = vadd.f32 %v963_v20, %v907_v17 }
 0x185   :  { %2585 = vmatmul.msk.f32.gmra.mxu2 %vm1120_vm8, %v3544_v25 }
 0x186   :  { %v3564_v26 = vmax.f32 %v1027_v22, 0.0 }
 0x189   :  { %v965_v27 = vpop.permute.xlu2 %964  ;;  %v967_v54 = vpop.permute.xlu1 %966 }
 0x18a   :  { %v1028_v30 = vadd.f32 %v965_v27, %v908_v36  ;;  %v1029_v42 = vadd.f32 %v967_v54, %v909_v33  ;;  %v969_v46 = vpop.permute.xlu0 %968 }
 0x18c   :  { %v3569_v35 = vmax.f32 %v1028_v30, 0.0  ;;  %v3574_v45 = vmax.f32 %v1029_v42, 0.0 }
 0x18d   :  { %2586 = vmatmul.msk.f32.gmra.mxu2 %vm1120_vm8, %v3549_v29 }
 0x191   :  { %v849_v43 = vpop.permute.xlu2 %848  ;;  %v851_v39 = vpop.permute.xlu1 %850 }
 0x192   :  { %v910_v7 = vmul.f32 %v849_v43, %v3382_v44  ;;  %v911_v24 = vmul.f32 %v851_v39, %v3389_v61 }
 0x194   :  { %v1030_v47 = vadd.f32 %v969_v46, %v910_v7 }
 0x195   :  { %2587 = vmatmul.msk.f32.gmra.mxu2 %vm1120_vm8, %v3554_v11 }
 0x196   :  { %v3579_v51 = vmax.f32 %v1030_v47, 0.0 }
 0x199   :  { %v971_v50 = vpop.permute.xlu2 %970 }
 0x19a   :  { %v1031_v55 = vadd.f32 %v971_v50, %v911_v24 }
 0x19c   :  { %v3584_v57 = vmax.f32 %v1031_v55, 0.0 }
 0x19d   :  { %2588 = vmatmul.msk.f32.gmra.mxu2 %vm1120_vm8, %v3559_v15 }
 0x1a1   :  { %v3626_v62 = vpop.permute.xlu2 %1270 }
 0x1a5   :  { %2589 = vmatmul.msk.f32.gmra.mxu2 %vm1120_vm8, %v3564_v26 }
 0x1a9   :  { %v855_v22 = vpop.permute.xlu2 %854 }
 0x1aa   :  { %v913_v27 = vmul.f32 %v855_v22, %v3403_v34 }
 0x1ad   :  { %2590 = vmatmul.msk.f32.gmra.mxu2 %vm1120_vm8, %v3569_v35 }
 0x1b1   :  { %v977_v42 = vpop.permute.xlu2 %976 }
 0x1b5   :  { %2591 = vmatmul.msk.f32.gmra.mxu2 %vm1120_vm8, %v3574_v45 }
 0x1bd   :  { %2592 = vmatmul.msk.f32.gmra.mxu2 %vm1120_vm8, %v3579_v51 }
 0x1c5   :  { %2593 = vmatmul.msk.f32.gmra.mxu2 %vm1120_vm8, %v3584_v57 }
 0x1da   :  { %v1144_v44 = vpop.f32.mrf.mxu0 }
 0x1db   :  { %v1145_v59 = vadd.f32 %v1144_v44, %v3496_v5  ;;  %v1282_v5 = vld [vmem:[#allocation10] sm:$0xff] }
 0x1dd   :  { %v1162_v63 = vmul.f32 %v3502_v23, %v1145_v59  ;;  %v1181_v23 = vld [vmem:[#allocation9 + $0x8] sm:$0xff] }
 0x1df   :  { %v1176_v3 = vadd.f32 %v3505_v40, %v1162_v63  ;;  %v1287_v40 = vld [vmem:[#allocation10 + $0x28] sm:$0xff] }
 0x1e0   :  { %1573 = vmatpush.msrb.mxu1 %v1287_v40 }
 0x1e1   :  { %v1178_v10 = vmax.f32 %v1176_v3, 0.0 }
 0x1e8   :  { %v1147_v60 = vpop.f32.mrf.mxu2 }
 0x1e9   :  { %v1148_v2 = vadd.f32 %v1147_v60, %v3481_v37  ;;  %v3094_v37 = vmov 0.0  }
 0x1eb   :  { %v1163_v61 = vmul.f32 %v3487_v58, %v1148_v2  ;;  %v3620_v58 = vpop.permute.xlu0 %1215 }
 0x1ed   :  { %v1177_v49 = vadd.f32 %v3494_v4, %v1163_v61  ;;  %v3622_v4 = vpop.permute.xlu1 %1256 }
 0x1ef   :  { %v1179_v6 = vmax.f32 %v1177_v49, 0.0 }
 0x1f1   :  { %1202 = vmatpush.msra.mxu3 %v1179_v6 }
 0x1f3   :  { %1203 = vmatpush.msra.mxu3 %v1178_v10  ;;  %v853_v18 = vpop.permute.xlu0 %852 }
 0x1f4   :  { %2578 = vmatmul.msk.f32.vlgmr.msra.gmra.mxu3 %vm1120_vm8, %v1180_v16  ;;  %v912_v20 = vmul.f32 %v853_v18, %v3396_v14 }
 0x1f5   :  { %1478 = vmatpush.msrb.mxu3 %v1283_v1  ;;  %v973_v19 = vpop.permute.xlu1 %972 }
 0x1f6   :  { %v3630_v17 = vadd.f32 %v973_v19, %v912_v20 }
 0x1f7   :  { %1479 = vmatpush.msrb.mxu3 %v1282_v5 }
 0x1f8   :  { %v1056_v21 = vmax.f32 %v3630_v17, 0.0 }
 0x1fb   :  { %v975_v36 = vpop.permute.xlu0 %974 }
 0x1fc   :  { %2579 = vmatmul.msk.f32.gmra.mxu3 %vm1120_vm8, %v1181_v23  ;;  %v1033_v30 = vadd.f32 %v975_v36, %v913_v27 }
 0x1fd   :  { %v857_v32 = vpop.permute.xlu1 %856 }
 0x1fe   :  { %v3638_v14 = vmax.f32 %v1033_v30, 0.0  ;;  %v914_v54 = vmul.f32 %v857_v32, %v3410_v53  ;;  %v861_v53 = vpop.permute.xlu2 %860 }
 0x1ff   :  { %v916_v44 = vmul.f32 %v861_v53, %v3431_v31 }
 0x200   :  { %v1034_v43 = vadd.f32 %v977_v42, %v914_v54 }
 0x202   :  { %v3644_v7 = vmax.f32 %v1034_v43, 0.0 }
 0x203   :  { %v859_v46 = vpop.permute.xlu0 %858 }
 0x204   :  { %1480 = vmatmul.f32.vlgmr.msrb.gmra.mxu3 %v3094_v37  ;;  %v915_v47 = vmul.f32 %v859_v46, %v3420_v9 }
 0x205   :  { %v979_v39 = vpop.permute.xlu1 %978 }
 0x206   :  { %v1035_v24 = vadd.f32 %v979_v39, %v915_v47 }
 0x208   :  { %v3651_v50 = vmax.f32 %v1035_v24, 0.0 }
 0x20b   :  { %v981_v55 = vpop.permute.xlu0 %980 }
 0x20c   :  { %2608 = vmatmul.msk.f32.gmra.mxu3 %vm1120_vm8, %v1044_v13  ;;  %v1286_v13 = vld [vmem:[#allocation10 + $0x20] sm:$0xff]  ;;  %v1036_v59 = vadd.f32 %v981_v55, %v916_v44 }
 0x20d   :  { %1574 = vmatpush.msrb.mxu1 %v1286_v13  ;;  %v863_v60 = vpop.permute.xlu1 %862 }
 0x20e   :  { %v3658_v9 = vmax.f32 %v1036_v59, 0.0  ;;  %v917_v63 = vmul.f32 %v863_v60, %v3440_v52 }
 0x213   :  { %v865_v61 = vpop.permute.xlu0 %864 }
 0x214   :  { %2609 = vmatmul.msk.f32.gmra.mxu3 %vm1120_vm8, %v3525_v38  ;;  %v918_v49 = vmul.f32 %v865_v61, %v3447_v8 }
 0x21b   :  { %v987_v10 = vpop.permute.xlu0 %986 }
 0x21c   :  { %2610 = vmatmul.msk.f32.gmra.mxu3 %vm1120_vm8, %v3539_v48 }
 0x223   :  { %v871_v40 = vpop.permute.xlu0 %870 }
 0x224   :  { %2611 = vmatmul.msk.f32.gmra.mxu3 %vm1120_vm8, %v3544_v25  ;;  %v921_v13 = vmul.f32 %v871_v40, %v3473_v12 }
 0x22b   :  { %v993_v20 = vpop.permute.xlu0 %992 }
 0x22c   :  { %2612 = vmatmul.msk.f32.gmra.mxu3 %vm1120_vm8, %v3549_v29 }
 0x234   :  { %2613 = vmatmul.msk.f32.gmra.mxu3 %vm1120_vm8, %v3554_v11 }
 0x23c   :  { %2614 = vmatmul.msk.f32.gmra.mxu3 %vm1120_vm8, %v3559_v15 }
 0x244   :  { %2615 = vmatmul.msk.f32.gmra.mxu3 %vm1120_vm8, %v3564_v26 }
 0x24c   :  { %2616 = vmatmul.msk.f32.gmra.mxu3 %vm1120_vm8, %v3569_v35 }
 0x254   :  { %2617 = vmatmul.msk.f32.gmra.mxu3 %vm1120_vm8, %v3574_v45 }
 0x25c   :  { %2618 = vmatmul.msk.f32.gmra.mxu3 %vm1120_vm8, %v3579_v51 }
 0x264   :  { %2619 = vmatmul.msk.f32.gmra.mxu3 %vm1120_vm8, %v3584_v57 }
 0x26c   :  { %1519 = vmatmul.f32.gmra.mxu3 %v3094_v37 }
 0x274   :  { %2620 = vmatmul.msk.f32.gmra.mxu3 %vm1120_vm8, %v1056_v21 }
 0x277   :  { %v1205_v33 = vpop.f32.mrf.mxu3 }
 0x278   :  { %2580 = vmatmul.msk.f32.vlgmr.msrb.gmra.mxu0 %vm1120_vm8, %v1205_v33 }
 0x27c   :  { %2621 = vmatmul.msk.f32.gmra.mxu3 %vm1120_vm8, %v3638_v14 }
 0x27f   :  { %v1208_v34 = vpop.f32.mrf.mxu3 }
 0x280   :  { %2581 = vmatmul.msk.f32.vlgmr.msra.gmra.mxu1 %vm1120_vm8, %v1208_v34 }
 0x284   :  { %2622 = vmatmul.msk.f32.gmra.mxu3 %vm1120_vm8, %v3644_v7 }
 0x287   :  { %v1481_v30 = vpop.f32.mrf.mxu3 }
 0x288   :  { %2632 = vmatmul.msk.f32.vlgmr.msrb.gmra.mxu1 %vm1120_vm8, %v3525_v38  ;;  %v983_v38 = vpop.permute.xlu2 %982 }
 0x289   :  { %v1037_v2 = vadd.f32 %v983_v38, %v917_v63 }
 0x28b   :  { %v3665_v31 = vmax.f32 %v1037_v2, 0.0 }
 0x28c   :  { %2623 = vmatmul.msk.f32.gmra.mxu3 %vm1120_vm8, %v3651_v50 }
 0x28f   :  { %v1484_v33 = vpop.f32.mrf.mxu3 }
 0x290   :  { %2633 = vmatmul.msk.f32.gmra.mxu1 %vm1120_vm8, %v3539_v48  ;;  %v985_v48 = vpop.permute.xlu1 %984  ;;  %v867_v52 = vpop.permute.xlu2 %866 }
 0x291   :  { %v1038_v3 = vadd.f32 %v985_v48, %v918_v49  ;;  %v919_v16 = vmul.f32 %v867_v52, %v3454_v28 }
 0x293   :  { %v3672_v6 = vmax.f32 %v1038_v3, 0.0 }
 0x294   :  { %2624 = vmatmul.msk.f32.gmra.mxu3 %vm1120_vm8, %v3658_v9 }
 0x298   :  { %2634 = vmatmul.msk.f32.gmra.mxu1 %vm1120_vm8, %v3544_v25  ;;  %v1039_v25 = vadd.f32 %v987_v10, %v919_v16  ;;  %v869_v1 = vpop.permute.xlu1 %868 }
 0x299   :  { %v920_v5 = vmul.f32 %v869_v1, %v3464_v56 }
 0x29a   :  { %v3679_v8 = vmax.f32 %v1039_v25, 0.0 }
 0x29c   :  { %2625 = vmatmul.msk.f32.gmra.mxu3 %vm1120_vm8, %v3665_v31 }
 0x2a0   :  { %2635 = vmatmul.msk.f32.gmra.mxu1 %vm1120_vm8, %v3549_v29  ;;  %v989_v29 = vpop.permute.xlu2 %988 }
 0x2a1   :  { %v1040_v23 = vadd.f32 %v989_v29, %v920_v5 }
 0x2a3   :  { %v3686_v28 = vmax.f32 %v1040_v23, 0.0 }
 0x2a4   :  { %2626 = vmatmul.msk.f32.gmra.mxu3 %vm1120_vm8, %v3672_v6 }
 0x2a8   :  { %2636 = vmatmul.msk.f32.gmra.mxu1 %vm1120_vm8, %v3554_v11  ;;  %v991_v11 = vpop.permute.xlu1 %990  ;;  %v873_v56 = vpop.permute.xlu2 %872 }
 0x2a9   :  { %v1041_v18 = vadd.f32 %v991_v11, %v921_v13  ;;  %v922_v22 = vmul.f32 %v873_v56, %v3484_v41 }
 0x2ab   :  { %v3693_v19 = vmax.f32 %v1041_v18, 0.0 }
 0x2ac   :  { %2627 = vmatmul.msk.f32.gmra.mxu3 %vm1120_vm8, %v3679_v8 }
 0x2b0   :  { %2637 = vmatmul.msk.f32.gmra.mxu1 %vm1120_vm8, %v3559_v15  ;;  %v1042_v15 = vadd.f32 %v993_v20, %v922_v22  ;;  %v875_v36 = vpop.permute.xlu1 %874 }
 0x2b1   :  { %v923_v27 = vmul.f32 %v875_v36, %v3492_v0  ;;  %v1383_v0 = vpop.f32.mrf.mxu2 }
 0x2b2   :  { %v3700_v12 = vmax.f32 %v1042_v15, 0.0  ;;  %v1482_v39 = vadd.f32 %v1481_v30, %v1383_v0 }
 0x2b4   :  { %2628 = vmatmul.msk.f32.gmra.mxu3 %vm1120_vm8, %v3686_v28 }
 0x2b8   :  { %2638 = vmatmul.msk.f32.gmra.mxu1 %vm1120_vm8, %v3564_v26  ;;  %v995_v26 = vpop.permute.xlu2 %994 }
 0x2b9   :  { %v1043_v32 = vadd.f32 %v995_v26, %v923_v27  ;;  %v1386_v42 = vpop.f32.mrf.mxu2 }
 0x2ba   :  { %v1485_v44 = vadd.f32 %v1484_v33, %v1386_v42 }
 0x2bb   :  { %v3707_v41 = vmax.f32 %v1043_v32, 0.0 }
 0x2bc   :  { %2629 = vmatmul.msk.f32.gmra.mxu3 %vm1120_vm8, %v3693_v19 }
 0x2c0   :  { %2639 = vmatmul.msk.f32.gmra.mxu1 %vm1120_vm8, %v3569_v35 }
 0x2c1   :  { %v1389_v47 = vpop.f32.mrf.mxu2 }
 0x2c4   :  { %2630 = vmatmul.msk.f32.gmra.mxu3 %vm1120_vm8, %v3700_v12 }
 0x2c8   :  { %2640 = vmatmul.msk.f32.gmra.mxu1 %vm1120_vm8, %v3574_v45 }
 0x2c9   :  { %v1392_v55 = vpop.f32.mrf.mxu2 }
 0x2cc   :  { %2631 = vmatmul.msk.f32.gmra.mxu3 %vm1120_vm8, %v3707_v41 }
 0x2d0   :  { %2641 = vmatmul.msk.f32.gmra.mxu1 %vm1120_vm8, %v3579_v51  ;;  %v1487_v51 = vpop.f32.mrf.mxu3 }
 0x2d1   :  { %v1488_v2 = vadd.f32 %v1487_v51, %v1389_v47  ;;  %v1395_v48 = vpop.f32.mrf.mxu2 }
 0x2d8   :  { %2642 = vmatmul.msk.f32.gmra.mxu1 %vm1120_vm8, %v3584_v57  ;;  %v3722_v57 = vld [vmem:[#allocation12] ss:$0 sm:$0xff] }
 0x2d9   :  { %v1398_v11 = vpop.f32.mrf.mxu2 }
 0x2f5   :  { %v1246_v35 = vpop.f32.mrf.mxu0 }
 0x2f6   :  { %v1247_v54 = vadd.f32 %v1246_v35, %v3620_v58 }
 0x2f8   :  { %v1264_v43 = vmul.f32 %v3622_v4, %v1247_v54  ;;  %v1490_v4 = vpop.f32.mrf.mxu3 }
 0x2f9   :  { %v1491_v1 = vadd.f32 %v1490_v4, %v1392_v55 }
 0x2fa   :  { %v1278_v45 = vadd.f32 %v3626_v62, %v1264_v43 }
 0x2fc   :  { %v1280_v46 = vmax.f32 %v1278_v45, 0.0 }
 0x2fd   :  { %v3718_v34 = vpop.f32.mrf.mxu1 }
 0x2fe   :  { %2594 = vmatmul.msk.f32.gmra.mxu2 %vm1120_vm8, %v1280_v46  ;;  %2643 = vmatmul.msk.f32.gmra.mxu1 %vm1120_vm8, %v1280_v46 }
 0x300   :  { %v1493_v61 = vpop.f32.mrf.mxu3 }
 0x301   :  { %v1494_v30 = vadd.f32 %v1493_v61, %v1395_v48 }
 0x305   :  { %v1576_v24 = vpop.f32.mrf.mxu1 }
 0x306   :  { %v1654_v53 = vadd.f32 %v1576_v24, %v1482_v39  ;;  %2595 = vmatmul.msk.f32.gmra.mxu2 %vm1120_vm8, %v1056_v21  ;;  %1611 = vmatmul.f32.gmra.mxu1 %v3094_v37  ;;  %v1401_v24 = vpop.f32.mrf.mxu2 }
 0x308   :  { %v3729_v58 = vadd.f32 %v3722_v57, %v1654_v53  ;;  %v1496_v23 = vpop.f32.mrf.mxu3 }
 0x309   :  { %v1497_v55 = vadd.f32 %v1496_v23, %v1398_v11 }
 0x30a   :  { %v2656_v62 = vmul.f32 -1.442695, %v3729_v58  ;;  %2360 = vrot.lane.b32.xlu2 %v3729_v58, %s3092_s6 }
 0x30c   :  { %2800 = vpow2.f32 %v2656_v62 }
 0x30d   :  { %v1579_v59 = vpop.f32.mrf.mxu1 }
 0x30e   :  { %v1655_v60 = vadd.f32 %v1579_v59, %v1485_v44  ;;  %2596 = vmatmul.msk.f32.gmra.mxu2 %vm1120_vm8, %v3638_v14  ;;  %2644 = vmatmul.msk.f32.gmra.mxu1 %vm1120_vm8, %v3638_v14  ;;  %v1404_v23 = vpop.f32.mrf.mxu2 }
 0x310   :  { %v3739_v17 = vadd.f32 %v3722_v57, %v1655_v60  ;;  %v1499_v45 = vpop.f32.mrf.mxu3 }
 0x312   :  { %v2801_v21 = vpop.eup %2800  ;;  %v2657_v63 = vmul.f32 -1.442695, %v3739_v17  ;;  %2362 = vrot.lane.b32.xlu0 %v3739_v17, %s3092_s6 }
 0x313   :  { %v1788_v38 = vadd.f32 1.0, %v2801_v21 }
 0x314   :  { %2802 = vpow2.f32 %v2657_v63 }
 0x315   :  { %2804 = vrcp.f32 %v1788_v38  ;;  %v1582_v49 = vpop.f32.mrf.mxu1  ;;  %v1825_v13 = vand.u32 2147483648, %v1788_v38  ;;  %v1823_v20 = vand.u32 2147483647, %v1788_v38  ;;  %vm1819_vm7 = vweird.f32 %v1788_v38 }
 0x316   :  { %v1656_v3 = vadd.f32 %v1582_v49, %v1488_v2  ;;  %2597 = vmatmul.msk.f32.gmra.mxu2 %vm1120_vm8, %v3644_v7  ;;  %2645 = vmatmul.msk.f32.gmra.mxu1 %vm1120_vm8, %v3644_v7 }
 0x317   :  { %v1826_v26 = vor.u32 1.1754944e-38, %v1825_v13  ;;  %vm1824_vm9 = vcmp.eq.f32.partialorder %v1823_v20, 8.507059e+37 }
 0x318   :  { %v3749_v14 = vadd.f32 %v3722_v57, %v1656_v3 }
 0x31a   :  { %v2803_v52 = vpop.eup %2802  ;;  %v2658_v10 = vmul.f32 -1.442695, %v3749_v14  ;;  %2364 = vrot.lane.b32.xlu1 %v3749_v14, %s3092_s6 }
 0x31b   :  { %v2805_v16 = vpop.eup %2804  ;;  %v1789_v25 = vadd.f32 1.0, %v2803_v52 }
 0x31c   :  { %2806 = vpow2.f32 %v2658_v10  ;;  %v1815_v5 = vmul.f32 %v2805_v16, %v1788_v38  ;;  %vm1820_vm6 = vweird.f32 %v2805_v16  ;;  %v1502_v10 = vpop.f32.mrf.mxu3 }
 0x31d   :  { %2808 = vrcp.f32 %v1789_v25  ;;  %v1585_v29 = vpop.f32.mrf.mxu1  ;;  %vm1821_vm1 = vmor %vm1819_vm7, %vm1820_vm6  ;;  %v1840_v43 = vand.u32 2147483648, %v1789_v25  ;;  %v1838_v47 = vand.u32 2147483647, %v1789_v25  ;;  %vm1834_vm11 = vweird.f32 %v1789_v25 }
 0x31e   :  { %v1657_v40 = vadd.f32 %v1585_v29, %v1491_v1  ;;  %2598 = vmatmul.msk.f32.gmra.mxu2 %vm1120_vm8, %v3651_v50  ;;  %2646 = vmatmul.msk.f32.gmra.mxu1 %vm1120_vm8, %v3651_v50  ;;  %v1816_v7 = vsub.f32 1.0, %v1815_v5  ;;  %v1500_v5 = vadd.f32 %v1499_v45, %v1401_v24 }
 0x31f   :  { %vm1839_vm13 = vcmp.eq.f32.partialorder %v1838_v47, 8.507059e+37 }
 0x320   :  { %v3759_v18 = vadd.f32 %v3722_v57, %v1657_v40  ;;  %v1817_v56 = vmul.f32 %v2805_v16, %v1816_v7 }
 0x322   :  { %v2807_v22 = vpop.eup %2806  ;;  %v2659_v15 = vmul.f32 -1.442695, %v3759_v18  ;;  %2366 = vrot.lane.b32.xlu2 %v3759_v18, %s3092_s6  ;;  %v1818_v36 = vadd.f32 %v2805_v16, %v1817_v56 }
 0x323   :  { %v2809_v27 = vpop.eup %2808  ;;  %v3764_v50 = vadd.f32 1.0, %v2807_v22 }
 0x324   :  { %2810 = vpow2.f32 %v2659_v15  ;;  %v1822_v32 = vsel %vm1821_vm1, %v2805_v16, %v1818_v36  ;;  %v1830_v33 = vmul.f32 %v2809_v27, %v1789_v25  ;;  %vm1835_vm10 = vweird.f32 %v2809_v27 }
 0x325   :  { %2812 = vrcp.f32 %v3764_v50  ;;  %v1588_v0 = vpop.f32.mrf.mxu1  ;;  %v1827_v35 = vsel %vm1824_vm9, %v1826_v26, %v1822_v32  ;;  %vm1836_vm12 = vmor %vm1834_vm11, %vm1835_vm10  ;;  %v1855_v61 = vand.u32 2147483648, %v3764_v50  ;;  %v1853_v3 = vand.u32 2147483647, %v3764_v50 }
 0x326   :  { %v1658_v54 = vadd.f32 %v1588_v0, %v1494_v30  ;;  %2230 = vrot.lane.b32.xlu0 %v1827_v35, %s3093_s24  ;;  %2599 = vmatmul.msk.f32.gmra.mxu2 %vm1120_vm8, %v3658_v9  ;;  %v1831_v42 = vsub.f32 1.0, %v1830_v33  ;;  %vm1849_vm15 = vweird.f32 %v3764_v50  ;;  %v1503_v33 = vadd.f32 %v1502_v10, %v1404_v23  ;;  %v1505_v35 = vpop.f32.mrf.mxu3 }
 0x327   :  { %2647 = vmatmul.msk.f32.gmra.mxu1 %vm1120_vm8, %v3658_v9  ;;  %v1841_v9 = vor.u32 1.1754944e-38, %v1840_v43  ;;  %vm1854_vm2 = vcmp.eq.f32.partialorder %v1853_v3, 8.507059e+37 }
 0x328   :  { %v3773_v46 = vadd.f32 %v3722_v57, %v1658_v54  ;;  %v1832_v51 = vmul.f32 %v2809_v27, %v1831_v42 }
 0x32a   :  { %v2811_v39 = vpop.eup %2810  ;;  %v2660_v53 = vmul.f32 -1.442695, %v3773_v46  ;;  %v1833_v4 = vadd.f32 %v2809_v27, %v1832_v51  ;;  %v1407_v51 = vpop.f32.mrf.mxu2 }
 0x32b   :  { %v2813_v62 = vpop.eup %2812  ;;  %v3776_v44 = vadd.f32 1.0, %v2811_v39 }
 0x32c   :  { %2814 = vpow2.f32 %v2660_v53  ;;  %v1837_v59 = vsel %vm1836_vm12, %v2809_v27, %v1833_v4  ;;  %v1845_v60 = vmul.f32 %v2813_v62, %v3764_v50  ;;  %vm1850_vm14 = vweird.f32 %v2813_v62 }
 0x32d   :  { %2816 = vrcp.f32 %v3776_v44  ;;  %v1591_v21 = vpop.f32.mrf.mxu1  ;;  %v1842_v63 = vsel %vm1839_vm13, %v1841_v9, %v1837_v59  ;;  %vm1851_vm0 = vmor %vm1849_vm15, %vm1850_vm14  ;;  %v1870_v22 = vand.u32 2147483648, %v3776_v44  ;;  %v1868_v27 = vand.u32 2147483647, %v3776_v44 }
 0x32e   :  { %v1659_v38 = vadd.f32 %v1591_v21, %v1497_v55  ;;  %2232 = vrot.lane.b32.xlu1 %v1842_v63, %s3093_s24  ;;  %2368 = vrot.lane.b32.xlu0 %v3773_v46, %s3092_s6  ;;  %v1846_v2 = vsub.f32 1.0, %v1845_v60  ;;  %vm1864_vm4 = vweird.f32 %v3776_v44  ;;  %v1506_v60 = vadd.f32 %v1505_v35, %v1407_v51 }
 0x32f   :  { %2600 = vmatmul.msk.f32.gmra.mxu2 %vm1120_vm8, %v3665_v31  ;;  %2648 = vmatmul.msk.f32.gmra.mxu1 %vm1120_vm8, %v3665_v31  ;;  %v1856_v31 = vor.u32 1.1754944e-38, %v1855_v61  ;;  %vm1869_vm6 = vcmp.eq.f32.partialorder %v1868_v27, 8.507059e+37 }
 0x330   :  { %v3789_v49 = vadd.f32 %v3722_v57, %v1659_v38  ;;  %v1847_v48 = vmul.f32 %v2813_v62, %v1846_v2 }
 0x332   :  { %v2815_v52 = vpop.eup %2814  ;;  %v2661_v16 = vmul.f32 -1.442695, %v3789_v49  ;;  %v1848_v25 = vadd.f32 %v2813_v62, %v1847_v48  ;;  %v1508_v48 = vpop.f32.mrf.mxu3 }
 0x333   :  { %v2817_v1 = vpop.eup %2816  ;;  %v3794_v29 = vadd.f32 1.0, %v2815_v52 }
 0x334   :  { %2818 = vpow2.f32 %v2661_v16  ;;  %v1852_v40 = vsel %vm1851_vm0, %v2813_v62, %v1848_v25  ;;  %v1860_v7 = vmul.f32 %v2817_v1, %v3776_v44  ;;  %vm1865_vm3 = vweird.f32 %v2817_v1  ;;  %v1410_v16 = vpop.f32.mrf.mxu2 }
 0x335   :  { %2820 = vrcp.f32 %v3794_v29  ;;  %v1594_v13 = vpop.f32.mrf.mxu1  ;;  %v1857_v11 = vsel %vm1854_vm2, %v1856_v31, %v1852_v40  ;;  %vm1866_vm5 = vmor %vm1864_vm4, %vm1865_vm3  ;;  %v1885_v24 = vand.u32 2147483648, %v3794_v29  ;;  %v1883_v62 = vand.u32 2147483647, %v3794_v29 }
 0x336   :  { %v1660_v56 = vadd.f32 %v1594_v13, %v1500_v5  ;;  %2234 = vrot.lane.b32.xlu2 %v1857_v11, %s3093_s24  ;;  %2370 = vrot.lane.b32.xlu1 %v3789_v49, %s3092_s6  ;;  %v1861_v20 = vsub.f32 1.0, %v1860_v7  ;;  %vm1879_vm1 = vweird.f32 %v3794_v29  ;;  %v1509_v7 = vadd.f32 %v1508_v48, %v1410_v16  ;;  %v1262_v48 = vpop.permute.xlu1 %1261 }
 0x337   :  { %2601 = vmatmul.msk.f32.gmra.mxu2 %vm1120_vm8, %v3672_v6  ;;  %2649 = vmatmul.msk.f32.gmra.mxu1 %vm1120_vm8, %v3672_v6  ;;  %v1871_v6 = vor.u32 1.1754944e-38, %v1870_v22  ;;  %vm1884_vm10 = vcmp.eq.f32.partialorder %v1883_v62, 8.507059e+37 }
 0x338   :  { %v3807_v15 = vadd.f32 %v3722_v57, %v1660_v56  ;;  %v1862_v36 = vmul.f32 %v2817_v1, %v1861_v20 }
 0x33a   :  { %v2819_v30 = vpop.eup %2818  ;;  %v2662_v50 = vmul.f32 -1.442695, %v3807_v15  ;;  %v1863_v26 = vadd.f32 %v2817_v1, %v1862_v36 }
 0x33b   :  { %v2821_v32 = vpop.eup %2820  ;;  %v3812_v0 = vadd.f32 1.0, %v2819_v30 }
 0x33c   :  { %2822 = vpow2.f32 %v2662_v50  ;;  %v1867_v54 = vsel %vm1866_vm5, %v2817_v1, %v1863_v26  ;;  %v1875_v42 = vmul.f32 %v2821_v32, %v3794_v29  ;;  %vm1880_vm7 = vweird.f32 %v2821_v32  ;;  %v1511_v50 = vpop.f32.mrf.mxu3 }
 0x33d   :  { %2824 = vrcp.f32 %v3812_v0  ;;  %v1597_v43 = vpop.f32.mrf.mxu1  ;;  %v1872_v45 = vsel %vm1869_vm6, %v1871_v6, %v1867_v54  ;;  %vm1881_vm9 = vmor %vm1879_vm1, %vm1880_vm7  ;;  %v1900_v10 = vand.u32 2147483648, %v3812_v0  ;;  %v1898_v5 = vand.u32 2147483647, %v3812_v0  ;;  %v1413_v6 = vpop.f32.mrf.mxu2 }
 0x33e   :  { %v1661_v47 = vadd.f32 %v1597_v43, %v1503_v33  ;;  %2236 = vrot.lane.b32.xlu0 %v1872_v45, %s3093_s24  ;;  %2372 = vrot.lane.b32.xlu2 %v3807_v15, %s3092_s6  ;;  %v1876_v39 = vsub.f32 1.0, %v1875_v42  ;;  %vm1894_vm12 = vweird.f32 %v3812_v0  ;;  %v1512_v43 = vadd.f32 %v1511_v50, %v1413_v6 }
 0x33f   :  { %2602 = vmatmul.msk.f32.gmra.mxu2 %vm1120_vm8, %v3679_v8  ;;  %2650 = vmatmul.msk.f32.gmra.mxu1 %vm1120_vm8, %v3679_v8  ;;  %v1886_v8 = vor.u32 1.1754944e-38, %v1885_v24  ;;  %vm1899_vm14 = vcmp.eq.f32.partialorder %v1898_v5, 8.507059e+37 }
 0x340   :  { %v3825_v53 = vadd.f32 %v3722_v57, %v1661_v47  ;;  %v1877_v4 = vmul.f32 %v2821_v32, %v1876_v39 }
 0x342   :  { %v2823_v55 = vpop.eup %2822  ;;  %v2663_v44 = vmul.f32 -1.442695, %v3825_v53  ;;  %v1878_v9 = vadd.f32 %v2821_v32, %v1877_v4 }
 0x343   :  { %v2825_v59 = vpop.eup %2824  ;;  %v3830_v21 = vadd.f32 1.0, %v2823_v55 }
 0x344   :  { %2826 = vpow2.f32 %v2663_v44  ;;  %v1882_v63 = vsel %vm1881_vm9, %v2821_v32, %v1878_v9  ;;  %v1890_v38 = vmul.f32 %v2825_v59, %v3812_v0  ;;  %vm1895_vm11 = vweird.f32 %v2825_v59  ;;  %v1221_v44 = vpop.permute.xlu0 %1220 }
 0x345   :  { %2828 = vrcp.f32 %v3830_v21  ;;  %v1600_v2 = vpop.f32.mrf.mxu1  ;;  %v1887_v61 = vsel %vm1884_vm10, %v1886_v8, %v1882_v63  ;;  %vm1896_vm13 = vmor %vm1894_vm12, %vm1895_vm11  ;;  %v1915_v30 = vand.u32 2147483648, %v3830_v21  ;;  %v1913_v33 = vand.u32 2147483647, %v3830_v21 }
 0x346   :  { %v1662_v3 = vadd.f32 %v1600_v2, %v1506_v60  ;;  %2238 = vrot.lane.b32.xlu1 %v1887_v61, %s3093_s24  ;;  %2374 = vrot.lane.b32.xlu0 %v3825_v53, %s3092_s6  ;;  %v1891_v52 = vsub.f32 1.0, %v1890_v38  ;;  %vm1909_vm0 = vweird.f32 %v3830_v21 }
 0x347   :  { %2603 = vmatmul.msk.f32.gmra.mxu2 %vm1120_vm8, %v3686_v28  ;;  %2651 = vmatmul.msk.f32.gmra.mxu1 %vm1120_vm8, %v3686_v28  ;;  %v1901_v28 = vor.u32 1.1754944e-38, %v1900_v10  ;;  %v1916_v45 = vor.u32 1.1754944e-38, %v1915_v30  ;;  %vm1914_vm3 = vcmp.eq.f32.partialorder %v1913_v33, 8.507059e+37  ;;  %v3882_v10 = vpop.f32.mrf.mxu3 }
 0x348   :  { %v3843_v25 = vadd.f32 %v3722_v57, %v1662_v3  ;;  %v1892_v1 = vmul.f32 %v2825_v59, %v1891_v52 }
 0x34a   :  { %v2827_v29 = vpop.eup %2826  ;;  %v2664_v31 = vmul.f32 -1.442695, %v3843_v25  ;;  %v1893_v23 = vadd.f32 %v2825_v59, %v1892_v1 }
 0x34b   :  { %v2829_v40 = vpop.eup %2828  ;;  %v3848_v13 = vadd.f32 1.0, %v2827_v29  ;;  %v1276_v29 = vpop.permute.xlu2 %1275 }
 0x34c   :  { %2830 = vpow2.f32 %v2664_v31  ;;  %v1897_v11 = vsel %vm1896_vm13, %v2825_v59, %v1893_v23  ;;  %v1905_v56 = vmul.f32 %v2829_v40, %v3830_v21  ;;  %vm1910_vm15 = vweird.f32 %v2829_v40 }
 0x34d   :  { %2832 = vrcp.f32 %v3848_v13  ;;  %v1603_v20 = vpop.f32.mrf.mxu1  ;;  %v1902_v22 = vsel %vm1899_vm14, %v1901_v28, %v1897_v11  ;;  %vm1911_vm2 = vmor %vm1909_vm0, %vm1910_vm15  ;;  %v1930_v55 = vand.u32 2147483648, %v3848_v13  ;;  %v1928_v60 = vand.u32 2147483647, %v3848_v13 }
 0x34e   :  { %v1663_v36 = vadd.f32 %v1603_v20, %v1509_v7  ;;  %2240 = vrot.lane.b32.xlu2 %v1902_v22, %s3093_s24  ;;  %2376 = vrot.lane.b32.xlu1 %v3843_v25, %s3092_s6  ;;  %v1906_v27 = vsub.f32 1.0, %v1905_v56  ;;  %v1250_v21 = vadd.f32 %v3718_v34, %v1221_v44  ;;  %vm1924_vm5 = vweird.f32 %v3848_v13  ;;  %v1416_v44 = vpop.f32.mrf.mxu2 }
 0x34f   :  { %2604 = vmatmul.msk.f32.gmra.mxu2 %vm1120_vm8, %v3693_v19  ;;  %2652 = vmatmul.msk.f32.gmra.mxu1 %vm1120_vm8, %v3693_v19  ;;  %v1931_v61 = vor.u32 1.1754944e-38, %v1930_v55  ;;  %vm1929_vm7 = vcmp.eq.f32.partialorder %v1928_v60, 8.507059e+37  ;;  %v1517_v30 = vpop.f32.mrf.mxu3 }
 0x350   :  { %v3861_v26 = vadd.f32 %v3722_v57, %v1663_v36  ;;  %v1907_v32 = vmul.f32 %v2829_v40, %v1906_v27  ;;  %v1265_v16 = vmul.f32 %v1262_v48, %v1250_v21 }
 0x352   :  { %v2831_v0 = vpop.eup %2830  ;;  %v2665_v35 = vmul.f32 -1.442695, %v3861_v26  ;;  %v1908_v54 = vadd.f32 %v2829_v40, %v1907_v32 }
 0x353   :  { %v2833_v42 = vpop.eup %2832  ;;  %v1796_v19 = vadd.f32 1.0, %v2831_v0 }
 0x354   :  { %2834 = vpow2.f32 %v2665_v35  ;;  %v1912_v51 = vsel %vm1911_vm2, %v2829_v40, %v1908_v54  ;;  %v1920_v47 = vmul.f32 %v2833_v42, %v3848_v13  ;;  %vm1925_vm4 = vweird.f32 %v2833_v42 }
 0x355   :  { %2836 = vrcp.f32 %v1796_v19  ;;  %v1606_v39 = vpop.f32.mrf.mxu1  ;;  %v1917_v24 = vsel %vm1914_vm3, %v1916_v45, %v1912_v51  ;;  %vm1926_vm6 = vmor %vm1924_vm5, %vm1925_vm4  ;;  %v1945_v5 = vand.u32 2147483648, %v1796_v19  ;;  %v1943_v23 = vand.u32 2147483647, %v1796_v19 }
 0x356   :  { %v1664_v4 = vadd.f32 %v1606_v39, %v1512_v43  ;;  %2242 = vrot.lane.b32.xlu0 %v1917_v24, %s3093_s24  ;;  %2378 = vrot.lane.b32.xlu2 %v3861_v26, %s3092_s6  ;;  %v1921_v62 = vsub.f32 1.0, %v1920_v47  ;;  %v1279_v40 = vadd.f32 %v1276_v29, %v1265_v16  ;;  %vm1939_vm9 = vweird.f32 %v1796_v19 }
 0x357   :  { %2605 = vmatmul.msk.f32.gmra.mxu2 %vm1120_vm8, %v3700_v12  ;;  %2653 = vmatmul.msk.f32.gmra.mxu1 %vm1120_vm8, %v3700_v12  ;;  %v1946_v56 = vor.u32 1.1754944e-38, %v1945_v5  ;;  %vm1944_vm11 = vcmp.eq.f32.partialorder %v1943_v23, 8.507059e+37  ;;  %v1520_v39 = vpop.f32.mrf.mxu3 }
 0x358   :  { %v3876_v9 = vadd.f32 %v3722_v57, %v1664_v4  ;;  %v1922_v59 = vmul.f32 %v2833_v42, %v1921_v62  ;;  %v1281_v36 = vmax.f32 %v1279_v40, 0.0 }
 0x35a   :  { %v2835_v8 = vpop.eup %2834  ;;  %v2666_v63 = vmul.f32 -1.442695, %v3876_v9  ;;  %v1923_v38 = vadd.f32 %v2833_v42, %v1922_v59  ;;  %v1515_v59 = vadd.f32 %v3882_v10, %v1416_v44 }
 0x35b   :  { %v2837_v2 = vpop.eup %2836  ;;  %v1797_v12 = vadd.f32 1.0, %v2835_v8 }
 0x35c   :  { %2838 = vpow2.f32 %v2666_v63  ;;  %v1927_v3 = vsel %vm1926_vm6, %v2833_v42, %v1923_v38  ;;  %v1935_v52 = vmul.f32 %v2837_v2, %v1796_v19  ;;  %vm1940_vm1 = vweird.f32 %v2837_v2 }
 0x35d   :  { %2840 = vrcp.f32 %v1797_v12  ;;  %v1932_v34 = vsel %vm1929_vm7, %v1931_v61, %v1927_v3  ;;  %vm1941_vm10 = vmor %vm1939_vm9, %vm1940_vm1  ;;  %v1960_v50 = vand.u32 2147483648, %v1797_v12  ;;  %v1958_v33 = vand.u32 2147483647, %v1797_v12 }
 0x35e   :  { %2244 = vrot.lane.b32.xlu1 %v1932_v34, %s3093_s24  ;;  %2380 = vrot.lane.b32.xlu0 %v3876_v9, %s3092_s6  ;;  %v1936_v1 = vsub.f32 1.0, %v1935_v52  ;;  %vm1954_vm13 = vweird.f32 %v1797_v12 }
 0x35f   :  { %2606 = vmatmul.msk.f32.gmra.mxu2 %vm1120_vm8, %v3707_v41  ;;  %2654 = vmatmul.msk.f32.gmra.mxu1 %vm1120_vm8, %v3707_v41  ;;  %v1961_v35 = vor.u32 1.1754944e-38, %v1960_v50  ;;  %vm1959_vm15 = vcmp.eq.f32.partialorder %v1958_v33, 8.507059e+37  ;;  %v1523_v60 = vpop.f32.mrf.mxu3 }
 0x360   :  { %v1937_v31 = vmul.f32 %v2837_v2, %v1936_v1 }
 0x362   :  { %v2839_v7 = vpop.eup %2838  ;;  %v1938_v13 = vadd.f32 %v2837_v2, %v1937_v31 }
 0x363   :  { %v2841_v28 = vpop.eup %2840  ;;  %v1798_v11 = vadd.f32 1.0, %v2839_v7 }
 0x364   :  { %v1942_v20 = vsel %vm1941_vm10, %v2837_v2, %v1938_v13  ;;  %v1950_v22 = vmul.f32 %v2841_v28, %v1797_v12  ;;  %vm1955_vm12 = vweird.f32 %v2841_v28  ;;  %v3901_v63 = vpop.permute.xlu2 %2360 }
 0x365   :  { %2842 = vrcp.f32 %v1798_v11  ;;  %v1947_v27 = vsel %vm1944_vm11, %v1946_v56, %v1942_v20  ;;  %vm1956_vm14 = vmor %vm1954_vm13, %vm1955_vm12  ;;  %v1975_v45 = vand.u32 2147483648, %v1798_v11  ;;  %v1973_v47 = vand.u32 2147483647, %v1798_v11 }
 0x366   :  { %2246 = vrot.lane.b32.xlu2 %v1947_v27, %s3093_s24  ;;  %v1951_v41 = vsub.f32 1.0, %v1950_v22  ;;  %vm1969_vm2 = vweird.f32 %v1798_v11 }
 0x367   :  { %2607 = vmatmul.msk.f32.gmra.mxu2 %vm1120_vm8, %v1281_v36  ;;  %2655 = vmatmul.msk.f32.gmra.mxu1 %vm1120_vm8, %v1281_v36  ;;  %v1976_v4 = vor.u32 1.1754944e-38, %v1975_v45  ;;  %vm1974_vm4 = vcmp.eq.f32.partialorder %v1973_v47, 8.507059e+37  ;;  %v1526_v3 = vpop.f32.mrf.mxu3 }
 0x368   :  { %v1952_v32 = vmul.f32 %v2841_v28, %v1951_v41 }
 0x36a   :  { %v1953_v0 = vadd.f32 %v2841_v28, %v1952_v32 }
 0x36b   :  { %v2843_v6 = vpop.eup %2842 }
 0x36c   :  { %v1957_v54 = vsel %vm1956_vm14, %v2841_v28, %v1953_v0  ;;  %v1965_v42 = vmul.f32 %v2843_v6, %v1798_v11  ;;  %vm1970_vm0 = vweird.f32 %v2843_v6 }
 0x36d   :  { %v1962_v43 = vsel %vm1959_vm15, %v1961_v35, %v1957_v54  ;;  %vm1971_vm3 = vmor %vm1969_vm2, %vm1970_vm0 }
 0x36e   :  { %2248 = vrot.lane.b32.xlu0 %v1962_v43, %s3093_s24  ;;  %v1966_v19 = vsub.f32 1.0, %v1965_v42 }
 0x36f   :  { %1650 = vmatmul.f32.gmra.mxu1 %v3094_v37  ;;  %v3917_v7 = vpop.f32.mrf.mxu3 }
 0x370   :  { %v1967_v51 = vmul.f32 %v2843_v6, %v1966_v19 }
 0x372   :  { %v1968_v24 = vadd.f32 %v2843_v6, %v1967_v51 }
 0x374   :  { %v1972_v62 = vsel %vm1971_vm3, %v2843_v6, %v1968_v24 }
 0x375   :  { %v1977_v55 = vsel %vm1974_vm4, %v1976_v4, %v1972_v62 }
 0x376   :  { %2250 = vrot.lane.b32.xlu1 %v1977_v55, %s3093_s24 }
 0x377   :  { %v3938_v24 = vpop.f32.mrf.mxu3 }
 0x37b   :  { %v1609_v21 = vpop.f32.mrf.mxu1 }
 0x37c   :  { %v1665_v37 = vadd.f32 %v1609_v21, %v1515_v59  ;;  %v3909_v16 = vpop.permute.xlu2 %2366 }
 0x37e   :  { %v3899_v8 = vadd.f32 %v3722_v57, %v1665_v37 }
 0x380   :  { %v2667_v38 = vmul.f32 -1.442695, %v3899_v8  ;;  %2382 = vrot.lane.b32.xlu1 %v3899_v8, %s3092_s6 }
 0x381   :  { %v1419_v2 = vpop.f32.mrf.mxu2 }
 0x382   :  { %2844 = vpow2.f32 %v2667_v38  ;;  %v1518_v12 = vadd.f32 %v1517_v30, %v1419_v2 }
 0x383   :  { %v1612_v61 = vpop.f32.mrf.mxu1 }
 0x384   :  { %v1666_v48 = vadd.f32 %v1612_v61, %v1518_v12  ;;  %v3919_v28 = vpop.permute.xlu0 %2362 }
 0x386   :  { %v3907_v52 = vadd.f32 %v3722_v57, %v1666_v48 }
 0x388   :  { %v2845_v10 = vpop.eup %2844  ;;  %v2668_v34 = vmul.f32 -1.442695, %v3907_v52  ;;  %2384 = vrot.lane.b32.xlu2 %v3907_v52, %s3092_s6 }
 0x389   :  { %v1799_v1 = vadd.f32 1.0, %v2845_v10  ;;  %v1422_v5 = vpop.f32.mrf.mxu2 }
 0x38a   :  { %2846 = vpow2.f32 %v2668_v34  ;;  %v1521_v29 = vadd.f32 %v1520_v39, %v1422_v5 }
 0x38b   :  { %2848 = vrcp.f32 %v1799_v1  ;;  %v1615_v31 = vpop.f32.mrf.mxu1  ;;  %v1988_v54 = vand.u32 2147483647, %v1799_v1  ;;  %v1990_v42 = vand.u32 2147483648, %v1799_v1  ;;  %vm1984_vm6 = vweird.f32 %v1799_v1 }
 0x38c   :  { %v1667_v23 = vadd.f32 %v1615_v31, %v1521_v29  ;;  %v2365_v41 = vpop.permute.xlu1 %2364 }
 0x38d   :  { %vm1989_vm1 = vcmp.eq.f32.partialorder %v1988_v54, 8.507059e+37  ;;  %v1991_v44 = vor.u32 1.1754944e-38, %v1990_v42 }
 0x38e   :  { %v3915_v40 = vadd.f32 %v3722_v57, %v1667_v23 }
 0x390   :  { %v2847_v13 = vpop.eup %2846  ;;  %v2669_v11 = vmul.f32 -1.442695, %v3915_v40  ;;  %v2235_v56 = vpop.permute.xlu2 %2234  ;;  %2386 = vrot.lane.b32.xlu0 %v3915_v40, %s3092_s6 }
 0x391   :  { %v2849_v20 = vpop.eup %2848  ;;  %v3924_v22 = vadd.f32 1.0, %v2847_v13  ;;  %v2310_v36 = vmul.f32 %v2235_v56, %v3749_v14  ;;  %v1425_v27 = vpop.f32.mrf.mxu2 }
 0x392   :  { %2850 = vpow2.f32 %v2669_v11  ;;  %v1524_v30 = vadd.f32 %v1523_v60, %v1425_v27  ;;  %v1980_v50 = vmul.f32 %v2849_v20, %v1799_v1  ;;  %vm1985_vm5 = vweird.f32 %v2849_v20 }
 0x393   :  { %2852 = vrcp.f32 %v3924_v22  ;;  %v2440_v32 = vadd.f32 %v2365_v41, %v2310_v36  ;;  %v1618_v33 = vpop.f32.mrf.mxu1  ;;  %vm1986_vm7 = vmor %vm1984_vm6, %vm1985_vm5  ;;  %v2003_v48 = vand.u32 2147483647, %v3924_v22  ;;  %v2005_v10 = vand.u32 2147483648, %v3924_v22 }
 0x394   :  { %v1668_v0 = vadd.f32 %v1618_v33, %v1524_v30  ;;  %v1981_v6 = vsub.f32 1.0, %v1980_v50  ;;  %vm1999_vm10 = vweird.f32 %v3924_v22  ;;  %v3965_v30 = vpop.f32.mrf.mxu3 }
 0x395   :  { %v2466_v35 = vmax.f32 %v2440_v32, 0.0  ;;  %vm2004_vm12 = vcmp.eq.f32.partialorder %v2003_v48, 8.507059e+37 }
 0x396   :  { %v3929_v43 = vadd.f32 %v3722_v57, %v1668_v0  ;;  %v1982_v19 = vmul.f32 %v2849_v20, %v1981_v6 }
 0x397   :  { %2492 = vst.msk [vmem:[%s4265_s15 + $0x10] sm:$0xff] %vm1120_vm8, %v2466_v35 }
 0x398   :  { %v2851_v14 = vpop.eup %2850  ;;  %v2670_v45 = vmul.f32 -1.442695, %v3929_v43  ;;  %2388 = vrot.lane.b32.xlu1 %v3929_v43, %s3092_s6  ;;  %v2231_v51 = vpop.permute.xlu0 %2230  ;;  %v1983_v47 = vadd.f32 %v2849_v20, %v1982_v19 }
 0x399   :  { %v2853_v39 = vpop.eup %2852  ;;  %v3940_v4 = vadd.f32 1.0, %v2851_v14  ;;  %v2308_v62 = vmul.f32 %v2231_v51, %v3729_v58  ;;  %v1428_v55 = vpop.f32.mrf.mxu2 }
 0x39a   :  { %2854 = vpow2.f32 %v2670_v45  ;;  %v1527_v59 = vadd.f32 %v1526_v3, %v1428_v55  ;;  %v1987_v60 = vsel %vm1986_vm7, %v2849_v20, %v1983_v47  ;;  %v1995_v21 = vmul.f32 %v2853_v39, %v3924_v22  ;;  %v3956_v1 = vpop.permute.xlu2 %2372 }
 0x39b   :  { %2856 = vrcp.f32 %v3940_v4  ;;  %v2438_v37 = vadd.f32 %v3901_v63, %v2308_v62  ;;  %v1621_v38 = vpop.f32.mrf.mxu1  ;;  %v1992_v2 = vsel %vm1989_vm1, %v1991_v44, %v1987_v60  ;;  %vm2000_vm9 = vweird.f32 %v2853_v39 }
 0x39c   :  { %v1669_v12 = vadd.f32 %v1621_v38, %v1527_v59  ;;  %2252 = vrot.lane.b32.xlu2 %v1992_v2, %s3093_s24  ;;  %v1996_v61 = vsub.f32 1.0, %v1995_v21  ;;  %vm2001_vm11 = vmor %vm1999_vm10, %vm2000_vm9  ;;  %v2006_v20 = vor.u32 1.1754944e-38, %v2005_v10  ;;  %v2018_v35 = vand.u32 2147483647, %v3940_v4  ;;  %v1538_v2 = vpop.f32.mrf.mxu3 }
 0x39d   :  { %v2464_v58 = vmax.f32 %v2438_v37, 0.0  ;;  %vm2014_vm14 = vweird.f32 %v3940_v4 }
 0x39e   :  { %v3950_v3 = vadd.f32 %v3722_v57, %v1669_v12  ;;  %v1997_v34 = vmul.f32 %v2853_v39, %v1996_v61  ;;  %vm2019_vm0 = vcmp.eq.f32.partialorder %v2018_v35, 8.507059e+37 }
 0x39f   :  { %2490 = vst.msk [vmem:[%s4265_s15] sm:$0xff] %vm1120_vm8, %v2464_v58 }
 0x3a0   :  { %v2855_v63 = vpop.eup %2854  ;;  %v2671_v5 = vmul.f32 -1.442695, %v3950_v3  ;;  %v2233_v29 = vpop.permute.xlu1 %2232  ;;  %v1998_v31 = vadd.f32 %v2853_v39, %v1997_v34 }
 0x3a1   :  { %v2857_v23 = vpop.eup %2856  ;;  %v3960_v13 = vadd.f32 1.0, %v2855_v63  ;;  %v2309_v11 = vmul.f32 %v2233_v29, %v3739_v17  ;;  %v1431_v56 = vpop.f32.mrf.mxu2 }
 0x3a2   :  { %2858 = vpow2.f32 %v2671_v5  ;;  %v1530_v36 = vadd.f32 %v3917_v7, %v1431_v56  ;;  %v2002_v27 = vsel %vm2001_vm11, %v2853_v39, %v1998_v31  ;;  %v2010_v41 = vmul.f32 %v2857_v23, %v3940_v4  ;;  %v3981_v42 = vpop.permute.xlu0 %2368 }
 0x3a3   :  { %2860 = vrcp.f32 %v3960_v13  ;;  %v2439_v22 = vadd.f32 %v3919_v28, %v2309_v11  ;;  %v2007_v50 = vsel %vm2004_vm12, %v2006_v20, %v2002_v27  ;;  %v2020_v7 = vand.u32 2147483648, %v3940_v4 }
 0x3a4   :  { %v1624_v32 = vpop.f32.mrf.mxu1  ;;  %2254 = vrot.lane.b32.xlu0 %v2007_v50, %s3093_s24  ;;  %2390 = vrot.lane.b32.xlu2 %v3950_v3, %s3092_s6  ;;  %v2011_v17 = vsub.f32 1.0, %v2010_v41  ;;  %vm2015_vm13 = vweird.f32 %v2857_v23  ;;  %v2033_v58 = vand.u32 2147483647, %v3960_v13  ;;  %v2035_v48 = vand.u32 2147483648, %v3960_v13 }
 0x3a5   :  { %v2465_v33 = vmax.f32 %v2439_v22, 0.0  ;;  %v1670_v0 = vadd.f32 %v1624_v32, %v1530_v36  ;;  %vm2016_vm15 = vmor %vm2014_vm14, %vm2015_vm13  ;;  %v2021_v55 = vor.u32 1.1754944e-38, %v2020_v7  ;;  %vm2029_vm3 = vweird.f32 %v3960_v13 }
 0x3a6   :  { %v2012_v6 = vmul.f32 %v2857_v23, %v2011_v17  ;;  %vm2034_vm5 = vcmp.eq.f32.partialorder %v2033_v58, 8.507059e+37  ;;  %v2036_v20 = vor.u32 1.1754944e-38, %v2035_v48 }
 0x3a7   :  { %2491 = vst.msk [vmem:[%s4265_s15 + $0x8] sm:$0xff] %vm1120_vm8, %v2465_v33  ;;  %v3979_v28 = vadd.f32 %v3722_v57, %v1670_v0  ;;  %v1541_v0 = vpop.f32.mrf.mxu3 }
 0x3a8   :  { %v2859_v54 = vpop.eup %2858  ;;  %v2241_v19 = vpop.permute.xlu2 %2240  ;;  %v2013_v14 = vadd.f32 %v2857_v23, %v2012_v6 }
 0x3a9   :  { %v2861_v45 = vpop.eup %2860  ;;  %v3984_v51 = vadd.f32 1.0, %v2859_v54  ;;  %v2672_v47 = vmul.f32 -1.442695, %v3979_v28  ;;  %v2313_v39 = vmul.f32 %v2241_v19, %v3789_v49  ;;  %v1434_v62 = vpop.f32.mrf.mxu2 }
 0x3aa   :  { %v2371_v44 = vpop.permute.xlu1 %2370  ;;  %v1533_v59 = vadd.f32 %v3938_v24, %v1434_v62  ;;  %v2017_v60 = vsel %vm2016_vm15, %v2857_v23, %v2013_v14  ;;  %v2025_v21 = vmul.f32 %v2861_v45, %v3960_v13  ;;  %vm2030_vm2 = vweird.f32 %v2861_v45 }
 0x3ab   :  { %2862 = vrcp.f32 %v3984_v51  ;;  %v2443_v4 = vadd.f32 %v2371_v44, %v2313_v39  ;;  %v2022_v37 = vsel %vm2019_vm0, %v2021_v55, %v2017_v60  ;;  %vm2031_vm4 = vmor %vm2029_vm3, %vm2030_vm2  ;;  %v2050_v17 = vand.u32 2147483648, %v3984_v51 }
 0x3ac   :  { %2864 = vpow2.f32 %v2672_v47  ;;  %v1627_v38 = vpop.f32.mrf.mxu1  ;;  %2256 = vrot.lane.b32.xlu1 %v2022_v37, %s3093_s24  ;;  %2392 = vrot.lane.b32.xlu0 %v3979_v28, %s3092_s6  ;;  %v2026_v49 = vsub.f32 1.0, %v2025_v21  ;;  %vm2044_vm7 = vweird.f32 %v3984_v51 }
 0x3ad   :  { %v2469_v12 = vmax.f32 %v2443_v4, 0.0  ;;  %v1671_v61 = vadd.f32 %v1627_v38, %v1533_v59  ;;  %v2051_v47 = vor.u32 1.1754944e-38, %v2050_v17 }
 0x3ae   :  { %v2027_v24 = vmul.f32 %v2861_v45, %v2026_v49 }
 0x3af   :  { %2495 = vst.msk [vmem:[%s4265_s15 + $0x28] sm:$0xff] %vm1120_vm8, %v2469_v12  ;;  %v4001_v10 = vadd.f32 %v3722_v57, %v1671_v61  ;;  %v1544_v48 = vpop.f32.mrf.mxu3 }
 0x3b0   :  { %v2237_v34 = vpop.permute.xlu0 %2236  ;;  %v2028_v63 = vadd.f32 %v2861_v45, %v2027_v24  ;;  %v4026_v6 = vpop.permute.xlu2 %2378 }
 0x3b1   :  { %v2863_v5 = vpop.eup %2862  ;;  %v2673_v29 = vmul.f32 -1.442695, %v4001_v10  ;;  %v2311_v31 = vmul.f32 %v2237_v34, %v3759_v18 }
 0x3b2   :  { %v2865_v23 = vpop.eup %2864  ;;  %v1437_v11 = vpop.f32.mrf.mxu2  ;;  %v2032_v56 = vsel %vm2031_vm4, %v2861_v45, %v2028_v63  ;;  %v2040_v36 = vmul.f32 %v2863_v5, %v3984_v51  ;;  %vm2045_vm6 = vweird.f32 %v2863_v5 }
 0x3b3   :  { %v4007_v27 = vadd.f32 1.0, %v2865_v23  ;;  %2866 = vpow2.f32 %v2673_v29  ;;  %v2441_v57 = vadd.f32 %v3909_v16, %v2311_v31  ;;  %v1536_v13 = vadd.f32 %v3965_v30, %v1437_v11  ;;  %v4021_v30 = vld [vmem:[#allocation12] ss:$0 sm:$0xff]  ;;  %vm2046_vm1 = vmor %vm2044_vm7, %vm2045_vm6 }
 0x3b4   :  { %v1630_v41 = vpop.f32.mrf.mxu1  ;;  %v2037_v22 = vsel %vm2034_vm5, %v2036_v20, %v2032_v56  ;;  %2394 = vrot.lane.b32.xlu1 %v4001_v10, %s3092_s6  ;;  %v2041_v18 = vsub.f32 1.0, %v2040_v36  ;;  %v2048_v16 = vand.u32 2147483647, %v3984_v51 }
 0x3b5   :  { %2868 = vrcp.f32 %v4007_v27  ;;  %v2467_v50 = vmax.f32 %v2441_v57, 0.0  ;;  %v1672_v32 = vadd.f32 %v1630_v41, %v1536_v13  ;;  %2258 = vrot.lane.b32.xlu2 %v2037_v22, %s3093_s24  ;;  %v2065_v49 = vand.u32 2147483648, %v4007_v27 }
 0x3b6   :  { %v2042_v33 = vmul.f32 %v2863_v5, %v2041_v18  ;;  %vm2049_vm9 = vcmp.eq.f32.partialorder %v2048_v16, 8.507059e+37  ;;  %v2063_v24 = vand.u32 2147483647, %v4007_v27  ;;  %vm2059_vm11 = vweird.f32 %v4007_v27 }
 0x3b7   :  { %2493 = vst.msk [vmem:[%s4265_s15 + $0x18] sm:$0xff] %vm1120_vm8, %v2467_v50  ;;  %v4024_v7 = vadd.f32 %v4021_v30, %v1672_v32  ;;  %v2066_v56 = vor.u32 1.1754944e-38, %v2065_v49 }
 0x3b8   :  { %v2239_v35 = vpop.permute.xlu1 %2238  ;;  %v2043_v54 = vadd.f32 %v2863_v5, %v2042_v33  ;;  %vm2064_vm13 = vcmp.eq.f32.partialorder %v2063_v24, 8.507059e+37 }
 0x3b9   :  { %v2867_v19 = vpop.eup %2866  ;;  %v2674_v14 = vmul.f32 -1.442695, %v4024_v7  ;;  %v2312_v45 = vmul.f32 %v2239_v35, %v3773_v46 }
 0x3ba   :  { %v4031_v39 = vadd.f32 1.0, %v2867_v19  ;;  %v1440_v62 = vpop.f32.mrf.mxu2  ;;  %v2047_v55 = vsel %vm2046_vm1, %v2863_v5, %v2043_v54 }
 0x3bb   :  { %v2869_v44 = vpop.eup %2868  ;;  %2870 = vpow2.f32 %v2674_v14  ;;  %v2442_v59 = vadd.f32 %v3981_v42, %v2312_v45  ;;  %v1539_v60 = vadd.f32 %v1538_v2, %v1440_v62  ;;  %v2052_v21 = vsel %vm2049_vm9, %v2051_v47, %v2047_v55  ;;  %v4047_v2 = vpop.permute.xlu0 %2374 }
 0x3bc   :  { %2872 = vrcp.f32 %v4031_v39  ;;  %v1633_v51 = vpop.f32.mrf.mxu1  ;;  %2260 = vrot.lane.b32.xlu0 %v2052_v21, %s3093_s24  ;;  %v2055_v46 = vmul.f32 %v2869_v44, %v4007_v27  ;;  %vm2060_vm10 = vweird.f32 %v2869_v44  ;;  %v2078_v50 = vand.u32 2147483647, %v4031_v39 }
 0x3bd   :  { %v2468_v4 = vmax.f32 %v2442_v59, 0.0  ;;  %v1673_v37 = vadd.f32 %v1633_v51, %v1539_v60  ;;  %2396 = vrot.lane.b32.xlu2 %v4024_v7, %s3092_s6  ;;  %vm2061_vm12 = vmor %vm2059_vm11, %vm2060_vm10  ;;  %v2080_v32 = vand.u32 2147483648, %v4031_v39  ;;  %vm2074_vm15 = vweird.f32 %v4031_v39  ;;  %v1547_v60 = vpop.f32.mrf.mxu3 }
 0x3be   :  { %v2056_v38 = vsub.f32 1.0, %v2055_v46  ;;  %vm2079_vm2 = vcmp.eq.f32.partialorder %v2078_v50, 8.507059e+37 }
 0x3bf   :  { %2494 = vst.msk [vmem:[%s4265_s15 + $0x20] sm:$0xff] %vm1120_vm8, %v2468_v4  ;;  %v4045_v42 = vadd.f32 %v4021_v30, %v1673_v37  ;;  %v2081_v62 = vor.u32 1.1754944e-38, %v2080_v32 }
 0x3c0   :  { %v2247_v12 = vpop.permute.xlu2 %2246  ;;  %v2057_v61 = vmul.f32 %v2869_v44, %v2056_v38  ;;  %v2377_v31 = vpop.permute.xlu1 %2376 }
 0x3c1   :  { %v2871_v58 = vpop.eup %2870  ;;  %v2675_v34 = vmul.f32 -1.442695, %v4045_v42  ;;  %v2316_v63 = vmul.f32 %v2247_v12, %v3843_v25 }
 0x3c2   :  { %v2873_v5 = vpop.eup %2872  ;;  %v4052_v29 = vadd.f32 1.0, %v2871_v58  ;;  %v1443_v23 = vpop.f32.mrf.mxu2  ;;  %v2058_v11 = vadd.f32 %v2869_v44, %v2057_v61 }
 0x3c3   :  { %2874 = vpow2.f32 %v2675_v34  ;;  %v2446_v20 = vadd.f32 %v2377_v31, %v2316_v63  ;;  %v1542_v36 = vadd.f32 %v1541_v0, %v1443_v23  ;;  %v2070_v57 = vmul.f32 %v2873_v5, %v4031_v39 }
 0x3c4   :  { %2876 = vrcp.f32 %v4052_v29  ;;  %v1636_v13 = vpop.f32.mrf.mxu1  ;;  %v2062_v25 = vsel %vm2061_vm12, %v2869_v44, %v2058_v11  ;;  %2398 = vrot.lane.b32.xlu0 %v4045_v42, %s3092_s6  ;;  %vm2075_vm14 = vweird.f32 %v2873_v5  ;;  %v2095_v37 = vand.u32 2147483648, %v4052_v29 }
 0x3c5   :  { %v2472_v41 = vmax.f32 %v2446_v20, 0.0  ;;  %v1674_v22 = vadd.f32 %v1636_v13, %v1542_v36  ;;  %v2067_v18 = vsel %vm2064_vm13, %v2066_v56, %v2062_v25  ;;  %v2071_v27 = vsub.f32 1.0, %v2070_v57  ;;  %vm2076_vm0 = vmor %vm2074_vm15, %vm2075_vm14  ;;  %v1550_v25 = vpop.f32.mrf.mxu3 }
 0x3c6   :  { %2262 = vrot.lane.b32.xlu1 %v2067_v18, %s3093_s24  ;;  %v2093_v12 = vand.u32 2147483647, %v4052_v29  ;;  %vm2089_vm4 = vweird.f32 %v4052_v29  ;;  %v2096_v31 = vor.u32 1.1754944e-38, %v2095_v37 }
 0x3c7   :  { %2498 = vst.msk [vmem:[%s4265_s15 + $0x40] sm:$0xff] %vm1120_vm8, %v2472_v41  ;;  %v4068_v17 = vadd.f32 %v4021_v30, %v1674_v22  ;;  %v2072_v33 = vmul.f32 %v2873_v5, %v2071_v27 }
 0x3c8   :  { %v2243_v16 = vpop.permute.xlu0 %2242  ;;  %vm2094_vm6 = vcmp.eq.f32.partialorder %v2093_v12, 8.507059e+37 }
 0x3c9   :  { %v2875_v0 = vpop.eup %2874  ;;  %v2676_v35 = vmul.f32 -1.442695, %v4068_v17  ;;  %v2314_v54 = vmul.f32 %v2243_v16, %v3807_v15  ;;  %v2073_v19 = vadd.f32 %v2873_v5, %v2072_v33 }
 0x3ca   :  { %v2877_v14 = vpop.eup %2876  ;;  %v4073_v45 = vadd.f32 1.0, %v2875_v0  ;;  %v1446_v47 = vpop.f32.mrf.mxu2 }
 0x3cb   :  { %2878 = vpow2.f32 %v2676_v35  ;;  %v2444_v55 = vadd.f32 %v3956_v1, %v2314_v54  ;;  %v1545_v44 = vadd.f32 %v1544_v48, %v1446_v47  ;;  %v2077_v59 = vsel %vm2076_vm0, %v2873_v5, %v2073_v19 }
 0x3cc   :  { %2880 = vrcp.f32 %v4073_v45  ;;  %v1639_v21 = vpop.f32.mrf.mxu1  ;;  %v2082_v15 = vsel %vm2079_vm2, %v2081_v62, %v2077_v59  ;;  %v2085_v51 = vmul.f32 %v2877_v14, %v4052_v29  ;;  %vm2090_vm3 = vweird.f32 %v2877_v14 }
 0x3cd   :  { %v2470_v39 = vmax.f32 %v2444_v55, 0.0  ;;  %v1675_v46 = vadd.f32 %v1639_v21, %v1545_v44  ;;  %2264 = vrot.lane.b32.xlu2 %v2082_v15, %s3093_s24  ;;  %vm2091_vm5 = vmor %vm2089_vm4, %vm2090_vm3  ;;  %v2110_v41 = vand.u32 2147483648, %v4073_v45  ;;  %vm2104_vm1 = vweird.f32 %v4073_v45 }
 0x3ce   :  { %2400 = vrot.lane.b32.xlu1 %v4068_v17, %s3092_s6  ;;  %v2086_v4 = vsub.f32 1.0, %v2085_v51  ;;  %v1553_v51 = vpop.f32.mrf.mxu3 }
 0x3cf   :  { %2496 = vst.msk [vmem:[%s4265_s15 + $0x30] sm:$0xff] %vm1120_vm8, %v2470_v39  ;;  %v4087_v1 = vadd.f32 %v4021_v30, %v1675_v46  ;;  %v2111_v54 = vor.u32 1.1754944e-38, %v2110_v41 }
 0x3d0   :  { %v2245_v38 = vpop.permute.xlu1 %2244  ;;  %v2087_v49 = vmul.f32 %v2877_v14, %v2086_v4  ;;  %v4110_v27 = vpop.permute.xlu0 %2380 }
 0x3d1   :  { %v2879_v61 = vpop.eup %2878  ;;  %v2677_v24 = vmul.f32 -1.442695, %v4087_v1  ;;  %v2315_v58 = vmul.f32 %v2245_v38, %v3825_v53 }
 0x3d2   :  { %v2881_v48 = vpop.eup %2880  ;;  %v4092_v34 = vadd.f32 1.0, %v2879_v61  ;;  %v1449_v63 = vpop.f32.mrf.mxu2  ;;  %v2088_v5 = vadd.f32 %v2877_v14, %v2087_v49 }
 0x3d3   :  { %2882 = vpow2.f32 %v2677_v24  ;;  %v2445_v23 = vadd.f32 %v4047_v2, %v2315_v58  ;;  %v1548_v11 = vadd.f32 %v1547_v60, %v1449_v63  ;;  %v2100_v56 = vmul.f32 %v2881_v48, %v4073_v45 }
 0x3d4   :  { %2884 = vrcp.f32 %v4092_v34  ;;  %v1642_v20 = vpop.f32.mrf.mxu1  ;;  %v2092_v36 = vsel %vm2091_vm5, %v2877_v14, %v2088_v5  ;;  %v2108_v2 = vand.u32 2147483647, %v4073_v45  ;;  %vm2105_vm7 = vweird.f32 %v2881_v48 }
 0x3d5   :  { %v2471_v53 = vmax.f32 %v2445_v23, 0.0  ;;  %v1676_v57 = vadd.f32 %v1642_v20, %v1548_v11  ;;  %v2097_v13 = vsel %vm2094_vm6, %v2096_v31, %v2092_v36  ;;  %2402 = vrot.lane.b32.xlu2 %v4087_v1, %s3092_s6  ;;  %v2101_v29 = vsub.f32 1.0, %v2100_v56  ;;  %vm2106_vm9 = vmor %vm2104_vm1, %vm2105_vm7 }
 0x3d6   :  { %2266 = vrot.lane.b32.xlu0 %v2097_v13, %s3093_s24  ;;  %vm2109_vm10 = vcmp.eq.f32.partialorder %v2108_v2, 8.507059e+37  ;;  %v2123_v59 = vand.u32 2147483647, %v4092_v34  ;;  %v2125_v60 = vand.u32 2147483648, %v4092_v34  ;;  %vm2119_vm12 = vweird.f32 %v4092_v34  ;;  %v1556_v2 = vpop.f32.mrf.mxu3 }
 0x3d7   :  { %2497 = vst.msk [vmem:[%s4265_s15 + $0x38] sm:$0xff] %vm1120_vm8, %v2471_v53  ;;  %v4108_v22 = vadd.f32 %v4021_v30, %v1676_v57  ;;  %v2102_v18 = vmul.f32 %v2881_v48, %v2101_v29 }
 0x3d8   :  { %vm2124_vm14 = vcmp.eq.f32.partialorder %v2123_v59, 8.507059e+37  ;;  %v2126_v24 = vor.u32 1.1754944e-38, %v2125_v60 }
 0x3d9   :  { %v2883_v50 = vpop.eup %2882  ;;  %v2678_v32 = vmul.f32 -1.442695, %v4108_v22  ;;  %v2103_v33 = vadd.f32 %v2881_v48, %v2102_v18 }
 0x3da   :  { %v2885_v16 = vpop.eup %2884  ;;  %v4114_v0 = vadd.f32 1.0, %v2883_v50  ;;  %v1452_v35 = vpop.f32.mrf.mxu2 }
 0x3db   :  { %2886 = vpow2.f32 %v2678_v32  ;;  %v1551_v19 = vadd.f32 %v1550_v25, %v1452_v35  ;;  %v2107_v14 = vsel %vm2106_vm9, %v2881_v48, %v2103_v33  ;;  %v2115_v47 = vmul.f32 %v2885_v16, %v4092_v34 }
 0x3dc   :  { %2888 = vrcp.f32 %v4114_v0  ;;  %v1645_v62 = vpop.f32.mrf.mxu1  ;;  %v2112_v55 = vsel %vm2109_vm10, %v2111_v54, %v2107_v14  ;;  %vm2120_vm11 = vweird.f32 %v2885_v16  ;;  %v2140_v56 = vand.u32 2147483648, %v4114_v0 }
 0x3dd   :  { %v1677_v44 = vadd.f32 %v1645_v62, %v1551_v19  ;;  %2268 = vrot.lane.b32.xlu1 %v2112_v55, %s3093_s24  ;;  %v2116_v45 = vsub.f32 1.0, %v2115_v47  ;;  %vm2121_vm13 = vmor %vm2119_vm12, %vm2120_vm11  ;;  %v2138_v53 = vand.u32 2147483647, %v4114_v0  ;;  %vm2134_vm0 = vweird.f32 %v4114_v0 }
 0x3de   :  { %2404 = vrot.lane.b32.xlu0 %v4108_v22, %s3092_s6  ;;  %v2141_v32 = vor.u32 1.1754944e-38, %v2140_v56 }
 0x3df   :  { %v4124_v21 = vadd.f32 %v4021_v30, %v1677_v44  ;;  %v2117_v15 = vmul.f32 %v2885_v16, %v2116_v45  ;;  %vm2139_vm3 = vcmp.eq.f32.partialorder %v2138_v53, 8.507059e+37 }
 0x3e0   :  { %v2249_v39 = vpop.permute.xlu0 %2248 }
 0x3e1   :  { %v2887_v46 = vpop.eup %2886  ;;  %v2679_v4 = vmul.f32 -1.442695, %v4124_v21  ;;  %v2317_v37 = vmul.f32 %v2249_v39, %v3861_v26  ;;  %v2118_v38 = vadd.f32 %v2885_v16, %v2117_v15 }
 0x3e2   :  { %v2889_v49 = vpop.eup %2888  ;;  %v4129_v12 = vadd.f32 1.0, %v2887_v46  ;;  %v1455_v61 = vpop.f32.mrf.mxu2 }
 0x3e3   :  { %2890 = vpow2.f32 %v2679_v4  ;;  %v2447_v58 = vadd.f32 %v4026_v6, %v2317_v37  ;;  %v1554_v48 = vadd.f32 %v1553_v51, %v1455_v61  ;;  %v2122_v63 = vsel %vm2121_vm13, %v2885_v16, %v2118_v38  ;;  %v4150_v55 = vpop.permute.xlu2 %2384 }
 0x3e4   :  { %2892 = vrcp.f32 %v4129_v12  ;;  %v1648_v5 = vpop.f32.mrf.mxu1  ;;  %v2127_v31 = vsel %vm2124_vm14, %v2126_v24, %v2122_v63  ;;  %v2130_v26 = vmul.f32 %v2889_v49, %v4114_v0  ;;  %vm2135_vm15 = vweird.f32 %v2889_v49 }
 0x3e5   :  { %v2473_v23 = vmax.f32 %v2447_v58, 0.0  ;;  %v1678_v34 = vadd.f32 %v1648_v5, %v1554_v48  ;;  %2270 = vrot.lane.b32.xlu2 %v2127_v31, %s3093_s24  ;;  %vm2136_vm2 = vmor %vm2134_vm0, %vm2135_vm15  ;;  %v2155_v0 = vand.u32 2147483648, %v4129_v12  ;;  %v2153_v45 = vand.u32 2147483647, %v4129_v12 }
 0x3e6   :  { %v2131_v11 = vsub.f32 1.0, %v2130_v26  ;;  %vm2149_vm5 = vweird.f32 %v4129_v12 }
 0x3e7   :  { %2499 = vst.msk [vmem:[%s4265_s15 + $0x48] sm:$0xff] %vm1120_vm8, %v2473_v23  ;;  %v4141_v6 = vadd.f32 %v4021_v30, %v1678_v34  ;;  %v2156_v46 = vor.u32 1.1754944e-38, %v2155_v0  ;;  %vm2154_vm7 = vcmp.eq.f32.partialorder %v2153_v45, 8.507059e+37 }
 0x3e8   :  { %v2251_v20 = vpop.permute.xlu1 %2250  ;;  %v2132_v36 = vmul.f32 %v2889_v49, %v2131_v11 }
 0x3e9   :  { %v2891_v57 = vpop.eup %2890  ;;  %v2680_v13 = vmul.f32 -1.442695, %v4141_v6  ;;  %v2318_v29 = vmul.f32 %v2251_v20, %v3876_v9 }
 0x3ea   :  { %v2893_v25 = vpop.eup %2892  ;;  %v1811_v41 = vadd.f32 1.0, %v2891_v57  ;;  %v1458_v18 = vpop.f32.mrf.mxu2  ;;  %v2133_v50 = vadd.f32 %v2889_v49, %v2132_v36 }
 0x3eb   :  { %2894 = vpow2.f32 %v2680_v13  ;;  %v2448_v33 = vadd.f32 %v4110_v27, %v2318_v29  ;;  %v1557_v16 = vadd.f32 %v1556_v2, %v1458_v18  ;;  %v2145_v35 = vmul.f32 %v2893_v25, %v4129_v12 }
 0x3ec   :  { %2896 = vrcp.f32 %v1811_v41  ;;  %v1651_v54 = vpop.f32.mrf.mxu1  ;;  %v2137_v19 = vsel %vm2136_vm2, %v2889_v49, %v2133_v50  ;;  %vm2150_vm4 = vweird.f32 %v2893_v25  ;;  %v2170_v61 = vand.u32 2147483648, %v1811_v41 }
 0x3ed   :  { %v2474_v9 = vmax.f32 %v2448_v33, 0.0  ;;  %v1679_v14 = vadd.f32 %v1651_v54, %v1557_v16  ;;  %v2142_v47 = vsel %vm2139_vm3, %v2141_v32, %v2137_v19  ;;  %v2146_v62 = vsub.f32 1.0, %v2145_v35  ;;  %vm2151_vm6 = vmor %vm2149_vm5, %vm2150_vm4 }
 0x3ee   :  { %2272 = vrot.lane.b32.xlu0 %v2142_v47, %s3093_s24  ;;  %v2168_v12 = vand.u32 2147483647, %v1811_v41  ;;  %vm2164_vm9 = vweird.f32 %v1811_v41  ;;  %v2171_v34 = vor.u32 1.1754944e-38, %v2170_v61 }
 0x3ef   :  { %2500 = vst.msk [vmem:[%s4265_s15 + $0x50] sm:$0xff] %vm1120_vm8, %v2474_v9  ;;  %v4159_v27 = vadd.f32 %v4021_v30, %v1679_v14  ;;  %v2147_v44 = vmul.f32 %v2893_v25, %v2146_v62 }
 0x3f0   :  { %vm2169_vm11 = vcmp.eq.f32.partialorder %v2168_v12, 8.507059e+37 }
 0x3f1   :  { %v2895_v59 = vpop.eup %2894  ;;  %v2681_v60 = vmul.f32 -1.442695, %v4159_v27  ;;  %v2148_v15 = vadd.f32 %v2893_v25, %v2147_v44 }
 0x3f2   :  { %v2897_v51 = vpop.eup %2896  ;;  %v1812_v39 = vadd.f32 1.0, %v2895_v59  ;;  %v2383_v48 = vpop.permute.xlu1 %2382 }
 0x3f3   :  { %2898 = vpow2.f32 %v2681_v60  ;;  %v2152_v4 = vsel %vm2151_vm6, %v2893_v25, %v2148_v15  ;;  %v2160_v37 = vmul.f32 %v2897_v51, %v1811_v41  ;;  %vm2165_vm1 = vweird.f32 %v2897_v51 }
 0x3f4   :  { %2900 = vrcp.f32 %v1812_v39  ;;  %v2157_v30 = vsel %vm2154_vm7, %v2156_v46, %v2152_v4  ;;  %vm2166_vm10 = vmor %vm2164_vm9, %vm2165_vm1  ;;  %v2185_v53 = vand.u32 2147483648, %v1812_v39  ;;  %v2183_v13 = vand.u32 2147483647, %v1812_v39 }
 0x3f5   :  { %2274 = vrot.lane.b32.xlu1 %v2157_v30, %s3093_s24  ;;  %v2161_v38 = vsub.f32 1.0, %v2160_v37  ;;  %vm2179_vm13 = vweird.f32 %v1812_v39 }
 0x3f6   :  { %v2253_v49 = vpop.permute.xlu2 %2252  ;;  %v2186_v2 = vor.u32 1.1754944e-38, %v2185_v53  ;;  %vm2184_vm15 = vcmp.eq.f32.partialorder %v2183_v13, 8.507059e+37 }
 0x3f7   :  { %v2319_v24 = vmul.f32 %v2253_v49, %v3899_v8  ;;  %v2162_v58 = vmul.f32 %v2897_v51, %v2161_v38 }
 0x3f9   :  { %v2899_v63 = vpop.eup %2898  ;;  %v2449_v5 = vadd.f32 %v2383_v48, %v2319_v24  ;;  %v2163_v31 = vadd.f32 %v2897_v51, %v2162_v58 }
 0x3fa   :  { %v2901_v26 = vpop.eup %2900  ;;  %v1813_v23 = vadd.f32 1.0, %v2899_v63 }
 0x3fb   :  { %v2475_v11 = vmax.f32 %v2449_v5, 0.0  ;;  %v2167_v56 = vsel %vm2166_vm10, %v2897_v51, %v2163_v31  ;;  %v2175_v20 = vmul.f32 %v2901_v26, %v1812_v39  ;;  %vm2180_vm12 = vweird.f32 %v2901_v26 }
 0x3fc   :  { %2902 = vrcp.f32 %v1813_v23  ;;  %v2172_v36 = vsel %vm2169_vm11, %v2171_v34, %v2167_v56  ;;  %vm2181_vm14 = vmor %vm2179_vm13, %vm2180_vm12  ;;  %v2200_v33 = vand.u32 2147483648, %v1813_v23  ;;  %v2198_v54 = vand.u32 2147483647, %v1813_v23 }
 0x3fd   :  { %2501 = vst.msk [vmem:[%s4265_s15 + $0x58] sm:$0xff] %vm1120_vm8, %v2475_v11  ;;  %2276 = vrot.lane.b32.xlu2 %v2172_v36, %s3093_s24  ;;  %v2176_v8 = vsub.f32 1.0, %v2175_v20  ;;  %vm2194_vm2 = vweird.f32 %v1813_v23 }
 0x3fe   :  { %v2391_v16 = vpop.permute.xlu2 %2390  ;;  %v2201_v9 = vor.u32 1.1754944e-38, %v2200_v33  ;;  %vm2199_vm4 = vcmp.eq.f32.partialorder %v2198_v54, 8.507059e+37 }
 0x3ff   :  { %v2177_v57 = vmul.f32 %v2901_v26, %v2176_v8 }
 0x401   :  { %v2178_v29 = vadd.f32 %v2901_v26, %v2177_v57 }
 0x402   :  { %v2903_v25 = vpop.eup %2902  ;;  %v2387_v62 = vpop.permute.xlu0 %2386 }
 0x403   :  { %v2182_v41 = vsel %vm2181_vm14, %v2901_v26, %v2178_v29  ;;  %v2190_v18 = vmul.f32 %v2903_v25, %v1813_v23  ;;  %vm2195_vm0 = vweird.f32 %v2903_v25 }
 0x404   :  { %v2187_v50 = vsel %vm2184_vm15, %v2186_v2, %v2182_v41  ;;  %vm2196_vm3 = vmor %vm2194_vm2, %vm2195_vm0 }
 0x405   :  { %2408 = vrot.lane.b32.xlu2 %v4141_v6, %s3092_s6  ;;  %2278 = vrot.lane.b32.xlu0 %v2187_v50, %s3093_s24  ;;  %v2191_v32 = vsub.f32 1.0, %v2190_v18 }
 0x407   :  { %v2192_v35 = vmul.f32 %v2903_v25, %v2191_v32 }
 0x409   :  { %v2193_v19 = vadd.f32 %v2903_v25, %v2192_v35 }
 0x40a   :  { %v2389_v45 = vpop.permute.xlu1 %2388 }
 0x40b   :  { %v2197_v14 = vsel %vm2196_vm3, %v2903_v25, %v2193_v19 }
 0x40c   :  { %v2202_v47 = vsel %vm2199_vm4, %v2201_v9, %v2197_v14 }
 0x40d   :  { %2410 = vrot.lane.b32.xlu0 %v4159_v27, %s3092_s6  ;;  %2280 = vrot.lane.b32.xlu1 %v2202_v47, %s3093_s24 }
 0x40f   :  { %v2259_v0 = vpop.permute.xlu2 %2258 }
 0x410   :  { %v2322_v44 = vmul.f32 %v2259_v0, %v3929_v43 }
 0x412   :  { %v2452_v59 = vadd.f32 %v2389_v45, %v2322_v44 }
 0x414   :  { %v2478_v60 = vmax.f32 %v2452_v59, 0.0 }
 0x415   :  { %2406 = vrot.lane.b32.xlu1 %v4124_v21, %s3092_s6 }
 0x416   :  { %2504 = vst.msk [vmem:[%s4265_s15 + $0x70] sm:$0xff] %vm1120_vm8, %v2478_v60  ;;  %v2255_v15 = vpop.permute.xlu0 %2254 }
 0x417   :  { %v2320_v51 = vmul.f32 %v2255_v15, %v3907_v52  ;;  %v2397_v4 = vpop.permute.xlu2 %2396 }
 0x419   :  { %v2450_v39 = vadd.f32 %v4150_v55, %v2320_v51 }
 0x41b   :  { %v2476_v46 = vmax.f32 %v2450_v39, 0.0 }
 0x41d   :  { %2502 = vst.msk [vmem:[%s4265_s15 + $0x60] sm:$0xff] %vm1120_vm8, %v2476_v46 }
 0x41e   :  { %v2257_v43 = vpop.permute.xlu1 %2256  ;;  %v2393_v52 = vpop.permute.xlu0 %2392 }
 0x41f   :  { %v2321_v37 = vmul.f32 %v2257_v43, %v3915_v40 }
 0x421   :  { %v2451_v30 = vadd.f32 %v2387_v62, %v2321_v37 }
 0x423   :  { %v2477_v38 = vmax.f32 %v2451_v30, 0.0 }
 0x425   :  { %2503 = vst.msk [vmem:[%s4265_s15 + $0x68] sm:$0xff] %vm1120_vm8, %v2477_v38 }
 0x426   :  { %v2395_v61 = vpop.permute.xlu1 %2394 }
 0x427   :  { %v2265_v49 = vpop.permute.xlu2 %2264 }
 0x428   :  { %v2325_v55 = vmul.f32 %v2265_v49, %v4001_v10 }
 0x42a   :  { %v2455_v24 = vadd.f32 %v2395_v61, %v2325_v55 }
 0x42c   :  { %v2481_v58 = vmax.f32 %v2455_v24, 0.0 }
 0x42e   :  { %2507 = vst.msk [vmem:[%s4265_s15 + $0x88] sm:$0xff] %vm1120_vm8, %v2481_v58  ;;  %v2261_v40 = vpop.permute.xlu0 %2260 }
 0x42f   :  { %v2323_v12 = vmul.f32 %v2261_v40, %v3950_v3  ;;  %v2403_v5 = vpop.permute.xlu2 %2402 }
 0x431   :  { %v2453_v48 = vadd.f32 %v2391_v16, %v2323_v12 }
 0x433   :  { %v2479_v63 = vmax.f32 %v2453_v48, 0.0 }
 0x435   :  { %2505 = vst.msk [vmem:[%s4265_s15 + $0x78] sm:$0xff] %vm1120_vm8, %v2479_v63 }
 0x436   :  { %v2399_v3 = vpop.permute.xlu0 %2398 }
 0x438   :  { %v2263_v10 = vpop.permute.xlu1 %2262 }
 0x439   :  { %v2324_v31 = vmul.f32 %v2263_v10, %v3979_v28 }
 0x43b   :  { %v2454_v26 = vadd.f32 %v2393_v52, %v2324_v31 }
 0x43d   :  { %v2480_v23 = vmax.f32 %v2454_v26, 0.0 }
 0x43f   :  { %2506 = vst.msk [vmem:[%s4265_s15 + $0x80] sm:$0xff] %vm1120_vm8, %v2480_v23  ;;  %v2271_v34 = vpop.permute.xlu2 %2270 }
 0x440   :  { %v2328_v11 = vmul.f32 %v2271_v34, %v4068_v17  ;;  %v2401_v56 = vpop.permute.xlu1 %2400 }
 0x442   :  { %v2458_v20 = vadd.f32 %v2401_v56, %v2328_v11 }
 0x444   :  { %v2484_v36 = vmax.f32 %v2458_v20, 0.0 }
 0x446   :  { %2510 = vst.msk [vmem:[%s4265_s15 + $0xa0] sm:$0xff] %vm1120_vm8, %v2484_v36 }
 0x448   :  { %v2267_v28 = vpop.permute.xlu0 %2266 }
 0x449   :  { %v2326_v8 = vmul.f32 %v2267_v28, %v4024_v7 }
 0x44b   :  { %v2456_v53 = vadd.f32 %v2397_v4, %v2326_v8 }
 0x44d   :  { %v2482_v57 = vmax.f32 %v2456_v53, 0.0 }
 0x44f   :  { %2508 = vst.msk [vmem:[%s4265_s15 + $0x90] sm:$0xff] %vm1120_vm8, %v2482_v57  ;;  %v2269_v13 = vpop.permute.xlu1 %2268 }
 0x450   :  { %v2327_v17 = vmul.f32 %v2269_v13, %v4045_v42  ;;  %v2405_v2 = vpop.permute.xlu0 %2404 }
 0x452   :  { %v2457_v29 = vadd.f32 %v2399_v3, %v2327_v17 }
 0x454   :  { %v2483_v25 = vmax.f32 %v2457_v29, 0.0 }
 0x456   :  { %2509 = vst.msk [vmem:[%s4265_s15 + $0x98] sm:$0xff] %vm1120_vm8, %v2483_v25 }
 0x457   :  { %v2277_v35 = vpop.permute.xlu2 %2276 }
 0x458   :  { %v2331_v45 = vmul.f32 %v2277_v35, %v4124_v21 }
 0x45f   :  { %v2409_v19 = vpop.permute.xlu2 %2408 }
 0x460   :  { %v2273_v41 = vpop.permute.xlu0 %2272 }
 0x461   :  { %v2329_v7 = vmul.f32 %v2273_v41, %v4087_v1 }
 0x463   :  { %v2459_v18 = vadd.f32 %v2403_v5, %v2329_v7 }
 0x465   :  { %v2485_v50 = vmax.f32 %v2459_v18, 0.0 }
 0x467   :  { %2511 = vst.msk [vmem:[%s4265_s15 + $0xa8] sm:$0xff] %vm1120_vm8, %v2485_v50  ;;  %v2275_v32 = vpop.permute.xlu1 %2274 }
 0x468   :  { %v2330_v42 = vmul.f32 %v2275_v32, %v4108_v22 }
 0x46a   :  { %v2460_v33 = vadd.f32 %v2405_v2, %v2330_v42 }
 0x46c   :  { %v2486_v16 = vmax.f32 %v2460_v33, 0.0 }
 0x46e   :  { %2512 = vst.msk [vmem:[%s4265_s15 + $0xb0] sm:$0xff] %vm1120_vm8, %v2486_v16 }
 0x477   :  { %v2279_v54 = vpop.permute.xlu0 %2278 }
 0x478   :  { %v2332_v1 = vmul.f32 %v2279_v54, %v4141_v6 }
 0x47a   :  { %v2462_v9 = vadd.f32 %v2409_v19, %v2332_v1 }
 0x47c   :  { %v2488_v14 = vmax.f32 %v2462_v9, 0.0 }
 0x47e   :  { %2514 = vst.msk [vmem:[%s4265_s15 + $0xc0] sm:$0xff] %vm1120_vm8, %v2488_v14 }
 0x47f   :  { %v2281_v22 = vpop.permute.xlu1 %2280  ;;  %v2411_v62 = vpop.permute.xlu0 %2410 }
 0x480   :  { %v2333_v47 = vmul.f32 %v2281_v22, %v4159_v27 }
 0x482   :  { %v2463_v0 = vadd.f32 %v2411_v62, %v2333_v47 }
 0x484   :  { %v2489_v44 = vmax.f32 %v2463_v0, 0.0 }
 0x486   :  { %2515 = vst.msk [vmem:[%s4265_s15 + $0xc8] sm:$0xff] %vm1120_vm8, %v2489_v44 }
 0x487   :  { %v2407_v6 = vpop.permute.xlu1 %2406 }
 0x488   :  { %v2461_v59 = vadd.f32 %v2407_v6, %v2331_v45 }
 0x48a   :  { %v2487_v60 = vmax.f32 %v2461_v59, 0.0 }
 0x48c   :  { %2513 = vst.msk [vmem:[%s4265_s15 + $0xb8] sm:$0xff] %vm1120_vm8, %v2487_v60 }
 0x48d   :  { %2520 = vsyncpa [#allocation3], 1 }
 0x48e   :  { %2521 = vsyncpa [#allocation5], 1 }
 0x48f   :  { %2522 = vsyncpa [#allocation8], 1 }
 0x490   :  { %2523 = vsyncpa [#allocation11], 1 }

// kernel: stconv_forward.3
= control target key start
LH: loop header
LB: loop body
LE: loop exit
PB: predicated region body
PF: predicated region fallthrough
CT: control target
= control target key end

     0   :  { %10 = vsyncpa [#allocation3], 0  ;;  %s12217_s0 = inlined_call_operand.vmem [shape: f32[2,1664], index: 0, kind: input, shape index: {}]   ;;  %s12218_s1 = inlined_call_operand.hbm [shape: bf16[1664,1024], index: 1, kind: input, shape index: {}]   ;;  %s12219_s2 = inlined_call_operand.hbm [shape: f32[1,1024], index: 2, kind: input, shape index: {}]   ;;  %s12220_s3 = inlined_call_operand.vmem [shape: bf16[1024,72], index: 3, kind: input, shape index: {}]   ;;  %s12221_s4 = inlined_call_operand.hbm [shape: f32[1,72], index: 4, kind: input, shape index: {}]   ;;  %s12222_s5 = inlined_call_operand.hbm [shape: f32[2,72], index: 5, kind: output, shape index: {}]  }
   0x1   :  { %11 = vsyncpa [#allocation6], 0  ;;  %s33_s20 = sshll.u32 %s12219_s2, 4  ;;  %s34_s20 = int_to_ptr.hbm [resolvable:$true] %s33_s20 }
   0x2   :  { %12 = vsyncpa [#allocation4], 0  ;;  %s11727_s21 = smov [#allocation5]   ;;  %s19_s25 = sshll.u32 %s12218_s1, 4  ;;  %s20_s25 = int_to_ptr.hbm [resolvable:$true] %s19_s25 }
   0x3   :  { %s35_s22 = sshll.u32 %s11727_s21, 4  ;;  %s11728_s26 = smov [#allocation2]   ;;  %s36_s22 = int_to_ptr.vmem [resolvable:$true] %s35_s22 }
   0x4   :  { %38 = dma.hbm_to_vmem [thread:$0]  %s34_s20, 128, %s36_s22, [#allocation6]  }
   0x5   :  { %s21_s27 = sshll.u32 %s11728_s26, 4  ;;  %s11729_s28 = smov 512   ;;  %s22_s27 = int_to_ptr.vmem [resolvable:$true] %s21_s27 }
   0x6   :  { %s11730_s29 = smov 32   ;;  %s46_s2 = sshll.u32 %s12221_s4, 4  ;;  %s47_s2 = int_to_ptr.hbm [resolvable:$true] %s46_s2 }
   0x7   :  { %27 = dma.hbm_to_vmem [thread:$0]  %s20_s25, 106496, %s22_s27, [#allocation3], %s11729_s28, %s11729_s28, %s11730_s29  }
   0x8   :  { %s11731_s7 = smov [#allocation7]  }
   0x9   :  { %s48_s8 = sshll.u32 %s11731_s7, 4  ;;  %s49_s8 = int_to_ptr.vmem [resolvable:$true] %s48_s8 }
   0xa   :  { %51 = dma.hbm_to_vmem [thread:$0]  %s47_s2, 16, %s49_s8, [#allocation6]  }
   0xb   :  { %11721 = dma.done.wait [#allocation3], 106496  }
   0xc   :  { %11722 = vsyncadd [#allocation3], 4294860800 }
   0xd   :  { %11723 = dma.done.wait [#allocation6], 144  }
   0xe   :  { %11724 = vsyncadd [#allocation6], 4294967152  ;;  %v7360_v0 = vld [vmem:[#allocation2 + $0x1c0] sm:$0xf]  ;;  %s7123_s29 = sshll.u32 %s12222_s5, 4  ;;  %vm7114_vm0 = vcmask 582656   ;;  %s7124_s29 = int_to_ptr.hbm [resolvable:$true] %s7123_s29 }
   0xf   :  { %v10778_v1 = vld [vmem:[#allocation2 + $0x1dc] sm:$0xf0] }
  0x10   :  { %v7616_v2 = vld [vmem:[#allocation2 + $0x3c0] sm:$0xf]  ;;  %v7361_v3 = vor.u32 %v10778_v1, %v7360_v0 }
  0x11   :  { %v10842_v4 = vld [vmem:[#allocation2 + $0x3dc] sm:$0xf0] }
  0x12   :  { %v7872_v5 = vld [vmem:[#allocation2 + $0x5c0] sm:$0xf]  ;;  %v7617_v7 = vor.u32 %v10842_v4, %v7616_v2  ;;  %5126 = vmatpush.bf16.msra.mxu0 %v7361_v3 }
  0x13   :  { %v10906_v6 = vld [vmem:[#allocation2 + $0x5dc] sm:$0xf0] }
  0x14   :  { %v7873_v8 = vor.u32 %v10906_v6, %v7872_v5  ;;  %v8128_v9 = vld [vmem:[#allocation2 + $0x7c0] sm:$0xf]  ;;  %5139 = vmatpush.bf16.msra.mxu1 %v7617_v7 }
  0x15   :  { %v10970_v10 = vld [vmem:[#allocation2 + $0x7dc] sm:$0xf0] }
  0x16   :  { %v7328_v11 = vld [vmem:[#allocation2 + $0x180] sm:$0xf]  ;;  %v8129_v12 = vor.u32 %v10970_v10, %v8128_v9  ;;  %5152 = vmatpush.bf16.msra.mxu2 %v7873_v8 }
  0x17   :  { %v10770_v13 = vld [vmem:[#allocation2 + $0x19c] sm:$0xf0] }
  0x18   :  { %v7584_v14 = vld [vmem:[#allocation2 + $0x380] sm:$0xf]  ;;  %v7329_v16 = vor.u32 %v10770_v13, %v7328_v11  ;;  %5165 = vmatpush.bf16.msra.mxu3 %v8129_v12 }
  0x19   :  { %v10834_v15 = vld [vmem:[#allocation2 + $0x39c] sm:$0xf0] }
  0x1a   :  { %v7585_v17 = vor.u32 %v10834_v15, %v7584_v14  ;;  %v7840_v18 = vld [vmem:[#allocation2 + $0x580] sm:$0xf]  ;;  %5127 = vmatpush.bf16.msra.mxu0 %v7329_v16 }
  0x1b   :  { %v10898_v19 = vld [vmem:[#allocation2 + $0x59c] sm:$0xf0] }
  0x1c   :  { %v8096_v20 = vld [vmem:[#allocation2 + $0x780] sm:$0xf]  ;;  %v7841_v21 = vor.u32 %v10898_v19, %v7840_v18  ;;  %5140 = vmatpush.bf16.msra.mxu1 %v7585_v17 }
  0x1d   :  { %v10962_v22 = vld [vmem:[#allocation2 + $0x79c] sm:$0xf0] }
  0x1e   :  { %v7296_v23 = vld [vmem:[#allocation2 + $0x140] sm:$0xf]  ;;  %v8097_v25 = vor.u32 %v10962_v22, %v8096_v20  ;;  %5153 = vmatpush.bf16.msra.mxu2 %v7841_v21 }
  0x1f   :  { %v10762_v24 = vld [vmem:[#allocation2 + $0x15c] sm:$0xf0] }
  0x20   :  { %v7552_v26 = vld [vmem:[#allocation2 + $0x340] sm:$0xf]  ;;  %v7297_v29 = vor.u32 %v10762_v24, %v7296_v23  ;;  %5166 = vmatpush.bf16.msra.mxu3 %v8097_v25 }
  0x21   :  { %v10826_v27 = vld [vmem:[#allocation2 + $0x35c] sm:$0xf0] }
  0x22   :  { %v7808_v28 = vld [vmem:[#allocation2 + $0x540] sm:$0xf]  ;;  %v7553_v33 = vor.u32 %v10826_v27, %v7552_v26  ;;  %5128 = vmatpush.bf16.msra.mxu0 %v7297_v29 }
  0x23   :  { %v10890_v30 = vld [vmem:[#allocation2 + $0x55c] sm:$0xf0] }
  0x24   :  { %v8064_v31 = vld [vmem:[#allocation2 + $0x740] sm:$0xf]  ;;  %v7809_v34 = vor.u32 %v10890_v30, %v7808_v28  ;;  %5141 = vmatpush.bf16.msra.mxu1 %v7553_v33 }
  0x25   :  { %v10954_v32 = vld [vmem:[#allocation2 + $0x75c] sm:$0xf0] }
  0x26   :  { %v7264_v35 = vld [vmem:[#allocation2 + $0x100] sm:$0xf]  ;;  %v8065_v38 = vor.u32 %v10954_v32, %v8064_v31  ;;  %5154 = vmatpush.bf16.msra.mxu2 %v7809_v34 }
  0x27   :  { %v10754_v36 = vld [vmem:[#allocation2 + $0x11c] sm:$0xf0] }
  0x28   :  { %v7520_v37 = vld [vmem:[#allocation2 + $0x300] sm:$0xf]  ;;  %v7265_v44 = vor.u32 %v10754_v36, %v7264_v35  ;;  %5167 = vmatpush.bf16.msra.mxu3 %v8065_v38 }
  0x29   :  { %v10818_v39 = vld [vmem:[#allocation2 + $0x31c] sm:$0xf0] }
  0x2a   :  { %v7776_v40 = vld [vmem:[#allocation2 + $0x500] sm:$0xf]  ;;  %v7521_v45 = vor.u32 %v10818_v39, %v7520_v37  ;;  %5129 = vmatpush.bf16.msra.mxu0 %v7265_v44 }
  0x2b   :  { %v10882_v41 = vld [vmem:[#allocation2 + $0x51c] sm:$0xf0] }
  0x2c   :  { %v8032_v42 = vld [vmem:[#allocation2 + $0x700] sm:$0xf]  ;;  %v7777_v46 = vor.u32 %v10882_v41, %v7776_v40  ;;  %5142 = vmatpush.bf16.msra.mxu1 %v7521_v45 }
  0x2d   :  { %v10946_v43 = vld [vmem:[#allocation2 + $0x71c] sm:$0xf0] }
  0x2e   :  { %v7232_v47 = vld [vmem:[#allocation2 + $0xc0] sm:$0xf]  ;;  %v8033_v50 = vor.u32 %v10946_v43, %v8032_v42  ;;  %5155 = vmatpush.bf16.msra.mxu2 %v7777_v46 }
  0x2f   :  { %v10746_v48 = vld [vmem:[#allocation2 + $0xdc] sm:$0xf0] }
  0x30   :  { %v7488_v49 = vld [vmem:[#allocation2 + $0x2c0] sm:$0xf]  ;;  %v7233_v56 = vor.u32 %v10746_v48, %v7232_v47  ;;  %5168 = vmatpush.bf16.msra.mxu3 %v8033_v50 }
  0x31   :  { %v10810_v51 = vld [vmem:[#allocation2 + $0x2dc] sm:$0xf0] }
  0x32   :  { %v7744_v52 = vld [vmem:[#allocation2 + $0x4c0] sm:$0xf]  ;;  %v7489_v57 = vor.u32 %v10810_v51, %v7488_v49  ;;  %5130 = vmatpush.bf16.msra.mxu0 %v7233_v56 }
  0x33   :  { %v10874_v53 = vld [vmem:[#allocation2 + $0x4dc] sm:$0xf0] }
  0x34   :  { %v8000_v54 = vld [vmem:[#allocation2 + $0x6c0] sm:$0xf]  ;;  %v7745_v58 = vor.u32 %v10874_v53, %v7744_v52  ;;  %5143 = vmatpush.bf16.msra.mxu1 %v7489_v57 }
  0x35   :  { %v10938_v55 = vld [vmem:[#allocation2 + $0x6dc] sm:$0xf0] }
  0x36   :  { %v7200_v59 = vld [vmem:[#allocation2 + $0x80] sm:$0xf]  ;;  %v8001_v62 = vor.u32 %v10938_v55, %v8000_v54  ;;  %5156 = vmatpush.bf16.msra.mxu2 %v7745_v58 }
  0x37   :  { %v10738_v60 = vld [vmem:[#allocation2 + $0x9c] sm:$0xf0] }
  0x38   :  { %v7456_v61 = vld [vmem:[#allocation2 + $0x280] sm:$0xf]  ;;  %v7201_v4 = vor.u32 %v10738_v60, %v7200_v59  ;;  %5169 = vmatpush.bf16.msra.mxu3 %v8001_v62 }
  0x39   :  { %v10802_v63 = vld [vmem:[#allocation2 + $0x29c] sm:$0xf0] }
  0x3a   :  { %v7712_v0 = vld [vmem:[#allocation2 + $0x480] sm:$0xf]  ;;  %v7457_v5 = vor.u32 %v10802_v63, %v7456_v61  ;;  %5131 = vmatpush.bf16.msra.mxu0 %v7201_v4 }
  0x3b   :  { %v10866_v1 = vld [vmem:[#allocation2 + $0x49c] sm:$0xf0] }
  0x3c   :  { %v7968_v2 = vld [vmem:[#allocation2 + $0x680] sm:$0xf]  ;;  %v7713_v6 = vor.u32 %v10866_v1, %v7712_v0  ;;  %5144 = vmatpush.bf16.msra.mxu1 %v7457_v5 }
  0x3d   :  { %v10930_v3 = vld [vmem:[#allocation2 + $0x69c] sm:$0xf0] }
  0x3e   :  { %v7168_v7 = vld [vmem:[#allocation2 + $0x40] sm:$0xf]  ;;  %v7969_v10 = vor.u32 %v10930_v3, %v7968_v2  ;;  %5157 = vmatpush.bf16.msra.mxu2 %v7713_v6  ;;  %v64_v2 = vld [vmem:[%s12217_s0] sm:$0xff] }
  0x3f   :  { %v10730_v8 = vld [vmem:[#allocation2 + $0x5c] sm:$0xf0]  ;;  %72 = vst [vmem:[#allocation1] ss:$4 sm:$0xff] %v64_v2 }
  0x40   :  { %v7424_v9 = vld [vmem:[#allocation2 + $0x240] sm:$0xf]  ;;  %v7169_v16 = vor.u32 %v10730_v8, %v7168_v7  ;;  %5170 = vmatpush.bf16.msra.mxu3 %v7969_v10 }
  0x41   :  { %v10794_v11 = vld [vmem:[#allocation2 + $0x25c] sm:$0xf0] }
  0x42   :  { %v7680_v12 = vld [vmem:[#allocation2 + $0x440] sm:$0xf]  ;;  %v7425_v19 = vor.u32 %v10794_v11, %v7424_v9  ;;  %5132 = vmatpush.bf16.msra.mxu0 %v7169_v16 }
  0x43   :  { %v10858_v13 = vld [vmem:[#allocation2 + $0x45c] sm:$0xf0] }
  0x44   :  { %v7936_v14 = vld [vmem:[#allocation2 + $0x640] sm:$0xf]  ;;  %v7681_v20 = vor.u32 %v10858_v13, %v7680_v12  ;;  %5145 = vmatpush.bf16.msra.mxu1 %v7425_v19 }
  0x45   :  { %v10922_v15 = vld [vmem:[#allocation2 + $0x65c] sm:$0xf0] }
  0x46   :  { %v7136_v17 = vld [vmem:[#allocation2] sm:$0xf]  ;;  %v7937_v24 = vor.u32 %v10922_v15, %v7936_v14  ;;  %5158 = vmatpush.bf16.msra.mxu2 %v7681_v20 }
  0x47   :  { %v10722_v18 = vld [vmem:[#allocation2 + $0x1c] sm:$0xf0] }
  0x48   :  { %v7392_v21 = vld [vmem:[#allocation2 + $0x200] sm:$0xf]  ;;  %v7137_v31 = vor.u32 %v10722_v18, %v7136_v17  ;;  %5171 = vmatpush.bf16.msra.mxu3 %v7937_v24 }
  0x49   :  { %v10786_v22 = vld [vmem:[#allocation2 + $0x21c] sm:$0xf0] }
  0x4a   :  { %v7648_v23 = vld [vmem:[#allocation2 + $0x400] sm:$0xf]  ;;  %v7393_v35 = vor.u32 %v10786_v22, %v7392_v21  ;;  %5133 = vmatpush.bf16.msra.mxu0 %v7137_v31 }
  0x4b   :  { %v10850_v25 = vld [vmem:[#allocation2 + $0x41c] sm:$0xf0] }
  0x4c   :  { %v7904_v26 = vld [vmem:[#allocation2 + $0x600] sm:$0xf]  ;;  %v7649_v36 = vor.u32 %v10850_v25, %v7648_v23  ;;  %5146 = vmatpush.bf16.msra.mxu1 %v7393_v35 }
  0x4d   :  { %v10914_v27 = vld [vmem:[#allocation2 + $0x61c] sm:$0xf0] }
  0x4e   :  { %v8384_v28 = vld [vmem:[#allocation2 + $0x9c0] sm:$0xf]  ;;  %v7905_v39 = vor.u32 %v10914_v27, %v7904_v26  ;;  %5159 = vmatpush.bf16.msra.mxu2 %v7649_v36  ;;  %v66_v27 = vld [vmem:[%s12217_s0 + $0x10] sm:$0xff] }
  0x4f   :  { %v11034_v29 = vld [vmem:[#allocation2 + $0x9dc] sm:$0xf0] }
  0x50   :  { %v8640_v30 = vld [vmem:[#allocation2 + $0xbc0] sm:$0xf]  ;;  %v8385_v40 = vor.u32 %v11034_v29, %v8384_v28  ;;  %5172 = vmatpush.bf16.msra.mxu3 %v7905_v39 }
  0x51   :  { %v11098_v32 = vld [vmem:[#allocation2 + $0xbdc] sm:$0xf0] }
  0x52   :  { %v8896_v33 = vld [vmem:[#allocation2 + $0xdc0] sm:$0xf]  ;;  %v8641_v41 = vor.u32 %v11098_v32, %v8640_v30  ;;  %5178 = vmatpush.bf16.msrb.mxu0 %v8385_v40  ;;  %v77_v32 = vld.sshfl [vmem:[#allocation1 + $0x10] sm:$0xff pattern:$0x73625140] }
  0x53   :  { %v11162_v34 = vld [vmem:[#allocation2 + $0xddc] sm:$0xf0]  ;;  %v11778_v35 = vpack.c.bf16 %v77_v32, %v77_v32 }
  0x54   :  { %v9152_v37 = vld [vmem:[#allocation2 + $0xfc0] sm:$0xf]  ;;  %v8897_v42 = vor.u32 %v11162_v34, %v8896_v33  ;;  %5191 = vmatpush.bf16.msrb.mxu1 %v8641_v41  ;;  %v75_v33 = vld.sshfl [vmem:[#allocation1] sm:$0xff pattern:$0x73625140] }
  0x55   :  { %v11226_v38 = vld [vmem:[#allocation2 + $0xfdc] sm:$0xf0]  ;;  %v11780_v36 = vpack.c.bf16 %v75_v33, %v75_v33  ;;  %5160 = vmatmul.bf16.vlgmr.msra.gmra.mxu2 %v11778_v35 }
  0x56   :  { %v8352_v43 = vld [vmem:[#allocation2 + $0x980] sm:$0xf]  ;;  %v9153_v46 = vor.u32 %v11226_v38, %v9152_v37  ;;  %5204 = vmatpush.bf16.msrb.mxu2 %v8897_v42  ;;  %v78_v37 = vld.sshfl [vmem:[#allocation1 + $0x18] sm:$0xff pattern:$0x73625140] }
  0x57   :  { %v11026_v44 = vld [vmem:[#allocation2 + $0x99c] sm:$0xf0]  ;;  %v11782_v42 = vpack.c.bf16 %v78_v37, %v78_v37  ;;  %5134 = vmatmul.bf16.vlgmr.msra.gmra.mxu0 %v11780_v36 }
  0x58   :  { %v8608_v45 = vld [vmem:[#allocation2 + $0xb80] sm:$0xf]  ;;  %v8353_v52 = vor.u32 %v11026_v44, %v8352_v43  ;;  %5217 = vmatpush.bf16.msrb.mxu3 %v9153_v46 }
  0x59   :  { %v11090_v47 = vld [vmem:[#allocation2 + $0xb9c] sm:$0xf0]  ;;  %5173 = vmatmul.bf16.vlgmr.msra.gmra.mxu3 %v11782_v42 }
  0x5a   :  { %v8864_v48 = vld [vmem:[#allocation2 + $0xd80] sm:$0xf]  ;;  %v8609_v53 = vor.u32 %v11090_v47, %v8608_v45  ;;  %5179 = vmatpush.bf16.msrb.mxu0 %v8353_v52 }
  0x5b   :  { %v11154_v49 = vld [vmem:[#allocation2 + $0xd9c] sm:$0xf0] }
  0x5c   :  { %v9120_v50 = vld [vmem:[#allocation2 + $0xf80] sm:$0xf]  ;;  %v8865_v54 = vor.u32 %v11154_v49, %v8864_v48  ;;  %5192 = vmatpush.bf16.msrb.mxu1 %v8609_v53 }
  0x5d   :  { %v11218_v51 = vld [vmem:[#allocation2 + $0xf9c] sm:$0xf0] }
  0x5e   :  { %v8320_v55 = vld [vmem:[#allocation2 + $0x940] sm:$0xf]  ;;  %v9121_v58 = vor.u32 %v11218_v51, %v9120_v50  ;;  %5205 = vmatpush.bf16.msrb.mxu2 %v8865_v54 }
  0x5f   :  { %v11018_v56 = vld [vmem:[#allocation2 + $0x95c] sm:$0xf0] }
  0x60   :  { %v8576_v57 = vld [vmem:[#allocation2 + $0xb40] sm:$0xf]  ;;  %v8321_v0 = vor.u32 %v11018_v56, %v8320_v55  ;;  %5218 = vmatpush.bf16.msrb.mxu3 %v9121_v58 }
  0x61   :  { %v11082_v59 = vld [vmem:[#allocation2 + $0xb5c] sm:$0xf0] }
  0x62   :  { %v8832_v60 = vld [vmem:[#allocation2 + $0xd40] sm:$0xf]  ;;  %v8577_v3 = vor.u32 %v11082_v59, %v8576_v57  ;;  %5180 = vmatpush.bf16.msrb.mxu0 %v8321_v0 }
  0x63   :  { %v11146_v61 = vld [vmem:[#allocation2 + $0xd5c] sm:$0xf0] }
  0x64   :  { %v9088_v62 = vld [vmem:[#allocation2 + $0xf40] sm:$0xf]  ;;  %v8833_v4 = vor.u32 %v11146_v61, %v8832_v60  ;;  %5193 = vmatpush.bf16.msrb.mxu1 %v8577_v3 }
  0x65   :  { %v11210_v63 = vld [vmem:[#allocation2 + $0xf5c] sm:$0xf0] }
  0x66   :  { %v8288_v1 = vld [vmem:[#allocation2 + $0x900] sm:$0xf]  ;;  %v9089_v7 = vor.u32 %v11210_v63, %v9088_v62  ;;  %5206 = vmatpush.bf16.msrb.mxu2 %v8833_v4 }
  0x67   :  { %v11010_v5 = vld [vmem:[#allocation2 + $0x91c] sm:$0xf0] }
  0x68   :  { %v8544_v6 = vld [vmem:[#allocation2 + $0xb00] sm:$0xf]  ;;  %v8289_v13 = vor.u32 %v11010_v5, %v8288_v1  ;;  %5219 = vmatpush.bf16.msrb.mxu3 %v9089_v7 }
  0x69   :  { %v11074_v8 = vld [vmem:[#allocation2 + $0xb1c] sm:$0xf0] }
  0x6a   :  { %v8800_v9 = vld [vmem:[#allocation2 + $0xd00] sm:$0xf]  ;;  %v8545_v16 = vor.u32 %v11074_v8, %v8544_v6  ;;  %5181 = vmatpush.bf16.msrb.mxu0 %v8289_v13 }
  0x6b   :  { %v11138_v10 = vld [vmem:[#allocation2 + $0xd1c] sm:$0xf0] }
  0x6c   :  { %v9056_v11 = vld [vmem:[#allocation2 + $0xf00] sm:$0xf]  ;;  %v8801_v17 = vor.u32 %v11138_v10, %v8800_v9  ;;  %5194 = vmatpush.bf16.msrb.mxu1 %v8545_v16 }
  0x6d   :  { %v11202_v12 = vld [vmem:[#allocation2 + $0xf1c] sm:$0xf0] }
  0x6e   :  { %v8256_v14 = vld [vmem:[#allocation2 + $0x8c0] sm:$0xf]  ;;  %v9057_v21 = vor.u32 %v11202_v12, %v9056_v11  ;;  %5207 = vmatpush.bf16.msrb.mxu2 %v8801_v17 }
  0x6f   :  { %v11002_v15 = vld [vmem:[#allocation2 + $0x8dc] sm:$0xf0] }
  0x70   :  { %v8512_v18 = vld [vmem:[#allocation2 + $0xac0] sm:$0xf]  ;;  %v8257_v28 = vor.u32 %v11002_v15, %v8256_v14  ;;  %5220 = vmatpush.bf16.msrb.mxu3 %v9057_v21 }
  0x71   :  { %v11066_v19 = vld [vmem:[#allocation2 + $0xadc] sm:$0xf0] }
  0x72   :  { %v8768_v20 = vld [vmem:[#allocation2 + $0xcc0] sm:$0xf]  ;;  %v8513_v29 = vor.u32 %v11066_v19, %v8512_v18  ;;  %5182 = vmatpush.bf16.msrb.mxu0 %v8257_v28 }
  0x73   :  { %v11130_v22 = vld [vmem:[#allocation2 + $0xcdc] sm:$0xf0] }
  0x74   :  { %v9024_v23 = vld [vmem:[#allocation2 + $0xec0] sm:$0xf]  ;;  %v8769_v34 = vor.u32 %v11130_v22, %v8768_v20  ;;  %5195 = vmatpush.bf16.msrb.mxu1 %v8513_v29  ;;  %v67_v20 = vld [vmem:[%s12217_s0 + $0x18] sm:$0x3] }
  0x75   :  { %v11194_v24 = vld [vmem:[#allocation2 + $0xedc] sm:$0xf0] }
  0x76   :  { %v8224_v25 = vld [vmem:[#allocation2 + $0x880] sm:$0xf]  ;;  %v9025_v39 = vor.u32 %v11194_v24, %v9024_v23  ;;  %5208 = vmatpush.bf16.msrb.mxu2 %v8769_v34 }
  0x77   :  { %v10994_v26 = vld [vmem:[#allocation2 + $0x89c] sm:$0xf0] }
  0x78   :  { %v8480_v30 = vld [vmem:[#allocation2 + $0xa80] sm:$0xf]  ;;  %v8225_v46 = vor.u32 %v10994_v26, %v8224_v25  ;;  %5221 = vmatpush.bf16.msrb.mxu3 %v9025_v39 }
  0x79   :  { %v11058_v31 = vld [vmem:[#allocation2 + $0xa9c] sm:$0xf0] }
  0x7a   :  { %v76_v38 = vld.sshfl [vmem:[#allocation1 + $0x8] sm:$0xff pattern:$0x73625140]  ;;  %v8481_v49 = vor.u32 %v11058_v31, %v8480_v30  ;;  %5183 = vmatpush.bf16.msrb.mxu0 %v8225_v46 }
  0x7b   :  { %v8736_v40 = vld [vmem:[#allocation2 + $0xc80] sm:$0xf]  ;;  %83 = vst [vmem:[#allocation1] ss:$4 sm:$0xff] %v66_v27  ;;  %v11784_v43 = vpack.c.bf16 %v76_v38, %v76_v38 }
  0x7c   :  { %v11122_v41 = vld [vmem:[#allocation2 + $0xc9c] sm:$0xf0]  ;;  %5196 = vmatpush.bf16.msrb.mxu1 %v8481_v49 }
  0x7d   :  { %v8992_v44 = vld [vmem:[#allocation2 + $0xe80] sm:$0xf]  ;;  %v8737_v50 = vor.u32 %v11122_v41, %v8736_v40  ;;  %5147 = vmatmul.bf16.vlgmr.msra.gmra.mxu1 %v11784_v43 }
  0x7e   :  { %v11186_v45 = vld [vmem:[#allocation2 + $0xe9c] sm:$0xf0] }
  0x7f   :  { %v8192_v47 = vld [vmem:[#allocation2 + $0x840] sm:$0xf]  ;;  %v8993_v54 = vor.u32 %v11186_v45, %v8992_v44  ;;  %5209 = vmatpush.bf16.msrb.mxu2 %v8737_v50 }
  0x80   :  { %v10986_v48 = vld [vmem:[#allocation2 + $0x85c] sm:$0xf0] }
  0x81   :  { %v8448_v51 = vld [vmem:[#allocation2 + $0xa40] sm:$0xf]  ;;  %v8193_v60 = vor.u32 %v10986_v48, %v8192_v47  ;;  %5222 = vmatpush.bf16.msrb.mxu3 %v8993_v54 }
  0x82   :  { %v11050_v52 = vld [vmem:[#allocation2 + $0xa5c] sm:$0xf0] }
  0x83   :  { %v8704_v53 = vld [vmem:[#allocation2 + $0xc40] sm:$0xf]  ;;  %v8449_v0 = vor.u32 %v11050_v52, %v8448_v51  ;;  %5184 = vmatpush.bf16.msrb.mxu0 %v8193_v60 }
  0x84   :  { %v11114_v55 = vld [vmem:[#allocation2 + $0xc5c] sm:$0xf0] }
  0x85   :  { %v8960_v56 = vld [vmem:[#allocation2 + $0xe40] sm:$0xf]  ;;  %v8705_v1 = vor.u32 %v11114_v55, %v8704_v53  ;;  %5197 = vmatpush.bf16.msrb.mxu1 %v8449_v0 }
  0x86   :  { %v65_v57 = vld [vmem:[%s12217_s0 + $0x8] sm:$0xff] }
  0x87   :  { %v11178_v58 = vld [vmem:[#allocation2 + $0xe5c] sm:$0xf0]  ;;  %74 = vst [vmem:[#allocation1 + $0x20] ss:$4 sm:$0xff] %v65_v57  ;;  %5210 = vmatpush.bf16.msrb.mxu2 %v8705_v1 }
  0x88   :  { %v8160_v59 = vld [vmem:[#allocation2 + $0x800] sm:$0xf]  ;;  %v8961_v5 = vor.u32 %v11178_v58, %v8960_v56 }
  0x89   :  { %v10978_v61 = vld [vmem:[#allocation2 + $0x81c] sm:$0xf0] }
  0x8a   :  { %v8416_v62 = vld [vmem:[#allocation2 + $0xa00] sm:$0xf]  ;;  %v8161_v12 = vor.u32 %v10978_v61, %v8160_v59  ;;  %5223 = vmatpush.bf16.msrb.mxu3 %v8961_v5 }
  0x8b   :  { %v11042_v63 = vld [vmem:[#allocation2 + $0xa1c] sm:$0xf0] }
  0x8c   :  { %v8672_v2 = vld [vmem:[#allocation2 + $0xc00] sm:$0xf]  ;;  %v8417_v16 = vor.u32 %v11042_v63, %v8416_v62  ;;  %5185 = vmatpush.bf16.msrb.mxu0 %v8161_v12 }
  0x8d   :  { %v11106_v3 = vld [vmem:[#allocation2 + $0xc1c] sm:$0xf0] }
  0x8e   :  { %v8928_v4 = vld [vmem:[#allocation2 + $0xe00] sm:$0xf]  ;;  %v8673_v17 = vor.u32 %v11106_v3, %v8672_v2  ;;  %v81_v25 = vld.sshfl [vmem:[#allocation1 + $0x30] sm:$0xff pattern:$0x73625140]  ;;  %5198 = vmatpush.bf16.msrb.mxu1 %v8417_v16 }
  0x8f   :  { %v11170_v6 = vld [vmem:[#allocation2 + $0xe1c] sm:$0xf0]  ;;  %v79_v26 = vld.sshfl [vmem:[#allocation1 + $0x20] sm:$0xff pattern:$0x73625140]  ;;  %v11796_v34 = vpack.c.bf16 %v81_v25, %v81_v25 }
  0x90   :  { %v9408_v7 = vld [vmem:[#allocation2 + $0x11c0] sm:$0xf]  ;;  %v8929_v21 = vor.u32 %v11170_v6, %v8928_v4  ;;  %v82_v29 = vld.sshfl [vmem:[#allocation1 + $0x38] sm:$0xff pattern:$0x73625140]  ;;  %5211 = vmatpush.bf16.msrb.mxu2 %v8673_v17  ;;  %v11798_v39 = vpack.c.bf16 %v79_v26, %v79_v26 }
  0x91   :  { %v11290_v8 = vld [vmem:[#allocation2 + $0x11dc] sm:$0xf0]  ;;  %v11800_v40 = vpack.c.bf16 %v82_v29, %v82_v29 }
  0x92   :  { %v9664_v9 = vld [vmem:[#allocation2 + $0x13c0] sm:$0xf]  ;;  %v9409_v22 = vor.u32 %v11290_v8, %v9408_v7  ;;  %5224 = vmatpush.bf16.msrb.mxu3 %v8929_v21  ;;  %5186 = vmatmul.bf16.vlgmr.msrb.gmra.mxu0 %v11798_v39 }
  0x93   :  { %v11354_v10 = vld [vmem:[#allocation2 + $0x13dc] sm:$0xf0]  ;;  %5212 = vmatmul.bf16.vlgmr.msrb.gmra.mxu2 %v11796_v34 }
  0x94   :  { %v9920_v11 = vld [vmem:[#allocation2 + $0x15c0] sm:$0xf]  ;;  %v9665_v27 = vor.u32 %v11354_v10, %v9664_v9  ;;  %5230 = vmatpush.bf16.msra.mxu0 %v9409_v22 }
  0x95   :  { %v11418_v13 = vld [vmem:[#allocation2 + $0x15dc] sm:$0xf0]  ;;  %5225 = vmatmul.bf16.vlgmr.msrb.gmra.mxu3 %v11800_v40 }
  0x96   :  { %v10176_v14 = vld [vmem:[#allocation2 + $0x17c0] sm:$0xf]  ;;  %v9921_v28 = vor.u32 %v11418_v13, %v9920_v11  ;;  %5243 = vmatpush.bf16.msra.mxu1 %v9665_v27 }
  0x97   :  { %v11482_v15 = vld [vmem:[#allocation2 + $0x17dc] sm:$0xf0] }
  0x98   :  { %v9376_v18 = vld [vmem:[#allocation2 + $0x1180] sm:$0xf]  ;;  %v10177_v31 = vor.u32 %v11482_v15, %v10176_v14  ;;  %5256 = vmatpush.bf16.msra.mxu2 %v9921_v28 }
  0x99   :  { %v11282_v19 = vld [vmem:[#allocation2 + $0x119c] sm:$0xf0] }
  0x9a   :  { %v9632_v23 = vld [vmem:[#allocation2 + $0x1380] sm:$0xf]  ;;  %v9377_v41 = vor.u32 %v11282_v19, %v9376_v18  ;;  %5269 = vmatpush.bf16.msra.mxu3 %v10177_v31 }
  0x9b   :  { %v11346_v24 = vld [vmem:[#allocation2 + $0x139c] sm:$0xf0] }
  0x9c   :  { %v80_v30 = vld.sshfl [vmem:[#allocation1 + $0x28] sm:$0xff pattern:$0x73625140]  ;;  %v9633_v45 = vor.u32 %v11346_v24, %v9632_v23  ;;  %5231 = vmatpush.bf16.msra.mxu0 %v9377_v41 }
  0x9d   :  { %v9888_v32 = vld [vmem:[#allocation2 + $0x1580] sm:$0xf]  ;;  %84 = vst [vmem:[#allocation1 + $0x20] ss:$4 sm:$0xff] %v67_v20  ;;  %v11802_v44 = vpack.c.bf16 %v80_v30, %v80_v30 }
  0x9e   :  { %v11410_v33 = vld [vmem:[#allocation2 + $0x159c] sm:$0xf0]  ;;  %5244 = vmatpush.bf16.msra.mxu1 %v9633_v45 }
  0x9f   :  { %v10144_v37 = vld [vmem:[#allocation2 + $0x1780] sm:$0xf]  ;;  %v9889_v46 = vor.u32 %v11410_v33, %v9888_v32  ;;  %5199 = vmatmul.bf16.vlgmr.msrb.gmra.mxu1 %v11802_v44 }
  0xa0   :  { %v11474_v38 = vld [vmem:[#allocation2 + $0x179c] sm:$0xf0] }
  0xa1   :  { %v9344_v47 = vld [vmem:[#allocation2 + $0x1140] sm:$0xf]  ;;  %v10145_v50 = vor.u32 %v11474_v38, %v10144_v37  ;;  %5257 = vmatpush.bf16.msra.mxu2 %v9889_v46 }
  0xa2   :  { %v11274_v48 = vld [vmem:[#allocation2 + $0x115c] sm:$0xf0] }
  0xa3   :  { %v9600_v49 = vld [vmem:[#allocation2 + $0x1340] sm:$0xf]  ;;  %v9345_v56 = vor.u32 %v11274_v48, %v9344_v47  ;;  %5270 = vmatpush.bf16.msra.mxu3 %v10145_v50 }
  0xa4   :  { %v11338_v51 = vld [vmem:[#allocation2 + $0x135c] sm:$0xf0] }
  0xa5   :  { %v9856_v52 = vld [vmem:[#allocation2 + $0x1540] sm:$0xf]  ;;  %v9601_v57 = vor.u32 %v11338_v51, %v9600_v49  ;;  %5232 = vmatpush.bf16.msra.mxu0 %v9345_v56 }
  0xa6   :  { %v11402_v53 = vld [vmem:[#allocation2 + $0x155c] sm:$0xf0] }
  0xa7   :  { %v10112_v54 = vld [vmem:[#allocation2 + $0x1740] sm:$0xf]  ;;  %v9857_v58 = vor.u32 %v11402_v53, %v9856_v52  ;;  %5245 = vmatpush.bf16.msra.mxu1 %v9601_v57 }
  0xa8   :  { %v11466_v55 = vld [vmem:[#allocation2 + $0x175c] sm:$0xf0] }
  0xa9   :  { %v9312_v59 = vld [vmem:[#allocation2 + $0x1100] sm:$0xf]  ;;  %v10113_v62 = vor.u32 %v11466_v55, %v10112_v54  ;;  %5258 = vmatpush.bf16.msra.mxu2 %v9857_v58 }
  0xaa   :  { %v11266_v60 = vld [vmem:[#allocation2 + $0x111c] sm:$0xf0] }
  0xab   :  { %v9568_v61 = vld [vmem:[#allocation2 + $0x1300] sm:$0xf]  ;;  %v9313_v4 = vor.u32 %v11266_v60, %v9312_v59  ;;  %5271 = vmatpush.bf16.msra.mxu3 %v10113_v62  ;;  %v10774_v62 = vld [vmem:[#allocation2 + $0x1c4] sm:$0xf] }
  0xac   :  { %v11330_v63 = vld [vmem:[#allocation2 + $0x131c] sm:$0xf0] }
  0xad   :  { %v9824_v0 = vld [vmem:[#allocation2 + $0x1500] sm:$0xf]  ;;  %v9569_v5 = vor.u32 %v11330_v63, %v9568_v61  ;;  %5233 = vmatpush.bf16.msra.mxu0 %v9313_v4  ;;  %v7362_v63 = vld [vmem:[#allocation2 + $0x1e0] sm:$0xf0] }
  0xae   :  { %v11394_v1 = vld [vmem:[#allocation2 + $0x151c] sm:$0xf0]  ;;  %v7874_v4 = vld [vmem:[#allocation2 + $0x5e0] sm:$0xf0] }
  0xaf   :  { %v10080_v2 = vld [vmem:[#allocation2 + $0x1700] sm:$0xf]  ;;  %v9825_v6 = vor.u32 %v11394_v1, %v9824_v0  ;;  %5246 = vmatpush.bf16.msra.mxu1 %v9569_v5  ;;  %v10838_v0 = vld [vmem:[#allocation2 + $0x3c4] sm:$0xf] }
  0xb0   :  { %v11458_v3 = vld [vmem:[#allocation2 + $0x171c] sm:$0xf0] }
  0xb1   :  { %v9280_v7 = vld [vmem:[#allocation2 + $0x10c0] sm:$0xf]  ;;  %v10081_v10 = vor.u32 %v11458_v3, %v10080_v2  ;;  %5259 = vmatpush.bf16.msra.mxu2 %v9825_v6  ;;  %v7618_v2 = vld [vmem:[#allocation2 + $0x3e0] sm:$0xf0] }
  0xb2   :  { %v11258_v8 = vld [vmem:[#allocation2 + $0x10dc] sm:$0xf0]  ;;  %v10902_v3 = vld [vmem:[#allocation2 + $0x5c4] sm:$0xf] }
  0xb3   :  { %v9536_v9 = vld [vmem:[#allocation2 + $0x12c0] sm:$0xf]  ;;  %v9281_v16 = vor.u32 %v11258_v8, %v9280_v7  ;;  %5272 = vmatpush.bf16.msra.mxu3 %v10081_v10  ;;  %v85_v7 = vld.sshfl [vmem:[#allocation1] sm:$0xff pattern:$0x73625140] }
  0xb4   :  { %v11322_v11 = vld [vmem:[#allocation2 + $0x12dc] sm:$0xf0]  ;;  %v87_v8 = vld.sshfl [vmem:[#allocation1 + $0x10] sm:$0xff pattern:$0x73625140] }
  0xb5   :  { %v9792_v12 = vld [vmem:[#allocation2 + $0x14c0] sm:$0xf]  ;;  %v9537_v17 = vor.u32 %v11322_v11, %v9536_v9  ;;  %5234 = vmatpush.bf16.msra.mxu0 %v9281_v16 }
  0xb6   :  { %v11386_v13 = vld [vmem:[#allocation2 + $0x14dc] sm:$0xf0] }
  0xb7   :  { %v10048_v14 = vld [vmem:[#allocation2 + $0x16c0] sm:$0xf]  ;;  %v9793_v18 = vor.u32 %v11386_v13, %v9792_v12  ;;  %5247 = vmatpush.bf16.msra.mxu1 %v9537_v17  ;;  %v88_v12 = vld.sshfl [vmem:[#allocation1 + $0x18] sm:$0xff pattern:$0x73625140]  ;;  %v7365_v13 = vor.u32 %v10774_v62, %v7362_v63 }
  0xb8   :  { %v11450_v15 = vld [vmem:[#allocation2 + $0x16dc] sm:$0xf0]  ;;  %v10766_v17 = vld [vmem:[#allocation2 + $0x184] sm:$0xf] }
  0xb9   :  { %v9248_v19 = vld [vmem:[#allocation2 + $0x1080] sm:$0xf]  ;;  %v10049_v22 = vor.u32 %v11450_v15, %v10048_v14  ;;  %5260 = vmatpush.bf16.msra.mxu2 %v9793_v18  ;;  %v7621_v14 = vor.u32 %v10838_v0, %v7618_v2  ;;  %v7877_v18 = vor.u32 %v10902_v3, %v7874_v4  ;;  %v7234_v3 = vld [vmem:[#allocation2 + $0xe0] sm:$0xf0] }
  0xba   :  { %v11250_v20 = vld [vmem:[#allocation2 + $0x109c] sm:$0xf0]  ;;  %v10806_v4 = vld [vmem:[#allocation2 + $0x2c4] sm:$0xf] }
  0xbb   :  { %v9504_v21 = vld [vmem:[#allocation2 + $0x1280] sm:$0xf]  ;;  %v9249_v28 = vor.u32 %v11250_v20, %v9248_v19  ;;  %5273 = vmatpush.bf16.msra.mxu3 %v10049_v22  ;;  %v11808_v19 = vpack.c.bf16 %v85_v7, %v85_v7  ;;  %v7330_v20 = vld [vmem:[#allocation2 + $0x1a0] sm:$0xf0] }
  0xbc   :  { %v11314_v23 = vld [vmem:[#allocation2 + $0x129c] sm:$0xf0]  ;;  %v7586_v22 = vld [vmem:[#allocation2 + $0x3a0] sm:$0xf0] }
  0xbd   :  { %v9760_v24 = vld [vmem:[#allocation2 + $0x1480] sm:$0xf]  ;;  %v9505_v29 = vor.u32 %v11314_v23, %v9504_v21  ;;  %5235 = vmatpush.bf16.msra.mxu0 %v9249_v28  ;;  %v10830_v21 = vld [vmem:[#allocation2 + $0x384] sm:$0xf]  ;;  %v11810_v23 = vpack.c.bf16 %v87_v8, %v87_v8 }
  0xbe   :  { %v11378_v25 = vld [vmem:[#allocation2 + $0x149c] sm:$0xf0]  ;;  %v7746_v7 = vld [vmem:[#allocation2 + $0x4e0] sm:$0xf0] }
  0xbf   :  { %v10016_v26 = vld [vmem:[#allocation2 + $0x1680] sm:$0xf]  ;;  %v9761_v30 = vor.u32 %v11378_v25, %v9760_v24  ;;  %5248 = vmatpush.bf16.msra.mxu1 %v9505_v29  ;;  %v10894_v25 = vld [vmem:[#allocation2 + $0x584] sm:$0xf]  ;;  %v7333_v29 = vor.u32 %v10766_v17, %v7330_v20 }
  0xc0   :  { %v11442_v27 = vld [vmem:[#allocation2 + $0x169c] sm:$0xf0]  ;;  %v7458_v17 = vld [vmem:[#allocation2 + $0x2a0] sm:$0xf0] }
  0xc1   :  { %v9216_v31 = vld [vmem:[#allocation2 + $0x1040] sm:$0xf]  ;;  %v10017_v37 = vor.u32 %v11442_v27, %v10016_v26  ;;  %5261 = vmatpush.bf16.msra.mxu2 %v9761_v30  ;;  %v7842_v26 = vld [vmem:[#allocation2 + $0x5a0] sm:$0xf0]  ;;  %v11814_v27 = vpack.c.bf16 %v88_v12, %v88_v12  ;;  %v7589_v30 = vor.u32 %v10830_v21, %v7586_v22 }
  0xc2   :  { %v11242_v32 = vld [vmem:[#allocation2 + $0x105c] sm:$0xf0]  ;;  %v7714_v20 = vld [vmem:[#allocation2 + $0x4a0] sm:$0xf0] }
  0xc3   :  { %v9472_v33 = vld [vmem:[#allocation2 + $0x1240] sm:$0xf]  ;;  %v9217_v49 = vor.u32 %v11242_v32, %v9216_v31  ;;  %5274 = vmatpush.bf16.msra.mxu3 %v10017_v37  ;;  %v7845_v37 = vor.u32 %v10894_v25, %v7842_v26 }
  0xc4   :  { %v11306_v38 = vld [vmem:[#allocation2 + $0x125c] sm:$0xf0] }
  0xc5   :  { %v9728_v41 = vld [vmem:[#allocation2 + $0x1440] sm:$0xf]  ;;  %v9473_v53 = vor.u32 %v11306_v38, %v9472_v33  ;;  %5236 = vmatpush.bf16.msra.mxu0 %v9217_v49  ;;  %v10758_v33 = vld [vmem:[#allocation2 + $0x144] sm:$0xf] }
  0xc6   :  { %v11370_v45 = vld [vmem:[#allocation2 + $0x145c] sm:$0xf0]  ;;  %v7298_v38 = vld [vmem:[#allocation2 + $0x160] sm:$0xf0] }
  0xc7   :  { %v9984_v46 = vld [vmem:[#allocation2 + $0x1640] sm:$0xf]  ;;  %v9729_v54 = vor.u32 %v11370_v45, %v9728_v41  ;;  %5249 = vmatpush.bf16.msra.mxu1 %v9473_v53  ;;  %v10822_v41 = vld [vmem:[#allocation2 + $0x344] sm:$0xf]  ;;  %v7301_v49 = vor.u32 %v10758_v33, %v7298_v38 }
  0xc8   :  { %v11434_v47 = vld [vmem:[#allocation2 + $0x165c] sm:$0xf0]  ;;  %v7554_v45 = vld [vmem:[#allocation2 + $0x360] sm:$0xf0] }
  0xc9   :  { %v9184_v48 = vld [vmem:[#allocation2 + $0x1000] sm:$0xf]  ;;  %v9985_v58 = vor.u32 %v11434_v47, %v9984_v46  ;;  %5262 = vmatpush.bf16.msra.mxu2 %v9729_v54  ;;  %v10886_v46 = vld [vmem:[#allocation2 + $0x544] sm:$0xf] }
  0xca   :  { %v11234_v50 = vld [vmem:[#allocation2 + $0x101c] sm:$0xf0]  ;;  %v7810_v47 = vld [vmem:[#allocation2 + $0x560] sm:$0xf0] }
  0xcb   :  { %v9440_v51 = vld [vmem:[#allocation2 + $0x1200] sm:$0xf]  ;;  %v9185_v1 = vor.u32 %v11234_v50, %v9184_v48  ;;  %5275 = vmatpush.bf16.msra.mxu3 %v9985_v58  ;;  %v7557_v50 = vor.u32 %v10822_v41, %v7554_v45  ;;  %v10750_v53 = vld [vmem:[#allocation2 + $0x104] sm:$0xf]  ;;  %v7813_v54 = vor.u32 %v10886_v46, %v7810_v47 }
  0xcc   :  { %v11298_v52 = vld [vmem:[#allocation2 + $0x121c] sm:$0xf0]  ;;  %v10878_v58 = vld [vmem:[#allocation2 + $0x504] sm:$0xf] }
  0xcd   :  { %v9696_v55 = vld [vmem:[#allocation2 + $0x1400] sm:$0xf]  ;;  %v9441_v5 = vor.u32 %v11298_v52, %v9440_v51  ;;  %5237 = vmatpush.bf16.msra.mxu0 %v9185_v1  ;;  %v10742_v1 = vld [vmem:[#allocation2 + $0xc4] sm:$0xf] }
  0xce   :  { %v11362_v56 = vld [vmem:[#allocation2 + $0x141c] sm:$0xf0]  ;;  %v7426_v33 = vld [vmem:[#allocation2 + $0x260] sm:$0xf0] }
  0xcf   :  { %v9952_v57 = vld [vmem:[#allocation2 + $0x1600] sm:$0xf]  ;;  %v9697_v6 = vor.u32 %v11362_v56, %v9696_v55  ;;  %5250 = vmatpush.bf16.msra.mxu1 %v9441_v5  ;;  %v7266_v55 = vld [vmem:[#allocation2 + $0x120] sm:$0xf0] }
  0xd0   :  { %v11426_v59 = vld [vmem:[#allocation2 + $0x161c] sm:$0xf0]  ;;  %5238 = vmatmul.bf16.vlgmr.msra.gmra.mxu0 %v11808_v19  ;;  %v10814_v56 = vld [vmem:[#allocation2 + $0x304] sm:$0xf] }
  0xd1   :  { %v10432_v60 = vld [vmem:[#allocation2 + $0x19c0] sm:$0xf]  ;;  %v9953_v9 = vor.u32 %v11426_v59, %v9952_v57  ;;  %5263 = vmatpush.bf16.msra.mxu2 %v9697_v6  ;;  %v7522_v57 = vld [vmem:[#allocation2 + $0x320] sm:$0xf0] }
  0xd2   :  { %v11546_v61 = vld [vmem:[#allocation2 + $0x19dc] sm:$0xf0]  ;;  %v7778_v59 = vld [vmem:[#allocation2 + $0x520] sm:$0xf0]  ;;  %v7525_v62 = vor.u32 %v10814_v56, %v7522_v57 }
  0xd3   :  { %v10433_v10 = vor.u32 %v11546_v61, %v10432_v60  ;;  %v86_v11 = vld.sshfl [vmem:[#allocation1 + $0x8] sm:$0xff pattern:$0x73625140]  ;;  %5276 = vmatpush.bf16.msra.mxu3 %v9953_v9  ;;  %5295 = vmatpush.bf16.msrb.mxu1 %v7365_v13  ;;  %v7269_v61 = vor.u32 %v10750_v53, %v7266_v55  ;;  %v7781_v2 = vor.u32 %v10878_v58, %v7778_v59 }
  0xd4   :  { %v10400_v15 = vld [vmem:[#allocation2 + $0x1980] sm:$0xf]  ;;  %v11812_v24 = vpack.c.bf16 %v86_v11, %v86_v11  ;;  %5264 = vmatmul.bf16.vlgmr.msra.gmra.mxu2 %v11810_v23  ;;  %v7490_v5 = vld [vmem:[#allocation2 + $0x2e0] sm:$0xf0]  ;;  %v7237_v9 = vor.u32 %v10742_v1, %v7234_v3 }
  0xd5   :  { %v11538_v16 = vld [vmem:[#allocation2 + $0x199c] sm:$0xf0]  ;;  %5282 = vmatpush.bf16.msrb.mxu0 %v10433_v10  ;;  %5308 = vmatpush.bf16.msrb.mxu2 %v7621_v14  ;;  %v10870_v6 = vld [vmem:[#allocation2 + $0x4c4] sm:$0xf]  ;;  %v7493_v10 = vor.u32 %v10806_v4, %v7490_v5 }
  0xd6   :  { %v10401_v28 = vor.u32 %v11538_v16, %v10400_v15  ;;  %v10368_v31 = vld [vmem:[#allocation2 + $0x1940] sm:$0xf]  ;;  %5251 = vmatmul.bf16.vlgmr.msra.gmra.mxu1 %v11812_v24  ;;  %5277 = vmatmul.bf16.vlgmr.msra.gmra.mxu3 %v11814_v27  ;;  %v10734_v13 = vld [vmem:[#allocation2 + $0x84] sm:$0xf]  ;;  %v7749_v14 = vor.u32 %v10870_v6, %v7746_v7 }
  0xd7   :  { %v11530_v32 = vld [vmem:[#allocation2 + $0x195c] sm:$0xf0]  ;;  %5321 = vmatpush.bf16.msrb.mxu3 %v7877_v18  ;;  %5296 = vmatpush.bf16.msrb.mxu1 %v7333_v29  ;;  %v7202_v15 = vld [vmem:[#allocation2 + $0xa0] sm:$0xf0] }
  0xd8   :  { %v10369_v48 = vor.u32 %v11530_v32, %v10368_v31  ;;  %v10336_v51 = vld [vmem:[#allocation2 + $0x1900] sm:$0xf]  ;;  %v10798_v16 = vld [vmem:[#allocation2 + $0x284] sm:$0xf]  ;;  %v7205_v22 = vor.u32 %v10734_v13, %v7202_v15 }
  0xd9   :  { %5283 = vmatpush.bf16.msrb.mxu0 %v10401_v28  ;;  %5309 = vmatpush.bf16.msrb.mxu2 %v7589_v30  ;;  %v11522_v52 = vld [vmem:[#allocation2 + $0x191c] sm:$0xf0]  ;;  %v10862_v18 = vld [vmem:[#allocation2 + $0x484] sm:$0xf]  ;;  %v7461_v25 = vor.u32 %v10798_v16, %v7458_v17 }
  0xda   :  { %v10337_v60 = vor.u32 %v11522_v52, %v10336_v51  ;;  %v10304_v63 = vld [vmem:[#allocation2 + $0x18c0] sm:$0xf]  ;;  %v10726_v29 = vld [vmem:[#allocation2 + $0x44] sm:$0xf]  ;;  %v7717_v30 = vor.u32 %v10862_v18, %v7714_v20 }
  0xdb   :  { %5322 = vmatpush.bf16.msrb.mxu3 %v7845_v37  ;;  %5297 = vmatpush.bf16.msrb.mxu1 %v7301_v49  ;;  %v11514_v0 = vld [vmem:[#allocation2 + $0x18dc] sm:$0xf0]  ;;  %v7170_v31 = vld [vmem:[#allocation2 + $0x60] sm:$0xf0] }
  0xdc   :  { %v10305_v8 = vor.u32 %v11514_v0, %v10304_v63  ;;  %v10272_v11 = vld [vmem:[#allocation2 + $0x1880] sm:$0xf]  ;;  %v10790_v32 = vld [vmem:[#allocation2 + $0x244] sm:$0xf] }
  0xdd   :  { %5284 = vmatpush.bf16.msrb.mxu0 %v10369_v48  ;;  %5310 = vmatpush.bf16.msrb.mxu2 %v7557_v50  ;;  %v11506_v12 = vld [vmem:[#allocation2 + $0x189c] sm:$0xf0]  ;;  %v10854_v37 = vld [vmem:[#allocation2 + $0x444] sm:$0xf]  ;;  %v7173_v48 = vor.u32 %v10726_v29, %v7170_v31  ;;  %v7429_v49 = vor.u32 %v10790_v32, %v7426_v33 }
  0xde   :  { %v10273_v21 = vor.u32 %v11506_v12, %v10272_v11  ;;  %v10240_v26 = vld [vmem:[#allocation2 + $0x1840] sm:$0xf]  ;;  %v7682_v38 = vld [vmem:[#allocation2 + $0x460] sm:$0xf0] }
  0xdf   :  { %5323 = vmatpush.bf16.msrb.mxu3 %v7813_v54  ;;  %5298 = vmatpush.bf16.msrb.mxu1 %v7269_v61  ;;  %v11498_v28 = vld [vmem:[#allocation2 + $0x185c] sm:$0xf0]  ;;  %v10718_v47 = vld [vmem:[#allocation2 + $0x4] sm:$0xf]  ;;  %v7685_v53 = vor.u32 %v10854_v37, %v7682_v38 }
  0xe0   :  { %v10241_v41 = vor.u32 %v11498_v28, %v10240_v26  ;;  %v10208_v45 = vld [vmem:[#allocation2 + $0x1800] sm:$0xf]  ;;  %v7138_v50 = vld [vmem:[#allocation2 + $0x20] sm:$0xf0] }
  0xe1   :  { %5285 = vmatpush.bf16.msrb.mxu0 %v10337_v60  ;;  %5311 = vmatpush.bf16.msrb.mxu2 %v7525_v62  ;;  %v11490_v46 = vld [vmem:[#allocation2 + $0x181c] sm:$0xf0]  ;;  %v10782_v51 = vld [vmem:[#allocation2 + $0x204] sm:$0xf]  ;;  %v7141_v0 = vor.u32 %v10718_v47, %v7138_v50 }
  0xe2   :  { %v7394_v52 = vld [vmem:[#allocation2 + $0x220] sm:$0xf0]  ;;  %v10209_v60 = vor.u32 %v11490_v46, %v10208_v45  ;;  %v89_v3 = vld.sshfl [vmem:[#allocation1 + $0x20] sm:$0xff pattern:$0x73625140] }
  0xe3   :  { %5324 = vmatpush.bf16.msrb.mxu3 %v7781_v2  ;;  %5299 = vmatpush.bf16.msrb.mxu1 %v7237_v9  ;;  %v10846_v54 = vld [vmem:[#allocation2 + $0x404] sm:$0xf]  ;;  %v7397_v1 = vor.u32 %v10782_v51, %v7394_v52  ;;  %v11820_v12 = vpack.c.bf16 %v89_v3, %v89_v3 }
  0xe4   :  { %v7650_v55 = vld [vmem:[#allocation2 + $0x420] sm:$0xf0] }
  0xe5   :  { %5286 = vmatpush.bf16.msrb.mxu0 %v10305_v8  ;;  %5312 = vmatpush.bf16.msrb.mxu2 %v7493_v10  ;;  %v10966_v56 = vld [vmem:[#allocation2 + $0x7c4] sm:$0xf]  ;;  %v7653_v4 = vor.u32 %v10846_v54, %v7650_v55 }
  0xe6   :  { %v8130_v57 = vld [vmem:[#allocation2 + $0x7e0] sm:$0xf0] }
  0xe7   :  { %5325 = vmatpush.bf16.msrb.mxu3 %v7749_v14  ;;  %5300 = vmatpush.bf16.msrb.mxu1 %v7205_v22  ;;  %v11030_v58 = vld [vmem:[#allocation2 + $0x9c4] sm:$0xf]  ;;  %v8133_v5 = vor.u32 %v10966_v56, %v8130_v57 }
  0xe8   :  { %v8386_v59 = vld [vmem:[#allocation2 + $0x9e0] sm:$0xf0] }
  0xe9   :  { %5287 = vmatpush.bf16.msrb.mxu0 %v10273_v21  ;;  %5313 = vmatpush.bf16.msrb.mxu2 %v7461_v25  ;;  %v11094_v61 = vld [vmem:[#allocation2 + $0xbc4] sm:$0xf]  ;;  %v8389_v6 = vor.u32 %v11030_v58, %v8386_v59 }
  0xea   :  { %v8642_v62 = vld [vmem:[#allocation2 + $0xbe0] sm:$0xf0] }
  0xeb   :  { %5326 = vmatpush.bf16.msrb.mxu3 %v7717_v30  ;;  %v11158_v63 = vld [vmem:[#allocation2 + $0xdc4] sm:$0xf]  ;;  %5301 = vmatpush.bf16.msrb.mxu1 %v7173_v48  ;;  %v8645_v7 = vor.u32 %v11094_v61, %v8642_v62 }
  0xec   :  { %v8898_v2 = vld [vmem:[#allocation2 + $0xde0] sm:$0xf0] }
  0xed   :  { %5288 = vmatpush.bf16.msrb.mxu0 %v10241_v41  ;;  %5314 = vmatpush.bf16.msrb.mxu2 %v7429_v49  ;;  %v10958_v8 = vld [vmem:[#allocation2 + $0x784] sm:$0xf]  ;;  %v8901_v11 = vor.u32 %v11158_v63, %v8898_v2 }
  0xee   :  { %v8098_v9 = vld [vmem:[#allocation2 + $0x7a0] sm:$0xf0] }
  0xef   :  { %5327 = vmatpush.bf16.msrb.mxu3 %v7685_v53  ;;  %v11022_v10 = vld [vmem:[#allocation2 + $0x984] sm:$0xf]  ;;  %5302 = vmatpush.bf16.msrb.mxu1 %v7141_v0  ;;  %v8101_v18 = vor.u32 %v10958_v8, %v8098_v9 }
  0xf0   :  { %v8354_v13 = vld [vmem:[#allocation2 + $0x9a0] sm:$0xf0] }
  0xf1   :  { %5289 = vmatpush.bf16.msrb.mxu0 %v10209_v60  ;;  %v11086_v14 = vld [vmem:[#allocation2 + $0xb84] sm:$0xf]  ;;  %5315 = vmatpush.bf16.msrb.mxu2 %v7397_v1  ;;  %v8357_v20 = vor.u32 %v11022_v10, %v8354_v13 }
  0xf2   :  { %v8610_v15 = vld [vmem:[#allocation2 + $0xba0] sm:$0xf0]  ;;  %5303 = vmatmul.bf16.vlgmr.msrb.gmra.mxu1 %v11780_v36 }
  0xf3   :  { %v11150_v16 = vld [vmem:[#allocation2 + $0xd84] sm:$0xf]  ;;  %5328 = vmatpush.bf16.msrb.mxu3 %v7653_v4  ;;  %5347 = vmatpush.bf16.msra.mxu1 %v8389_v6  ;;  %v8613_v21 = vor.u32 %v11086_v14, %v8610_v15 }
  0xf4   :  { %v8866_v17 = vld [vmem:[#allocation2 + $0xda0] sm:$0xf0]  ;;  %5290 = vmatmul.bf16.vlgmr.msrb.gmra.mxu0 %v11820_v12  ;;  %5316 = vmatmul.bf16.vlgmr.msrb.gmra.mxu2 %v11784_v43 }
  0xf5   :  { %5334 = vmatpush.bf16.msra.mxu0 %v8133_v5  ;;  %5360 = vmatpush.bf16.msra.mxu2 %v8645_v7  ;;  %v10950_v22 = vld [vmem:[#allocation2 + $0x744] sm:$0xf]  ;;  %v8869_v28 = vor.u32 %v11150_v16, %v8866_v17 }
  0xf6   :  { %v8066_v25 = vld [vmem:[#allocation2 + $0x760] sm:$0xf0]  ;;  %5329 = vmatmul.bf16.vlgmr.msrb.gmra.mxu3 %v11778_v35 }
  0xf7   :  { %v11014_v26 = vld [vmem:[#allocation2 + $0x944] sm:$0xf]  ;;  %5373 = vmatpush.bf16.msra.mxu3 %v8901_v11  ;;  %v8069_v37 = vor.u32 %v10950_v22, %v8066_v25  ;;  %5348 = vmatpush.bf16.msra.mxu1 %v8357_v20 }
  0xf8   :  { %v8322_v29 = vld [vmem:[#allocation2 + $0x960] sm:$0xf0] }
  0xf9   :  { %v11078_v30 = vld [vmem:[#allocation2 + $0xb44] sm:$0xf]  ;;  %5335 = vmatpush.bf16.msra.mxu0 %v8101_v18  ;;  %5361 = vmatpush.bf16.msra.mxu2 %v8613_v21  ;;  %v8325_v38 = vor.u32 %v11014_v26, %v8322_v29 }
  0xfa   :  { %v8578_v31 = vld [vmem:[#allocation2 + $0xb60] sm:$0xf0] }
  0xfb   :  { %v11142_v32 = vld [vmem:[#allocation2 + $0xd44] sm:$0xf]  ;;  %v8581_v41 = vor.u32 %v11078_v30, %v8578_v31  ;;  %5374 = vmatpush.bf16.msra.mxu3 %v8869_v28  ;;  %5349 = vmatpush.bf16.msra.mxu1 %v8325_v38 }
  0xfc   :  { %v8834_v33 = vld [vmem:[#allocation2 + $0xd60] sm:$0xf0] }
  0xfd   :  { %v10942_v45 = vld [vmem:[#allocation2 + $0x704] sm:$0xf]  ;;  %v8837_v48 = vor.u32 %v11142_v32, %v8834_v33  ;;  %5336 = vmatpush.bf16.msra.mxu0 %v8069_v37  ;;  %5362 = vmatpush.bf16.msra.mxu2 %v8581_v41 }
  0xfe   :  { %v8034_v46 = vld [vmem:[#allocation2 + $0x720] sm:$0xf0] }
  0xff   :  { %v11006_v47 = vld [vmem:[#allocation2 + $0x904] sm:$0xf]  ;;  %v8037_v54 = vor.u32 %v10942_v45, %v8034_v46  ;;  %5375 = vmatpush.bf16.msra.mxu3 %v8837_v48 }
 0x100   :  { %v8290_v49 = vld [vmem:[#allocation2 + $0x920] sm:$0xf0] }
 0x101   :  { %v11070_v50 = vld [vmem:[#allocation2 + $0xb04] sm:$0xf]  ;;  %v8293_v55 = vor.u32 %v11006_v47, %v8290_v49  ;;  %5337 = vmatpush.bf16.msra.mxu0 %v8037_v54 }
 0x102   :  { %v8546_v51 = vld [vmem:[#allocation2 + $0xb20] sm:$0xf0] }
 0x103   :  { %v11134_v52 = vld [vmem:[#allocation2 + $0xd04] sm:$0xf]  ;;  %v8549_v56 = vor.u32 %v11070_v50, %v8546_v51  ;;  %5350 = vmatpush.bf16.msra.mxu1 %v8293_v55 }
 0x104   :  { %v8802_v53 = vld [vmem:[#allocation2 + $0xd20] sm:$0xf0] }
 0x105   :  { %v10934_v57 = vld [vmem:[#allocation2 + $0x6c4] sm:$0xf]  ;;  %v8805_v60 = vor.u32 %v11134_v52, %v8802_v53  ;;  %5363 = vmatpush.bf16.msra.mxu2 %v8549_v56 }
 0x106   :  { %v8002_v58 = vld [vmem:[#allocation2 + $0x6e0] sm:$0xf0] }
 0x107   :  { %v10998_v59 = vld [vmem:[#allocation2 + $0x8c4] sm:$0xf]  ;;  %v8005_v2 = vor.u32 %v10934_v57, %v8002_v58  ;;  %5376 = vmatpush.bf16.msra.mxu3 %v8805_v60 }
 0x108   :  { %v8258_v61 = vld [vmem:[#allocation2 + $0x8e0] sm:$0xf0] }
 0x109   :  { %v11062_v62 = vld [vmem:[#allocation2 + $0xac4] sm:$0xf]  ;;  %v8261_v3 = vor.u32 %v10998_v59, %v8258_v61  ;;  %5338 = vmatpush.bf16.msra.mxu0 %v8005_v2 }
 0x10a   :  { %v8514_v63 = vld [vmem:[#allocation2 + $0xae0] sm:$0xf0] }
 0x10b   :  { %v11126_v0 = vld [vmem:[#allocation2 + $0xcc4] sm:$0xf]  ;;  %v8517_v4 = vor.u32 %v11062_v62, %v8514_v63  ;;  %5351 = vmatpush.bf16.msra.mxu1 %v8261_v3 }
 0x10c   :  { %v8770_v1 = vld [vmem:[#allocation2 + $0xce0] sm:$0xf0] }
 0x10d   :  { %v10926_v5 = vld [vmem:[#allocation2 + $0x684] sm:$0xf]  ;;  %v8773_v8 = vor.u32 %v11126_v0, %v8770_v1  ;;  %5364 = vmatpush.bf16.msra.mxu2 %v8517_v4 }
 0x10e   :  { %v7970_v6 = vld [vmem:[#allocation2 + $0x6a0] sm:$0xf0] }
 0x10f   :  { %v10990_v7 = vld [vmem:[#allocation2 + $0x884] sm:$0xf]  ;;  %v7973_v15 = vor.u32 %v10926_v5, %v7970_v6  ;;  %5377 = vmatpush.bf16.msra.mxu3 %v8773_v8 }
 0x110   :  { %v8226_v9 = vld [vmem:[#allocation2 + $0x8a0] sm:$0xf0] }
 0x111   :  { %v11054_v10 = vld [vmem:[#allocation2 + $0xa84] sm:$0xf]  ;;  %v8229_v16 = vor.u32 %v10990_v7, %v8226_v9  ;;  %5339 = vmatpush.bf16.msra.mxu0 %v7973_v15 }
 0x112   :  { %v8482_v11 = vld [vmem:[#allocation2 + $0xaa0] sm:$0xf0] }
 0x113   :  { %v11118_v13 = vld [vmem:[#allocation2 + $0xc84] sm:$0xf]  ;;  %v8485_v17 = vor.u32 %v11054_v10, %v8482_v11  ;;  %5352 = vmatpush.bf16.msra.mxu1 %v8229_v16 }
 0x114   :  { %v8738_v14 = vld [vmem:[#allocation2 + $0xca0] sm:$0xf0] }
 0x115   :  { %v10918_v18 = vld [vmem:[#allocation2 + $0x644] sm:$0xf]  ;;  %v8741_v22 = vor.u32 %v11118_v13, %v8738_v14  ;;  %5365 = vmatpush.bf16.msra.mxu2 %v8485_v17 }
 0x116   :  { %v7938_v20 = vld [vmem:[#allocation2 + $0x660] sm:$0xf0] }
 0x117   :  { %v10982_v21 = vld [vmem:[#allocation2 + $0x844] sm:$0xf]  ;;  %v7941_v31 = vor.u32 %v10918_v18, %v7938_v20  ;;  %5378 = vmatpush.bf16.msra.mxu3 %v8741_v22 }
 0x118   :  { %v8194_v25 = vld [vmem:[#allocation2 + $0x860] sm:$0xf0] }
 0x119   :  { %v11046_v26 = vld [vmem:[#allocation2 + $0xa44] sm:$0xf]  ;;  %v8197_v37 = vor.u32 %v10982_v21, %v8194_v25  ;;  %5340 = vmatpush.bf16.msra.mxu0 %v7941_v31 }
 0x11a   :  { %v8450_v28 = vld [vmem:[#allocation2 + $0xa60] sm:$0xf0] }
 0x11b   :  { %v11110_v29 = vld [vmem:[#allocation2 + $0xc44] sm:$0xf]  ;;  %v8453_v38 = vor.u32 %v11046_v26, %v8450_v28  ;;  %5353 = vmatpush.bf16.msra.mxu1 %v8197_v37 }
 0x11c   :  { %v8706_v30 = vld [vmem:[#allocation2 + $0xc60] sm:$0xf0] }
 0x11d   :  { %v10910_v32 = vld [vmem:[#allocation2 + $0x604] sm:$0xf]  ;;  %v8709_v47 = vor.u32 %v11110_v29, %v8706_v30  ;;  %5366 = vmatpush.bf16.msra.mxu2 %v8453_v38 }
 0x11e   :  { %v7906_v33 = vld [vmem:[#allocation2 + $0x620] sm:$0xf0] }
 0x11f   :  { %v10974_v41 = vld [vmem:[#allocation2 + $0x804] sm:$0xf]  ;;  %v7909_v54 = vor.u32 %v10910_v32, %v7906_v33  ;;  %5379 = vmatpush.bf16.msra.mxu3 %v8709_v47 }
 0x120   :  { %v8162_v45 = vld [vmem:[#allocation2 + $0x820] sm:$0xf0] }
 0x121   :  { %v11038_v46 = vld [vmem:[#allocation2 + $0xa04] sm:$0xf]  ;;  %v8165_v58 = vor.u32 %v10974_v41, %v8162_v45  ;;  %5341 = vmatpush.bf16.msra.mxu0 %v7909_v54 }
 0x122   :  { %v8418_v48 = vld [vmem:[#allocation2 + $0xa20] sm:$0xf0] }
 0x123   :  { %v11102_v49 = vld [vmem:[#allocation2 + $0xc04] sm:$0xf]  ;;  %v8421_v59 = vor.u32 %v11038_v46, %v8418_v48  ;;  %5354 = vmatpush.bf16.msra.mxu1 %v8165_v58 }
 0x124   :  { %v8674_v50 = vld [vmem:[#allocation2 + $0xc20] sm:$0xf0]  ;;  %5342 = vmatmul.bf16.vlgmr.msra.gmra.mxu0 %v11782_v42 }
 0x125   :  { %v11222_v51 = vld [vmem:[#allocation2 + $0xfc4] sm:$0xf]  ;;  %v8677_v62 = vor.u32 %v11102_v49, %v8674_v50  ;;  %5367 = vmatpush.bf16.msra.mxu2 %v8421_v59 }
 0x126   :  { %v9154_v52 = vld [vmem:[#allocation2 + $0xfe0] sm:$0xf0]  ;;  %5355 = vmatmul.bf16.vlgmr.msra.gmra.mxu1 %v11798_v39 }
 0x127   :  { %v11286_v53 = vld [vmem:[#allocation2 + $0x11c4] sm:$0xf]  ;;  %v9157_v63 = vor.u32 %v11222_v51, %v9154_v52  ;;  %5380 = vmatpush.bf16.msra.mxu3 %v8677_v62 }
 0x128   :  { %v9410_v55 = vld [vmem:[#allocation2 + $0x11e0] sm:$0xf0]  ;;  %5368 = vmatmul.bf16.vlgmr.msra.gmra.mxu2 %v11802_v44 }
 0x129   :  { %v11350_v56 = vld [vmem:[#allocation2 + $0x13c4] sm:$0xf]  ;;  %v9413_v0 = vor.u32 %v11286_v53, %v9410_v55  ;;  %5386 = vmatpush.bf16.msrb.mxu0 %v9157_v63 }
 0x12a   :  { %v9666_v57 = vld [vmem:[#allocation2 + $0x13e0] sm:$0xf0]  ;;  %5381 = vmatmul.bf16.vlgmr.msra.gmra.mxu3 %v11796_v34 }
 0x12b   :  { %v11414_v60 = vld [vmem:[#allocation2 + $0x15c4] sm:$0xf]  ;;  %v9669_v1 = vor.u32 %v11350_v56, %v9666_v57  ;;  %5399 = vmatpush.bf16.msrb.mxu1 %v9413_v0 }
 0x12c   :  { %v9922_v61 = vld [vmem:[#allocation2 + $0x15e0] sm:$0xf0] }
 0x12d   :  { %v11214_v2 = vld [vmem:[#allocation2 + $0xf84] sm:$0xf]  ;;  %v9925_v5 = vor.u32 %v11414_v60, %v9922_v61  ;;  %5412 = vmatpush.bf16.msrb.mxu2 %v9669_v1 }
 0x12e   :  { %v9122_v3 = vld [vmem:[#allocation2 + $0xfa0] sm:$0xf0] }
 0x12f   :  { %v11278_v4 = vld [vmem:[#allocation2 + $0x1184] sm:$0xf]  ;;  %v9125_v11 = vor.u32 %v11214_v2, %v9122_v3  ;;  %5425 = vmatpush.bf16.msrb.mxu3 %v9925_v5 }
 0x130   :  { %v9378_v6 = vld [vmem:[#allocation2 + $0x11a0] sm:$0xf0] }
 0x131   :  { %v11342_v7 = vld [vmem:[#allocation2 + $0x1384] sm:$0xf]  ;;  %v9381_v13 = vor.u32 %v11278_v4, %v9378_v6  ;;  %5387 = vmatpush.bf16.msrb.mxu0 %v9125_v11 }
 0x132   :  { %v9634_v8 = vld [vmem:[#allocation2 + $0x13a0] sm:$0xf0] }
 0x133   :  { %v11406_v9 = vld [vmem:[#allocation2 + $0x1584] sm:$0xf]  ;;  %v9637_v14 = vor.u32 %v11342_v7, %v9634_v8  ;;  %5400 = vmatpush.bf16.msrb.mxu1 %v9381_v13 }
 0x134   :  { %v9890_v10 = vld [vmem:[#allocation2 + $0x15a0] sm:$0xf0] }
 0x135   :  { %v11206_v15 = vld [vmem:[#allocation2 + $0xf44] sm:$0xf]  ;;  %v9893_v18 = vor.u32 %v11406_v9, %v9890_v10  ;;  %5413 = vmatpush.bf16.msrb.mxu2 %v9637_v14 }
 0x136   :  { %v9090_v16 = vld [vmem:[#allocation2 + $0xf60] sm:$0xf0] }
 0x137   :  { %v11270_v17 = vld [vmem:[#allocation2 + $0x1144] sm:$0xf]  ;;  %v9093_v28 = vor.u32 %v11206_v15, %v9090_v16  ;;  %5426 = vmatpush.bf16.msrb.mxu3 %v9893_v18 }
 0x138   :  { %v9346_v20 = vld [vmem:[#allocation2 + $0x1160] sm:$0xf0] }
 0x139   :  { %v11334_v21 = vld [vmem:[#allocation2 + $0x1344] sm:$0xf]  ;;  %v9349_v29 = vor.u32 %v11270_v17, %v9346_v20  ;;  %5388 = vmatpush.bf16.msrb.mxu0 %v9093_v28 }
 0x13a   :  { %v9602_v22 = vld [vmem:[#allocation2 + $0x1360] sm:$0xf0] }
 0x13b   :  { %v11398_v25 = vld [vmem:[#allocation2 + $0x1544] sm:$0xf]  ;;  %v9605_v30 = vor.u32 %v11334_v21, %v9602_v22  ;;  %5401 = vmatpush.bf16.msrb.mxu1 %v9349_v29 }
 0x13c   :  { %v9858_v26 = vld [vmem:[#allocation2 + $0x1560] sm:$0xf0] }
 0x13d   :  { %v11198_v31 = vld [vmem:[#allocation2 + $0xf04] sm:$0xf]  ;;  %v9861_v37 = vor.u32 %v11398_v25, %v9858_v26  ;;  %5414 = vmatpush.bf16.msrb.mxu2 %v9605_v30  ;;  %v5135_v30 = vpop.f32.mrf.mxu0 }
 0x13e   :  { %v9058_v32 = vld [vmem:[#allocation2 + $0xf20] sm:$0xf0] }
 0x13f   :  { %v11262_v33 = vld [vmem:[#allocation2 + $0x1104] sm:$0xf]  ;;  %v9061_v48 = vor.u32 %v11198_v31, %v9058_v32  ;;  %5427 = vmatpush.bf16.msrb.mxu3 %v9861_v37 }
 0x140   :  { %v9314_v38 = vld [vmem:[#allocation2 + $0x1120] sm:$0xf0] }
 0x141   :  { %v11326_v41 = vld [vmem:[#allocation2 + $0x1304] sm:$0xf]  ;;  %v9317_v49 = vor.u32 %v11262_v33, %v9314_v38  ;;  %5389 = vmatpush.bf16.msrb.mxu0 %v9061_v48 }
 0x142   :  { %v9570_v45 = vld [vmem:[#allocation2 + $0x1320] sm:$0xf0] }
 0x143   :  { %v11390_v46 = vld [vmem:[#allocation2 + $0x1504] sm:$0xf]  ;;  %v9573_v50 = vor.u32 %v11326_v41, %v9570_v45  ;;  %5402 = vmatpush.bf16.msrb.mxu1 %v9317_v49 }
 0x144   :  { %v9826_v47 = vld [vmem:[#allocation2 + $0x1520] sm:$0xf0] }
 0x145   :  { %v11190_v51 = vld [vmem:[#allocation2 + $0xec4] sm:$0xf]  ;;  %v9829_v54 = vor.u32 %v11390_v46, %v9826_v47  ;;  %5415 = vmatpush.bf16.msrb.mxu2 %v9573_v50 }
 0x146   :  { %v9026_v52 = vld [vmem:[#allocation2 + $0xee0] sm:$0xf0] }
 0x147   :  { %v11254_v53 = vld [vmem:[#allocation2 + $0x10c4] sm:$0xf]  ;;  %v9029_v60 = vor.u32 %v11190_v51, %v9026_v52  ;;  %5428 = vmatpush.bf16.msrb.mxu3 %v9829_v54  ;;  %v5148_v52 = vpop.f32.mrf.mxu1 }
 0x148   :  { %v9282_v55 = vld [vmem:[#allocation2 + $0x10e0] sm:$0xf0] }
 0x149   :  { %v11318_v56 = vld [vmem:[#allocation2 + $0x12c4] sm:$0xf]  ;;  %v9285_v62 = vor.u32 %v11254_v53, %v9282_v55  ;;  %5390 = vmatpush.bf16.msrb.mxu0 %v9029_v60  ;;  %v7368_v55 = vld [vmem:[#allocation2 + $0x1c8] sm:$0xf] }
 0x14a   :  { %v9538_v57 = vld [vmem:[#allocation2 + $0x12e0] sm:$0xf0]  ;;  %v7624_v60 = vld [vmem:[#allocation2 + $0x3c8] sm:$0xf] }
 0x14b   :  { %v11382_v58 = vld [vmem:[#allocation2 + $0x14c4] sm:$0xf]  ;;  %v9541_v63 = vor.u32 %v11318_v56, %v9538_v57  ;;  %5403 = vmatpush.bf16.msrb.mxu1 %v9285_v62  ;;  %v10779_v56 = vld [vmem:[#allocation2 + $0x1e4] sm:$0xf0] }
 0x14c   :  { %v9794_v59 = vld [vmem:[#allocation2 + $0x14e0] sm:$0xf0] }
 0x14d   :  { %v11182_v61 = vld [vmem:[#allocation2 + $0xe84] sm:$0xf]  ;;  %v9797_v3 = vor.u32 %v11382_v58, %v9794_v59  ;;  %5416 = vmatpush.bf16.msrb.mxu2 %v9541_v63 }
 0x14e   :  { %v8994_v0 = vld [vmem:[#allocation2 + $0xea0] sm:$0xf0] }
 0x14f   :  { %v11246_v1 = vld [vmem:[#allocation2 + $0x1084] sm:$0xf]  ;;  %v8997_v9 = vor.u32 %v11182_v61, %v8994_v0  ;;  %5429 = vmatpush.bf16.msrb.mxu3 %v9797_v3  ;;  %v10843_v61 = vld [vmem:[#allocation2 + $0x3e4] sm:$0xf0]  ;;  %v5161_v0 = vpop.f32.mrf.mxu2 }
 0x150   :  { %v9250_v2 = vld [vmem:[#allocation2 + $0x10a0] sm:$0xf0] }
 0x151   :  { %v11310_v4 = vld [vmem:[#allocation2 + $0x1284] sm:$0xf]  ;;  %v9253_v11 = vor.u32 %v11246_v1, %v9250_v2  ;;  %5391 = vmatpush.bf16.msrb.mxu0 %v8997_v9  ;;  %v7369_v2 = vor.u32 %v10779_v56, %v7368_v55  ;;  %v7625_v9 = vor.u32 %v10843_v61, %v7624_v60  ;;  %v7528_v55 = vld [vmem:[#allocation2 + $0x308] sm:$0xf] }
 0x152   :  { %v9506_v5 = vld [vmem:[#allocation2 + $0x12a0] sm:$0xf0]  ;;  %v10819_v56 = vld [vmem:[#allocation2 + $0x324] sm:$0xf0] }
 0x153   :  { %v11830_v6 = vld [vmem:[#allocation5] sm:$0xff]  ;;  %v9509_v13 = vor.u32 %v11310_v4, %v9506_v5  ;;  %5404 = vmatpush.bf16.msrb.mxu1 %v9253_v11  ;;  %v7336_v11 = vld [vmem:[#allocation2 + $0x188] sm:$0xf] }
 0x154   :  { %v11374_v7 = vld [vmem:[#allocation2 + $0x1484] sm:$0xf]  ;;  %v950_v16 = vperm.slane %v11830_v6, 0 }
 0x155   :  { %v9762_v8 = vld [vmem:[#allocation2 + $0x14a0] sm:$0xf0]  ;;  %5417 = vmatpush.bf16.msrb.mxu2 %v9509_v13  ;;  %v10771_v13 = vld [vmem:[#allocation2 + $0x1a4] sm:$0xf0] }
 0x156   :  { %v11174_v10 = vld [vmem:[#allocation2 + $0xe44] sm:$0xf]  ;;  %v9765_v17 = vor.u32 %v11374_v7, %v9762_v8  ;;  %v5136_v41 = vadd.f32 %v5135_v30, %v950_v16  ;;  %v5174_v8 = vpop.f32.mrf.mxu3  ;;  %v10835_v16 = vld [vmem:[#allocation2 + $0x3a4] sm:$0xf0] }
 0x157   :  { %v8962_v14 = vld [vmem:[#allocation2 + $0xe60] sm:$0xf0] }
 0x158   :  { %v11238_v15 = vld [vmem:[#allocation2 + $0x1044] sm:$0xf]  ;;  %v8965_v26 = vor.u32 %v11174_v10, %v8962_v14  ;;  %5430 = vmatpush.bf16.msrb.mxu3 %v9765_v17  ;;  %v5149_v57 = vadd.f32 %v5148_v52, %v5136_v41  ;;  %v5137_v14 = vpop.f32.mrf.mxu0  ;;  %v5163_v41 = vpop.f32.mrf.mxu2 }
 0x159   :  { %v9218_v18 = vld [vmem:[#allocation2 + $0x1060] sm:$0xf0] }
 0x15a   :  { %v11302_v20 = vld [vmem:[#allocation2 + $0x1244] sm:$0xf]  ;;  %v9221_v31 = vor.u32 %v11238_v15, %v9218_v18  ;;  %5392 = vmatpush.bf16.msrb.mxu0 %v8965_v26  ;;  %v5162_v7 = vadd.f32 %v5161_v0, %v5149_v57  ;;  %v7592_v15 = vld [vmem:[#allocation2 + $0x388] sm:$0xf] }
 0x15b   :  { %v9474_v21 = vld [vmem:[#allocation2 + $0x1260] sm:$0xf0] }
 0x15c   :  { %v11366_v22 = vld [vmem:[#allocation2 + $0x1444] sm:$0xf]  ;;  %v9477_v32 = vor.u32 %v11302_v20, %v9474_v21  ;;  %5405 = vmatpush.bf16.msrb.mxu1 %v9221_v31  ;;  %v5175_v17 = vadd.f32 %v5174_v8, %v5162_v7  ;;  %v7337_v21 = vor.u32 %v10771_v13, %v7336_v11  ;;  %v7304_v31 = vld [vmem:[#allocation2 + $0x148] sm:$0xf] }
 0x15d   :  { %v9730_v25 = vld [vmem:[#allocation2 + $0x1460] sm:$0xf0]  ;;  %v7496_v7 = vld [vmem:[#allocation2 + $0x2c8] sm:$0xf] }
 0x15e   :  { %v11166_v28 = vld [vmem:[#allocation2 + $0xe04] sm:$0xf]  ;;  %v9733_v45 = vor.u32 %v11366_v22, %v9730_v25  ;;  %5418 = vmatpush.bf16.msrb.mxu2 %v9477_v32  ;;  %v10763_v32 = vld [vmem:[#allocation2 + $0x164] sm:$0xf0] }
 0x15f   :  { %v8930_v29 = vld [vmem:[#allocation2 + $0xe20] sm:$0xf0]  ;;  %v10811_v8 = vld [vmem:[#allocation2 + $0x2e4] sm:$0xf0] }
 0x160   :  { %v11230_v33 = vld [vmem:[#allocation2 + $0x1004] sm:$0xf]  ;;  %v8933_v53 = vor.u32 %v11166_v28, %v8930_v29  ;;  %5431 = vmatpush.bf16.msrb.mxu3 %v9733_v45  ;;  %v5150_v28 = vpop.f32.mrf.mxu1  ;;  %v7593_v29 = vor.u32 %v10835_v16, %v7592_v15 }
 0x161   :  { %v9186_v37 = vld [vmem:[#allocation2 + $0x1020] sm:$0xf0]  ;;  %v7464_v28 = vld [vmem:[#allocation2 + $0x288] sm:$0xf] }
 0x162   :  { %v11294_v38 = vld [vmem:[#allocation2 + $0x1204] sm:$0xf]  ;;  %v9189_v58 = vor.u32 %v11230_v33, %v9186_v37  ;;  %5393 = vmatpush.bf16.msrb.mxu0 %v8933_v53  ;;  %v7560_v33 = vld [vmem:[#allocation2 + $0x348] sm:$0xf] }
 0x163   :  { %v9442_v46 = vld [vmem:[#allocation2 + $0x1220] sm:$0xf0]  ;;  %v10827_v37 = vld [vmem:[#allocation2 + $0x364] sm:$0xf0] }
 0x164   :  { %v11358_v47 = vld [vmem:[#allocation2 + $0x1404] sm:$0xf]  ;;  %v9445_v59 = vor.u32 %v11294_v38, %v9442_v46  ;;  %5406 = vmatpush.bf16.msrb.mxu1 %v9189_v58  ;;  %v7305_v46 = vor.u32 %v10763_v32, %v7304_v31  ;;  %v7272_v53 = vld [vmem:[#allocation2 + $0x108] sm:$0xf]  ;;  %v5187_v58 = vpop.f32.mrf.mxu0 }
 0x165   :  { %v9698_v48 = vld [vmem:[#allocation2 + $0x1420] sm:$0xf0]  ;;  %5394 = vmatmul.bf16.vlgmr.msrb.gmra.mxu0 %v11800_v40  ;;  %v5188_v0 = vadd.f32 %v5187_v58, %v5175_v17  ;;  %v7497_v17 = vor.u32 %v10811_v8, %v7496_v7  ;;  %v10971_v8 = vld [vmem:[#allocation2 + $0x7e4] sm:$0xf0] }
 0x166   :  { %v11478_v49 = vld [vmem:[#allocation2 + $0x17c4] sm:$0xf]  ;;  %v9701_v62 = vor.u32 %v11358_v47, %v9698_v48  ;;  %5419 = vmatpush.bf16.msrb.mxu2 %v9445_v59 }
 0x167   :  { %v10178_v50 = vld [vmem:[#allocation2 + $0x17e0] sm:$0xf0]  ;;  %5407 = vmatmul.bf16.vlgmr.msrb.gmra.mxu1 %v11808_v19 }
 0x168   :  { %v11542_v51 = vld [vmem:[#allocation2 + $0x19c4] sm:$0xf]  ;;  %v10181_v63 = vor.u32 %v11478_v49, %v10178_v50  ;;  %5432 = vmatpush.bf16.msrb.mxu3 %v9701_v62  ;;  %v5176_v50 = vpop.f32.mrf.mxu3 }
 0x169   :  { %v10434_v54 = vld [vmem:[#allocation2 + $0x19e0] sm:$0xf0]  ;;  %5420 = vmatmul.bf16.vlgmr.msrb.gmra.mxu2 %v11812_v24  ;;  %v10731_v50 = vld [vmem:[#allocation2 + $0x64] sm:$0xf0] }
 0x16a   :  { %v10437_v1 = vor.u32 %v11542_v51, %v10434_v54  ;;  %v11470_v3 = vld [vmem:[#allocation2 + $0x1784] sm:$0xf]  ;;  %5438 = vmatpush.bf16.msra.mxu0 %v10181_v63  ;;  %5464 = vmatpush.bf16.msra.mxu2 %v7369_v2  ;;  %v7561_v51 = vor.u32 %v10827_v37, %v7560_v33  ;;  %v10755_v54 = vld [vmem:[#allocation2 + $0x124] sm:$0xf0]  ;;  %v7529_v2 = vor.u32 %v10819_v56, %v7528_v55 }
 0x16b   :  { %v10146_v4 = vld [vmem:[#allocation2 + $0x17a0] sm:$0xf0]  ;;  %5433 = vmatmul.bf16.vlgmr.msrb.gmra.mxu3 %v11810_v23  ;;  %v7273_v60 = vor.u32 %v10755_v54, %v7272_v53 }
 0x16c   :  { %v11534_v5 = vld [vmem:[#allocation2 + $0x1984] sm:$0xf]  ;;  %v10149_v18 = vor.u32 %v11470_v3, %v10146_v4  ;;  %5451 = vmatpush.bf16.msra.mxu1 %v10437_v1  ;;  %5477 = vmatpush.bf16.msra.mxu3 %v7625_v9  ;;  %v5200_v1 = vpop.f32.mrf.mxu1  ;;  %v7240_v4 = vld [vmem:[#allocation2 + $0xc8] sm:$0xf]  ;;  %v5189_v32 = vpop.f32.mrf.mxu0 }
 0x16d   :  { %v10402_v10 = vld [vmem:[#allocation2 + $0x19a0] sm:$0xf0]  ;;  %v5201_v9 = vadd.f32 %v5200_v1, %v5188_v0  ;;  %v7400_v0 = vld [vmem:[#allocation2 + $0x208] sm:$0xf] }
 0x16e   :  { %v10405_v20 = vor.u32 %v11534_v5, %v10402_v10  ;;  %v11462_v22 = vld [vmem:[#allocation2 + $0x1744] sm:$0xf]  ;;  %5439 = vmatpush.bf16.msra.mxu0 %v10149_v18  ;;  %5465 = vmatpush.bf16.msra.mxu2 %v7337_v21  ;;  %v10747_v5 = vld [vmem:[#allocation2 + $0xe4] sm:$0xf0]  ;;  %v5213_v18 = vpop.f32.mrf.mxu2 }
 0x16f   :  { %v10114_v25 = vld [vmem:[#allocation2 + $0x1760] sm:$0xf0]  ;;  %v7241_v13 = vor.u32 %v10747_v5, %v7240_v4  ;;  %v7208_v21 = vld [vmem:[#allocation2 + $0x88] sm:$0xf] }
 0x170   :  { %v11526_v26 = vld [vmem:[#allocation2 + $0x1944] sm:$0xf]  ;;  %v10117_v38 = vor.u32 %v11462_v22, %v10114_v25  ;;  %5452 = vmatpush.bf16.msra.mxu1 %v10405_v20  ;;  %5478 = vmatpush.bf16.msra.mxu3 %v7593_v29  ;;  %v10739_v22 = vld [vmem:[#allocation2 + $0xa4] sm:$0xf0]  ;;  %v5214_v25 = vadd.f32 %v5213_v18, %v5201_v9 }
 0x171   :  { %v10370_v30 = vld [vmem:[#allocation2 + $0x1960] sm:$0xf0]  ;;  %v10803_v29 = vld [vmem:[#allocation2 + $0x2a4] sm:$0xf0]  ;;  %v7209_v37 = vor.u32 %v10739_v22, %v7208_v21 }
 0x172   :  { %v10373_v45 = vor.u32 %v11526_v26, %v10370_v30  ;;  %v11454_v47 = vld [vmem:[#allocation2 + $0x1704] sm:$0xf]  ;;  %5440 = vmatpush.bf16.msra.mxu0 %v10117_v38  ;;  %5466 = vmatpush.bf16.msra.mxu2 %v7305_v46  ;;  %v5226_v26 = vpop.f32.mrf.mxu3  ;;  %v10787_v1 = vld [vmem:[#allocation2 + $0x224] sm:$0xf0] }
 0x173   :  { %v10082_v48 = vld [vmem:[#allocation2 + $0x1720] sm:$0xf0]  ;;  %v11837_v31 = vadd.f32 %v5226_v26, %v5214_v25  ;;  %v10907_v4 = vld [vmem:[#allocation2 + $0x5e4] sm:$0xf0] }
 0x174   :  { %v11518_v49 = vld [vmem:[#allocation2 + $0x1904] sm:$0xf]  ;;  %v10085_v57 = vor.u32 %v11454_v47, %v10082_v48  ;;  %5453 = vmatpush.bf16.msra.mxu1 %v10373_v45  ;;  %5479 = vmatpush.bf16.msra.mxu3 %v7561_v51  ;;  %v5202_v46 = vpop.f32.mrf.mxu1  ;;  %v7465_v47 = vor.u32 %v10803_v29, %v7464_v28  ;;  %v7432_v51 = vld [vmem:[#allocation2 + $0x248] sm:$0xf] }
 0x175   :  { %v10338_v52 = vld [vmem:[#allocation2 + $0x1920] sm:$0xf0]  ;;  %v8136_v5 = vld [vmem:[#allocation2 + $0x7c8] sm:$0xf] }
 0x176   :  { %v10341_v59 = vor.u32 %v11518_v49, %v10338_v52  ;;  %v11446_v61 = vld [vmem:[#allocation2 + $0x16c4] sm:$0xf]  ;;  %5441 = vmatpush.bf16.msra.mxu0 %v10085_v57  ;;  %5467 = vmatpush.bf16.msra.mxu2 %v7273_v60  ;;  %v7176_v49 = vld [vmem:[#allocation2 + $0x48] sm:$0xf] }
 0x177   :  { %v10050_v62 = vld [vmem:[#allocation2 + $0x16e0] sm:$0xf0]  ;;  %v10795_v52 = vld [vmem:[#allocation2 + $0x264] sm:$0xf0]  ;;  %v7177_v57 = vor.u32 %v10731_v50, %v7176_v49 }
 0x178   :  { %v11510_v63 = vld [vmem:[#allocation2 + $0x18c4] sm:$0xf]  ;;  %v10053_v10 = vor.u32 %v11446_v61, %v10050_v62  ;;  %5454 = vmatpush.bf16.msra.mxu1 %v10341_v59  ;;  %5480 = vmatpush.bf16.msra.mxu3 %v7529_v2  ;;  %v7144_v60 = vld [vmem:[#allocation2 + $0x8] sm:$0xf]  ;;  %v5215_v61 = vpop.f32.mrf.mxu2  ;;  %v7433_v62 = vor.u32 %v10795_v52, %v7432_v51 }
 0x179   :  { %v10306_v3 = vld [vmem:[#allocation2 + $0x18e0] sm:$0xf0]  ;;  %v8392_v9 = vld [vmem:[#allocation2 + $0x9c8] sm:$0xf] }
 0x17a   :  { %v10309_v11 = vor.u32 %v11510_v63, %v10306_v3  ;;  %v11438_v14 = vld [vmem:[#allocation2 + $0x1684] sm:$0xf]  ;;  %5442 = vmatpush.bf16.msra.mxu0 %v10053_v10  ;;  %5468 = vmatpush.bf16.msra.mxu2 %v7241_v13  ;;  %v10723_v63 = vld [vmem:[#allocation2 + $0x24] sm:$0xf0]  ;;  %v5228_v2 = vpop.f32.mrf.mxu3 }
 0x17b   :  { %v10018_v15 = vld [vmem:[#allocation2 + $0x16a0] sm:$0xf0]  ;;  %v7880_v3 = vld [vmem:[#allocation2 + $0x5c8] sm:$0xf]  ;;  %v7145_v13 = vor.u32 %v10723_v63, %v7144_v60 }
 0x17c   :  { %v11502_v16 = vld [vmem:[#allocation2 + $0x1884] sm:$0xf]  ;;  %v10021_v30 = vor.u32 %v11438_v14, %v10018_v15  ;;  %5455 = vmatpush.bf16.msra.mxu1 %v10309_v11  ;;  %5481 = vmatpush.bf16.msra.mxu3 %v7497_v17  ;;  %v11035_v10 = vld [vmem:[#allocation2 + $0x9e4] sm:$0xf0]  ;;  %v7881_v18 = vor.u32 %v10907_v4, %v7880_v3  ;;  %v8137_v17 = vor.u32 %v10971_v8, %v8136_v5  ;;  %v5252_v5 = vpop.f32.mrf.mxu1 }
 0x17d   :  { %v10274_v20 = vld [vmem:[#allocation2 + $0x18a0] sm:$0xf0]  ;;  %v8648_v14 = vld [vmem:[#allocation2 + $0xbc8] sm:$0xf] }
 0x17e   :  { %v10277_v33 = vor.u32 %v11502_v16, %v10274_v20  ;;  %v11430_v38 = vld [vmem:[#allocation2 + $0x1644] sm:$0xf]  ;;  %5443 = vmatpush.bf16.msra.mxu0 %v10021_v30  ;;  %5469 = vmatpush.bf16.msra.mxu2 %v7209_v37  ;;  %v11099_v15 = vld [vmem:[#allocation2 + $0xbe4] sm:$0xf0]  ;;  %v7401_v16 = vor.u32 %v10787_v1, %v7400_v0  ;;  %v8393_v20 = vor.u32 %v11035_v10, %v8392_v9  ;;  %v5239_v0 = vpop.f32.mrf.mxu0 }
 0x17f   :  { %v9986_v41 = vld [vmem:[#allocation2 + $0x1660] sm:$0xf0]  ;;  %v7848_v21 = vld [vmem:[#allocation2 + $0x588] sm:$0xf]  ;;  %v8649_v26 = vor.u32 %v11099_v15, %v8648_v14  ;;  %v5240_v3 = vadd.f32 %v5239_v0, %v11837_v31 }
 0x180   :  { %v11494_v45 = vld [vmem:[#allocation2 + $0x1844] sm:$0xf]  ;;  %v9989_v53 = vor.u32 %v11430_v38, %v9986_v41  ;;  %5456 = vmatpush.bf16.msra.mxu1 %v10277_v33  ;;  %5482 = vmatpush.bf16.msra.mxu3 %v7465_v47  ;;  %v10899_v22 = vld [vmem:[#allocation2 + $0x5a4] sm:$0xf0] }
 0x181   :  { %v10242_v48 = vld [vmem:[#allocation2 + $0x1860] sm:$0xf0]  ;;  %v8104_v25 = vld [vmem:[#allocation2 + $0x788] sm:$0xf]  ;;  %v7849_v37 = vor.u32 %v10899_v22, %v7848_v21  ;;  %v5253_v14 = vadd.f32 %v5252_v5, %v5240_v3 }
 0x182   :  { %v11422_v54 = vld [vmem:[#allocation2 + $0x1604] sm:$0xf]  ;;  %v10245_v56 = vor.u32 %v11494_v45, %v10242_v48  ;;  %5444 = vmatpush.bf16.msra.mxu0 %v9989_v53  ;;  %5470 = vmatpush.bf16.msra.mxu2 %v7177_v57  ;;  %v10963_v28 = vld [vmem:[#allocation2 + $0x7a4] sm:$0xf0] }
 0x183   :  { %v9954_v55 = vld [vmem:[#allocation2 + $0x1620] sm:$0xf0]  ;;  %v8360_v29 = vld [vmem:[#allocation2 + $0x988] sm:$0xf]  ;;  %v8105_v38 = vor.u32 %v10963_v28, %v8104_v25 }
 0x184   :  { %v11486_v58 = vld [vmem:[#allocation2 + $0x1804] sm:$0xf]  ;;  %v9957_v7 = vor.u32 %v11422_v54, %v9954_v55  ;;  %5457 = vmatpush.bf16.msra.mxu1 %v10245_v56  ;;  %5483 = vmatpush.bf16.msra.mxu3 %v7433_v62  ;;  %v11027_v30 = vld [vmem:[#allocation2 + $0x9a4] sm:$0xf0] }
 0x185   :  { %v10210_v59 = vld [vmem:[#allocation2 + $0x1820] sm:$0xf0]  ;;  %v8616_v32 = vld [vmem:[#allocation2 + $0xb88] sm:$0xf]  ;;  %v8361_v41 = vor.u32 %v11027_v30, %v8360_v29  ;;  %v5265_v30 = vpop.f32.mrf.mxu2 }
 0x186   :  { %v10213_v11 = vor.u32 %v11486_v58, %v10210_v59  ;;  %5445 = vmatpush.bf16.msra.mxu0 %v9957_v7  ;;  %5471 = vmatpush.bf16.msra.mxu2 %v7145_v13  ;;  %v11091_v33 = vld [vmem:[#allocation2 + $0xba4] sm:$0xf0] }
 0x187   :  { %v7816_v45 = vld [vmem:[#allocation2 + $0x548] sm:$0xf]  ;;  %v8617_v48 = vor.u32 %v11091_v33, %v8616_v32 }
 0x188   :  { %5458 = vmatpush.bf16.msra.mxu1 %v10213_v11  ;;  %5484 = vmatpush.bf16.msra.mxu3 %v7401_v16  ;;  %v10891_v46 = vld [vmem:[#allocation2 + $0x564] sm:$0xf0] }
 0x189   :  { %v8072_v47 = vld [vmem:[#allocation2 + $0x748] sm:$0xf]  ;;  %5446 = vmatmul.bf16.vlgmr.msra.gmra.mxu0 %v11814_v27  ;;  %5472 = vmatmul.bf16.vlgmr.msra.gmra.mxu2 %v11780_v36  ;;  %v7817_v54 = vor.u32 %v10891_v46, %v7816_v45 }
 0x18a   :  { %5490 = vmatpush.bf16.msrb.mxu0 %v7881_v18  ;;  %5516 = vmatpush.bf16.msrb.mxu2 %v8393_v20  ;;  %v10955_v49 = vld [vmem:[#allocation2 + $0x764] sm:$0xf0] }
 0x18b   :  { %v8328_v50 = vld [vmem:[#allocation2 + $0x948] sm:$0xf]  ;;  %5459 = vmatmul.bf16.vlgmr.msra.gmra.mxu1 %v11820_v12  ;;  %5485 = vmatmul.bf16.vlgmr.msra.gmra.mxu3 %v11784_v43  ;;  %v8073_v55 = vor.u32 %v10955_v49, %v8072_v47  ;;  %v5241_v47 = vpop.f32.mrf.mxu0  ;;  %v5254_v49 = vpop.f32.mrf.mxu1 }
 0x18c   :  { %5503 = vmatpush.bf16.msrb.mxu1 %v8137_v17  ;;  %5529 = vmatpush.bf16.msrb.mxu3 %v8649_v26  ;;  %v11019_v51 = vld [vmem:[#allocation2 + $0x964] sm:$0xf0] }
 0x18d   :  { %v8584_v52 = vld [vmem:[#allocation2 + $0xb48] sm:$0xf]  ;;  %v8329_v56 = vor.u32 %v11019_v51, %v8328_v50 }
 0x18e   :  { %v11083_v53 = vld [vmem:[#allocation2 + $0xb64] sm:$0xf0]  ;;  %5491 = vmatpush.bf16.msrb.mxu0 %v7849_v37  ;;  %5517 = vmatpush.bf16.msrb.mxu2 %v8361_v41  ;;  %v5278_v41 = vpop.f32.mrf.mxu3 }
 0x18f   :  { %v7784_v57 = vld [vmem:[#allocation2 + $0x508] sm:$0xf]  ;;  %v8585_v60 = vor.u32 %v11083_v53, %v8584_v52 }
 0x190   :  { %5504 = vmatpush.bf16.msrb.mxu1 %v8105_v38  ;;  %v10883_v58 = vld [vmem:[#allocation2 + $0x524] sm:$0xf0]  ;;  %5530 = vmatpush.bf16.msrb.mxu3 %v8617_v48  ;;  %v5266_v38 = vadd.f32 %v5265_v30, %v5253_v14 }
 0x191   :  { %v8040_v59 = vld [vmem:[#allocation2 + $0x708] sm:$0xf]  ;;  %v7785_v4 = vor.u32 %v10883_v58, %v7784_v57 }
 0x192   :  { %v10947_v61 = vld [vmem:[#allocation2 + $0x724] sm:$0xf0]  ;;  %5492 = vmatpush.bf16.msrb.mxu0 %v7817_v54  ;;  %5518 = vmatpush.bf16.msrb.mxu2 %v8329_v56  ;;  %v11844_v50 = vadd.f32 %v5278_v41, %v5266_v38 }
 0x193   :  { %v8296_v62 = vld [vmem:[#allocation2 + $0x908] sm:$0xf]  ;;  %v8041_v7 = vor.u32 %v10947_v61, %v8040_v59 }
 0x194   :  { %v11011_v63 = vld [vmem:[#allocation2 + $0x924] sm:$0xf0]  ;;  %5505 = vmatpush.bf16.msrb.mxu1 %v8073_v55  ;;  %5531 = vmatpush.bf16.msrb.mxu3 %v8585_v60 }
 0x195   :  { %v8552_v1 = vld [vmem:[#allocation2 + $0xb08] sm:$0xf]  ;;  %v8297_v8 = vor.u32 %v11011_v63, %v8296_v62 }
 0x196   :  { %v11075_v2 = vld [vmem:[#allocation2 + $0xb24] sm:$0xf0]  ;;  %5493 = vmatpush.bf16.msrb.mxu0 %v7785_v4 }
 0x197   :  { %v7752_v9 = vld [vmem:[#allocation2 + $0x4c8] sm:$0xf]  ;;  %v8553_v13 = vor.u32 %v11075_v2, %v8552_v1  ;;  %5519 = vmatpush.bf16.msrb.mxu2 %v8297_v8 }
 0x198   :  { %v10875_v10 = vld [vmem:[#allocation2 + $0x4e4] sm:$0xf0]  ;;  %5506 = vmatpush.bf16.msrb.mxu1 %v8041_v7 }
 0x199   :  { %v8008_v11 = vld [vmem:[#allocation2 + $0x6c8] sm:$0xf]  ;;  %v7753_v21 = vor.u32 %v10875_v10, %v7752_v9  ;;  %5532 = vmatpush.bf16.msrb.mxu3 %v8553_v13 }
 0x19a   :  { %v10939_v15 = vld [vmem:[#allocation2 + $0x6e4] sm:$0xf0] }
 0x19b   :  { %v8264_v16 = vld [vmem:[#allocation2 + $0x8c8] sm:$0xf]  ;;  %v8009_v31 = vor.u32 %v10939_v15, %v8008_v11  ;;  %5494 = vmatpush.bf16.msrb.mxu0 %v7753_v21  ;;  %v5267_v11 = vpop.f32.mrf.mxu2 }
 0x19c   :  { %v11003_v18 = vld [vmem:[#allocation2 + $0x8e4] sm:$0xf0] }
 0x19d   :  { %v8520_v17 = vld [vmem:[#allocation2 + $0xac8] sm:$0xf]  ;;  %v8265_v22 = vor.u32 %v11003_v18, %v8264_v16  ;;  %5507 = vmatpush.bf16.msrb.mxu1 %v8009_v31  ;;  %v5280_v16 = vpop.f32.mrf.mxu3 }
 0x19e   :  { %v11067_v20 = vld [vmem:[#allocation2 + $0xae4] sm:$0xf0] }
 0x19f   :  { %v7720_v25 = vld [vmem:[#allocation2 + $0x488] sm:$0xf]  ;;  %v8521_v29 = vor.u32 %v11067_v20, %v8520_v17  ;;  %5520 = vmatpush.bf16.msrb.mxu2 %v8265_v22 }
 0x1a0   :  { %v10867_v26 = vld [vmem:[#allocation2 + $0x4a4] sm:$0xf0] }
 0x1a1   :  { %v7976_v28 = vld [vmem:[#allocation2 + $0x688] sm:$0xf]  ;;  %v7721_v48 = vor.u32 %v10867_v26, %v7720_v25  ;;  %5533 = vmatpush.bf16.msrb.mxu3 %v8521_v29 }
 0x1a2   :  { %v10931_v32 = vld [vmem:[#allocation2 + $0x6a4] sm:$0xf0] }
 0x1a3   :  { %v8232_v33 = vld [vmem:[#allocation2 + $0x888] sm:$0xf]  ;;  %v7977_v51 = vor.u32 %v10931_v32, %v7976_v28  ;;  %5495 = vmatpush.bf16.msrb.mxu0 %v7721_v48 }
 0x1a4   :  { %v10995_v37 = vld [vmem:[#allocation2 + $0x8a4] sm:$0xf0] }
 0x1a5   :  { %v8488_v45 = vld [vmem:[#allocation2 + $0xa88] sm:$0xf]  ;;  %v8233_v52 = vor.u32 %v10995_v37, %v8232_v33  ;;  %5508 = vmatpush.bf16.msrb.mxu1 %v7977_v51 }
 0x1a6   :  { %v11059_v46 = vld [vmem:[#allocation2 + $0xaa4] sm:$0xf0] }
 0x1a7   :  { %v7688_v53 = vld [vmem:[#allocation2 + $0x448] sm:$0xf]  ;;  %v8489_v56 = vor.u32 %v11059_v46, %v8488_v45  ;;  %5521 = vmatpush.bf16.msrb.mxu2 %v8233_v52 }
 0x1a8   :  { %v10859_v54 = vld [vmem:[#allocation2 + $0x464] sm:$0xf0] }
 0x1a9   :  { %v7944_v55 = vld [vmem:[#allocation2 + $0x648] sm:$0xf]  ;;  %v7689_v62 = vor.u32 %v10859_v54, %v7688_v53  ;;  %5534 = vmatpush.bf16.msrb.mxu3 %v8489_v56 }
 0x1aa   :  { %v10923_v57 = vld [vmem:[#allocation2 + $0x664] sm:$0xf0] }
 0x1ab   :  { %v8200_v58 = vld [vmem:[#allocation2 + $0x848] sm:$0xf]  ;;  %v7945_v1 = vor.u32 %v10923_v57, %v7944_v55  ;;  %5496 = vmatpush.bf16.msrb.mxu0 %v7689_v62 }
 0x1ac   :  { %v10987_v59 = vld [vmem:[#allocation2 + $0x864] sm:$0xf0] }
 0x1ad   :  { %v8456_v60 = vld [vmem:[#allocation2 + $0xa48] sm:$0xf]  ;;  %v8201_v2 = vor.u32 %v10987_v59, %v8200_v58  ;;  %5509 = vmatpush.bf16.msrb.mxu1 %v7945_v1 }
 0x1ae   :  { %v11051_v61 = vld [vmem:[#allocation2 + $0xa64] sm:$0xf0] }
 0x1af   :  { %v7656_v63 = vld [vmem:[#allocation2 + $0x408] sm:$0xf]  ;;  %v8457_v7 = vor.u32 %v11051_v61, %v8456_v60  ;;  %5522 = vmatpush.bf16.msrb.mxu2 %v8201_v2 }
 0x1b0   :  { %v10851_v0 = vld [vmem:[#allocation2 + $0x424] sm:$0xf0] }
 0x1b1   :  { %v7912_v3 = vld [vmem:[#allocation2 + $0x608] sm:$0xf]  ;;  %v7657_v18 = vor.u32 %v10851_v0, %v7656_v63  ;;  %5535 = vmatpush.bf16.msrb.mxu3 %v8457_v7 }
 0x1b2   :  { %v10915_v4 = vld [vmem:[#allocation2 + $0x624] sm:$0xf0] }
 0x1b3   :  { %v8168_v5 = vld [vmem:[#allocation2 + $0x808] sm:$0xf]  ;;  %v7913_v31 = vor.u32 %v10915_v4, %v7912_v3  ;;  %5497 = vmatpush.bf16.msrb.mxu0 %v7657_v18 }
 0x1b4   :  { %v10979_v8 = vld [vmem:[#allocation2 + $0x824] sm:$0xf0] }
 0x1b5   :  { %v8424_v9 = vld [vmem:[#allocation2 + $0xa08] sm:$0xf]  ;;  %v8169_v22 = vor.u32 %v10979_v8, %v8168_v5  ;;  %5510 = vmatpush.bf16.msrb.mxu1 %v7913_v31 }
 0x1b6   :  { %v11043_v10 = vld [vmem:[#allocation2 + $0xa24] sm:$0xf0]  ;;  %5498 = vmatmul.bf16.vlgmr.msrb.gmra.mxu0 %v11778_v35 }
 0x1b7   :  { %v8904_v13 = vld [vmem:[#allocation2 + $0xdc8] sm:$0xf]  ;;  %v8425_v28 = vor.u32 %v11043_v10, %v8424_v9  ;;  %5523 = vmatpush.bf16.msrb.mxu2 %v8169_v22  ;;  %v5291_v10 = vpop.f32.mrf.mxu0  ;;  %v5304_v22 = vpop.f32.mrf.mxu1 }
 0x1b8   :  { %v11163_v14 = vld [vmem:[#allocation2 + $0xde4] sm:$0xf0]  ;;  %5511 = vmatmul.bf16.vlgmr.msrb.gmra.mxu1 %v11782_v42 }
 0x1b9   :  { %v9160_v15 = vld [vmem:[#allocation2 + $0xfc8] sm:$0xf]  ;;  %v8905_v29 = vor.u32 %v11163_v14, %v8904_v13  ;;  %5536 = vmatpush.bf16.msrb.mxu3 %v8425_v28  ;;  %v951_v14 = vperm.slane %v11830_v6, 1 }
 0x1ba   :  { %v11227_v17 = vld [vmem:[#allocation2 + $0xfe4] sm:$0xf0]  ;;  %5524 = vmatmul.bf16.vlgmr.msrb.gmra.mxu2 %v11798_v39 }
 0x1bb   :  { %v9416_v20 = vld [vmem:[#allocation2 + $0x11c8] sm:$0xf]  ;;  %v9161_v30 = vor.u32 %v11227_v17, %v9160_v15  ;;  %5542 = vmatpush.bf16.msra.mxu0 %v8905_v29  ;;  %v11852_v15 = vadd.f32 %v5291_v10, %v11844_v50 }
 0x1bc   :  { %v11291_v21 = vld [vmem:[#allocation2 + $0x11e4] sm:$0xf0]  ;;  %5537 = vmatmul.bf16.vlgmr.msrb.gmra.mxu3 %v11802_v44 }
 0x1bd   :  { %v9672_v25 = vld [vmem:[#allocation2 + $0x13c8] sm:$0xf]  ;;  %v9417_v32 = vor.u32 %v11291_v21, %v9416_v20  ;;  %5555 = vmatpush.bf16.msra.mxu1 %v9161_v30 }
 0x1be   :  { %v11355_v26 = vld [vmem:[#allocation2 + $0x13e4] sm:$0xf0] }
 0x1bf   :  { %v8872_v33 = vld [vmem:[#allocation2 + $0xd88] sm:$0xf]  ;;  %v9673_v41 = vor.u32 %v11355_v26, %v9672_v25  ;;  %5568 = vmatpush.bf16.msra.mxu2 %v9417_v32  ;;  %v5305_v32 = vadd.f32 %v5304_v22, %v951_v14 }
 0x1c0   :  { %v11155_v37 = vld [vmem:[#allocation2 + $0xda4] sm:$0xf0] }
 0x1c1   :  { %v9128_v38 = vld [vmem:[#allocation2 + $0xf88] sm:$0xf]  ;;  %v8873_v51 = vor.u32 %v11155_v37, %v8872_v33  ;;  %5581 = vmatpush.bf16.msra.mxu3 %v9673_v41 }
 0x1c2   :  { %v11219_v45 = vld [vmem:[#allocation2 + $0xfa4] sm:$0xf0] }
 0x1c3   :  { %v9384_v46 = vld [vmem:[#allocation2 + $0x1188] sm:$0xf]  ;;  %v9129_v52 = vor.u32 %v11219_v45, %v9128_v38  ;;  %5543 = vmatpush.bf16.msra.mxu0 %v8873_v51  ;;  %v5317_v51 = vpop.f32.mrf.mxu2 }
 0x1c4   :  { %v11283_v47 = vld [vmem:[#allocation2 + $0x11a4] sm:$0xf0] }
 0x1c5   :  { %v9640_v48 = vld [vmem:[#allocation2 + $0x1388] sm:$0xf]  ;;  %v9385_v53 = vor.u32 %v11283_v47, %v9384_v46  ;;  %5556 = vmatpush.bf16.msra.mxu1 %v9129_v52  ;;  %v5330_v52 = vpop.f32.mrf.mxu3 }
 0x1c6   :  { %v11347_v49 = vld [vmem:[#allocation2 + $0x13a4] sm:$0xf0] }
 0x1c7   :  { %v8840_v54 = vld [vmem:[#allocation2 + $0xd48] sm:$0xf]  ;;  %v9641_v57 = vor.u32 %v11347_v49, %v9640_v48  ;;  %5569 = vmatpush.bf16.msra.mxu2 %v9385_v53 }
 0x1c8   :  { %v11147_v55 = vld [vmem:[#allocation2 + $0xd64] sm:$0xf0] }
 0x1c9   :  { %v9096_v56 = vld [vmem:[#allocation2 + $0xf48] sm:$0xf]  ;;  %v8841_v63 = vor.u32 %v11147_v55, %v8840_v54  ;;  %5582 = vmatpush.bf16.msra.mxu3 %v9641_v57  ;;  %v5318_v55 = vadd.f32 %v5317_v51, %v5305_v32 }
 0x1ca   :  { %v11211_v58 = vld [vmem:[#allocation2 + $0xf64] sm:$0xf0] }
 0x1cb   :  { %v9352_v59 = vld [vmem:[#allocation2 + $0x1148] sm:$0xf]  ;;  %v9097_v0 = vor.u32 %v11211_v58, %v9096_v56  ;;  %5544 = vmatpush.bf16.msra.mxu0 %v8841_v63  ;;  %v5293_v56 = vpop.f32.mrf.mxu0  ;;  %v11854_v63 = vadd.f32 %v5330_v52, %v5318_v55  ;;  %v5319_v22 = vpop.f32.mrf.mxu2 }
 0x1cc   :  { %v11275_v60 = vld [vmem:[#allocation2 + $0x1164] sm:$0xf0]  ;;  %v7274_v22 = vld [vmem:[#allocation2 + $0x128] sm:$0xf0] }
 0x1cd   :  { %v9608_v61 = vld [vmem:[#allocation2 + $0x1348] sm:$0xf]  ;;  %v9353_v1 = vor.u32 %v11275_v60, %v9352_v59  ;;  %5557 = vmatpush.bf16.msra.mxu1 %v9097_v0  ;;  %v5306_v0 = vpop.f32.mrf.mxu1 }
 0x1ce   :  { %v11339_v62 = vld [vmem:[#allocation2 + $0x1364] sm:$0xf0] }
 0x1cf   :  { %v8808_v2 = vld [vmem:[#allocation2 + $0xd08] sm:$0xf]  ;;  %v9609_v5 = vor.u32 %v11339_v62, %v9608_v61  ;;  %5570 = vmatpush.bf16.msra.mxu2 %v9353_v1 }
 0x1d0   :  { %v11139_v3 = vld [vmem:[#allocation2 + $0xd24] sm:$0xf0] }
 0x1d1   :  { %v9064_v4 = vld [vmem:[#allocation2 + $0xf08] sm:$0xf]  ;;  %v8809_v16 = vor.u32 %v11139_v3, %v8808_v2  ;;  %5583 = vmatpush.bf16.msra.mxu3 %v9609_v5 }
 0x1d2   :  { %v11203_v7 = vld [vmem:[#allocation2 + $0xf24] sm:$0xf0] }
 0x1d3   :  { %v9320_v8 = vld [vmem:[#allocation2 + $0x1108] sm:$0xf]  ;;  %v9065_v18 = vor.u32 %v11203_v7, %v9064_v4  ;;  %5545 = vmatpush.bf16.msra.mxu0 %v8809_v16 }
 0x1d4   :  { %v11267_v9 = vld [vmem:[#allocation2 + $0x1124] sm:$0xf0] }
 0x1d5   :  { %v9576_v11 = vld [vmem:[#allocation2 + $0x1308] sm:$0xf]  ;;  %v9321_v17 = vor.u32 %v11267_v9, %v9320_v8  ;;  %5558 = vmatpush.bf16.msra.mxu1 %v9065_v18 }
 0x1d6   :  { %v11331_v13 = vld [vmem:[#allocation2 + $0x1324] sm:$0xf0] }
 0x1d7   :  { %v8776_v20 = vld [vmem:[#allocation2 + $0xcc8] sm:$0xf]  ;;  %v9577_v25 = vor.u32 %v11331_v13, %v9576_v11  ;;  %5571 = vmatpush.bf16.msra.mxu2 %v9321_v17 }
 0x1d8   :  { %v11131_v21 = vld [vmem:[#allocation2 + $0xce4] sm:$0xf0] }
 0x1d9   :  { %v9032_v31 = vld [vmem:[#allocation2 + $0xec8] sm:$0xf]  ;;  %v8777_v50 = vor.u32 %v11131_v21, %v8776_v20  ;;  %5584 = vmatpush.bf16.msra.mxu3 %v9577_v25  ;;  %v5332_v25 = vpop.f32.mrf.mxu3 }
 0x1da   :  { %v11195_v26 = vld [vmem:[#allocation2 + $0xee4] sm:$0xf0] }
 0x1db   :  { %v9288_v28 = vld [vmem:[#allocation2 + $0x10c8] sm:$0xf]  ;;  %v9033_v33 = vor.u32 %v11195_v26, %v9032_v31  ;;  %5546 = vmatpush.bf16.msra.mxu0 %v8777_v50 }
 0x1dc   :  { %v11259_v29 = vld [vmem:[#allocation2 + $0x10e4] sm:$0xf0] }
 0x1dd   :  { %v9544_v30 = vld [vmem:[#allocation2 + $0x12c8] sm:$0xf]  ;;  %v9289_v37 = vor.u32 %v11259_v29, %v9288_v28  ;;  %5559 = vmatpush.bf16.msra.mxu1 %v9033_v33 }
 0x1de   :  { %v11323_v6 = vld [vmem:[#allocation2 + $0x12e4] sm:$0xf0] }
 0x1df   :  { %v8744_v38 = vld [vmem:[#allocation2 + $0xc88] sm:$0xf]  ;;  %v9545_v46 = vor.u32 %v11323_v6, %v9544_v30  ;;  %5572 = vmatpush.bf16.msra.mxu2 %v9289_v37 }
 0x1e0   :  { %v11123_v41 = vld [vmem:[#allocation2 + $0xca4] sm:$0xf0] }
 0x1e1   :  { %v9000_v45 = vld [vmem:[#allocation2 + $0xe88] sm:$0xf]  ;;  %v8745_v57 = vor.u32 %v11123_v41, %v8744_v38  ;;  %5585 = vmatpush.bf16.msra.mxu3 %v9545_v46  ;;  %v10775_v38 = vld [vmem:[#allocation2 + $0x1cc] sm:$0xf] }
 0x1e2   :  { %v11187_v47 = vld [vmem:[#allocation2 + $0xea4] sm:$0xf0]  ;;  %v7370_v41 = vld [vmem:[#allocation2 + $0x1e8] sm:$0xf0] }
 0x1e3   :  { %v9256_v48 = vld [vmem:[#allocation2 + $0x1088] sm:$0xf]  ;;  %v9001_v58 = vor.u32 %v11187_v47, %v9000_v45  ;;  %5547 = vmatpush.bf16.msra.mxu0 %v8745_v57  ;;  %v10767_v57 = vld [vmem:[#allocation2 + $0x18c] sm:$0xf] }
 0x1e4   :  { %v11251_v49 = vld [vmem:[#allocation2 + $0x10a4] sm:$0xf0] }
 0x1e5   :  { %v9512_v53 = vld [vmem:[#allocation2 + $0x1288] sm:$0xf]  ;;  %v9257_v59 = vor.u32 %v11251_v49, %v9256_v48  ;;  %5560 = vmatpush.bf16.msra.mxu1 %v9001_v58  ;;  %v7338_v58 = vld [vmem:[#allocation2 + $0x1a8] sm:$0xf0] }
 0x1e6   :  { %v11315_v54 = vld [vmem:[#allocation2 + $0x12a4] sm:$0xf0] }
 0x1e7   :  { %v8712_v60 = vld [vmem:[#allocation2 + $0xc48] sm:$0xf]  ;;  %v9513_v1 = vor.u32 %v11315_v54, %v9512_v53  ;;  %5573 = vmatpush.bf16.msra.mxu2 %v9257_v59  ;;  %v7373_v53 = vor.u32 %v10775_v38, %v7370_v41 }
 0x1e8   :  { %v11115_v61 = vld [vmem:[#allocation2 + $0xc64] sm:$0xf0] }
 0x1e9   :  { %v8968_v62 = vld [vmem:[#allocation2 + $0xe48] sm:$0xf]  ;;  %v8713_v8 = vor.u32 %v11115_v61, %v8712_v60  ;;  %5586 = vmatpush.bf16.msra.mxu3 %v9513_v1 }
 0x1ea   :  { %v11179_v2 = vld [vmem:[#allocation2 + $0xe64] sm:$0xf0] }
 0x1eb   :  { %v9224_v3 = vld [vmem:[#allocation2 + $0x1048] sm:$0xf]  ;;  %v8969_v11 = vor.u32 %v11179_v2, %v8968_v62  ;;  %5548 = vmatpush.bf16.msra.mxu0 %v8713_v8  ;;  %v7341_v2 = vor.u32 %v10767_v57, %v7338_v58  ;;  %v7306_v8 = vld [vmem:[#allocation2 + $0x168] sm:$0xf0] }
 0x1ec   :  { %v11243_v4 = vld [vmem:[#allocation2 + $0x1064] sm:$0xf0] }
 0x1ed   :  { %v9480_v5 = vld [vmem:[#allocation2 + $0x1248] sm:$0xf]  ;;  %v9225_v13 = vor.u32 %v11243_v4, %v9224_v3  ;;  %5561 = vmatpush.bf16.msra.mxu1 %v8969_v11 }
 0x1ee   :  { %v11307_v7 = vld [vmem:[#allocation2 + $0x1264] sm:$0xf0] }
 0x1ef   :  { %v8680_v9 = vld [vmem:[#allocation2 + $0xc08] sm:$0xf]  ;;  %v9481_v17 = vor.u32 %v11307_v7, %v9480_v5  ;;  %5574 = vmatpush.bf16.msra.mxu2 %v9225_v13  ;;  %v10759_v7 = vld [vmem:[#allocation2 + $0x14c] sm:$0xf] }
 0x1f0   :  { %v11107_v10 = vld [vmem:[#allocation2 + $0xc24] sm:$0xf0] }
 0x1f1   :  { %v8936_v14 = vld [vmem:[#allocation2 + $0xe08] sm:$0xf]  ;;  %v8681_v30 = vor.u32 %v11107_v10, %v8680_v9  ;;  %5587 = vmatpush.bf16.msra.mxu3 %v9481_v17 }
 0x1f2   :  { %v11171_v16 = vld [vmem:[#allocation2 + $0xe24] sm:$0xf0] }
 0x1f3   :  { %v9192_v18 = vld [vmem:[#allocation2 + $0x1008] sm:$0xf]  ;;  %v8937_v33 = vor.u32 %v11171_v16, %v8936_v14  ;;  %5549 = vmatpush.bf16.msra.mxu0 %v8681_v30 }
 0x1f4   :  { %v11235_v20 = vld [vmem:[#allocation2 + $0x1024] sm:$0xf0] }
 0x1f5   :  { %v9448_v21 = vld [vmem:[#allocation2 + $0x1208] sm:$0xf]  ;;  %v9193_v37 = vor.u32 %v11235_v20, %v9192_v18  ;;  %5562 = vmatpush.bf16.msra.mxu1 %v8937_v33  ;;  %v7309_v18 = vor.u32 %v10759_v7, %v7306_v8  ;;  %v5356_v33 = vpop.f32.mrf.mxu1 }
 0x1f6   :  { %v11299_v31 = vld [vmem:[#allocation2 + $0x1224] sm:$0xf0]  ;;  %5550 = vmatmul.bf16.vlgmr.msra.gmra.mxu0 %v11796_v34 }
 0x1f7   :  { %v9928_v26 = vld [vmem:[#allocation2 + $0x15c8] sm:$0xf]  ;;  %v9449_v45 = vor.u32 %v11299_v31, %v9448_v21  ;;  %5575 = vmatpush.bf16.msra.mxu2 %v9193_v37  ;;  %v10751_v31 = vld [vmem:[#allocation2 + $0x10c] sm:$0xf] }
 0x1f8   :  { %v11419_v28 = vld [vmem:[#allocation2 + $0x15e4] sm:$0xf0]  ;;  %5563 = vmatmul.bf16.vlgmr.msra.gmra.mxu1 %v11800_v40  ;;  %v7277_v37 = vor.u32 %v10751_v31, %v7274_v22 }
 0x1f9   :  { %v10184_v29 = vld [vmem:[#allocation2 + $0x17c8] sm:$0xf]  ;;  %v9929_v46 = vor.u32 %v11419_v28, %v9928_v26  ;;  %5588 = vmatpush.bf16.msra.mxu3 %v9449_v45  ;;  %v5343_v26 = vpop.f32.mrf.mxu0 }
 0x1fa   :  { %v11483_v6 = vld [vmem:[#allocation2 + $0x17e4] sm:$0xf0]  ;;  %5576 = vmatmul.bf16.vlgmr.msra.gmra.mxu2 %v11808_v19 }
 0x1fb   :  { %v10440_v32 = vld [vmem:[#allocation2 + $0x19c8] sm:$0xf]  ;;  %v10185_v47 = vor.u32 %v11483_v6, %v10184_v29  ;;  %5594 = vmatpush.bf16.msrb.mxu0 %v9929_v46  ;;  %v10743_v46 = vld [vmem:[#allocation2 + $0xcc] sm:$0xf] }
 0x1fc   :  { %v11547_v50 = vld [vmem:[#allocation2 + $0x19e4] sm:$0xf0]  ;;  %5589 = vmatmul.bf16.vlgmr.msra.gmra.mxu3 %v11812_v24 }
 0x1fd   :  { %v10441_v48 = vor.u32 %v11547_v50, %v10440_v32  ;;  %v9896_v49 = vld [vmem:[#allocation2 + $0x1588] sm:$0xf]  ;;  %5607 = vmatpush.bf16.msrb.mxu1 %v10185_v47  ;;  %5633 = vmatpush.bf16.msrb.mxu3 %v7373_v53  ;;  %v5344_v50 = vadd.f32 %v5343_v26, %v11854_v63  ;;  %v7242_v47 = vld [vmem:[#allocation2 + $0xe8] sm:$0xf0] }
 0x1fe   :  { %v11411_v51 = vld [vmem:[#allocation2 + $0x15a4] sm:$0xf0]  ;;  %v7245_v63 = vor.u32 %v10743_v46, %v7242_v47  ;;  %v7882_v47 = vld [vmem:[#allocation2 + $0x5e8] sm:$0xf0] }
 0x1ff   :  { %v10152_v52 = vld [vmem:[#allocation2 + $0x1788] sm:$0xf]  ;;  %v9897_v59 = vor.u32 %v11411_v51, %v9896_v49  ;;  %5620 = vmatpush.bf16.msrb.mxu2 %v10441_v48  ;;  %v5357_v48 = vadd.f32 %v5356_v33, %v5344_v50  ;;  %v10719_v50 = vld [vmem:[#allocation2 + $0xc] sm:$0xf] }
 0x200   :  { %v11475_v54 = vld [vmem:[#allocation2 + $0x17a4] sm:$0xf0]  ;;  %v7146_v33 = vld [vmem:[#allocation2 + $0x28] sm:$0xf0] }
 0x201   :  { %v10408_v55 = vld [vmem:[#allocation2 + $0x1988] sm:$0xf]  ;;  %v10153_v60 = vor.u32 %v11475_v54, %v10152_v52  ;;  %5595 = vmatpush.bf16.msrb.mxu0 %v9897_v59  ;;  %5634 = vmatpush.bf16.msrb.mxu3 %v7341_v2 }
 0x202   :  { %v11539_v56 = vld [vmem:[#allocation2 + $0x19a4] sm:$0xf0] }
 0x203   :  { %v10409_v61 = vor.u32 %v11539_v56, %v10408_v55  ;;  %v9864_v62 = vld [vmem:[#allocation2 + $0x1548] sm:$0xf]  ;;  %5608 = vmatpush.bf16.msrb.mxu1 %v10153_v60  ;;  %v5369_v56 = vpop.f32.mrf.mxu2 }
 0x204   :  { %v11403_v0 = vld [vmem:[#allocation2 + $0x1564] sm:$0xf0]  ;;  %v5370_v60 = vadd.f32 %v5369_v56, %v5357_v48  ;;  %v10967_v48 = vld [vmem:[#allocation2 + $0x7cc] sm:$0xf] }
 0x205   :  { %v10120_v1 = vld [vmem:[#allocation2 + $0x1748] sm:$0xf]  ;;  %v9865_v9 = vor.u32 %v11403_v0, %v9864_v62  ;;  %5621 = vmatpush.bf16.msrb.mxu2 %v10409_v61  ;;  %5635 = vmatpush.bf16.msrb.mxu3 %v7309_v18  ;;  %v5382_v61 = vpop.f32.mrf.mxu3  ;;  %v10735_v62 = vld [vmem:[#allocation2 + $0x8c] sm:$0xf] }
 0x206   :  { %v11467_v3 = vld [vmem:[#allocation2 + $0x1764] sm:$0xf0]  ;;  %v7210_v0 = vld [vmem:[#allocation2 + $0xa8] sm:$0xf0]  ;;  %v11861_v2 = vadd.f32 %v5382_v61, %v5370_v60 }
 0x207   :  { %v10376_v4 = vld [vmem:[#allocation2 + $0x1948] sm:$0xf]  ;;  %v10121_v10 = vor.u32 %v11467_v3, %v10120_v1  ;;  %5596 = vmatpush.bf16.msrb.mxu0 %v9865_v9  ;;  %v5345_v3 = vpop.f32.mrf.mxu0  ;;  %v10727_v18 = vld [vmem:[#allocation2 + $0x4c] sm:$0xf] }
 0x208   :  { %v11531_v5 = vld [vmem:[#allocation2 + $0x1964] sm:$0xf0]  ;;  %v10895_v60 = vld [vmem:[#allocation2 + $0x58c] sm:$0xf] }
 0x209   :  { %v10377_v11 = vor.u32 %v11531_v5, %v10376_v4  ;;  %v9832_v13 = vld [vmem:[#allocation2 + $0x1508] sm:$0xf]  ;;  %5609 = vmatpush.bf16.msrb.mxu1 %v10121_v10  ;;  %5636 = vmatpush.bf16.msrb.mxu3 %v7277_v37  ;;  %v5358_v10 = vpop.f32.mrf.mxu1  ;;  %v11023_v3 = vld [vmem:[#allocation2 + $0x98c] sm:$0xf] }
 0x20a   :  { %v11395_v14 = vld [vmem:[#allocation2 + $0x1524] sm:$0xf0]  ;;  %v7562_v10 = vld [vmem:[#allocation2 + $0x368] sm:$0xf0] }
 0x20b   :  { %v10088_v16 = vld [vmem:[#allocation2 + $0x1708] sm:$0xf]  ;;  %v9833_v25 = vor.u32 %v11395_v14, %v9832_v13  ;;  %5622 = vmatpush.bf16.msrb.mxu2 %v10377_v11  ;;  %v7213_v11 = vor.u32 %v10735_v62, %v7210_v0  ;;  %v7850_v62 = vld [vmem:[#allocation2 + $0x5a8] sm:$0xf0] }
 0x20c   :  { %v11459_v17 = vld [vmem:[#allocation2 + $0x1724] sm:$0xf0]  ;;  %v10959_v0 = vld [vmem:[#allocation2 + $0x78c] sm:$0xf] }
 0x20d   :  { %v10344_v20 = vld [vmem:[#allocation2 + $0x1908] sm:$0xf]  ;;  %v10089_v28 = vor.u32 %v11459_v17, %v10088_v16  ;;  %5597 = vmatpush.bf16.msrb.mxu0 %v9833_v25  ;;  %5637 = vmatpush.bf16.msrb.mxu3 %v7245_v63  ;;  %v7178_v17 = vld [vmem:[#allocation2 + $0x68] sm:$0xf0]  ;;  %v5384_v37 = vpop.f32.mrf.mxu3 }
 0x20e   :  { %v11523_v21 = vld [vmem:[#allocation2 + $0x1924] sm:$0xf0]  ;;  %v8298_v37 = vld [vmem:[#allocation2 + $0x928] sm:$0xf0] }
 0x20f   :  { %v10345_v29 = vor.u32 %v11523_v21, %v10344_v20  ;;  %v9800_v30 = vld [vmem:[#allocation2 + $0x14c8] sm:$0xf]  ;;  %5610 = vmatpush.bf16.msrb.mxu1 %v10089_v28 }
 0x210   :  { %v11387_v6 = vld [vmem:[#allocation2 + $0x14e4] sm:$0xf0] }
 0x211   :  { %v10056_v32 = vld [vmem:[#allocation2 + $0x16c8] sm:$0xf]  ;;  %v9801_v49 = vor.u32 %v11387_v6, %v9800_v30  ;;  %5623 = vmatpush.bf16.msrb.mxu2 %v10345_v29  ;;  %v5371_v30 = vpop.f32.mrf.mxu2  ;;  %5638 = vmatpush.bf16.msrb.mxu3 %v7213_v11  ;;  %v7181_v6 = vor.u32 %v10727_v18, %v7178_v17  ;;  %v10887_v11 = vld [vmem:[#allocation2 + $0x54c] sm:$0xf] }
 0x212   :  { %v11451_v38 = vld [vmem:[#allocation2 + $0x16e4] sm:$0xf0]  ;;  %v8074_v18 = vld [vmem:[#allocation2 + $0x768] sm:$0xf0] }
 0x213   :  { %v10312_v41 = vld [vmem:[#allocation2 + $0x18c8] sm:$0xf]  ;;  %v10057_v51 = vor.u32 %v11451_v38, %v10056_v32  ;;  %5598 = vmatpush.bf16.msrb.mxu0 %v9801_v49  ;;  %v10839_v38 = vld [vmem:[#allocation2 + $0x3cc] sm:$0xf] }
 0x214   :  { %v11515_v45 = vld [vmem:[#allocation2 + $0x18e4] sm:$0xf0]  ;;  %v8138_v49 = vld [vmem:[#allocation2 + $0x7e8] sm:$0xf0] }
 0x215   :  { %v10313_v52 = vor.u32 %v11515_v45, %v10312_v41  ;;  %v9768_v53 = vld [vmem:[#allocation2 + $0x1488] sm:$0xf]  ;;  %5611 = vmatpush.bf16.msrb.mxu1 %v10057_v51  ;;  %v7626_v41 = vld [vmem:[#allocation2 + $0x3e8] sm:$0xf0]  ;;  %5639 = vmatpush.bf16.msrb.mxu3 %v7181_v6 }
 0x216   :  { %v11379_v54 = vld [vmem:[#allocation2 + $0x14a4] sm:$0xf0]  ;;  %v10903_v45 = vld [vmem:[#allocation2 + $0x5cc] sm:$0xf]  ;;  %v7629_v56 = vor.u32 %v10839_v38, %v7626_v41 }
 0x217   :  { %v10024_v55 = vld [vmem:[#allocation2 + $0x1688] sm:$0xf]  ;;  %v9769_v1 = vor.u32 %v11379_v54, %v9768_v53  ;;  %5624 = vmatpush.bf16.msrb.mxu2 %v10313_v52  ;;  %v11031_v53 = vld [vmem:[#allocation2 + $0x9cc] sm:$0xf]  ;;  %v7885_v63 = vor.u32 %v10903_v45, %v7882_v47  ;;  %v5408_v45 = vpop.f32.mrf.mxu1 }
 0x218   :  { %v11443_v57 = vld [vmem:[#allocation2 + $0x16a4] sm:$0xf0]  ;;  %v8394_v54 = vld [vmem:[#allocation2 + $0x9e8] sm:$0xf0] }
 0x219   :  { %v10280_v58 = vld [vmem:[#allocation2 + $0x1888] sm:$0xf]  ;;  %v10025_v4 = vor.u32 %v11443_v57, %v10024_v55  ;;  %5599 = vmatpush.bf16.msrb.mxu0 %v9769_v1  ;;  %v7149_v55 = vor.u32 %v10719_v50, %v7146_v33  ;;  %v8141_v57 = vor.u32 %v10967_v48, %v8138_v49  ;;  %v8397_v61 = vor.u32 %v11031_v53, %v8394_v54  ;;  %v8106_v1 = vld [vmem:[#allocation2 + $0x7a8] sm:$0xf0]  ;;  %v5395_v50 = vpop.f32.mrf.mxu0 }
 0x21a   :  { %v11507_v59 = vld [vmem:[#allocation2 + $0x18a4] sm:$0xf0]  ;;  %v11015_v17 = vld [vmem:[#allocation2 + $0x94c] sm:$0xf]  ;;  %v5396_v38 = vadd.f32 %v5395_v50, %v11861_v2 }
 0x21b   :  { %v10281_v5 = vor.u32 %v11507_v59, %v10280_v58  ;;  %v9736_v7 = vld [vmem:[#allocation2 + $0x1448] sm:$0xf]  ;;  %5612 = vmatpush.bf16.msrb.mxu1 %v10025_v4  ;;  %v10831_v58 = vld [vmem:[#allocation2 + $0x38c] sm:$0xf]  ;;  %5640 = vmatpush.bf16.msrb.mxu3 %v7149_v55 }
 0x21c   :  { %v11371_v8 = vld [vmem:[#allocation2 + $0x1464] sm:$0xf0]  ;;  %v7594_v59 = vld [vmem:[#allocation2 + $0x3a8] sm:$0xf0]  ;;  %v5409_v53 = vadd.f32 %v5408_v45, %v5396_v38 }
 0x21d   :  { %v9992_v9 = vld [vmem:[#allocation2 + $0x1648] sm:$0xf]  ;;  %v9737_v20 = vor.u32 %v11371_v8, %v9736_v7  ;;  %5625 = vmatpush.bf16.msrb.mxu2 %v10281_v5  ;;  %v8362_v4 = vld [vmem:[#allocation2 + $0x9a8] sm:$0xf0]  ;;  %v7597_v5 = vor.u32 %v10831_v58, %v7594_v59  ;;  %v7853_v7 = vor.u32 %v10895_v60, %v7850_v62  ;;  %v8109_v8 = vor.u32 %v10959_v0, %v8106_v1  ;;  %v5421_v1 = vpop.f32.mrf.mxu2 }
 0x21e   :  { %v11435_v13 = vld [vmem:[#allocation2 + $0x1664] sm:$0xf0]  ;;  %5641 = vmatmul.bf16.vlgmr.msrb.gmra.mxu3 %v11780_v36  ;;  %v7786_v30 = vld [vmem:[#allocation2 + $0x528] sm:$0xf0] }
 0x21f   :  { %v10248_v14 = vld [vmem:[#allocation2 + $0x1848] sm:$0xf]  ;;  %v9993_v22 = vor.u32 %v11435_v13, %v9992_v9  ;;  %5600 = vmatpush.bf16.msrb.mxu0 %v9737_v20  ;;  %v10823_v9 = vld [vmem:[#allocation2 + $0x34c] sm:$0xf]  ;;  %5685 = vmatpush.bf16.msra.mxu3 %v8397_v61  ;;  %v8365_v13 = vor.u32 %v11023_v3, %v8362_v4 }
 0x220   :  { %v11499_v16 = vld [vmem:[#allocation2 + $0x1864] sm:$0xf0]  ;;  %v8330_v20 = vld [vmem:[#allocation2 + $0x968] sm:$0xf0] }
 0x221   :  { %v9704_v21 = vld [vmem:[#allocation2 + $0x1408] sm:$0xf]  ;;  %v10249_v25 = vor.u32 %v11499_v16, %v10248_v14  ;;  %5613 = vmatpush.bf16.msrb.mxu1 %v9993_v22  ;;  %v7818_v14 = vld [vmem:[#allocation2 + $0x568] sm:$0xf0] }
 0x222   :  { %v11363_v31 = vld [vmem:[#allocation2 + $0x1424] sm:$0xf0]  ;;  %v10951_v16 = vld [vmem:[#allocation2 + $0x74c] sm:$0xf] }
 0x223   :  { %v9960_v26 = vld [vmem:[#allocation2 + $0x1608] sm:$0xf]  ;;  %v9705_v46 = vor.u32 %v11363_v31, %v9704_v21  ;;  %5626 = vmatpush.bf16.msrb.mxu2 %v10249_v25  ;;  %v7565_v21 = vor.u32 %v10823_v9, %v7562_v10  ;;  %v7821_v31 = vor.u32 %v10887_v11, %v7818_v14  ;;  %v8077_v22 = vor.u32 %v10951_v16, %v8074_v18  ;;  %v10815_v25 = vld [vmem:[#allocation2 + $0x30c] sm:$0xf]  ;;  %v5397_v11 = vpop.f32.mrf.mxu0  ;;  %v5410_v14 = vpop.f32.mrf.mxu1 }
 0x224   :  { %v11427_v28 = vld [vmem:[#allocation2 + $0x1624] sm:$0xf0]  ;;  %5686 = vmatpush.bf16.msra.mxu3 %v8365_v13  ;;  %v10943_v6 = vld [vmem:[#allocation2 + $0x70c] sm:$0xf] }
 0x225   :  { %v10216_v29 = vld [vmem:[#allocation2 + $0x1808] sm:$0xf]  ;;  %v9961_v51 = vor.u32 %v11427_v28, %v9960_v26  ;;  %5601 = vmatpush.bf16.msrb.mxu0 %v9705_v46  ;;  %v7530_v26 = vld [vmem:[#allocation2 + $0x328] sm:$0xf0] }
 0x226   :  { %v11491_v32 = vld [vmem:[#allocation2 + $0x1824] sm:$0xf0]  ;;  %v10879_v28 = vld [vmem:[#allocation2 + $0x50c] sm:$0xf]  ;;  %v7533_v41 = vor.u32 %v10815_v25, %v7530_v26 }
 0x227   :  { %v10217_v52 = vor.u32 %v11491_v32, %v10216_v29  ;;  %5614 = vmatpush.bf16.msrb.mxu1 %v9961_v51  ;;  %v8333_v29 = vor.u32 %v11015_v17, %v8330_v20  ;;  %v8042_v32 = vld [vmem:[#allocation2 + $0x728] sm:$0xf0]  ;;  %v7789_v46 = vor.u32 %v10879_v28, %v7786_v30 }
 0x228   :  { %5602 = vmatmul.bf16.vlgmr.msrb.gmra.mxu0 %v11810_v23  ;;  %v11007_v33 = vld [vmem:[#allocation2 + $0x90c] sm:$0xf]  ;;  %v8045_v47 = vor.u32 %v10943_v6, %v8042_v32 }
 0x229   :  { %5627 = vmatpush.bf16.msrb.mxu2 %v10217_v52  ;;  %5646 = vmatpush.bf16.msra.mxu0 %v7629_v56  ;;  %v10807_v48 = vld [vmem:[#allocation2 + $0x2cc] sm:$0xf]  ;;  %v8301_v52 = vor.u32 %v11007_v33, %v8298_v37 }
 0x22a   :  { %5615 = vmatmul.bf16.vlgmr.msrb.gmra.mxu1 %v11814_v27  ;;  %v7498_v49 = vld [vmem:[#allocation2 + $0x2e8] sm:$0xf0]  ;;  %5687 = vmatpush.bf16.msra.mxu3 %v8333_v29 }
 0x22b   :  { %5659 = vmatpush.bf16.msra.mxu1 %v7885_v63  ;;  %v10871_v51 = vld [vmem:[#allocation2 + $0x4cc] sm:$0xf]  ;;  %v7501_v58 = vor.u32 %v10807_v48, %v7498_v49 }
 0x22c   :  { %5628 = vmatmul.bf16.vlgmr.msrb.gmra.mxu2 %v11820_v12  ;;  %v7754_v54 = vld [vmem:[#allocation2 + $0x4e8] sm:$0xf0] }
 0x22d   :  { %5672 = vmatpush.bf16.msra.mxu2 %v8141_v57  ;;  %5647 = vmatpush.bf16.msra.mxu0 %v7597_v5  ;;  %v10935_v55 = vld [vmem:[#allocation2 + $0x6cc] sm:$0xf]  ;;  %v7757_v2 = vor.u32 %v10871_v51, %v7754_v54  ;;  %v5423_v51 = vpop.f32.mrf.mxu2 }
 0x22e   :  { %v8010_v56 = vld [vmem:[#allocation2 + $0x6e8] sm:$0xf0]  ;;  %5688 = vmatpush.bf16.msra.mxu3 %v8301_v52 }
 0x22f   :  { %5660 = vmatpush.bf16.msra.mxu1 %v7853_v7  ;;  %v10999_v63 = vld [vmem:[#allocation2 + $0x8cc] sm:$0xf]  ;;  %v8013_v59 = vor.u32 %v10935_v55, %v8010_v56  ;;  %v5422_v7 = vadd.f32 %v5421_v1, %v5409_v53 }
 0x230   :  { %v8266_v57 = vld [vmem:[#allocation2 + $0x8e8] sm:$0xf0] }
 0x231   :  { %5673 = vmatpush.bf16.msra.mxu2 %v8109_v8  ;;  %5648 = vmatpush.bf16.msra.mxu0 %v7565_v21  ;;  %v10799_v60 = vld [vmem:[#allocation2 + $0x28c] sm:$0xf]  ;;  %v8269_v0 = vor.u32 %v10999_v63, %v8266_v57  ;;  %v5434_v8 = vpop.f32.mrf.mxu3 }
 0x232   :  { %v7466_v61 = vld [vmem:[#allocation2 + $0x2a8] sm:$0xf0]  ;;  %v11868_v16 = vadd.f32 %v5434_v8, %v5422_v7 }
 0x233   :  { %5661 = vmatpush.bf16.msra.mxu1 %v7821_v31  ;;  %v10863_v62 = vld [vmem:[#allocation2 + $0x48c] sm:$0xf]  ;;  %v7469_v13 = vor.u32 %v10799_v60, %v7466_v61  ;;  %5689 = vmatpush.bf16.msra.mxu3 %v8269_v0 }
 0x234   :  { %v7722_v3 = vld [vmem:[#allocation2 + $0x4a8] sm:$0xf0] }
 0x235   :  { %5674 = vmatpush.bf16.msra.mxu2 %v8077_v22  ;;  %5649 = vmatpush.bf16.msra.mxu0 %v7533_v41  ;;  %v10927_v4 = vld [vmem:[#allocation2 + $0x68c] sm:$0xf]  ;;  %v7725_v18 = vor.u32 %v10863_v62, %v7722_v3 }
 0x236   :  { %v7978_v5 = vld [vmem:[#allocation2 + $0x6a8] sm:$0xf0] }
 0x237   :  { %5662 = vmatpush.bf16.msra.mxu1 %v7789_v46  ;;  %v10991_v9 = vld [vmem:[#allocation2 + $0x88c] sm:$0xf]  ;;  %v7981_v17 = vor.u32 %v10927_v4, %v7978_v5 }
 0x238   :  { %v8234_v10 = vld [vmem:[#allocation2 + $0x8a8] sm:$0xf0] }
 0x239   :  { %5675 = vmatpush.bf16.msra.mxu2 %v8045_v47  ;;  %5650 = vmatpush.bf16.msra.mxu0 %v7501_v58  ;;  %v10791_v20 = vld [vmem:[#allocation2 + $0x24c] sm:$0xf]  ;;  %v8237_v22 = vor.u32 %v10991_v9, %v8234_v10  ;;  %v5436_v55 = vpop.f32.mrf.mxu3 }
 0x23a   :  { %v7434_v21 = vld [vmem:[#allocation2 + $0x268] sm:$0xf0]  ;;  %v5460_v55 = vpop.f32.mrf.mxu1 }
 0x23b   :  { %5663 = vmatpush.bf16.msra.mxu1 %v7757_v2  ;;  %v10855_v31 = vld [vmem:[#allocation2 + $0x44c] sm:$0xf]  ;;  %v7437_v6 = vor.u32 %v10791_v20, %v7434_v21  ;;  %5690 = vmatpush.bf16.msra.mxu3 %v8237_v22 }
 0x23c   :  { %v7690_v25 = vld [vmem:[#allocation2 + $0x468] sm:$0xf0] }
 0x23d   :  { %5676 = vmatpush.bf16.msra.mxu2 %v8013_v59  ;;  %v10919_v26 = vld [vmem:[#allocation2 + $0x64c] sm:$0xf]  ;;  %5651 = vmatpush.bf16.msra.mxu0 %v7469_v13  ;;  %v7693_v33 = vor.u32 %v10855_v31, %v7690_v25 }
 0x23e   :  { %v7946_v28 = vld [vmem:[#allocation2 + $0x668] sm:$0xf0] }
 0x23f   :  { %v10983_v29 = vld [vmem:[#allocation2 + $0x84c] sm:$0xf]  ;;  %5664 = vmatpush.bf16.msra.mxu1 %v7725_v18  ;;  %v7949_v37 = vor.u32 %v10919_v26, %v7946_v28 }
 0x240   :  { %v8202_v30 = vld [vmem:[#allocation2 + $0x868] sm:$0xf0] }
 0x241   :  { %v10783_v32 = vld [vmem:[#allocation2 + $0x20c] sm:$0xf]  ;;  %5677 = vmatpush.bf16.msra.mxu2 %v7981_v17  ;;  %v8205_v46 = vor.u32 %v10983_v29, %v8202_v30  ;;  %5652 = vmatpush.bf16.msra.mxu0 %v7437_v6 }
 0x242   :  { %v7402_v50 = vld [vmem:[#allocation2 + $0x228] sm:$0xf0] }
 0x243   :  { %v10847_v38 = vld [vmem:[#allocation2 + $0x40c] sm:$0xf]  ;;  %v7405_v56 = vor.u32 %v10783_v32, %v7402_v50  ;;  %5665 = vmatpush.bf16.msra.mxu1 %v7693_v33  ;;  %5691 = vmatpush.bf16.msra.mxu3 %v8205_v46 }
 0x244   :  { %v7658_v41 = vld [vmem:[#allocation2 + $0x428] sm:$0xf0] }
 0x245   :  { %v10911_v45 = vld [vmem:[#allocation2 + $0x60c] sm:$0xf]  ;;  %5678 = vmatpush.bf16.msra.mxu2 %v7949_v37  ;;  %v7661_v2 = vor.u32 %v10847_v38, %v7658_v41  ;;  %5653 = vmatpush.bf16.msra.mxu0 %v7405_v56 }
 0x246   :  { %v7914_v47 = vld [vmem:[#allocation2 + $0x628] sm:$0xf0] }
 0x247   :  { %v10975_v48 = vld [vmem:[#allocation2 + $0x80c] sm:$0xf]  ;;  %v7917_v59 = vor.u32 %v10911_v45, %v7914_v47  ;;  %5666 = vmatpush.bf16.msra.mxu1 %v7661_v2 }
 0x248   :  { %v8170_v49 = vld [vmem:[#allocation2 + $0x828] sm:$0xf0]  ;;  %5654 = vmatmul.bf16.vlgmr.msra.gmra.mxu0 %v11784_v43 }
 0x249   :  { %v11095_v52 = vld [vmem:[#allocation2 + $0xbcc] sm:$0xf]  ;;  %v8173_v62 = vor.u32 %v10975_v48, %v8170_v49  ;;  %5679 = vmatpush.bf16.msra.mxu2 %v7917_v59  ;;  %v5447_v49 = vpop.f32.mrf.mxu0 }
 0x24a   :  { %v8650_v53 = vld [vmem:[#allocation2 + $0xbe8] sm:$0xf0]  ;;  %5667 = vmatmul.bf16.vlgmr.msra.gmra.mxu1 %v11778_v35 }
 0x24b   :  { %v11159_v54 = vld [vmem:[#allocation2 + $0xdcc] sm:$0xf]  ;;  %v8653_v0 = vor.u32 %v11095_v52, %v8650_v53  ;;  %5692 = vmatpush.bf16.msra.mxu3 %v8173_v62  ;;  %v5448_v53 = vadd.f32 %v5447_v49, %v11868_v16 }
 0x24c   :  { %v8906_v63 = vld [vmem:[#allocation2 + $0xde8] sm:$0xf0]  ;;  %5680 = vmatmul.bf16.vlgmr.msra.gmra.mxu2 %v11782_v42 }
 0x24d   :  { %v11223_v57 = vld [vmem:[#allocation2 + $0xfcc] sm:$0xf]  ;;  %v8909_v1 = vor.u32 %v11159_v54, %v8906_v63  ;;  %5698 = vmatpush.bf16.msrb.mxu0 %v8653_v0 }
 0x24e   :  { %v9162_v58 = vld [vmem:[#allocation2 + $0xfe8] sm:$0xf0]  ;;  %5693 = vmatmul.bf16.vlgmr.msra.gmra.mxu3 %v11798_v39 }
 0x24f   :  { %v11287_v60 = vld [vmem:[#allocation2 + $0x11cc] sm:$0xf]  ;;  %v9165_v3 = vor.u32 %v11223_v57, %v9162_v58  ;;  %5711 = vmatpush.bf16.msrb.mxu1 %v8909_v1 }
 0x250   :  { %v9418_v61 = vld [vmem:[#allocation2 + $0x11e8] sm:$0xf0] }
 0x251   :  { %v11087_v4 = vld [vmem:[#allocation2 + $0xb8c] sm:$0xf]  ;;  %v9421_v8 = vor.u32 %v11287_v60, %v9418_v61  ;;  %5724 = vmatpush.bf16.msrb.mxu2 %v9165_v3  ;;  %v11875_v60 = vadd.f32 %v5460_v55, %v5448_v53 }
 0x252   :  { %v8618_v5 = vld [vmem:[#allocation2 + $0xba8] sm:$0xf0] }
 0x253   :  { %v11151_v7 = vld [vmem:[#allocation2 + $0xd8c] sm:$0xf]  ;;  %v8621_v18 = vor.u32 %v11087_v4, %v8618_v5  ;;  %5737 = vmatpush.bf16.msrb.mxu3 %v9421_v8  ;;  %v11621_v4 = vld [vmem:[#allocation5] sm:$0xff] }
 0x254   :  { %v8874_v9 = vld [vmem:[#allocation2 + $0xda8] sm:$0xf0]  ;;  %v952_v16 = vperm.slane %v11621_v4, 2 }
 0x255   :  { %v11215_v10 = vld [vmem:[#allocation2 + $0xf8c] sm:$0xf]  ;;  %v8877_v17 = vor.u32 %v11151_v7, %v8874_v9  ;;  %5699 = vmatpush.bf16.msrb.mxu0 %v8621_v18 }
 0x256   :  { %v9130_v11 = vld [vmem:[#allocation2 + $0xfa8] sm:$0xf0] }
 0x257   :  { %v11279_v13 = vld [vmem:[#allocation2 + $0x118c] sm:$0xf]  ;;  %v9133_v20 = vor.u32 %v11215_v10, %v9130_v11  ;;  %5712 = vmatpush.bf16.msrb.mxu1 %v8877_v17 }
 0x258   :  { %v9386_v14 = vld [vmem:[#allocation2 + $0x11a8] sm:$0xf0] }
 0x259   :  { %v11079_v21 = vld [vmem:[#allocation2 + $0xb4c] sm:$0xf]  ;;  %v9389_v25 = vor.u32 %v11279_v13, %v9386_v14  ;;  %5725 = vmatpush.bf16.msrb.mxu2 %v9133_v20  ;;  %v5473_v20 = vpop.f32.mrf.mxu2 }
 0x25a   :  { %v8586_v31 = vld [vmem:[#allocation2 + $0xb68] sm:$0xf0] }
 0x25b   :  { %v11143_v22 = vld [vmem:[#allocation2 + $0xd4c] sm:$0xf]  ;;  %v8589_v32 = vor.u32 %v11079_v21, %v8586_v31  ;;  %5738 = vmatpush.bf16.msrb.mxu3 %v9389_v25  ;;  %v5486_v25 = vpop.f32.mrf.mxu3 }
 0x25c   :  { %v8842_v26 = vld [vmem:[#allocation2 + $0xd68] sm:$0xf0] }
 0x25d   :  { %v11207_v28 = vld [vmem:[#allocation2 + $0xf4c] sm:$0xf]  ;;  %v8845_v50 = vor.u32 %v11143_v22, %v8842_v26  ;;  %5700 = vmatpush.bf16.msrb.mxu0 %v8589_v32  ;;  %v5474_v22 = vadd.f32 %v5473_v20, %v952_v16  ;;  %v5449_v26 = vpop.f32.mrf.mxu0 }
 0x25e   :  { %v9098_v29 = vld [vmem:[#allocation2 + $0xf68] sm:$0xf0] }
 0x25f   :  { %v11271_v30 = vld [vmem:[#allocation2 + $0x114c] sm:$0xf]  ;;  %v9101_v33 = vor.u32 %v11207_v28, %v9098_v29  ;;  %5713 = vmatpush.bf16.msrb.mxu1 %v8845_v50  ;;  %v5462_v29 = vpop.f32.mrf.mxu1 }
 0x260   :  { %v9354_v6 = vld [vmem:[#allocation2 + $0x1168] sm:$0xf0] }
 0x261   :  { %v11071_v37 = vld [vmem:[#allocation2 + $0xb0c] sm:$0xf]  ;;  %v9357_v45 = vor.u32 %v11271_v30, %v9354_v6  ;;  %5726 = vmatpush.bf16.msrb.mxu2 %v9101_v33 }
 0x262   :  { %v8554_v38 = vld [vmem:[#allocation2 + $0xb28] sm:$0xf0] }
 0x263   :  { %v11135_v41 = vld [vmem:[#allocation2 + $0xd0c] sm:$0xf]  ;;  %v8557_v54 = vor.u32 %v11071_v37, %v8554_v38  ;;  %5739 = vmatpush.bf16.msrb.mxu3 %v9357_v45  ;;  %v11877_v37 = vadd.f32 %v5486_v25, %v5474_v22 }
 0x264   :  { %v8810_v46 = vld [vmem:[#allocation2 + $0xd28] sm:$0xf0] }
 0x265   :  { %v11199_v47 = vld [vmem:[#allocation2 + $0xf0c] sm:$0xf]  ;;  %v8813_v56 = vor.u32 %v11135_v41, %v8810_v46  ;;  %5701 = vmatpush.bf16.msrb.mxu0 %v8557_v54 }
 0x266   :  { %v9066_v48 = vld [vmem:[#allocation2 + $0xf28] sm:$0xf0] }
 0x267   :  { %v11263_v51 = vld [vmem:[#allocation2 + $0x110c] sm:$0xf]  ;;  %v9069_v63 = vor.u32 %v11199_v47, %v9066_v48  ;;  %5714 = vmatpush.bf16.msrb.mxu1 %v8813_v56 }
 0x268   :  { %v9322_v52 = vld [vmem:[#allocation2 + $0x1128] sm:$0xf0] }
 0x269   :  { %v11063_v57 = vld [vmem:[#allocation2 + $0xacc] sm:$0xf]  ;;  %v9325_v59 = vor.u32 %v11263_v51, %v9322_v52  ;;  %5727 = vmatpush.bf16.msrb.mxu2 %v9069_v63 }
 0x26a   :  { %v8522_v58 = vld [vmem:[#allocation2 + $0xae8] sm:$0xf0] }
 0x26b   :  { %v11127_v2 = vld [vmem:[#allocation2 + $0xccc] sm:$0xf]  ;;  %v8525_v5 = vor.u32 %v11063_v57, %v8522_v58  ;;  %5740 = vmatpush.bf16.msrb.mxu3 %v9325_v59 }
 0x26c   :  { %v8778_v61 = vld [vmem:[#allocation2 + $0xce8] sm:$0xf0] }
 0x26d   :  { %v11191_v62 = vld [vmem:[#allocation2 + $0xecc] sm:$0xf]  ;;  %v8781_v7 = vor.u32 %v11127_v2, %v8778_v61  ;;  %5702 = vmatpush.bf16.msrb.mxu0 %v8525_v5  ;;  %v5475_v61 = vpop.f32.mrf.mxu2 }
 0x26e   :  { %v9034_v0 = vld [vmem:[#allocation2 + $0xee8] sm:$0xf0] }
 0x26f   :  { %v11255_v1 = vld [vmem:[#allocation2 + $0x10cc] sm:$0xf]  ;;  %v9037_v8 = vor.u32 %v11191_v62, %v9034_v0  ;;  %5715 = vmatpush.bf16.msrb.mxu1 %v8781_v7 }
 0x270   :  { %v9290_v3 = vld [vmem:[#allocation2 + $0x10e8] sm:$0xf0] }
 0x271   :  { %v11055_v9 = vld [vmem:[#allocation2 + $0xa8c] sm:$0xf]  ;;  %v9293_v13 = vor.u32 %v11255_v1, %v9290_v3  ;;  %5728 = vmatpush.bf16.msrb.mxu2 %v9037_v8  ;;  %v5488_v3 = vpop.f32.mrf.mxu3 }
 0x272   :  { %v8490_v10 = vld [vmem:[#allocation2 + $0xaa8] sm:$0xf0] }
 0x273   :  { %v11119_v11 = vld [vmem:[#allocation2 + $0xc8c] sm:$0xf]  ;;  %v8493_v28 = vor.u32 %v11055_v9, %v8490_v10  ;;  %5741 = vmatpush.bf16.msrb.mxu3 %v9293_v13 }
 0x274   :  { %v8746_v14 = vld [vmem:[#allocation2 + $0xca8] sm:$0xf0] }
 0x275   :  { %v11183_v18 = vld [vmem:[#allocation2 + $0xe8c] sm:$0xf]  ;;  %v8749_v30 = vor.u32 %v11119_v11, %v8746_v14  ;;  %5703 = vmatpush.bf16.msrb.mxu0 %v8493_v28 }
 0x276   :  { %v9002_v17 = vld [vmem:[#allocation2 + $0xea8] sm:$0xf0] }
 0x277   :  { %v11247_v21 = vld [vmem:[#allocation2 + $0x108c] sm:$0xf]  ;;  %v9005_v6 = vor.u32 %v11183_v18, %v9002_v17  ;;  %5716 = vmatpush.bf16.msrb.mxu1 %v8749_v30 }
 0x278   :  { %v9258_v31 = vld [vmem:[#allocation2 + $0x10a8] sm:$0xf0] }
 0x279   :  { %v11047_v32 = vld [vmem:[#allocation2 + $0xa4c] sm:$0xf]  ;;  %v9261_v38 = vor.u32 %v11247_v21, %v9258_v31  ;;  %5729 = vmatpush.bf16.msrb.mxu2 %v9005_v6 }
 0x27a   :  { %v8458_v50 = vld [vmem:[#allocation2 + $0xa68] sm:$0xf0] }
 0x27b   :  { %v11111_v33 = vld [vmem:[#allocation2 + $0xc4c] sm:$0xf]  ;;  %v8461_v49 = vor.u32 %v11047_v32, %v8458_v50  ;;  %5742 = vmatpush.bf16.msrb.mxu3 %v9261_v38 }
 0x27c   :  { %v8714_v41 = vld [vmem:[#allocation2 + $0xc68] sm:$0xf0] }
 0x27d   :  { %v11175_v45 = vld [vmem:[#allocation2 + $0xe4c] sm:$0xf]  ;;  %v8717_v53 = vor.u32 %v11111_v33, %v8714_v41  ;;  %5704 = vmatpush.bf16.msrb.mxu0 %v8461_v49 }
 0x27e   :  { %v8970_v46 = vld [vmem:[#allocation2 + $0xe68] sm:$0xf0] }
 0x27f   :  { %v11239_v47 = vld [vmem:[#allocation2 + $0x104c] sm:$0xf]  ;;  %v8973_v54 = vor.u32 %v11175_v45, %v8970_v46  ;;  %5717 = vmatpush.bf16.msrb.mxu1 %v8717_v53 }
 0x280   :  { %v9226_v48 = vld [vmem:[#allocation2 + $0x1068] sm:$0xf0] }
 0x281   :  { %v11039_v51 = vld [vmem:[#allocation2 + $0xa0c] sm:$0xf]  ;;  %v9229_v57 = vor.u32 %v11239_v47, %v9226_v48  ;;  %5730 = vmatpush.bf16.msrb.mxu2 %v8973_v54 }
 0x282   :  { %v8426_v52 = vld [vmem:[#allocation2 + $0xa28] sm:$0xf0] }
 0x283   :  { %v11103_v55 = vld [vmem:[#allocation2 + $0xc0c] sm:$0xf]  ;;  %v8429_v4 = vor.u32 %v11039_v51, %v8426_v52  ;;  %5743 = vmatpush.bf16.msrb.mxu3 %v9229_v57 }
 0x284   :  { %v8682_v56 = vld [vmem:[#allocation2 + $0xc28] sm:$0xf0] }
 0x285   :  { %v11167_v63 = vld [vmem:[#allocation2 + $0xe0c] sm:$0xf]  ;;  %v8685_v8 = vor.u32 %v11103_v55, %v8682_v56  ;;  %5705 = vmatpush.bf16.msrb.mxu0 %v8429_v4 }
 0x286   :  { %v8938_v58 = vld [vmem:[#allocation2 + $0xe28] sm:$0xf0] }
 0x287   :  { %v11231_v2 = vld [vmem:[#allocation2 + $0x100c] sm:$0xf]  ;;  %v8941_v9 = vor.u32 %v11167_v63, %v8938_v58  ;;  %5718 = vmatpush.bf16.msrb.mxu1 %v8685_v8 }
 0x288   :  { %v9194_v59 = vld [vmem:[#allocation2 + $0x1028] sm:$0xf0]  ;;  %5706 = vmatmul.bf16.vlgmr.msrb.gmra.mxu0 %v11802_v44 }
 0x289   :  { %v11351_v62 = vld [vmem:[#allocation2 + $0x13cc] sm:$0xf]  ;;  %v9197_v13 = vor.u32 %v11231_v2, %v9194_v59  ;;  %5731 = vmatpush.bf16.msrb.mxu2 %v8941_v9  ;;  %v5512_v9 = vpop.f32.mrf.mxu1 }
 0x28a   :  { %v9674_v0 = vld [vmem:[#allocation2 + $0x13e8] sm:$0xf0]  ;;  %5719 = vmatmul.bf16.vlgmr.msrb.gmra.mxu1 %v11796_v34 }
 0x28b   :  { %v11415_v1 = vld [vmem:[#allocation2 + $0x15cc] sm:$0xf]  ;;  %v9677_v14 = vor.u32 %v11351_v62, %v9674_v0  ;;  %5744 = vmatpush.bf16.msrb.mxu3 %v9197_v13 }
 0x28c   :  { %v9930_v16 = vld [vmem:[#allocation2 + $0x15e8] sm:$0xf0]  ;;  %5732 = vmatmul.bf16.vlgmr.msrb.gmra.mxu2 %v11800_v40 }
 0x28d   :  { %v11479_v5 = vld [vmem:[#allocation2 + $0x17cc] sm:$0xf]  ;;  %v9933_v18 = vor.u32 %v11415_v1, %v9930_v16  ;;  %5750 = vmatpush.bf16.msra.mxu0 %v9677_v14  ;;  %v5499_v1 = vpop.f32.mrf.mxu0 }
 0x28e   :  { %v10186_v7 = vld [vmem:[#allocation2 + $0x17e8] sm:$0xf0]  ;;  %5745 = vmatmul.bf16.vlgmr.msrb.gmra.mxu3 %v11808_v19  ;;  %v5500_v8 = vadd.f32 %v5499_v1, %v11877_v37 }
 0x28f   :  { %v11543_v10 = vld [vmem:[#allocation2 + $0x19cc] sm:$0xf]  ;;  %v10189_v17 = vor.u32 %v11479_v5, %v10186_v7  ;;  %5763 = vmatpush.bf16.msra.mxu1 %v9933_v18 }
 0x290   :  { %v10442_v11 = vld [vmem:[#allocation2 + $0x19e8] sm:$0xf0] }
 0x291   :  { %v11343_v20 = vld [vmem:[#allocation2 + $0x138c] sm:$0xf]  ;;  %v10445_v22 = vor.u32 %v11543_v10, %v10442_v11  ;;  %5776 = vmatpush.bf16.msra.mxu2 %v10189_v17 }
 0x292   :  { %v9642_v21 = vld [vmem:[#allocation2 + $0x13a8] sm:$0xf0] }
 0x293   :  { %v11407_v31 = vld [vmem:[#allocation2 + $0x158c] sm:$0xf]  ;;  %v9645_v6 = vor.u32 %v11343_v20, %v9642_v21  ;;  %5789 = vmatpush.bf16.msra.mxu3 %v10445_v22  ;;  %v5513_v20 = vadd.f32 %v5512_v9, %v5500_v8 }
 0x294   :  { %v9898_v25 = vld [vmem:[#allocation2 + $0x15a8] sm:$0xf0] }
 0x295   :  { %v11471_v26 = vld [vmem:[#allocation2 + $0x178c] sm:$0xf]  ;;  %v9901_v32 = vor.u32 %v11407_v31, %v9898_v25  ;;  %5751 = vmatpush.bf16.msra.mxu0 %v9645_v6 }
 0x296   :  { %v10154_v28 = vld [vmem:[#allocation2 + $0x17a8] sm:$0xf0] }
 0x297   :  { %v11535_v29 = vld [vmem:[#allocation2 + $0x198c] sm:$0xf]  ;;  %v10157_v50 = vor.u32 %v11471_v26, %v10154_v28  ;;  %5764 = vmatpush.bf16.msra.mxu1 %v9901_v32 }
 0x298   :  { %v10410_v30 = vld [vmem:[#allocation2 + $0x19a8] sm:$0xf0] }
 0x299   :  { %v11335_v33 = vld [vmem:[#allocation2 + $0x134c] sm:$0xf]  ;;  %v10413_v45 = vor.u32 %v11535_v29, %v10410_v30  ;;  %5777 = vmatpush.bf16.msra.mxu2 %v10157_v50  ;;  %v5525_v29 = vpop.f32.mrf.mxu2 }
 0x29a   :  { %v9610_v38 = vld [vmem:[#allocation2 + $0x1368] sm:$0xf0]  ;;  %v5526_v50 = vadd.f32 %v5525_v29, %v5513_v20  ;;  %v10844_v20 = vld [vmem:[#allocation2 + $0x3ec] sm:$0xf0] }
 0x29b   :  { %v11399_v41 = vld [vmem:[#allocation2 + $0x154c] sm:$0xf]  ;;  %v9613_v52 = vor.u32 %v11335_v33, %v9610_v38  ;;  %5790 = vmatpush.bf16.msra.mxu3 %v10413_v45  ;;  %v5538_v33 = vpop.f32.mrf.mxu3 }
 0x29c   :  { %v9866_v46 = vld [vmem:[#allocation2 + $0x1568] sm:$0xf0] }
 0x29d   :  { %v11463_v47 = vld [vmem:[#allocation2 + $0x174c] sm:$0xf]  ;;  %v9869_v53 = vor.u32 %v11399_v41, %v9866_v46  ;;  %5752 = vmatpush.bf16.msra.mxu0 %v9613_v52  ;;  %v11884_v46 = vadd.f32 %v5538_v33, %v5526_v50  ;;  %v10772_v50 = vld [vmem:[#allocation2 + $0x1ac] sm:$0xf0] }
 0x29e   :  { %v10122_v48 = vld [vmem:[#allocation2 + $0x1768] sm:$0xf0]  ;;  %v7600_v33 = vld [vmem:[#allocation2 + $0x390] sm:$0xf] }
 0x29f   :  { %v11527_v49 = vld [vmem:[#allocation2 + $0x194c] sm:$0xf]  ;;  %v10125_v54 = vor.u32 %v11463_v47, %v10122_v48  ;;  %5765 = vmatpush.bf16.msra.mxu1 %v9869_v53  ;;  %v5501_v47 = vpop.f32.mrf.mxu0 }
 0x2a0   :  { %v10378_v51 = vld [vmem:[#allocation2 + $0x1968] sm:$0xf0]  ;;  %v10900_v47 = vld [vmem:[#allocation2 + $0x5ac] sm:$0xf0] }
 0x2a1   :  { %v11327_v55 = vld [vmem:[#allocation2 + $0x130c] sm:$0xf]  ;;  %v10381_v57 = vor.u32 %v11527_v49, %v10378_v51  ;;  %5778 = vmatpush.bf16.msra.mxu2 %v10125_v54  ;;  %v5514_v54 = vpop.f32.mrf.mxu1 }
 0x2a2   :  { %v9578_v56 = vld [vmem:[#allocation2 + $0x1328] sm:$0xf0]  ;;  %v7312_v54 = vld [vmem:[#allocation2 + $0x150] sm:$0xf] }
 0x2a3   :  { %v11391_v63 = vld [vmem:[#allocation2 + $0x150c] sm:$0xf]  ;;  %v9581_v0 = vor.u32 %v11327_v55, %v9578_v56  ;;  %5791 = vmatpush.bf16.msra.mxu3 %v10381_v57 }
 0x2a4   :  { %v9834_v58 = vld [vmem:[#allocation2 + $0x1528] sm:$0xf0] }
 0x2a5   :  { %v11455_v2 = vld [vmem:[#allocation2 + $0x170c] sm:$0xf]  ;;  %v9837_v3 = vor.u32 %v11391_v63, %v9834_v58  ;;  %5753 = vmatpush.bf16.msra.mxu0 %v9581_v0 }
 0x2a6   :  { %v10090_v59 = vld [vmem:[#allocation2 + $0x1728] sm:$0xf0] }
 0x2a7   :  { %v11519_v61 = vld [vmem:[#allocation2 + $0x190c] sm:$0xf]  ;;  %v10093_v4 = vor.u32 %v11455_v2, %v10090_v59  ;;  %5766 = vmatpush.bf16.msra.mxu1 %v9837_v3 }
 0x2a8   :  { %v10346_v62 = vld [vmem:[#allocation2 + $0x1928] sm:$0xf0] }
 0x2a9   :  { %v11319_v16 = vld [vmem:[#allocation2 + $0x12cc] sm:$0xf]  ;;  %v10349_v10 = vor.u32 %v11519_v61, %v10346_v62  ;;  %5779 = vmatpush.bf16.msra.mxu2 %v10093_v4 }
 0x2aa   :  { %v9546_v5 = vld [vmem:[#allocation2 + $0x12e8] sm:$0xf0] }
 0x2ab   :  { %v11383_v7 = vld [vmem:[#allocation2 + $0x14cc] sm:$0xf]  ;;  %v9549_v21 = vor.u32 %v11319_v16, %v9546_v5  ;;  %5792 = vmatpush.bf16.msra.mxu3 %v10349_v10  ;;  %v5527_v5 = vpop.f32.mrf.mxu2 }
 0x2ac   :  { %v9802_v11 = vld [vmem:[#allocation2 + $0x14e8] sm:$0xf0] }
 0x2ad   :  { %v11447_v13 = vld [vmem:[#allocation2 + $0x16cc] sm:$0xf]  ;;  %v9805_v31 = vor.u32 %v11383_v7, %v9802_v11  ;;  %5754 = vmatpush.bf16.msra.mxu0 %v9549_v21  ;;  %v5540_v11 = vpop.f32.mrf.mxu3  ;;  %v7888_v21 = vld [vmem:[#allocation2 + $0x5d0] sm:$0xf] }
 0x2ae   :  { %v10058_v14 = vld [vmem:[#allocation2 + $0x16e8] sm:$0xf0]  ;;  %v8048_v11 = vld [vmem:[#allocation2 + $0x710] sm:$0xf] }
 0x2af   :  { %v11511_v18 = vld [vmem:[#allocation2 + $0x18cc] sm:$0xf]  ;;  %v10061_v22 = vor.u32 %v11447_v13, %v10058_v14  ;;  %5767 = vmatpush.bf16.msra.mxu1 %v9805_v31  ;;  %v7376_v13 = vld [vmem:[#allocation2 + $0x1d0] sm:$0xf] }
 0x2b0   :  { %v10314_v17 = vld [vmem:[#allocation2 + $0x18e8] sm:$0xf0]  ;;  %v10780_v14 = vld [vmem:[#allocation2 + $0x1ec] sm:$0xf0] }
 0x2b1   :  { %v11311_v25 = vld [vmem:[#allocation2 + $0x128c] sm:$0xf]  ;;  %v10317_v37 = vor.u32 %v11511_v18, %v10314_v17  ;;  %5780 = vmatpush.bf16.msra.mxu2 %v10061_v22  ;;  %v7632_v18 = vld [vmem:[#allocation2 + $0x3d0] sm:$0xf] }
 0x2b2   :  { %v9514_v26 = vld [vmem:[#allocation2 + $0x12a8] sm:$0xf0]  ;;  %v10908_v31 = vld [vmem:[#allocation2 + $0x5ec] sm:$0xf0] }
 0x2b3   :  { %v11375_v28 = vld [vmem:[#allocation2 + $0x148c] sm:$0xf]  ;;  %v9517_v45 = vor.u32 %v11311_v25, %v9514_v26  ;;  %5793 = vmatpush.bf16.msra.mxu3 %v10317_v37  ;;  %v8144_v26 = vld [vmem:[#allocation2 + $0x7d0] sm:$0xf]  ;;  %v7377_v37 = vor.u32 %v10780_v14, %v7376_v13 }
 0x2b4   :  { %v9770_v30 = vld [vmem:[#allocation2 + $0x14a8] sm:$0xf0]  ;;  %v10948_v13 = vld [vmem:[#allocation2 + $0x72c] sm:$0xf0] }
 0x2b5   :  { %v11439_v6 = vld [vmem:[#allocation2 + $0x168c] sm:$0xf]  ;;  %v9773_v48 = vor.u32 %v11375_v28, %v9770_v30  ;;  %5755 = vmatpush.bf16.msra.mxu0 %v9517_v45  ;;  %v10972_v28 = vld [vmem:[#allocation2 + $0x7ec] sm:$0xf0]  ;;  %v7633_v30 = vor.u32 %v10844_v20, %v7632_v18 }
 0x2b6   :  { %v10026_v32 = vld [vmem:[#allocation2 + $0x16a8] sm:$0xf0]  ;;  %v7856_v45 = vld [vmem:[#allocation2 + $0x590] sm:$0xf] }
 0x2b7   :  { %v11503_v38 = vld [vmem:[#allocation2 + $0x188c] sm:$0xf]  ;;  %v10029_v49 = vor.u32 %v11439_v6, %v10026_v32  ;;  %5768 = vmatpush.bf16.msra.mxu1 %v9773_v48  ;;  %v7889_v6 = vor.u32 %v10908_v31, %v7888_v21  ;;  %v7344_v32 = vld [vmem:[#allocation2 + $0x190] sm:$0xf] }
 0x2b8   :  { %v10282_v41 = vld [vmem:[#allocation2 + $0x18a8] sm:$0xf0]  ;;  %v8112_v48 = vld [vmem:[#allocation2 + $0x790] sm:$0xf] }
 0x2b9   :  { %v11303_v51 = vld [vmem:[#allocation2 + $0x124c] sm:$0xf]  ;;  %v10285_v55 = vor.u32 %v11503_v38, %v10282_v41  ;;  %5781 = vmatpush.bf16.msra.mxu2 %v10029_v49  ;;  %v8145_v38 = vor.u32 %v10972_v28, %v8144_v26  ;;  %v10836_v41 = vld [vmem:[#allocation2 + $0x3ac] sm:$0xf0]  ;;  %v8049_v26 = vor.u32 %v10948_v13, %v8048_v11 }
 0x2ba   :  { %v9482_v52 = vld [vmem:[#allocation2 + $0x1268] sm:$0xf0]  ;;  %v10964_v49 = vld [vmem:[#allocation2 + $0x7ac] sm:$0xf0] }
 0x2bb   :  { %v11367_v53 = vld [vmem:[#allocation2 + $0x144c] sm:$0xf]  ;;  %v9485_v59 = vor.u32 %v11303_v51, %v9482_v52  ;;  %5794 = vmatpush.bf16.msra.mxu3 %v10285_v55  ;;  %v7345_v51 = vor.u32 %v10772_v50, %v7344_v32  ;;  %v7601_v52 = vor.u32 %v10836_v41, %v7600_v33  ;;  %v10764_v55 = vld [vmem:[#allocation2 + $0x16c] sm:$0xf0] }
 0x2bc   :  { %v9738_v56 = vld [vmem:[#allocation2 + $0x1468] sm:$0xf0]  ;;  %v7248_v31 = vld [vmem:[#allocation2 + $0xd0] sm:$0xf] }
 0x2bd   :  { %v11431_v63 = vld [vmem:[#allocation2 + $0x164c] sm:$0xf]  ;;  %v9741_v0 = vor.u32 %v11367_v53, %v9738_v56  ;;  %5756 = vmatpush.bf16.msra.mxu0 %v9485_v59  ;;  %v7857_v53 = vor.u32 %v10900_v47, %v7856_v45  ;;  %v7568_v56 = vld [vmem:[#allocation2 + $0x350] sm:$0xf] }
 0x2be   :  { %v9994_v57 = vld [vmem:[#allocation2 + $0x1668] sm:$0xf0]  ;;  %v8080_v59 = vld [vmem:[#allocation2 + $0x750] sm:$0xf] }
 0x2bf   :  { %v11495_v58 = vld [vmem:[#allocation2 + $0x184c] sm:$0xf]  ;;  %v9997_v1 = vor.u32 %v11431_v63, %v9994_v57  ;;  %5769 = vmatpush.bf16.msra.mxu1 %v9741_v0  ;;  %v8113_v63 = vor.u32 %v10964_v49, %v8112_v48  ;;  %v10828_v57 = vld [vmem:[#allocation2 + $0x36c] sm:$0xf0]  ;;  %v5577_v48 = vpop.f32.mrf.mxu2 }
 0x2c0   :  { %v10250_v2 = vld [vmem:[#allocation2 + $0x1868] sm:$0xf0]  ;;  %v7569_v0 = vor.u32 %v10828_v57, %v7568_v56  ;;  %v10940_v32 = vld [vmem:[#allocation2 + $0x6ec] sm:$0xf0] }
 0x2c1   :  { %v11295_v61 = vld [vmem:[#allocation2 + $0x120c] sm:$0xf]  ;;  %v10253_v7 = vor.u32 %v11495_v58, %v10250_v2  ;;  %5782 = vmatpush.bf16.msra.mxu2 %v9997_v1  ;;  %v7824_v58 = vld [vmem:[#allocation2 + $0x550] sm:$0xf] }
 0x2c2   :  { %v9450_v62 = vld [vmem:[#allocation2 + $0x1228] sm:$0xf0]  ;;  %v10892_v2 = vld [vmem:[#allocation2 + $0x56c] sm:$0xf0] }
 0x2c3   :  { %v11359_v3 = vld [vmem:[#allocation2 + $0x140c] sm:$0xf]  ;;  %v9453_v17 = vor.u32 %v11295_v61, %v9450_v62  ;;  %5795 = vmatpush.bf16.msra.mxu3 %v10253_v7  ;;  %v10956_v61 = vld [vmem:[#allocation2 + $0x76c] sm:$0xf0]  ;;  %v7313_v62 = vor.u32 %v10764_v55, %v7312_v54  ;;  %v7825_v1 = vor.u32 %v10892_v2, %v7824_v58  ;;  %v5590_v54 = vpop.f32.mrf.mxu3 }
 0x2c4   :  { %v9706_v4 = vld [vmem:[#allocation2 + $0x1428] sm:$0xf0]  ;;  %v8081_v5 = vor.u32 %v10956_v61, %v8080_v59  ;;  %v10820_v7 = vld [vmem:[#allocation2 + $0x32c] sm:$0xf0] }
 0x2c5   :  { %v11423_v16 = vld [vmem:[#allocation2 + $0x160c] sm:$0xf]  ;;  %v9709_v22 = vor.u32 %v11359_v3, %v9706_v4  ;;  %5757 = vmatpush.bf16.msra.mxu0 %v9453_v17  ;;  %v7280_v3 = vld [vmem:[#allocation2 + $0x110] sm:$0xf]  ;;  %v5564_v17 = vpop.f32.mrf.mxu1 }
 0x2c6   :  { %v9962_v8 = vld [vmem:[#allocation2 + $0x1628] sm:$0xf0]  ;;  %v10756_v4 = vld [vmem:[#allocation2 + $0x12c] sm:$0xf0] }
 0x2c7   :  { %v11487_v9 = vld [vmem:[#allocation2 + $0x180c] sm:$0xf]  ;;  %v9965_v25 = vor.u32 %v11423_v16, %v9962_v8  ;;  %5770 = vmatpush.bf16.msra.mxu1 %v9709_v22  ;;  %v7536_v16 = vld [vmem:[#allocation2 + $0x310] sm:$0xf]  ;;  %v7281_v18 = vor.u32 %v10756_v4, %v7280_v3 }
 0x2c8   :  { %v10218_v10 = vld [vmem:[#allocation2 + $0x1828] sm:$0xf0]  ;;  %5758 = vmatmul.bf16.vlgmr.msra.gmra.mxu0 %v11812_v24  ;;  %v7792_v8 = vld [vmem:[#allocation2 + $0x510] sm:$0xf]  ;;  %v7537_v20 = vor.u32 %v10820_v7, %v7536_v16 }
 0x2c9   :  { %v10221_v29 = vor.u32 %v11487_v9, %v10218_v10  ;;  %5783 = vmatpush.bf16.msra.mxu2 %v9965_v25  ;;  %5802 = vmatpush.bf16.msrb.mxu0 %v7377_v37  ;;  %v10884_v9 = vld [vmem:[#allocation2 + $0x52c] sm:$0xf0]  ;;  %v5551_v10 = vpop.f32.mrf.mxu0 }
 0x2ca   :  { %5771 = vmatmul.bf16.vlgmr.msra.gmra.mxu1 %v11810_v23  ;;  %v5552_v14 = vadd.f32 %v5551_v10, %v11884_v46  ;;  %v7793_v21 = vor.u32 %v10884_v9, %v7792_v8  ;;  %v10748_v22 = vld [vmem:[#allocation2 + $0xec] sm:$0xf0] }
 0x2cb   :  { %5796 = vmatpush.bf16.msra.mxu3 %v10221_v29  ;;  %5815 = vmatpush.bf16.msrb.mxu1 %v7633_v30  ;;  %v7504_v25 = vld [vmem:[#allocation2 + $0x2d0] sm:$0xf]  ;;  %v7249_v50 = vor.u32 %v10748_v22, %v7248_v31 }
 0x2cc   :  { %5784 = vmatmul.bf16.vlgmr.msra.gmra.mxu2 %v11814_v27  ;;  %v5565_v28 = vadd.f32 %v5564_v17, %v5552_v14  ;;  %v10812_v29 = vld [vmem:[#allocation2 + $0x2ec] sm:$0xf0] }
 0x2cd   :  { %5828 = vmatpush.bf16.msrb.mxu2 %v7889_v6  ;;  %5803 = vmatpush.bf16.msrb.mxu0 %v7345_v51  ;;  %v7760_v37 = vld [vmem:[#allocation2 + $0x4d0] sm:$0xf]  ;;  %v7505_v46 = vor.u32 %v10812_v29, %v7504_v25  ;;  %v5566_v58 = vpop.f32.mrf.mxu1 }
 0x2ce   :  { %5797 = vmatmul.bf16.vlgmr.msra.gmra.mxu3 %v11820_v12  ;;  %v10876_v30 = vld [vmem:[#allocation2 + $0x4ec] sm:$0xf0] }
 0x2cf   :  { %5841 = vmatpush.bf16.msrb.mxu3 %v8145_v38  ;;  %5816 = vmatpush.bf16.msrb.mxu1 %v7601_v52  ;;  %v8016_v6 = vld [vmem:[#allocation2 + $0x6d0] sm:$0xf]  ;;  %v7761_v33 = vor.u32 %v10876_v30, %v7760_v37  ;;  %v5592_v30 = vpop.f32.mrf.mxu3 }
 0x2d0   :  { %v7216_v38 = vld [vmem:[#allocation2 + $0x90] sm:$0xf]  ;;  %v8017_v47 = vor.u32 %v10940_v32, %v8016_v6 }
 0x2d1   :  { %5829 = vmatpush.bf16.msrb.mxu2 %v7857_v53  ;;  %5804 = vmatpush.bf16.msrb.mxu0 %v7313_v62  ;;  %v10740_v41 = vld [vmem:[#allocation2 + $0xac] sm:$0xf0]  ;;  %v5578_v53 = vadd.f32 %v5577_v48, %v5565_v28 }
 0x2d2   :  { %v7472_v45 = vld [vmem:[#allocation2 + $0x290] sm:$0xf]  ;;  %v7217_v57 = vor.u32 %v10740_v41, %v7216_v38 }
 0x2d3   :  { %5842 = vmatpush.bf16.msrb.mxu3 %v8113_v63  ;;  %5817 = vmatpush.bf16.msrb.mxu1 %v7569_v0  ;;  %v10804_v49 = vld [vmem:[#allocation2 + $0x2ac] sm:$0xf0]  ;;  %v5553_v63 = vpop.f32.mrf.mxu0  ;;  %v11891_v2 = vadd.f32 %v5590_v54, %v5578_v53 }
 0x2d4   :  { %v7728_v51 = vld [vmem:[#allocation2 + $0x490] sm:$0xf]  ;;  %v7473_v59 = vor.u32 %v10804_v49, %v7472_v45 }
 0x2d5   :  { %5830 = vmatpush.bf16.msrb.mxu2 %v7825_v1  ;;  %5805 = vmatpush.bf16.msrb.mxu0 %v7281_v18  ;;  %v10868_v52 = vld [vmem:[#allocation2 + $0x4ac] sm:$0xf0] }
 0x2d6   :  { %v7984_v55 = vld [vmem:[#allocation2 + $0x690] sm:$0xf]  ;;  %v7729_v61 = vor.u32 %v10868_v52, %v7728_v51 }
 0x2d7   :  { %5843 = vmatpush.bf16.msrb.mxu3 %v8081_v5  ;;  %5818 = vmatpush.bf16.msrb.mxu1 %v7537_v20  ;;  %v10932_v56 = vld [vmem:[#allocation2 + $0x6ac] sm:$0xf0] }
 0x2d8   :  { %v7184_v62 = vld [vmem:[#allocation2 + $0x50] sm:$0xf]  ;;  %v7985_v3 = vor.u32 %v10932_v56, %v7984_v55 }
 0x2d9   :  { %5831 = vmatpush.bf16.msrb.mxu2 %v7793_v21  ;;  %5806 = vmatpush.bf16.msrb.mxu0 %v7249_v50  ;;  %v10732_v0 = vld [vmem:[#allocation2 + $0x6c] sm:$0xf0] }
 0x2da   :  { %v7440_v1 = vld [vmem:[#allocation2 + $0x250] sm:$0xf]  ;;  %v7185_v9 = vor.u32 %v10732_v0, %v7184_v62 }
 0x2db   :  { %5844 = vmatpush.bf16.msrb.mxu3 %v8049_v26  ;;  %5819 = vmatpush.bf16.msrb.mxu1 %v7505_v46  ;;  %v10796_v4 = vld [vmem:[#allocation2 + $0x26c] sm:$0xf0]  ;;  %v5579_v26 = vpop.f32.mrf.mxu2 }
 0x2dc   :  { %v7696_v16 = vld [vmem:[#allocation2 + $0x450] sm:$0xf]  ;;  %v7441_v13 = vor.u32 %v10796_v4, %v7440_v1  ;;  %v5603_v26 = vpop.f32.mrf.mxu0 }
 0x2dd   :  { %5832 = vmatpush.bf16.msrb.mxu2 %v7761_v33  ;;  %v10860_v5 = vld [vmem:[#allocation2 + $0x46c] sm:$0xf0]  ;;  %5807 = vmatpush.bf16.msrb.mxu0 %v7217_v57 }
 0x2de   :  { %v7952_v7 = vld [vmem:[#allocation2 + $0x650] sm:$0xf]  ;;  %v7697_v14 = vor.u32 %v10860_v5, %v7696_v16 }
 0x2df   :  { %5845 = vmatpush.bf16.msrb.mxu3 %v8017_v47  ;;  %v10924_v8 = vld [vmem:[#allocation2 + $0x66c] sm:$0xf0]  ;;  %5820 = vmatpush.bf16.msrb.mxu1 %v7473_v59 }
 0x2e0   :  { %v7152_v10 = vld [vmem:[#allocation2 + $0x10] sm:$0xf]  ;;  %v7953_v21 = vor.u32 %v10924_v8, %v7952_v7 }
 0x2e1   :  { %v10724_v11 = vld [vmem:[#allocation2 + $0x2c] sm:$0xf0]  ;;  %5833 = vmatpush.bf16.msrb.mxu2 %v7729_v61  ;;  %5808 = vmatpush.bf16.msrb.mxu0 %v7185_v9 }
 0x2e2   :  { %v7408_v18 = vld [vmem:[#allocation2 + $0x210] sm:$0xf]  ;;  %v7153_v6 = vor.u32 %v10724_v11, %v7152_v10 }
 0x2e3   :  { %v10788_v17 = vld [vmem:[#allocation2 + $0x22c] sm:$0xf0]  ;;  %5846 = vmatpush.bf16.msrb.mxu3 %v7985_v3  ;;  %5821 = vmatpush.bf16.msrb.mxu1 %v7441_v13 }
 0x2e4   :  { %v7664_v20 = vld [vmem:[#allocation2 + $0x410] sm:$0xf]  ;;  %v7409_v33 = vor.u32 %v10788_v17, %v7408_v18 }
 0x2e5   :  { %v10852_v31 = vld [vmem:[#allocation2 + $0x42c] sm:$0xf0]  ;;  %5834 = vmatpush.bf16.msrb.mxu2 %v7697_v14  ;;  %5809 = vmatpush.bf16.msrb.mxu0 %v7153_v6  ;;  %v5616_v6 = vpop.f32.mrf.mxu1 }
 0x2e6   :  { %v7920_v22 = vld [vmem:[#allocation2 + $0x610] sm:$0xf]  ;;  %v7665_v38 = vor.u32 %v10852_v31, %v7664_v20 }
 0x2e7   :  { %v10916_v25 = vld [vmem:[#allocation2 + $0x62c] sm:$0xf0]  ;;  %5847 = vmatpush.bf16.msrb.mxu3 %v7953_v21  ;;  %5822 = vmatpush.bf16.msrb.mxu1 %v7409_v33 }
 0x2e8   :  { %v8400_v28 = vld [vmem:[#allocation2 + $0x9d0] sm:$0xf]  ;;  %v7921_v47 = vor.u32 %v10916_v25, %v7920_v22  ;;  %5810 = vmatmul.bf16.vlgmr.msrb.gmra.mxu0 %v11780_v36 }
 0x2e9   :  { %v11036_v29 = vld [vmem:[#allocation2 + $0x9ec] sm:$0xf0]  ;;  %5835 = vmatpush.bf16.msrb.mxu2 %v7665_v38 }
 0x2ea   :  { %v8656_v37 = vld [vmem:[#allocation2 + $0xbd0] sm:$0xf]  ;;  %v8401_v48 = vor.u32 %v11036_v29, %v8400_v28  ;;  %5823 = vmatmul.bf16.vlgmr.msrb.gmra.mxu1 %v11784_v43 }
 0x2eb   :  { %v11100_v32 = vld [vmem:[#allocation2 + $0xbec] sm:$0xf0]  ;;  %5848 = vmatpush.bf16.msrb.mxu3 %v7921_v47 }
 0x2ec   :  { %v8912_v50 = vld [vmem:[#allocation2 + $0xdd0] sm:$0xf]  ;;  %v8657_v49 = vor.u32 %v11100_v32, %v8656_v37  ;;  %5854 = vmatpush.bf16.msra.mxu0 %v8401_v48  ;;  %5836 = vmatmul.bf16.vlgmr.msrb.gmra.mxu2 %v11778_v35  ;;  %v5604_v37 = vadd.f32 %v5603_v26, %v11891_v2 }
 0x2ed   :  { %v11164_v46 = vld [vmem:[#allocation2 + $0xdec] sm:$0xf0] }
 0x2ee   :  { %v9168_v41 = vld [vmem:[#allocation2 + $0xfd0] sm:$0xf]  ;;  %v8913_v51 = vor.u32 %v11164_v46, %v8912_v50  ;;  %5867 = vmatpush.bf16.msra.mxu1 %v8657_v49  ;;  %5849 = vmatmul.bf16.vlgmr.msrb.gmra.mxu3 %v11782_v42 }
 0x2ef   :  { %v11228_v45 = vld [vmem:[#allocation2 + $0xfec] sm:$0xf0] }
 0x2f0   :  { %v8368_v52 = vld [vmem:[#allocation2 + $0x990] sm:$0xf]  ;;  %v9169_v55 = vor.u32 %v11228_v45, %v9168_v41  ;;  %5880 = vmatpush.bf16.msra.mxu2 %v8913_v51  ;;  %v5617_v45 = vadd.f32 %v5616_v6, %v5604_v37 }
 0x2f1   :  { %v11028_v53 = vld [vmem:[#allocation2 + $0x9ac] sm:$0xf0] }
 0x2f2   :  { %v8624_v54 = vld [vmem:[#allocation2 + $0xb90] sm:$0xf]  ;;  %v8369_v61 = vor.u32 %v11028_v53, %v8368_v52  ;;  %5893 = vmatpush.bf16.msra.mxu3 %v9169_v55 }
 0x2f3   :  { %v11092_v56 = vld [vmem:[#allocation2 + $0xbac] sm:$0xf0] }
 0x2f4   :  { %v8880_v63 = vld [vmem:[#allocation2 + $0xd90] sm:$0xf]  ;;  %v8625_v62 = vor.u32 %v11092_v56, %v8624_v54  ;;  %5855 = vmatpush.bf16.msra.mxu0 %v8369_v61 }
 0x2f5   :  { %v11156_v57 = vld [vmem:[#allocation2 + $0xdac] sm:$0xf0] }
 0x2f6   :  { %v9136_v58 = vld [vmem:[#allocation2 + $0xf90] sm:$0xf]  ;;  %v8881_v0 = vor.u32 %v11156_v57, %v8880_v63  ;;  %5868 = vmatpush.bf16.msra.mxu1 %v8625_v62 }
 0x2f7   :  { %v11220_v59 = vld [vmem:[#allocation2 + $0xfac] sm:$0xf0] }
 0x2f8   :  { %v8336_v1 = vld [vmem:[#allocation2 + $0x950] sm:$0xf]  ;;  %v9137_v16 = vor.u32 %v11220_v59, %v9136_v58  ;;  %5881 = vmatpush.bf16.msra.mxu2 %v8881_v0  ;;  %v5629_v58 = vpop.f32.mrf.mxu2 }
 0x2f9   :  { %v11020_v3 = vld [vmem:[#allocation2 + $0x96c] sm:$0xf0]  ;;  %v11898_v0 = vadd.f32 %v5629_v58, %v5617_v45 }
 0x2fa   :  { %v8592_v4 = vld [vmem:[#allocation2 + $0xb50] sm:$0xf]  ;;  %v8337_v11 = vor.u32 %v11020_v3, %v8336_v1  ;;  %5894 = vmatpush.bf16.msra.mxu3 %v9137_v16  ;;  %v5605_v16 = vpop.f32.mrf.mxu0 }
 0x2fb   :  { %v11084_v5 = vld [vmem:[#allocation2 + $0xb6c] sm:$0xf0] }
 0x2fc   :  { %v8848_v7 = vld [vmem:[#allocation2 + $0xd50] sm:$0xf]  ;;  %v8593_v13 = vor.u32 %v11084_v5, %v8592_v4  ;;  %5856 = vmatpush.bf16.msra.mxu0 %v8337_v11  ;;  %v11900_v4 = vpop.f32.mrf.mxu3 }
 0x2fd   :  { %v11148_v8 = vld [vmem:[#allocation2 + $0xd6c] sm:$0xf0] }
 0x2fe   :  { %v9104_v9 = vld [vmem:[#allocation2 + $0xf50] sm:$0xf]  ;;  %v8849_v14 = vor.u32 %v11148_v8, %v8848_v7  ;;  %5869 = vmatpush.bf16.msra.mxu1 %v8593_v13  ;;  %v5618_v7 = vpop.f32.mrf.mxu1 }
 0x2ff   :  { %v11212_v10 = vld [vmem:[#allocation2 + $0xf6c] sm:$0xf0] }
 0x300   :  { %v8304_v18 = vld [vmem:[#allocation2 + $0x910] sm:$0xf]  ;;  %v9105_v21 = vor.u32 %v11212_v10, %v9104_v9  ;;  %5882 = vmatpush.bf16.msra.mxu2 %v8849_v14 }
 0x301   :  { %v11012_v17 = vld [vmem:[#allocation2 + $0x92c] sm:$0xf0] }
 0x302   :  { %v8560_v20 = vld [vmem:[#allocation2 + $0xb10] sm:$0xf]  ;;  %v8305_v30 = vor.u32 %v11012_v17, %v8304_v18  ;;  %5895 = vmatpush.bf16.msra.mxu3 %v9105_v21 }
 0x303   :  { %v11076_v31 = vld [vmem:[#allocation2 + $0xb2c] sm:$0xf0] }
 0x304   :  { %v8816_v22 = vld [vmem:[#allocation2 + $0xd10] sm:$0xf]  ;;  %v8561_v32 = vor.u32 %v11076_v31, %v8560_v20  ;;  %5857 = vmatpush.bf16.msra.mxu0 %v8305_v30 }
 0x305   :  { %v11140_v25 = vld [vmem:[#allocation2 + $0xd2c] sm:$0xf0] }
 0x306   :  { %v9072_v28 = vld [vmem:[#allocation2 + $0xf10] sm:$0xf]  ;;  %v8817_v50 = vor.u32 %v11140_v25, %v8816_v22  ;;  %5870 = vmatpush.bf16.msra.mxu1 %v8561_v32 }
 0x307   :  { %v11204_v29 = vld [vmem:[#allocation2 + $0xf2c] sm:$0xf0] }
 0x308   :  { %v8272_v46 = vld [vmem:[#allocation2 + $0x8d0] sm:$0xf]  ;;  %v9073_v41 = vor.u32 %v11204_v29, %v9072_v28  ;;  %5883 = vmatpush.bf16.msra.mxu2 %v8817_v50 }
 0x309   :  { %v11004_v33 = vld [vmem:[#allocation2 + $0x8ec] sm:$0xf0] }
 0x30a   :  { %v8528_v38 = vld [vmem:[#allocation2 + $0xad0] sm:$0xf]  ;;  %v8273_v53 = vor.u32 %v11004_v33, %v8272_v46  ;;  %5896 = vmatpush.bf16.msra.mxu3 %v9073_v41 }
 0x30b   :  { %v11068_v47 = vld [vmem:[#allocation2 + $0xaec] sm:$0xf0] }
 0x30c   :  { %v8784_v48 = vld [vmem:[#allocation2 + $0xcd0] sm:$0xf]  ;;  %v8529_v2 = vor.u32 %v11068_v47, %v8528_v38  ;;  %5858 = vmatpush.bf16.msra.mxu0 %v8273_v53  ;;  %v5631_v38 = vpop.f32.mrf.mxu2 }
 0x30d   :  { %v11132_v49 = vld [vmem:[#allocation2 + $0xcec] sm:$0xf0] }
 0x30e   :  { %v9040_v51 = vld [vmem:[#allocation2 + $0xed0] sm:$0xf]  ;;  %v8785_v54 = vor.u32 %v11132_v49, %v8784_v48  ;;  %5871 = vmatpush.bf16.msra.mxu1 %v8529_v2  ;;  %v5644_v48 = vpop.f32.mrf.mxu3 }
 0x30f   :  { %v11196_v52 = vld [vmem:[#allocation2 + $0xeec] sm:$0xf0] }
 0x310   :  { %v8240_v55 = vld [vmem:[#allocation2 + $0x890] sm:$0xf]  ;;  %v9041_v57 = vor.u32 %v11196_v52, %v9040_v51  ;;  %5884 = vmatpush.bf16.msra.mxu2 %v8785_v54 }
 0x311   :  { %v10996_v56 = vld [vmem:[#allocation2 + $0x8ac] sm:$0xf0] }
 0x312   :  { %v8496_v63 = vld [vmem:[#allocation2 + $0xa90] sm:$0xf]  ;;  %v8241_v5 = vor.u32 %v10996_v56, %v8240_v55  ;;  %5897 = vmatpush.bf16.msra.mxu3 %v9041_v57 }
 0x313   :  { %v11060_v59 = vld [vmem:[#allocation2 + $0xaac] sm:$0xf0] }
 0x314   :  { %v8752_v61 = vld [vmem:[#allocation2 + $0xc90] sm:$0xf]  ;;  %v8497_v8 = vor.u32 %v11060_v59, %v8496_v63  ;;  %5859 = vmatpush.bf16.msra.mxu0 %v8241_v5 }
 0x315   :  { %v11124_v62 = vld [vmem:[#allocation2 + $0xcac] sm:$0xf0] }
 0x316   :  { %v9008_v1 = vld [vmem:[#allocation2 + $0xe90] sm:$0xf]  ;;  %v8753_v9 = vor.u32 %v11124_v62, %v8752_v61  ;;  %5872 = vmatpush.bf16.msra.mxu1 %v8497_v8 }
 0x317   :  { %v11188_v3 = vld [vmem:[#allocation2 + $0xeac] sm:$0xf0] }
 0x318   :  { %v8208_v10 = vld [vmem:[#allocation2 + $0x850] sm:$0xf]  ;;  %v9009_v14 = vor.u32 %v11188_v3, %v9008_v1  ;;  %5885 = vmatpush.bf16.msra.mxu2 %v8753_v9 }
 0x319   :  { %v10988_v11 = vld [vmem:[#allocation2 + $0x86c] sm:$0xf0] }
 0x31a   :  { %v8464_v13 = vld [vmem:[#allocation2 + $0xa50] sm:$0xf]  ;;  %v8209_v22 = vor.u32 %v10988_v11, %v8208_v10  ;;  %5898 = vmatpush.bf16.msra.mxu3 %v9009_v14 }
 0x31b   :  { %v11052_v18 = vld [vmem:[#allocation2 + $0xa6c] sm:$0xf0] }
 0x31c   :  { %v8720_v17 = vld [vmem:[#allocation2 + $0xc50] sm:$0xf]  ;;  %v8465_v28 = vor.u32 %v11052_v18, %v8464_v13  ;;  %5860 = vmatpush.bf16.msra.mxu0 %v8209_v22 }
 0x31d   :  { %v11116_v20 = vld [vmem:[#allocation2 + $0xc6c] sm:$0xf0] }
 0x31e   :  { %v8976_v21 = vld [vmem:[#allocation2 + $0xe50] sm:$0xf]  ;;  %v8721_v29 = vor.u32 %v11116_v20, %v8720_v17  ;;  %5873 = vmatpush.bf16.msra.mxu1 %v8465_v28  ;;  %v11902_v20 = vld [vmem:[#allocation5] sm:$0xff] }
 0x31f   :  { %v11180_v31 = vld [vmem:[#allocation2 + $0xe6c] sm:$0xf0] }
 0x320   :  { %v8176_v25 = vld [vmem:[#allocation2 + $0x810] sm:$0xf]  ;;  %v8977_v32 = vor.u32 %v11180_v31, %v8976_v21  ;;  %5886 = vmatpush.bf16.msra.mxu2 %v8721_v29  ;;  %v953_v21 = vperm.slane %v11902_v20, 3 }
 0x321   :  { %v10980_v26 = vld [vmem:[#allocation2 + $0x82c] sm:$0xf0] }
 0x322   :  { %v8432_v37 = vld [vmem:[#allocation2 + $0xa10] sm:$0xf]  ;;  %v8177_v49 = vor.u32 %v10980_v26, %v8176_v25  ;;  %5899 = vmatpush.bf16.msra.mxu3 %v8977_v32  ;;  %v5643_v32 = vadd.f32 %v11900_v4, %v953_v21 }
 0x323   :  { %v11044_v30 = vld [vmem:[#allocation2 + $0xa2c] sm:$0xf0] }
 0x324   :  { %v8688_v6 = vld [vmem:[#allocation2 + $0xc10] sm:$0xf]  ;;  %v8433_v2 = vor.u32 %v11044_v30, %v8432_v37  ;;  %5861 = vmatpush.bf16.msra.mxu0 %v8177_v49 }
 0x325   :  { %v11108_v50 = vld [vmem:[#allocation2 + $0xc2c] sm:$0xf0] }
 0x326   :  { %v8944_v46 = vld [vmem:[#allocation2 + $0xe10] sm:$0xf]  ;;  %v8689_v54 = vor.u32 %v11108_v50, %v8688_v6  ;;  %5874 = vmatpush.bf16.msra.mxu1 %v8433_v2 }
 0x327   :  { %v11172_v33 = vld [vmem:[#allocation2 + $0xe2c] sm:$0xf0]  ;;  %5862 = vmatmul.bf16.vlgmr.msra.gmra.mxu0 %v11798_v39 }
 0x328   :  { %v9424_v41 = vld [vmem:[#allocation2 + $0x11d0] sm:$0xf]  ;;  %v8945_v63 = vor.u32 %v11172_v33, %v8944_v46  ;;  %5887 = vmatpush.bf16.msra.mxu2 %v8689_v54 }
 0x329   :  { %v11292_v45 = vld [vmem:[#allocation2 + $0x11ec] sm:$0xf0]  ;;  %5875 = vmatmul.bf16.vlgmr.msra.gmra.mxu1 %v11802_v44 }
 0x32a   :  { %v9680_v47 = vld [vmem:[#allocation2 + $0x13d0] sm:$0xf]  ;;  %v9425_v57 = vor.u32 %v11292_v45, %v9424_v41  ;;  %5900 = vmatpush.bf16.msra.mxu3 %v8945_v63  ;;  %v5668_v63 = vpop.f32.mrf.mxu1 }
 0x32b   :  { %v11356_v51 = vld [vmem:[#allocation2 + $0x13ec] sm:$0xf0]  ;;  %5888 = vmatmul.bf16.vlgmr.msra.gmra.mxu2 %v11796_v34 }
 0x32c   :  { %v9936_v52 = vld [vmem:[#allocation2 + $0x15d0] sm:$0xf]  ;;  %v9681_v58 = vor.u32 %v11356_v51, %v9680_v47  ;;  %5906 = vmatpush.bf16.msrb.mxu0 %v9425_v57 }
 0x32d   :  { %v11420_v53 = vld [vmem:[#allocation2 + $0x15ec] sm:$0xf0]  ;;  %5901 = vmatmul.bf16.vlgmr.msra.gmra.mxu3 %v11800_v40 }
 0x32e   :  { %v10192_v55 = vld [vmem:[#allocation2 + $0x17d0] sm:$0xf]  ;;  %v9937_v59 = vor.u32 %v11420_v53, %v9936_v52  ;;  %5919 = vmatpush.bf16.msrb.mxu1 %v9681_v58  ;;  %v5655_v52 = vpop.f32.mrf.mxu0 }
 0x32f   :  { %v11484_v56 = vld [vmem:[#allocation2 + $0x17ec] sm:$0xf0] }
 0x330   :  { %v9392_v61 = vld [vmem:[#allocation2 + $0x1190] sm:$0xf]  ;;  %v10193_v3 = vor.u32 %v11484_v56, %v10192_v55  ;;  %5932 = vmatpush.bf16.msrb.mxu2 %v9937_v59  ;;  %v5656_v56 = vadd.f32 %v5655_v52, %v5643_v32 }
 0x331   :  { %v11284_v62 = vld [vmem:[#allocation2 + $0x11ac] sm:$0xf0] }
 0x332   :  { %v9648_v1 = vld [vmem:[#allocation2 + $0x1390] sm:$0xf]  ;;  %v9393_v10 = vor.u32 %v11284_v62, %v9392_v61  ;;  %5945 = vmatpush.bf16.msrb.mxu3 %v10193_v3  ;;  %v5669_v3 = vadd.f32 %v5668_v63, %v5656_v56 }
 0x333   :  { %v11348_v16 = vld [vmem:[#allocation2 + $0x13ac] sm:$0xf0] }
 0x334   :  { %v9904_v5 = vld [vmem:[#allocation2 + $0x1590] sm:$0xf]  ;;  %v9649_v13 = vor.u32 %v11348_v16, %v9648_v1  ;;  %5907 = vmatpush.bf16.msrb.mxu0 %v9393_v10 }
 0x335   :  { %v11412_v7 = vld [vmem:[#allocation2 + $0x15ac] sm:$0xf0] }
 0x336   :  { %v10160_v8 = vld [vmem:[#allocation2 + $0x1790] sm:$0xf]  ;;  %v9905_v14 = vor.u32 %v11412_v7, %v9904_v5  ;;  %5920 = vmatpush.bf16.msrb.mxu1 %v9649_v13 }
 0x337   :  { %v11476_v9 = vld [vmem:[#allocation2 + $0x17ac] sm:$0xf0] }
 0x338   :  { %v9360_v11 = vld [vmem:[#allocation2 + $0x1150] sm:$0xf]  ;;  %v10161_v31 = vor.u32 %v11476_v9, %v10160_v8  ;;  %5933 = vmatpush.bf16.msrb.mxu2 %v9905_v14 }
 0x339   :  { %v11276_v18 = vld [vmem:[#allocation2 + $0x116c] sm:$0xf0] }
 0x33a   :  { %v9616_v17 = vld [vmem:[#allocation2 + $0x1350] sm:$0xf]  ;;  %v9361_v37 = vor.u32 %v11276_v18, %v9360_v11  ;;  %5946 = vmatpush.bf16.msrb.mxu3 %v10161_v31  ;;  %v5681_v11 = vpop.f32.mrf.mxu2  ;;  %v5694_v31 = vpop.f32.mrf.mxu3 }
 0x33b   :  { %v11340_v22 = vld [vmem:[#allocation2 + $0x136c] sm:$0xf0]  ;;  %v5682_v21 = vadd.f32 %v5681_v11, %v5669_v3  ;;  %v10776_v3 = vld [vmem:[#allocation2 + $0x1d4] sm:$0xf] }
 0x33c   :  { %v9872_v25 = vld [vmem:[#allocation2 + $0x1550] sm:$0xf]  ;;  %v9617_v30 = vor.u32 %v11340_v22, %v9616_v17  ;;  %5908 = vmatpush.bf16.msrb.mxu0 %v9361_v37  ;;  %v10904_v11 = vld [vmem:[#allocation2 + $0x5d4] sm:$0xf] }
 0x33d   :  { %v11404_v26 = vld [vmem:[#allocation2 + $0x156c] sm:$0xf0] }
 0x33e   :  { %v10128_v28 = vld [vmem:[#allocation2 + $0x1750] sm:$0xf]  ;;  %v9873_v6 = vor.u32 %v11404_v26, %v9872_v25  ;;  %5921 = vmatpush.bf16.msrb.mxu1 %v9617_v30 }
 0x33f   :  { %v11468_v29 = vld [vmem:[#allocation2 + $0x176c] sm:$0xf0] }
 0x340   :  { %v9328_v50 = vld [vmem:[#allocation2 + $0x1110] sm:$0xf]  ;;  %v10129_v38 = vor.u32 %v11468_v29, %v10128_v28  ;;  %5934 = vmatpush.bf16.msrb.mxu2 %v9873_v6  ;;  %v11910_v28 = vadd.f32 %v5694_v31, %v5682_v21  ;;  %v5657_v29 = vpop.f32.mrf.mxu0 }
 0x341   :  { %v11268_v46 = vld [vmem:[#allocation2 + $0x112c] sm:$0xf0]  ;;  %v7346_v29 = vld [vmem:[#allocation2 + $0x1b0] sm:$0xf0] }
 0x342   :  { %v9584_v33 = vld [vmem:[#allocation2 + $0x1310] sm:$0xf]  ;;  %v9329_v51 = vor.u32 %v11268_v46, %v9328_v50  ;;  %5947 = vmatpush.bf16.msrb.mxu3 %v10129_v38  ;;  %v5670_v46 = vpop.f32.mrf.mxu1  ;;  %v5683_v56 = vpop.f32.mrf.mxu2 }
 0x343   :  { %v11332_v41 = vld [vmem:[#allocation2 + $0x132c] sm:$0xf0] }
 0x344   :  { %v9840_v45 = vld [vmem:[#allocation2 + $0x1510] sm:$0xf]  ;;  %v9585_v53 = vor.u32 %v11332_v41, %v9584_v33  ;;  %5909 = vmatpush.bf16.msrb.mxu0 %v9329_v51 }
 0x345   :  { %v11396_v47 = vld [vmem:[#allocation2 + $0x152c] sm:$0xf0] }
 0x346   :  { %v10096_v48 = vld [vmem:[#allocation2 + $0x1710] sm:$0xf]  ;;  %v9841_v2 = vor.u32 %v11396_v47, %v9840_v45  ;;  %5922 = vmatpush.bf16.msrb.mxu1 %v9585_v53 }
 0x347   :  { %v11460_v49 = vld [vmem:[#allocation2 + $0x172c] sm:$0xf0] }
 0x348   :  { %v9296_v54 = vld [vmem:[#allocation2 + $0x10d0] sm:$0xf]  ;;  %v10097_v57 = vor.u32 %v11460_v49, %v10096_v48  ;;  %5935 = vmatpush.bf16.msrb.mxu2 %v9841_v2 }
 0x349   :  { %v11260_v55 = vld [vmem:[#allocation2 + $0x10ec] sm:$0xf0] }
 0x34a   :  { %v9552_v4 = vld [vmem:[#allocation2 + $0x12d0] sm:$0xf]  ;;  %v9297_v16 = vor.u32 %v11260_v55, %v9296_v54  ;;  %5948 = vmatpush.bf16.msrb.mxu3 %v10097_v57 }
 0x34b   :  { %v11324_v58 = vld [vmem:[#allocation2 + $0x12ec] sm:$0xf0] }
 0x34c   :  { %v9808_v59 = vld [vmem:[#allocation2 + $0x14d0] sm:$0xf]  ;;  %v9553_v5 = vor.u32 %v11324_v58, %v9552_v4  ;;  %5910 = vmatpush.bf16.msrb.mxu0 %v9297_v16 }
 0x34d   :  { %v11388_v61 = vld [vmem:[#allocation2 + $0x14ec] sm:$0xf0] }
 0x34e   :  { %v10064_v62 = vld [vmem:[#allocation2 + $0x16d0] sm:$0xf]  ;;  %v9809_v7 = vor.u32 %v11388_v61, %v9808_v59  ;;  %5923 = vmatpush.bf16.msrb.mxu1 %v9553_v5  ;;  %v5696_v61 = vpop.f32.mrf.mxu3  ;;  %v7378_v5 = vld [vmem:[#allocation2 + $0x1f0] sm:$0xf0] }
 0x34f   :  { %v11452_v1 = vld [vmem:[#allocation2 + $0x16ec] sm:$0xf0]  ;;  %v7538_v61 = vld [vmem:[#allocation2 + $0x330] sm:$0xf0] }
 0x350   :  { %v9264_v8 = vld [vmem:[#allocation2 + $0x1090] sm:$0xf]  ;;  %v10065_v13 = vor.u32 %v11452_v1, %v10064_v62  ;;  %5936 = vmatpush.bf16.msrb.mxu2 %v9809_v7  ;;  %v10840_v7 = vld [vmem:[#allocation2 + $0x3d4] sm:$0xf] }
 0x351   :  { %v11252_v9 = vld [vmem:[#allocation2 + $0x10ac] sm:$0xf0] }
 0x352   :  { %v9520_v10 = vld [vmem:[#allocation2 + $0x1290] sm:$0xf]  ;;  %v9265_v26 = vor.u32 %v11252_v9, %v9264_v8  ;;  %5949 = vmatpush.bf16.msrb.mxu3 %v10065_v13  ;;  %v7634_v8 = vld [vmem:[#allocation2 + $0x3f0] sm:$0xf0] }
 0x353   :  { %v11316_v14 = vld [vmem:[#allocation2 + $0x12ac] sm:$0xf0]  ;;  %v7890_v13 = vld [vmem:[#allocation2 + $0x5f0] sm:$0xf0]  ;;  %v7637_v21 = vor.u32 %v10840_v7, %v7634_v8  ;;  %v5720_v7 = vpop.f32.mrf.mxu1 }
 0x354   :  { %v9776_v18 = vld [vmem:[#allocation2 + $0x1490] sm:$0xf]  ;;  %v9521_v37 = vor.u32 %v11316_v14, %v9520_v10  ;;  %5911 = vmatpush.bf16.msrb.mxu0 %v9265_v26  ;;  %v7893_v26 = vor.u32 %v10904_v11, %v7890_v13  ;;  %v10744_v13 = vld [vmem:[#allocation2 + $0xd4] sm:$0xf] }
 0x355   :  { %v11380_v17 = vld [vmem:[#allocation2 + $0x14ac] sm:$0xf0] }
 0x356   :  { %v10032_v22 = vld [vmem:[#allocation2 + $0x1690] sm:$0xf]  ;;  %v9777_v30 = vor.u32 %v11380_v17, %v9776_v18  ;;  %5924 = vmatpush.bf16.msrb.mxu1 %v9521_v37  ;;  %v7381_v17 = vor.u32 %v10776_v3, %v7378_v5  ;;  %v10832_v37 = vld [vmem:[#allocation2 + $0x394] sm:$0xf] }
 0x357   :  { %v11444_v25 = vld [vmem:[#allocation2 + $0x16ac] sm:$0xf0]  ;;  %v7794_v3 = vld [vmem:[#allocation2 + $0x530] sm:$0xf0] }
 0x358   :  { %v9232_v6 = vld [vmem:[#allocation2 + $0x1050] sm:$0xf]  ;;  %v10033_v33 = vor.u32 %v11444_v25, %v10032_v22  ;;  %5937 = vmatpush.bf16.msrb.mxu2 %v9777_v30  ;;  %v10768_v25 = vld [vmem:[#allocation2 + $0x194] sm:$0xf] }
 0x359   :  { %v11244_v32 = vld [vmem:[#allocation2 + $0x106c] sm:$0xf0]  ;;  %v7602_v30 = vld [vmem:[#allocation2 + $0x3b0] sm:$0xf0]  ;;  %v7349_v46 = vor.u32 %v10768_v25, %v7346_v29 }
 0x35a   :  { %v9488_v50 = vld [vmem:[#allocation2 + $0x1250] sm:$0xf]  ;;  %v9233_v49 = vor.u32 %v11244_v32, %v9232_v6  ;;  %5950 = vmatpush.bf16.msrb.mxu3 %v10033_v33  ;;  %v10896_v6 = vld [vmem:[#allocation2 + $0x594] sm:$0xf]  ;;  %v7605_v33 = vor.u32 %v10832_v37, %v7602_v30 }
 0x35b   :  { %v11308_v38 = vld [vmem:[#allocation2 + $0x126c] sm:$0xf0]  ;;  %v7858_v32 = vld [vmem:[#allocation2 + $0x5b0] sm:$0xf0] }
 0x35c   :  { %v9744_v41 = vld [vmem:[#allocation2 + $0x1450] sm:$0xf]  ;;  %v9489_v53 = vor.u32 %v11308_v38, %v9488_v50  ;;  %5912 = vmatpush.bf16.msrb.mxu0 %v9233_v49  ;;  %v10824_v49 = vld [vmem:[#allocation2 + $0x354] sm:$0xf] }
 0x35d   :  { %v11372_v45 = vld [vmem:[#allocation2 + $0x146c] sm:$0xf0]  ;;  %v7762_v25 = vld [vmem:[#allocation2 + $0x4f0] sm:$0xf0] }
 0x35e   :  { %v10000_v47 = vld [vmem:[#allocation2 + $0x1650] sm:$0xf]  ;;  %v9745_v2 = vor.u32 %v11372_v45, %v9744_v41  ;;  %5925 = vmatpush.bf16.msrb.mxu1 %v9489_v53  ;;  %v10760_v45 = vld [vmem:[#allocation2 + $0x154] sm:$0xf] }
 0x35f   :  { %v11436_v48 = vld [vmem:[#allocation2 + $0x166c] sm:$0xf0]  ;;  %v7826_v53 = vld [vmem:[#allocation2 + $0x570] sm:$0xf0] }
 0x360   :  { %v9200_v51 = vld [vmem:[#allocation2 + $0x1010] sm:$0xf]  ;;  %v10001_v63 = vor.u32 %v11436_v48, %v10000_v47  ;;  %5938 = vmatpush.bf16.msrb.mxu2 %v9745_v2  ;;  %v7861_v47 = vor.u32 %v10896_v6, %v7858_v32  ;;  %v7314_v48 = vld [vmem:[#allocation2 + $0x170] sm:$0xf0] }
 0x361   :  { %v11236_v52 = vld [vmem:[#allocation2 + $0x102c] sm:$0xf0]  ;;  %v10736_v6 = vld [vmem:[#allocation2 + $0x94] sm:$0xf] }
 0x362   :  { %v9456_v54 = vld [vmem:[#allocation2 + $0x1210] sm:$0xf]  ;;  %v9201_v16 = vor.u32 %v11236_v52, %v9200_v51  ;;  %5951 = vmatpush.bf16.msrb.mxu3 %v10001_v63  ;;  %v7570_v51 = vld [vmem:[#allocation2 + $0x370] sm:$0xf0] }
 0x363   :  { %v11300_v55 = vld [vmem:[#allocation2 + $0x122c] sm:$0xf0]  ;;  %v10888_v52 = vld [vmem:[#allocation2 + $0x554] sm:$0xf] }
 0x364   :  { %v9712_v4 = vld [vmem:[#allocation2 + $0x1410] sm:$0xf]  ;;  %v9457_v9 = vor.u32 %v11300_v55, %v9456_v54  ;;  %5913 = vmatpush.bf16.msrb.mxu0 %v9201_v16  ;;  %v7317_v54 = vor.u32 %v10760_v45, %v7314_v48  ;;  %v7573_v55 = vor.u32 %v10824_v49, %v7570_v51  ;;  %v10752_v63 = vld [vmem:[#allocation2 + $0x114] sm:$0xf]  ;;  %v5746_v45 = vpop.f32.mrf.mxu3 }
 0x365   :  { %v11364_v57 = vld [vmem:[#allocation2 + $0x142c] sm:$0xf0]  ;;  %v7730_v48 = vld [vmem:[#allocation2 + $0x4b0] sm:$0xf0] }
 0x366   :  { %v9968_v58 = vld [vmem:[#allocation2 + $0x1610] sm:$0xf]  ;;  %v9713_v10 = vor.u32 %v11364_v57, %v9712_v4  ;;  %5926 = vmatpush.bf16.msrb.mxu1 %v9457_v9  ;;  %v7829_v57 = vor.u32 %v10888_v52, %v7826_v53  ;;  %v5722_v52 = vpop.f32.mrf.mxu1 }
 0x367   :  { %v11428_v59 = vld [vmem:[#allocation2 + $0x162c] sm:$0xf0]  ;;  %5914 = vmatmul.bf16.vlgmr.msrb.gmra.mxu0 %v11808_v19  ;;  %v11088_v52 = vld [vmem:[#allocation2 + $0xb94] sm:$0xf] }
 0x368   :  { %v10448_v62 = vld [vmem:[#allocation2 + $0x19d0] sm:$0xf]  ;;  %v9969_v14 = vor.u32 %v11428_v59, %v9968_v58  ;;  %5939 = vmatpush.bf16.msrb.mxu2 %v9713_v10  ;;  %v7282_v58 = vld [vmem:[#allocation2 + $0x130] sm:$0xf0] }
 0x369   :  { %v11548_v1 = vld [vmem:[#allocation2 + $0x19ec] sm:$0xf0]  ;;  %5927 = vmatmul.bf16.vlgmr.msrb.gmra.mxu1 %v11812_v24  ;;  %v10816_v59 = vld [vmem:[#allocation2 + $0x314] sm:$0xf]  ;;  %v7285_v8 = vor.u32 %v10752_v63, %v7282_v58 }
 0x36a   :  { %v10449_v18 = vor.u32 %v11548_v1, %v10448_v62  ;;  %v10416_v31 = vld [vmem:[#allocation2 + $0x1990] sm:$0xf]  ;;  %5952 = vmatpush.bf16.msrb.mxu3 %v9969_v14  ;;  %5971 = vmatpush.bf16.msra.mxu1 %v7381_v17  ;;  %v5707_v62 = vpop.f32.mrf.mxu0  ;;  %v10880_v1 = vld [vmem:[#allocation2 + $0x514] sm:$0xf]  ;;  %v7541_v9 = vor.u32 %v10816_v59, %v7538_v61 }
 0x36b   :  { %v11540_v22 = vld [vmem:[#allocation2 + $0x19ac] sm:$0xf0]  ;;  %5940 = vmatmul.bf16.vlgmr.msrb.gmra.mxu2 %v11810_v23  ;;  %v5708_v16 = vadd.f32 %v5707_v62, %v11910_v28  ;;  %v7797_v14 = vor.u32 %v10880_v1, %v7794_v3  ;;  %v7250_v17 = vld [vmem:[#allocation2 + $0xf0] sm:$0xf0] }
 0x36c   :  { %5958 = vmatpush.bf16.msra.mxu0 %v10449_v18  ;;  %v10417_v50 = vor.u32 %v11540_v22, %v10416_v31  ;;  %5984 = vmatpush.bf16.msra.mxu2 %v7637_v21  ;;  %v10384_v38 = vld [vmem:[#allocation2 + $0x1950] sm:$0xf]  ;;  %v10808_v21 = vld [vmem:[#allocation2 + $0x2d4] sm:$0xf]  ;;  %v7253_v28 = vor.u32 %v10744_v13, %v7250_v17 }
 0x36d   :  { %v11532_v41 = vld [vmem:[#allocation2 + $0x196c] sm:$0xf0]  ;;  %5953 = vmatmul.bf16.vlgmr.msrb.gmra.mxu3 %v11814_v27  ;;  %v5721_v18 = vadd.f32 %v5720_v7, %v5708_v16  ;;  %v7506_v31 = vld [vmem:[#allocation2 + $0x2f0] sm:$0xf0] }
 0x36e   :  { %5997 = vmatpush.bf16.msra.mxu3 %v7893_v26  ;;  %v10385_v2 = vor.u32 %v11532_v41, %v10384_v38  ;;  %5972 = vmatpush.bf16.msra.mxu1 %v7349_v46  ;;  %v10352_v4 = vld [vmem:[#allocation2 + $0x1910] sm:$0xf]  ;;  %v10872_v22 = vld [vmem:[#allocation2 + $0x4d4] sm:$0xf]  ;;  %v7509_v29 = vor.u32 %v10808_v21, %v7506_v31 }
 0x36f   :  { %v11524_v56 = vld [vmem:[#allocation2 + $0x192c] sm:$0xf0]  ;;  %v7765_v32 = vor.u32 %v10872_v22, %v7762_v25  ;;  %v7218_v46 = vld [vmem:[#allocation2 + $0xb0] sm:$0xf0]  ;;  %v5748_v25 = vpop.f32.mrf.mxu3 }
 0x370   :  { %5959 = vmatpush.bf16.msra.mxu0 %v10417_v50  ;;  %5985 = vmatpush.bf16.msra.mxu2 %v7605_v33  ;;  %v10353_v5 = vor.u32 %v11524_v56, %v10352_v4  ;;  %v10320_v10 = vld [vmem:[#allocation2 + $0x18d0] sm:$0xf]  ;;  %v5733_v50 = vpop.f32.mrf.mxu2  ;;  %v10800_v33 = vld [vmem:[#allocation2 + $0x294] sm:$0xf] }
 0x371   :  { %v11516_v11 = vld [vmem:[#allocation2 + $0x18ec] sm:$0xf0]  ;;  %v7474_v38 = vld [vmem:[#allocation2 + $0x2b0] sm:$0xf0]  ;;  %v5734_v41 = vadd.f32 %v5733_v50, %v5721_v18 }
 0x372   :  { %5998 = vmatpush.bf16.msra.mxu3 %v7861_v47  ;;  %5973 = vmatpush.bf16.msra.mxu1 %v7317_v54  ;;  %v10321_v26 = vor.u32 %v11516_v11, %v10320_v10  ;;  %v10288_v37 = vld [vmem:[#allocation2 + $0x1890] sm:$0xf]  ;;  %v10864_v47 = vld [vmem:[#allocation2 + $0x494] sm:$0xf]  ;;  %v5709_v49 = vpop.f32.mrf.mxu0  ;;  %v7477_v54 = vor.u32 %v10800_v33, %v7474_v38 }
 0x373   :  { %v11508_v30 = vld [vmem:[#allocation2 + $0x18ac] sm:$0xf0]  ;;  %v11917_v53 = vadd.f32 %v5746_v45, %v5734_v41  ;;  %v10728_v56 = vld [vmem:[#allocation2 + $0x54] sm:$0xf]  ;;  %v7733_v63 = vor.u32 %v10864_v47, %v7730_v48 }
 0x374   :  { %5960 = vmatpush.bf16.msra.mxu0 %v10385_v2  ;;  %5986 = vmatpush.bf16.msra.mxu2 %v7573_v55  ;;  %v10289_v51 = vor.u32 %v11508_v30, %v10288_v37  ;;  %v7221_v2 = vor.u32 %v10736_v6, %v7218_v46  ;;  %v10256_v55 = vld [vmem:[#allocation2 + $0x1850] sm:$0xf]  ;;  %v10792_v58 = vld [vmem:[#allocation2 + $0x254] sm:$0xf] }
 0x375   :  { %v11500_v4 = vld [vmem:[#allocation2 + $0x186c] sm:$0xf0]  ;;  %v7442_v59 = vld [vmem:[#allocation2 + $0x270] sm:$0xf0] }
 0x376   :  { %5999 = vmatpush.bf16.msra.mxu3 %v7829_v57  ;;  %5974 = vmatpush.bf16.msra.mxu1 %v7285_v8  ;;  %v7186_v57 = vld [vmem:[#allocation2 + $0x70] sm:$0xf0]  ;;  %v10257_v1 = vor.u32 %v11500_v4, %v10256_v55  ;;  %v10224_v3 = vld [vmem:[#allocation2 + $0x1810] sm:$0xf]  ;;  %v7445_v7 = vor.u32 %v10792_v58, %v7442_v59 }
 0x377   :  { %v10856_v61 = vld [vmem:[#allocation2 + $0x454] sm:$0xf]  ;;  %v11492_v16 = vld [vmem:[#allocation2 + $0x182c] sm:$0xf0] }
 0x378   :  { %5961 = vmatpush.bf16.msra.mxu0 %v10353_v5  ;;  %5987 = vmatpush.bf16.msra.mxu2 %v7541_v9  ;;  %v7698_v62 = vld [vmem:[#allocation2 + $0x470] sm:$0xf0]  ;;  %v7189_v5 = vor.u32 %v10728_v56, %v7186_v57  ;;  %v5735_v17 = vpop.f32.mrf.mxu2 }
 0x379   :  { %v10720_v8 = vld [vmem:[#allocation2 + $0x14] sm:$0xf]  ;;  %v7701_v11 = vor.u32 %v10856_v61, %v7698_v62 }
 0x37a   :  { %6000 = vmatpush.bf16.msra.mxu3 %v7797_v14  ;;  %5975 = vmatpush.bf16.msra.mxu1 %v7253_v28  ;;  %v7154_v9 = vld [vmem:[#allocation2 + $0x30] sm:$0xf0] }
 0x37b   :  { %v10784_v10 = vld [vmem:[#allocation2 + $0x214] sm:$0xf]  ;;  %v7157_v30 = vor.u32 %v10720_v8, %v7154_v9 }
 0x37c   :  { %5962 = vmatpush.bf16.msra.mxu0 %v10321_v26  ;;  %5988 = vmatpush.bf16.msra.mxu2 %v7509_v29  ;;  %v7410_v13 = vld [vmem:[#allocation2 + $0x230] sm:$0xf0]  ;;  %v10225_v26 = vor.u32 %v11492_v16, %v10224_v3 }
 0x37d   :  { %v10848_v14 = vld [vmem:[#allocation2 + $0x414] sm:$0xf]  ;;  %v7413_v6 = vor.u32 %v10784_v10, %v7410_v13 }
 0x37e   :  { %6001 = vmatpush.bf16.msra.mxu3 %v7765_v32  ;;  %5976 = vmatpush.bf16.msra.mxu1 %v7221_v2  ;;  %v7666_v18 = vld [vmem:[#allocation2 + $0x430] sm:$0xf0] }
 0x37f   :  { %v10968_v21 = vld [vmem:[#allocation2 + $0x7d4] sm:$0xf]  ;;  %v7669_v46 = vor.u32 %v10848_v14, %v7666_v18 }
 0x380   :  { %5963 = vmatpush.bf16.msra.mxu0 %v10289_v51  ;;  %5989 = vmatpush.bf16.msra.mxu2 %v7477_v54  ;;  %v8146_v31 = vld [vmem:[#allocation2 + $0x7f0] sm:$0xf0] }
 0x381   :  { %v11032_v22 = vld [vmem:[#allocation2 + $0x9d4] sm:$0xf]  ;;  %v8149_v33 = vor.u32 %v10968_v21, %v8146_v31  ;;  %v5759_v31 = vpop.f32.mrf.mxu0 }
 0x382   :  { %6002 = vmatpush.bf16.msra.mxu3 %v7733_v63  ;;  %v8402_v28 = vld [vmem:[#allocation2 + $0x9f0] sm:$0xf0]  ;;  %5977 = vmatpush.bf16.msra.mxu1 %v7189_v5 }
 0x383   :  { %v11096_v29 = vld [vmem:[#allocation2 + $0xbd4] sm:$0xf]  ;;  %v8405_v38 = vor.u32 %v11032_v22, %v8402_v28 }
 0x384   :  { %5964 = vmatpush.bf16.msra.mxu0 %v10257_v1  ;;  %v8658_v37 = vld [vmem:[#allocation2 + $0xbf0] sm:$0xf0]  ;;  %5990 = vmatpush.bf16.msra.mxu2 %v7445_v7 }
 0x385   :  { %v11160_v32 = vld [vmem:[#allocation2 + $0xdd4] sm:$0xf]  ;;  %v8661_v41 = vor.u32 %v11096_v29, %v8658_v37  ;;  %v5772_v29 = vpop.f32.mrf.mxu1 }
 0x386   :  { %v8914_v50 = vld [vmem:[#allocation2 + $0xdf0] sm:$0xf0]  ;;  %6003 = vmatpush.bf16.msra.mxu3 %v7701_v11  ;;  %5978 = vmatpush.bf16.msra.mxu1 %v7157_v30 }
 0x387   :  { %v10960_v45 = vld [vmem:[#allocation2 + $0x794] sm:$0xf]  ;;  %v8917_v49 = vor.u32 %v11160_v32, %v8914_v50 }
 0x388   :  { %v8114_v47 = vld [vmem:[#allocation2 + $0x7b0] sm:$0xf0]  ;;  %5965 = vmatpush.bf16.msra.mxu0 %v10225_v26  ;;  %5991 = vmatpush.bf16.msra.mxu2 %v7413_v6  ;;  %v5760_v26 = vadd.f32 %v5759_v31, %v11917_v53 }
 0x389   :  { %v11024_v48 = vld [vmem:[#allocation2 + $0x994] sm:$0xf]  ;;  %v8117_v4 = vor.u32 %v10960_v45, %v8114_v47  ;;  %5979 = vmatmul.bf16.vlgmr.msra.gmra.mxu1 %v11780_v36 }
 0x38a   :  { %v8370_v51 = vld [vmem:[#allocation2 + $0x9b0] sm:$0xf0]  ;;  %6004 = vmatpush.bf16.msra.mxu3 %v7669_v46  ;;  %6023 = vmatpush.bf16.msrb.mxu1 %v8405_v38 }
 0x38b   :  { %v8626_v2 = vld [vmem:[#allocation2 + $0xbb0] sm:$0xf0]  ;;  %v8373_v56 = vor.u32 %v11024_v48, %v8370_v51  ;;  %5966 = vmatmul.bf16.vlgmr.msra.gmra.mxu0 %v11820_v12  ;;  %5992 = vmatmul.bf16.vlgmr.msra.gmra.mxu2 %v11784_v43 }
 0x38c   :  { %v11152_v54 = vld [vmem:[#allocation2 + $0xd94] sm:$0xf]  ;;  %6010 = vmatpush.bf16.msrb.mxu0 %v8149_v33  ;;  %6036 = vmatpush.bf16.msrb.mxu2 %v8661_v41  ;;  %v8629_v63 = vor.u32 %v11088_v52, %v8626_v2  ;;  %v5773_v33 = vadd.f32 %v5772_v29, %v5760_v26 }
 0x38d   :  { %v8882_v55 = vld [vmem:[#allocation2 + $0xdb0] sm:$0xf0]  ;;  %6005 = vmatmul.bf16.vlgmr.msra.gmra.mxu3 %v11778_v35 }
 0x38e   :  { %v10952_v57 = vld [vmem:[#allocation2 + $0x754] sm:$0xf]  ;;  %6049 = vmatpush.bf16.msrb.mxu3 %v8917_v49  ;;  %v8885_v61 = vor.u32 %v11152_v54, %v8882_v55  ;;  %6024 = vmatpush.bf16.msrb.mxu1 %v8373_v56 }
 0x38f   :  { %v8082_v58 = vld [vmem:[#allocation2 + $0x770] sm:$0xf0] }
 0x390   :  { %v11016_v59 = vld [vmem:[#allocation2 + $0x954] sm:$0xf]  ;;  %6011 = vmatpush.bf16.msrb.mxu0 %v8117_v4  ;;  %v8085_v7 = vor.u32 %v10952_v57, %v8082_v58  ;;  %6037 = vmatpush.bf16.msrb.mxu2 %v8629_v63  ;;  %v5785_v4 = vpop.f32.mrf.mxu2 }
 0x391   :  { %v8338_v62 = vld [vmem:[#allocation2 + $0x970] sm:$0xf0]  ;;  %v5786_v58 = vadd.f32 %v5785_v4, %v5773_v33 }
 0x392   :  { %v11080_v1 = vld [vmem:[#allocation2 + $0xb54] sm:$0xf]  ;;  %v8341_v8 = vor.u32 %v11016_v59, %v8338_v62  ;;  %6050 = vmatpush.bf16.msrb.mxu3 %v8885_v61  ;;  %v5798_v59 = vpop.f32.mrf.mxu3 }
 0x393   :  { %v8594_v3 = vld [vmem:[#allocation2 + $0xb70] sm:$0xf0] }
 0x394   :  { %v11144_v16 = vld [vmem:[#allocation2 + $0xd54] sm:$0xf]  ;;  %v8597_v9 = vor.u32 %v11080_v1, %v8594_v3  ;;  %6012 = vmatpush.bf16.msrb.mxu0 %v8085_v7  ;;  %6025 = vmatpush.bf16.msrb.mxu1 %v8341_v8  ;;  %v5761_v1 = vpop.f32.mrf.mxu0 }
 0x395   :  { %v8850_v5 = vld [vmem:[#allocation2 + $0xd70] sm:$0xf0] }
 0x396   :  { %v10944_v10 = vld [vmem:[#allocation2 + $0x714] sm:$0xf]  ;;  %v8853_v14 = vor.u32 %v11144_v16, %v8850_v5  ;;  %6038 = vmatpush.bf16.msrb.mxu2 %v8597_v9  ;;  %v5774_v16 = vpop.f32.mrf.mxu1  ;;  %v11924_v5 = vadd.f32 %v5798_v59, %v5786_v58 }
 0x397   :  { %v8050_v11 = vld [vmem:[#allocation2 + $0x730] sm:$0xf0] }
 0x398   :  { %v11008_v13 = vld [vmem:[#allocation2 + $0x914] sm:$0xf]  ;;  %v8053_v28 = vor.u32 %v10944_v10, %v8050_v11  ;;  %6051 = vmatpush.bf16.msrb.mxu3 %v8853_v14 }
 0x399   :  { %v8306_v18 = vld [vmem:[#allocation2 + $0x930] sm:$0xf0] }
 0x39a   :  { %v11072_v17 = vld [vmem:[#allocation2 + $0xb14] sm:$0xf]  ;;  %v8309_v37 = vor.u32 %v11008_v13, %v8306_v18  ;;  %6013 = vmatpush.bf16.msrb.mxu0 %v8053_v28 }
 0x39b   :  { %v8562_v21 = vld [vmem:[#allocation2 + $0xb30] sm:$0xf0] }
 0x39c   :  { %v11136_v22 = vld [vmem:[#allocation2 + $0xd14] sm:$0xf]  ;;  %v8565_v30 = vor.u32 %v11072_v17, %v8562_v21  ;;  %6026 = vmatpush.bf16.msrb.mxu1 %v8309_v37 }
 0x39d   :  { %v8818_v25 = vld [vmem:[#allocation2 + $0xd30] sm:$0xf0] }
 0x39e   :  { %v10936_v6 = vld [vmem:[#allocation2 + $0x6d4] sm:$0xf]  ;;  %v8821_v46 = vor.u32 %v11136_v22, %v8818_v25  ;;  %6039 = vmatpush.bf16.msrb.mxu2 %v8565_v30 }
 0x39f   :  { %v8018_v32 = vld [vmem:[#allocation2 + $0x6f0] sm:$0xf0] }
 0x3a0   :  { %v11000_v50 = vld [vmem:[#allocation2 + $0x8d4] sm:$0xf]  ;;  %v8021_v49 = vor.u32 %v10936_v6, %v8018_v32  ;;  %6052 = vmatpush.bf16.msrb.mxu3 %v8821_v46 }
 0x3a1   :  { %v8274_v38 = vld [vmem:[#allocation2 + $0x8f0] sm:$0xf0] }
 0x3a2   :  { %v11064_v41 = vld [vmem:[#allocation2 + $0xad4] sm:$0xf]  ;;  %v8277_v53 = vor.u32 %v11000_v50, %v8274_v38  ;;  %6014 = vmatpush.bf16.msrb.mxu0 %v8021_v49  ;;  %v5787_v38 = vpop.f32.mrf.mxu2 }
 0x3a3   :  { %v8530_v45 = vld [vmem:[#allocation2 + $0xaf0] sm:$0xf0] }
 0x3a4   :  { %v11128_v47 = vld [vmem:[#allocation2 + $0xcd4] sm:$0xf]  ;;  %v8533_v51 = vor.u32 %v11064_v41, %v8530_v45  ;;  %6027 = vmatpush.bf16.msrb.mxu1 %v8277_v53 }
 0x3a5   :  { %v8786_v48 = vld [vmem:[#allocation2 + $0xcf0] sm:$0xf0] }
 0x3a6   :  { %v10928_v52 = vld [vmem:[#allocation2 + $0x694] sm:$0xf]  ;;  %v8789_v55 = vor.u32 %v11128_v47, %v8786_v48  ;;  %6040 = vmatpush.bf16.msrb.mxu2 %v8533_v51  ;;  %v5800_v48 = vpop.f32.mrf.mxu3 }
 0x3a7   :  { %v7986_v2 = vld [vmem:[#allocation2 + $0x6b0] sm:$0xf0] }
 0x3a8   :  { %v10992_v54 = vld [vmem:[#allocation2 + $0x894] sm:$0xf]  ;;  %v7989_v3 = vor.u32 %v10928_v52, %v7986_v2  ;;  %6053 = vmatpush.bf16.msrb.mxu3 %v8789_v55 }
 0x3a9   :  { %v8242_v56 = vld [vmem:[#allocation2 + $0x8b0] sm:$0xf0] }
 0x3aa   :  { %v11056_v63 = vld [vmem:[#allocation2 + $0xa94] sm:$0xf]  ;;  %v8245_v7 = vor.u32 %v10992_v54, %v8242_v56  ;;  %6015 = vmatpush.bf16.msrb.mxu0 %v7989_v3 }
 0x3ab   :  { %v8498_v57 = vld [vmem:[#allocation2 + $0xab0] sm:$0xf0] }
 0x3ac   :  { %v11120_v61 = vld [vmem:[#allocation2 + $0xc94] sm:$0xf]  ;;  %v8501_v8 = vor.u32 %v11056_v63, %v8498_v57  ;;  %6028 = vmatpush.bf16.msrb.mxu1 %v8245_v7 }
 0x3ad   :  { %v8754_v62 = vld [vmem:[#allocation2 + $0xcb0] sm:$0xf0] }
 0x3ae   :  { %v10920_v9 = vld [vmem:[#allocation2 + $0x654] sm:$0xf]  ;;  %v8757_v13 = vor.u32 %v11120_v61, %v8754_v62  ;;  %6041 = vmatpush.bf16.msrb.mxu2 %v8501_v8 }
 0x3af   :  { %v7954_v10 = vld [vmem:[#allocation2 + $0x670] sm:$0xf0] }
 0x3b0   :  { %v10984_v11 = vld [vmem:[#allocation2 + $0x854] sm:$0xf]  ;;  %v7957_v22 = vor.u32 %v10920_v9, %v7954_v10  ;;  %6054 = vmatpush.bf16.msrb.mxu3 %v8757_v13 }
 0x3b1   :  { %v8210_v14 = vld [vmem:[#allocation2 + $0x870] sm:$0xf0] }
 0x3b2   :  { %v11048_v18 = vld [vmem:[#allocation2 + $0xa54] sm:$0xf]  ;;  %v8213_v28 = vor.u32 %v10984_v11, %v8210_v14  ;;  %6016 = vmatpush.bf16.msrb.mxu0 %v7957_v22 }
 0x3b3   :  { %v8466_v17 = vld [vmem:[#allocation2 + $0xa70] sm:$0xf0] }
 0x3b4   :  { %v11112_v21 = vld [vmem:[#allocation2 + $0xc54] sm:$0xf]  ;;  %v8469_v29 = vor.u32 %v11048_v18, %v8466_v17  ;;  %6029 = vmatpush.bf16.msrb.mxu1 %v8213_v28 }
 0x3b5   :  { %v8722_v31 = vld [vmem:[#allocation2 + $0xc70] sm:$0xf0] }
 0x3b6   :  { %v10912_v25 = vld [vmem:[#allocation2 + $0x614] sm:$0xf]  ;;  %v8725_v32 = vor.u32 %v11112_v21, %v8722_v31  ;;  %6042 = vmatpush.bf16.msrb.mxu2 %v8469_v29 }
 0x3b7   :  { %v7922_v26 = vld [vmem:[#allocation2 + $0x630] sm:$0xf0] }
 0x3b8   :  { %v10976_v37 = vld [vmem:[#allocation2 + $0x814] sm:$0xf]  ;;  %v7925_v49 = vor.u32 %v10912_v25, %v7922_v26  ;;  %6055 = vmatpush.bf16.msrb.mxu3 %v8725_v32 }
 0x3b9   :  { %v8178_v30 = vld [vmem:[#allocation2 + $0x830] sm:$0xf0] }
 0x3ba   :  { %v11040_v6 = vld [vmem:[#allocation2 + $0xa14] sm:$0xf]  ;;  %v8181_v2 = vor.u32 %v10976_v37, %v8178_v30  ;;  %6017 = vmatpush.bf16.msrb.mxu0 %v7925_v49 }
 0x3bb   :  { %v8434_v50 = vld [vmem:[#allocation2 + $0xa30] sm:$0xf0] }
 0x3bc   :  { %v11104_v46 = vld [vmem:[#allocation2 + $0xc14] sm:$0xf]  ;;  %v8437_v54 = vor.u32 %v11040_v6, %v8434_v50  ;;  %6030 = vmatpush.bf16.msrb.mxu1 %v8181_v2 }
 0x3bd   :  { %v8690_v33 = vld [vmem:[#allocation2 + $0xc30] sm:$0xf0]  ;;  %6018 = vmatmul.bf16.vlgmr.msrb.gmra.mxu0 %v11782_v42 }
 0x3be   :  { %v11224_v41 = vld [vmem:[#allocation2 + $0xfd4] sm:$0xf]  ;;  %v8693_v56 = vor.u32 %v11104_v46, %v8690_v33  ;;  %6043 = vmatpush.bf16.msrb.mxu2 %v8437_v54  ;;  %v954_v46 = vperm.slane %v11902_v20, 4 }
 0x3bf   :  { %v9170_v45 = vld [vmem:[#allocation2 + $0xff0] sm:$0xf0]  ;;  %6031 = vmatmul.bf16.vlgmr.msrb.gmra.mxu1 %v11798_v39 }
 0x3c0   :  { %v11288_v47 = vld [vmem:[#allocation2 + $0x11d4] sm:$0xf]  ;;  %v9173_v63 = vor.u32 %v11224_v41, %v9170_v45  ;;  %6056 = vmatpush.bf16.msrb.mxu3 %v8693_v56  ;;  %v5824_v56 = vpop.f32.mrf.mxu1 }
 0x3c1   :  { %v9426_v53 = vld [vmem:[#allocation2 + $0x11f0] sm:$0xf0]  ;;  %6044 = vmatmul.bf16.vlgmr.msrb.gmra.mxu2 %v11802_v44 }
 0x3c2   :  { %v11352_v51 = vld [vmem:[#allocation2 + $0x13d4] sm:$0xf]  ;;  %v9429_v57 = vor.u32 %v11288_v47, %v9426_v53  ;;  %6062 = vmatpush.bf16.msra.mxu0 %v9173_v63  ;;  %v5811_v53 = vpop.f32.mrf.mxu0 }
 0x3c3   :  { %v9682_v52 = vld [vmem:[#allocation2 + $0x13f0] sm:$0xf0]  ;;  %6057 = vmatmul.bf16.vlgmr.msrb.gmra.mxu3 %v11796_v34 }
 0x3c4   :  { %v11416_v55 = vld [vmem:[#allocation2 + $0x15d4] sm:$0xf]  ;;  %v9685_v58 = vor.u32 %v11352_v51, %v9682_v52  ;;  %6075 = vmatpush.bf16.msra.mxu1 %v9429_v57 }
 0x3c5   :  { %v9938_v4 = vld [vmem:[#allocation2 + $0x15f0] sm:$0xf0] }
 0x3c6   :  { %v11216_v59 = vld [vmem:[#allocation2 + $0xf94] sm:$0xf]  ;;  %v9941_v1 = vor.u32 %v11416_v55, %v9938_v4  ;;  %6088 = vmatpush.bf16.msra.mxu2 %v9685_v58  ;;  %v5812_v4 = vadd.f32 %v5811_v53, %v954_v46 }
 0x3c7   :  { %v9138_v61 = vld [vmem:[#allocation2 + $0xfb0] sm:$0xf0] }
 0x3c8   :  { %v11280_v62 = vld [vmem:[#allocation2 + $0x1194] sm:$0xf]  ;;  %v9141_v10 = vor.u32 %v11216_v59, %v9138_v61  ;;  %6101 = vmatpush.bf16.msra.mxu3 %v9941_v1 }
 0x3c9   :  { %v9394_v3 = vld [vmem:[#allocation2 + $0x11b0] sm:$0xf0] }
 0x3ca   :  { %v11344_v16 = vld [vmem:[#allocation2 + $0x1394] sm:$0xf]  ;;  %v9397_v11 = vor.u32 %v11280_v62, %v9394_v3  ;;  %6063 = vmatpush.bf16.msra.mxu0 %v9141_v10  ;;  %v5825_v62 = vadd.f32 %v5824_v56, %v5812_v4  ;;  %v5837_v10 = vpop.f32.mrf.mxu2 }
 0x3cb   :  { %v9650_v7 = vld [vmem:[#allocation2 + $0x13b0] sm:$0xf0] }
 0x3cc   :  { %v11408_v8 = vld [vmem:[#allocation2 + $0x1594] sm:$0xf]  ;;  %v9653_v13 = vor.u32 %v11344_v16, %v9650_v7  ;;  %6076 = vmatpush.bf16.msra.mxu1 %v9397_v11 }
 0x3cd   :  { %v9906_v9 = vld [vmem:[#allocation2 + $0x15b0] sm:$0xf0] }
 0x3ce   :  { %v11208_v14 = vld [vmem:[#allocation2 + $0xf54] sm:$0xf]  ;;  %v9909_v21 = vor.u32 %v11408_v8, %v9906_v9  ;;  %6089 = vmatpush.bf16.msra.mxu2 %v9653_v13 }
 0x3cf   :  { %v9106_v18 = vld [vmem:[#allocation2 + $0xf70] sm:$0xf0] }
 0x3d0   :  { %v11272_v17 = vld [vmem:[#allocation2 + $0x1154] sm:$0xf]  ;;  %v9109_v29 = vor.u32 %v11208_v14, %v9106_v18  ;;  %6102 = vmatpush.bf16.msra.mxu3 %v9909_v21  ;;  %v5850_v21 = vpop.f32.mrf.mxu3 }
 0x3d1   :  { %v9362_v31 = vld [vmem:[#allocation2 + $0x1170] sm:$0xf0] }
 0x3d2   :  { %v11336_v22 = vld [vmem:[#allocation2 + $0x1354] sm:$0xf]  ;;  %v9365_v30 = vor.u32 %v11272_v17, %v9362_v31  ;;  %6064 = vmatpush.bf16.msra.mxu0 %v9109_v29  ;;  %v5838_v17 = vadd.f32 %v5837_v10, %v5825_v62  ;;  %v5839_v4 = vpop.f32.mrf.mxu2  ;;  %v7640_v10 = vld [vmem:[#allocation2 + $0x3d8] sm:$0xf] }
 0x3d3   :  { %v9618_v25 = vld [vmem:[#allocation2 + $0x1370] sm:$0xf0] }
 0x3d4   :  { %v11400_v26 = vld [vmem:[#allocation2 + $0x1554] sm:$0xf]  ;;  %v9621_v6 = vor.u32 %v11336_v22, %v9618_v25  ;;  %6077 = vmatpush.bf16.msra.mxu1 %v9365_v30 }
 0x3d5   :  { %v9874_v28 = vld [vmem:[#allocation2 + $0x1570] sm:$0xf0] }
 0x3d6   :  { %v11200_v37 = vld [vmem:[#allocation2 + $0xf14] sm:$0xf]  ;;  %v9877_v33 = vor.u32 %v11400_v26, %v9874_v28  ;;  %6090 = vmatpush.bf16.msra.mxu2 %v9621_v6  ;;  %v11931_v26 = vadd.f32 %v5850_v21, %v5838_v17  ;;  %v5813_v28 = vpop.f32.mrf.mxu0 }
 0x3d7   :  { %v9074_v32 = vld [vmem:[#allocation2 + $0xf30] sm:$0xf0] }
 0x3d8   :  { %v11264_v50 = vld [vmem:[#allocation2 + $0x1114] sm:$0xf]  ;;  %v9077_v49 = vor.u32 %v11200_v37, %v9074_v32  ;;  %6103 = vmatpush.bf16.msra.mxu3 %v9877_v33 }
 0x3d9   :  { %v9330_v38 = vld [vmem:[#allocation2 + $0x1130] sm:$0xf0] }
 0x3da   :  { %v11328_v41 = vld [vmem:[#allocation2 + $0x1314] sm:$0xf]  ;;  %v9333_v51 = vor.u32 %v11264_v50, %v9330_v38  ;;  %6065 = vmatpush.bf16.msra.mxu0 %v9077_v49  ;;  %v5826_v50 = vpop.f32.mrf.mxu1 }
 0x3db   :  { %v9586_v45 = vld [vmem:[#allocation2 + $0x1330] sm:$0xf0] }
 0x3dc   :  { %v11392_v47 = vld [vmem:[#allocation2 + $0x1514] sm:$0xf]  ;;  %v9589_v52 = vor.u32 %v11328_v41, %v9586_v45  ;;  %6078 = vmatpush.bf16.msra.mxu1 %v9333_v51 }
 0x3dd   :  { %v9842_v48 = vld [vmem:[#allocation2 + $0x1530] sm:$0xf0] }
 0x3de   :  { %v11192_v2 = vld [vmem:[#allocation2 + $0xed4] sm:$0xf]  ;;  %v9845_v20 = vor.u32 %v11392_v47, %v9842_v48  ;;  %6091 = vmatpush.bf16.msra.mxu2 %v9589_v52 }
 0x3df   :  { %v9042_v54 = vld [vmem:[#allocation2 + $0xef0] sm:$0xf0] }
 0x3e0   :  { %v11256_v55 = vld [vmem:[#allocation2 + $0x10d4] sm:$0xf]  ;;  %v9045_v1 = vor.u32 %v11192_v2, %v9042_v54  ;;  %6104 = vmatpush.bf16.msra.mxu3 %v9845_v20 }
 0x3e1   :  { %v9298_v63 = vld [vmem:[#allocation2 + $0x10f0] sm:$0xf0] }
 0x3e2   :  { %v11320_v57 = vld [vmem:[#allocation2 + $0x12d4] sm:$0xf]  ;;  %v9301_v3 = vor.u32 %v11256_v55, %v9298_v63  ;;  %6066 = vmatpush.bf16.msra.mxu0 %v9045_v1 }
 0x3e3   :  { %v9554_v58 = vld [vmem:[#allocation2 + $0x12f0] sm:$0xf0] }
 0x3e4   :  { %v11384_v59 = vld [vmem:[#allocation2 + $0x14d4] sm:$0xf]  ;;  %v9557_v16 = vor.u32 %v11320_v57, %v9554_v58  ;;  %6079 = vmatpush.bf16.msra.mxu1 %v9301_v3  ;;  %v5852_v58 = vpop.f32.mrf.mxu3 }
 0x3e5   :  { %v9810_v61 = vld [vmem:[#allocation2 + $0x14f0] sm:$0xf0]  ;;  %v10757_v58 = vld [vmem:[#allocation2 + $0x134] sm:$0xf0] }
 0x3e6   :  { %v11184_v7 = vld [vmem:[#allocation2 + $0xe94] sm:$0xf]  ;;  %v9813_v11 = vor.u32 %v11384_v59, %v9810_v61  ;;  %6092 = vmatpush.bf16.msra.mxu2 %v9557_v16  ;;  %v7384_v16 = vld [vmem:[#allocation2 + $0x1d8] sm:$0xf] }
 0x3e7   :  { %v9010_v8 = vld [vmem:[#allocation2 + $0xeb0] sm:$0xf0] }
 0x3e8   :  { %v11248_v9 = vld [vmem:[#allocation2 + $0x1094] sm:$0xf]  ;;  %v9013_v25 = vor.u32 %v11184_v7, %v9010_v8  ;;  %6105 = vmatpush.bf16.msra.mxu3 %v9813_v11  ;;  %v10781_v7 = vld [vmem:[#allocation2 + $0x1f4] sm:$0xf0] }
 0x3e9   :  { %v9266_v13 = vld [vmem:[#allocation2 + $0x10b0] sm:$0xf0]  ;;  %v10845_v11 = vld [vmem:[#allocation2 + $0x3f4] sm:$0xf0]  ;;  %v7385_v17 = vor.u32 %v10781_v7, %v7384_v16 }
 0x3ea   :  { %v11312_v14 = vld [vmem:[#allocation2 + $0x1294] sm:$0xf]  ;;  %v9269_v29 = vor.u32 %v11248_v9, %v9266_v13  ;;  %6067 = vmatpush.bf16.msra.mxu0 %v9013_v25  ;;  %v7641_v25 = vor.u32 %v10845_v11, %v7640_v10  ;;  %v5876_v11 = vpop.f32.mrf.mxu1 }
 0x3eb   :  { %v9522_v18 = vld [vmem:[#allocation2 + $0x12b0] sm:$0xf0] }
 0x3ec   :  { %v11376_v31 = vld [vmem:[#allocation2 + $0x1494] sm:$0xf]  ;;  %v9525_v37 = vor.u32 %v11312_v14, %v9522_v18  ;;  %6080 = vmatpush.bf16.msra.mxu1 %v9269_v29  ;;  %v7352_v29 = vld [vmem:[#allocation2 + $0x198] sm:$0xf] }
 0x3ed   :  { %v9778_v22 = vld [vmem:[#allocation2 + $0x14b0] sm:$0xf0] }
 0x3ee   :  { %v11176_v30 = vld [vmem:[#allocation2 + $0xe54] sm:$0xf]  ;;  %v9781_v46 = vor.u32 %v11376_v31, %v9778_v22  ;;  %6093 = vmatpush.bf16.msra.mxu2 %v9525_v37  ;;  %v10773_v37 = vld [vmem:[#allocation2 + $0x1b4] sm:$0xf0] }
 0x3ef   :  { %v8978_v6 = vld [vmem:[#allocation2 + $0xe70] sm:$0xf0] }
 0x3f0   :  { %v11240_v32 = vld [vmem:[#allocation2 + $0x1054] sm:$0xf]  ;;  %v8981_v48 = vor.u32 %v11176_v30, %v8978_v6  ;;  %6106 = vmatpush.bf16.msra.mxu3 %v9781_v46  ;;  %v7608_v30 = vld [vmem:[#allocation2 + $0x398] sm:$0xf]  ;;  %v7353_v46 = vor.u32 %v10773_v37, %v7352_v29 }
 0x3f1   :  { %v9234_v33 = vld [vmem:[#allocation2 + $0x1070] sm:$0xf0]  ;;  %v10837_v6 = vld [vmem:[#allocation2 + $0x3b4] sm:$0xf0] }
 0x3f2   :  { %v11304_v38 = vld [vmem:[#allocation2 + $0x1254] sm:$0xf]  ;;  %v9237_v51 = vor.u32 %v11240_v32, %v9234_v33  ;;  %6068 = vmatpush.bf16.msra.mxu0 %v8981_v48  ;;  %v7320_v48 = vld [vmem:[#allocation2 + $0x158] sm:$0xf] }
 0x3f3   :  { %v9490_v41 = vld [vmem:[#allocation2 + $0x1270] sm:$0xf0] }
 0x3f4   :  { %v11368_v45 = vld [vmem:[#allocation2 + $0x1454] sm:$0xf]  ;;  %v9493_v52 = vor.u32 %v11304_v38, %v9490_v41  ;;  %6081 = vmatpush.bf16.msra.mxu1 %v9237_v51  ;;  %v10829_v51 = vld [vmem:[#allocation2 + $0x374] sm:$0xf0] }
 0x3f5   :  { %v9746_v47 = vld [vmem:[#allocation2 + $0x1470] sm:$0xf0] }
 0x3f6   :  { %v11168_v49 = vld [vmem:[#allocation2 + $0xe14] sm:$0xf]  ;;  %v9749_v56 = vor.u32 %v11368_v45, %v9746_v47  ;;  %6094 = vmatpush.bf16.msra.mxu2 %v9493_v52  ;;  %v7609_v45 = vor.u32 %v10837_v6, %v7608_v30 }
 0x3f7   :  { %v8946_v53 = vld [vmem:[#allocation2 + $0xe30] sm:$0xf0] }
 0x3f8   :  { %v11232_v2 = vld [vmem:[#allocation2 + $0x1014] sm:$0xf]  ;;  %v8949_v1 = vor.u32 %v11168_v49, %v8946_v53  ;;  %6107 = vmatpush.bf16.msra.mxu3 %v9749_v56  ;;  %v10765_v49 = vld [vmem:[#allocation2 + $0x174] sm:$0xf0] }
 0x3f9   :  { %v9202_v54 = vld [vmem:[#allocation2 + $0x1030] sm:$0xf0]  ;;  %v7576_v53 = vld [vmem:[#allocation2 + $0x358] sm:$0xf] }
 0x3fa   :  { %v11296_v55 = vld [vmem:[#allocation2 + $0x1214] sm:$0xf]  ;;  %v9205_v8 = vor.u32 %v11232_v2, %v9202_v54  ;;  %6069 = vmatpush.bf16.msra.mxu0 %v8949_v1  ;;  %v7321_v54 = vor.u32 %v10765_v49, %v7320_v48  ;;  %v5863_v1 = vpop.f32.mrf.mxu0 }
 0x3fb   :  { %v9458_v20 = vld [vmem:[#allocation2 + $0x1230] sm:$0xf0]  ;;  %v5864_v10 = vadd.f32 %v5863_v1, %v11931_v26 }
 0x3fc   :  { %v11360_v63 = vld [vmem:[#allocation2 + $0x1414] sm:$0xf]  ;;  %v9461_v9 = vor.u32 %v11296_v55, %v9458_v20  ;;  %6082 = vmatpush.bf16.msra.mxu1 %v9205_v8  ;;  %v7577_v20 = vor.u32 %v10829_v51, %v7576_v53 }
 0x3fd   :  { %v9714_v57 = vld [vmem:[#allocation2 + $0x1430] sm:$0xf0]  ;;  %6070 = vmatmul.bf16.vlgmr.msra.gmra.mxu0 %v11800_v40 }
 0x3fe   :  { %v11480_v59 = vld [vmem:[#allocation2 + $0x17d4] sm:$0xf]  ;;  %v9717_v13 = vor.u32 %v11360_v63, %v9714_v57  ;;  %6095 = vmatpush.bf16.msra.mxu2 %v9461_v9  ;;  %v7288_v57 = vld [vmem:[#allocation2 + $0x118] sm:$0xf] }
 0x3ff   :  { %v10194_v61 = vld [vmem:[#allocation2 + $0x17f0] sm:$0xf0]  ;;  %6083 = vmatmul.bf16.vlgmr.msra.gmra.mxu1 %v11808_v19  ;;  %v7289_v16 = vor.u32 %v10757_v58, %v7288_v57  ;;  %v10733_v57 = vld [vmem:[#allocation2 + $0x74] sm:$0xf0] }
 0x400   :  { %v11544_v62 = vld [vmem:[#allocation2 + $0x19d4] sm:$0xf]  ;;  %v10197_v14 = vor.u32 %v11480_v59, %v10194_v61  ;;  %6108 = vmatpush.bf16.msra.mxu3 %v9717_v13  ;;  %v7544_v59 = vld [vmem:[#allocation2 + $0x318] sm:$0xf] }
 0x401   :  { %v10450_v3 = vld [vmem:[#allocation2 + $0x19f0] sm:$0xf0]  ;;  %6096 = vmatmul.bf16.vlgmr.msra.gmra.mxu2 %v11812_v24  ;;  %v10821_v61 = vld [vmem:[#allocation2 + $0x334] sm:$0xf0] }
 0x402   :  { %v10453_v18 = vor.u32 %v11544_v62, %v10450_v3  ;;  %v11472_v21 = vld [vmem:[#allocation2 + $0x1794] sm:$0xf]  ;;  %6114 = vmatpush.bf16.msrb.mxu0 %v10197_v14  ;;  %6140 = vmatpush.bf16.msrb.mxu2 %v7385_v17  ;;  %v7545_v13 = vor.u32 %v10821_v61, %v7544_v59  ;;  %v10749_v17 = vld [vmem:[#allocation2 + $0xf4] sm:$0xf0]  ;;  %v5865_v53 = vpop.f32.mrf.mxu0 }
 0x403   :  { %v10162_v31 = vld [vmem:[#allocation2 + $0x17b0] sm:$0xf0]  ;;  %6109 = vmatmul.bf16.vlgmr.msra.gmra.mxu3 %v11810_v23  ;;  %v7448_v58 = vld [vmem:[#allocation2 + $0x258] sm:$0xf] }
 0x404   :  { %v11536_v22 = vld [vmem:[#allocation2 + $0x1994] sm:$0xf]  ;;  %v10165_v32 = vor.u32 %v11472_v21, %v10162_v31  ;;  %6127 = vmatpush.bf16.msrb.mxu1 %v10453_v18  ;;  %6153 = vmatpush.bf16.msrb.mxu3 %v7641_v25  ;;  %v7256_v18 = vld [vmem:[#allocation2 + $0xd8] sm:$0xf] }
 0x405   :  { %v10418_v28 = vld [vmem:[#allocation2 + $0x19b0] sm:$0xf0]  ;;  %v7512_v21 = vld [vmem:[#allocation2 + $0x2d8] sm:$0xf]  ;;  %v7257_v29 = vor.u32 %v10749_v17, %v7256_v18 }
 0x406   :  { %v10421_v50 = vor.u32 %v11536_v22, %v10418_v28  ;;  %v11464_v33 = vld [vmem:[#allocation2 + $0x1754] sm:$0xf]  ;;  %6115 = vmatpush.bf16.msrb.mxu0 %v10165_v32  ;;  %6141 = vmatpush.bf16.msrb.mxu2 %v7353_v46  ;;  %v10813_v31 = vld [vmem:[#allocation2 + $0x2f4] sm:$0xf0]  ;;  %v5877_v22 = vadd.f32 %v5876_v11, %v5864_v10  ;;  %v5889_v32 = vpop.f32.mrf.mxu2 }
 0x407   :  { %v10130_v38 = vld [vmem:[#allocation2 + $0x1770] sm:$0xf0]  ;;  %v7513_v26 = vor.u32 %v10813_v31, %v7512_v21  ;;  %v7224_v46 = vld [vmem:[#allocation2 + $0x98] sm:$0xf] }
 0x408   :  { %v11528_v41 = vld [vmem:[#allocation2 + $0x1954] sm:$0xf]  ;;  %v10133_v52 = vor.u32 %v11464_v33, %v10130_v38  ;;  %6128 = vmatpush.bf16.msrb.mxu1 %v10421_v50  ;;  %6154 = vmatpush.bf16.msrb.mxu3 %v7609_v45  ;;  %v10741_v33 = vld [vmem:[#allocation2 + $0xb4] sm:$0xf0]  ;;  %v5890_v38 = vadd.f32 %v5889_v32, %v5877_v22 }
 0x409   :  { %v10386_v47 = vld [vmem:[#allocation2 + $0x1970] sm:$0xf0]  ;;  %v7480_v45 = vld [vmem:[#allocation2 + $0x298] sm:$0xf] }
 0x40a   :  { %v10389_v2 = vor.u32 %v11528_v41, %v10386_v47  ;;  %v11456_v55 = vld [vmem:[#allocation2 + $0x1714] sm:$0xf]  ;;  %6116 = vmatpush.bf16.msrb.mxu0 %v10133_v52  ;;  %6142 = vmatpush.bf16.msrb.mxu2 %v7321_v54  ;;  %v5902_v41 = vpop.f32.mrf.mxu3  ;;  %v10805_v47 = vld [vmem:[#allocation2 + $0x2b4] sm:$0xf0]  ;;  %v7225_v52 = vor.u32 %v10741_v33, %v7224_v46 }
 0x40b   :  { %v10098_v4 = vld [vmem:[#allocation2 + $0x1730] sm:$0xf0]  ;;  %v11938_v49 = vadd.f32 %v5902_v41, %v5890_v38  ;;  %v10797_v59 = vld [vmem:[#allocation2 + $0x274] sm:$0xf0] }
 0x40c   :  { %v11520_v56 = vld [vmem:[#allocation2 + $0x1914] sm:$0xf]  ;;  %v10101_v62 = vor.u32 %v11456_v55, %v10098_v4  ;;  %6129 = vmatpush.bf16.msrb.mxu1 %v10389_v2  ;;  %6155 = vmatpush.bf16.msrb.mxu3 %v7577_v20  ;;  %v5878_v4 = vpop.f32.mrf.mxu1  ;;  %v7449_v11 = vor.u32 %v10797_v59, %v7448_v58  ;;  %v10789_v18 = vld [vmem:[#allocation2 + $0x234] sm:$0xf0] }
 0x40d   :  { %v10354_v63 = vld [vmem:[#allocation2 + $0x1930] sm:$0xf0]  ;;  %v7896_v21 = vld [vmem:[#allocation2 + $0x5d8] sm:$0xf] }
 0x40e   :  { %v10357_v3 = vor.u32 %v11520_v56, %v10354_v63  ;;  %v11448_v7 = vld [vmem:[#allocation2 + $0x16d4] sm:$0xf]  ;;  %6117 = vmatpush.bf16.msrb.mxu0 %v10101_v62  ;;  %6143 = vmatpush.bf16.msrb.mxu2 %v7289_v16  ;;  %v7481_v56 = vor.u32 %v10805_v47, %v7480_v45  ;;  %v7192_v63 = vld [vmem:[#allocation2 + $0x58] sm:$0xf]  ;;  %v5891_v10 = vpop.f32.mrf.mxu2 }
 0x40f   :  { %v10066_v8 = vld [vmem:[#allocation2 + $0x16f0] sm:$0xf0]  ;;  %v7193_v16 = vor.u32 %v10733_v57, %v7192_v63  ;;  %v10909_v31 = vld [vmem:[#allocation2 + $0x5f4] sm:$0xf0] }
 0x410   :  { %v11512_v9 = vld [vmem:[#allocation2 + $0x18d4] sm:$0xf]  ;;  %v10069_v25 = vor.u32 %v11448_v7, %v10066_v8  ;;  %6130 = vmatpush.bf16.msrb.mxu1 %v10357_v3  ;;  %6156 = vmatpush.bf16.msrb.mxu3 %v7545_v13  ;;  %v10725_v13 = vld [vmem:[#allocation2 + $0x34] sm:$0xf0]  ;;  %v7897_v46 = vor.u32 %v10909_v31, %v7896_v21  ;;  %v5915_v21 = vpop.f32.mrf.mxu0 }
 0x411   :  { %v10322_v14 = vld [vmem:[#allocation2 + $0x18f0] sm:$0xf0]  ;;  %v8152_v22 = vld [vmem:[#allocation2 + $0x7d8] sm:$0xf] }
 0x412   :  { %v10325_v28 = vor.u32 %v11512_v9, %v10322_v14  ;;  %v11440_v37 = vld [vmem:[#allocation2 + $0x1694] sm:$0xf]  ;;  %6118 = vmatpush.bf16.msrb.mxu0 %v10069_v25  ;;  %6144 = vmatpush.bf16.msrb.mxu2 %v7257_v29  ;;  %v7160_v9 = vld [vmem:[#allocation2 + $0x18] sm:$0xf]  ;;  %v5904_v17 = vpop.f32.mrf.mxu3 }
 0x413   :  { %v10034_v30 = vld [vmem:[#allocation2 + $0x16b0] sm:$0xf0]  ;;  %v7416_v14 = vld [vmem:[#allocation2 + $0x218] sm:$0xf] }
 0x414   :  { %v11504_v6 = vld [vmem:[#allocation2 + $0x1894] sm:$0xf]  ;;  %v10037_v48 = vor.u32 %v11440_v37, %v10034_v30  ;;  %6131 = vmatpush.bf16.msrb.mxu1 %v10325_v28  ;;  %6157 = vmatpush.bf16.msrb.mxu3 %v7513_v26  ;;  %v10973_v28 = vld [vmem:[#allocation2 + $0x7f4] sm:$0xf0] }
 0x415   :  { %v10290_v50 = vld [vmem:[#allocation2 + $0x18b0] sm:$0xf0]  ;;  %v8408_v29 = vld [vmem:[#allocation2 + $0x9d8] sm:$0xf]  ;;  %v8153_v33 = vor.u32 %v10973_v28, %v8152_v22 }
 0x416   :  { %v10293_v51 = vor.u32 %v11504_v6, %v10290_v50  ;;  %v11432_v2 = vld [vmem:[#allocation2 + $0x1654] sm:$0xf]  ;;  %6119 = vmatpush.bf16.msrb.mxu0 %v10037_v48  ;;  %6145 = vmatpush.bf16.msrb.mxu2 %v7225_v52  ;;  %v11037_v37 = vld [vmem:[#allocation2 + $0x9f4] sm:$0xf0]  ;;  %v7161_v6 = vor.u32 %v10725_v13, %v7160_v9  ;;  %v7417_v50 = vor.u32 %v10789_v18, %v7416_v14 }
 0x417   :  { %v10002_v54 = vld [vmem:[#allocation2 + $0x1670] sm:$0xf0]  ;;  %v8664_v32 = vld [vmem:[#allocation2 + $0xbd8] sm:$0xf]  ;;  %v8409_v38 = vor.u32 %v11037_v37, %v8408_v29  ;;  %v5928_v29 = vpop.f32.mrf.mxu1 }
 0x418   :  { %v11496_v55 = vld [vmem:[#allocation2 + $0x1854] sm:$0xf]  ;;  %v10005_v61 = vor.u32 %v11432_v2, %v10002_v54  ;;  %6132 = vmatpush.bf16.msrb.mxu1 %v10293_v51  ;;  %6158 = vmatpush.bf16.msrb.mxu3 %v7481_v56  ;;  %v11101_v26 = vld [vmem:[#allocation2 + $0xbf4] sm:$0xf0] }
 0x419   :  { %v10258_v20 = vld [vmem:[#allocation2 + $0x1870] sm:$0xf0]  ;;  %v7864_v41 = vld [vmem:[#allocation2 + $0x598] sm:$0xf]  ;;  %v8665_v48 = vor.u32 %v11101_v26, %v8664_v32 }
 0x41a   :  { %v11424_v62 = vld [vmem:[#allocation2 + $0x1614] sm:$0xf]  ;;  %v10261_v3 = vor.u32 %v11496_v55, %v10258_v20  ;;  %6120 = vmatpush.bf16.msrb.mxu0 %v10005_v61  ;;  %6146 = vmatpush.bf16.msrb.mxu2 %v7193_v16  ;;  %v10901_v45 = vld [vmem:[#allocation2 + $0x5b4] sm:$0xf0] }
 0x41b   :  { %v9970_v1 = vld [vmem:[#allocation2 + $0x1630] sm:$0xf0]  ;;  %v8120_v47 = vld [vmem:[#allocation2 + $0x798] sm:$0xf]  ;;  %v7865_v55 = vor.u32 %v10901_v45, %v7864_v41 }
 0x41c   :  { %v11488_v7 = vld [vmem:[#allocation2 + $0x1814] sm:$0xf]  ;;  %v9973_v25 = vor.u32 %v11424_v62, %v9970_v1  ;;  %6133 = vmatpush.bf16.msrb.mxu1 %v10261_v3  ;;  %6159 = vmatpush.bf16.msrb.mxu3 %v7449_v11  ;;  %v10965_v53 = vld [vmem:[#allocation2 + $0x7b4] sm:$0xf0] }
 0x41d   :  { %v10226_v8 = vld [vmem:[#allocation2 + $0x1830] sm:$0xf0]  ;;  %v8376_v51 = vld [vmem:[#allocation2 + $0x998] sm:$0xf]  ;;  %v8121_v4 = vor.u32 %v10965_v53, %v8120_v47 }
 0x41e   :  { %v10229_v30 = vor.u32 %v11488_v7, %v10226_v8  ;;  %6121 = vmatpush.bf16.msrb.mxu0 %v9973_v25  ;;  %v11029_v52 = vld [vmem:[#allocation2 + $0x9b4] sm:$0xf0]  ;;  %6147 = vmatpush.bf16.msrb.mxu2 %v7161_v6  ;;  %v5916_v25 = vadd.f32 %v5915_v21, %v11938_v49 }
 0x41f   :  { %v8632_v2 = vld [vmem:[#allocation2 + $0xb98] sm:$0xf]  ;;  %v8377_v56 = vor.u32 %v11029_v52, %v8376_v51 }
 0x420   :  { %6134 = vmatpush.bf16.msrb.mxu1 %v10229_v30  ;;  %v11093_v54 = vld [vmem:[#allocation2 + $0xbb4] sm:$0xf0]  ;;  %6160 = vmatpush.bf16.msrb.mxu3 %v7417_v50 }
 0x421   :  { %v7832_v20 = vld [vmem:[#allocation2 + $0x558] sm:$0xf]  ;;  %6122 = vmatmul.bf16.vlgmr.msrb.gmra.mxu0 %v11814_v27  ;;  %v8633_v58 = vor.u32 %v11093_v54, %v8632_v2  ;;  %6148 = vmatmul.bf16.vlgmr.msrb.gmra.mxu2 %v11780_v36 }
 0x422   :  { %6166 = vmatpush.bf16.msra.mxu0 %v7897_v46  ;;  %6192 = vmatpush.bf16.msra.mxu2 %v8409_v38  ;;  %v10893_v63 = vld [vmem:[#allocation2 + $0x574] sm:$0xf0]  ;;  %v5929_v46 = vadd.f32 %v5928_v29, %v5916_v25 }
 0x423   :  { %v8088_v57 = vld [vmem:[#allocation2 + $0x758] sm:$0xf]  ;;  %6135 = vmatmul.bf16.vlgmr.msrb.gmra.mxu1 %v11820_v12  ;;  %v7833_v16 = vor.u32 %v10893_v63, %v7832_v20  ;;  %6161 = vmatmul.bf16.vlgmr.msrb.gmra.mxu3 %v11784_v43 }
 0x424   :  { %6179 = vmatpush.bf16.msra.mxu1 %v8153_v33  ;;  %6205 = vmatpush.bf16.msra.mxu3 %v8665_v48  ;;  %v10957_v59 = vld [vmem:[#allocation2 + $0x774] sm:$0xf0] }
 0x425   :  { %v8344_v61 = vld [vmem:[#allocation2 + $0x958] sm:$0xf]  ;;  %v8089_v7 = vor.u32 %v10957_v59, %v8088_v57  ;;  %v5954_v57 = vpop.f32.mrf.mxu3 }
 0x426   :  { %v11021_v62 = vld [vmem:[#allocation2 + $0x974] sm:$0xf0]  ;;  %6167 = vmatpush.bf16.msra.mxu0 %v7865_v55  ;;  %6193 = vmatpush.bf16.msra.mxu2 %v8377_v56  ;;  %v5941_v55 = vpop.f32.mrf.mxu2 }
 0x427   :  { %v8600_v1 = vld [vmem:[#allocation2 + $0xb58] sm:$0xf]  ;;  %v8345_v8 = vor.u32 %v11021_v62, %v8344_v61  ;;  %v5942_v63 = vadd.f32 %v5941_v55, %v5929_v46  ;;  %v5917_v61 = vpop.f32.mrf.mxu0 }
 0x428   :  { %v11085_v3 = vld [vmem:[#allocation2 + $0xb74] sm:$0xf0]  ;;  %6180 = vmatpush.bf16.msra.mxu1 %v8121_v4  ;;  %6206 = vmatpush.bf16.msra.mxu3 %v8633_v58 }
 0x429   :  { %v7800_v9 = vld [vmem:[#allocation2 + $0x518] sm:$0xf]  ;;  %v8601_v13 = vor.u32 %v11085_v3, %v8600_v1  ;;  %v5930_v1 = vpop.f32.mrf.mxu1  ;;  %v11945_v3 = vadd.f32 %v5954_v57, %v5942_v63 }
 0x42a   :  { %v10885_v10 = vld [vmem:[#allocation2 + $0x534] sm:$0xf0]  ;;  %6168 = vmatpush.bf16.msra.mxu0 %v7833_v16  ;;  %6194 = vmatpush.bf16.msra.mxu2 %v8345_v8 }
 0x42b   :  { %v8056_v11 = vld [vmem:[#allocation2 + $0x718] sm:$0xf]  ;;  %v7801_v28 = vor.u32 %v10885_v10, %v7800_v9 }
 0x42c   :  { %v10949_v14 = vld [vmem:[#allocation2 + $0x734] sm:$0xf0]  ;;  %6181 = vmatpush.bf16.msra.mxu1 %v8089_v7  ;;  %6207 = vmatpush.bf16.msra.mxu3 %v8601_v13 }
 0x42d   :  { %v8312_v18 = vld [vmem:[#allocation2 + $0x918] sm:$0xf]  ;;  %v8057_v37 = vor.u32 %v10949_v14, %v8056_v11 }
 0x42e   :  { %v11013_v17 = vld [vmem:[#allocation2 + $0x934] sm:$0xf0]  ;;  %6169 = vmatpush.bf16.msra.mxu0 %v7801_v28 }
 0x42f   :  { %v8568_v31 = vld [vmem:[#allocation2 + $0xb18] sm:$0xf]  ;;  %v8313_v30 = vor.u32 %v11013_v17, %v8312_v18 }
 0x430   :  { %v11077_v22 = vld [vmem:[#allocation2 + $0xb34] sm:$0xf0]  ;;  %6182 = vmatpush.bf16.msra.mxu1 %v8057_v37 }
 0x431   :  { %v7768_v6 = vld [vmem:[#allocation2 + $0x4d8] sm:$0xf]  ;;  %v8569_v50 = vor.u32 %v11077_v22, %v8568_v31  ;;  %6195 = vmatpush.bf16.msra.mxu2 %v8313_v30 }
 0x432   :  { %v10877_v32 = vld [vmem:[#allocation2 + $0x4f4] sm:$0xf0] }
 0x433   :  { %v8024_v26 = vld [vmem:[#allocation2 + $0x6d8] sm:$0xf]  ;;  %v7769_v48 = vor.u32 %v10877_v32, %v7768_v6  ;;  %6208 = vmatpush.bf16.msra.mxu3 %v8569_v50 }
 0x434   :  { %v10941_v33 = vld [vmem:[#allocation2 + $0x6f4] sm:$0xf0] }
 0x435   :  { %v8280_v38 = vld [vmem:[#allocation2 + $0x8d8] sm:$0xf]  ;;  %v8025_v49 = vor.u32 %v10941_v33, %v8024_v26  ;;  %6170 = vmatpush.bf16.msra.mxu0 %v7769_v48  ;;  %v5943_v33 = vpop.f32.mrf.mxu2 }
 0x436   :  { %v11005_v41 = vld [vmem:[#allocation2 + $0x8f4] sm:$0xf0] }
 0x437   :  { %v8536_v45 = vld [vmem:[#allocation2 + $0xad8] sm:$0xf]  ;;  %v8281_v53 = vor.u32 %v11005_v41, %v8280_v38  ;;  %6183 = vmatpush.bf16.msra.mxu1 %v8025_v49 }
 0x438   :  { %v11069_v47 = vld [vmem:[#allocation2 + $0xaf4] sm:$0xf0] }
 0x439   :  { %v7736_v51 = vld [vmem:[#allocation2 + $0x498] sm:$0xf]  ;;  %v8537_v54 = vor.u32 %v11069_v47, %v8536_v45  ;;  %6196 = vmatpush.bf16.msra.mxu2 %v8281_v53  ;;  %v5956_v47 = vpop.f32.mrf.mxu3 }
 0x43a   :  { %v10869_v52 = vld [vmem:[#allocation2 + $0x4b4] sm:$0xf0] }
 0x43b   :  { %v7992_v2 = vld [vmem:[#allocation2 + $0x698] sm:$0xf]  ;;  %v7737_v62 = vor.u32 %v10869_v52, %v7736_v51  ;;  %6209 = vmatpush.bf16.msra.mxu3 %v8537_v54 }
 0x43c   :  { %v10933_v4 = vld [vmem:[#allocation2 + $0x6b4] sm:$0xf0] }
 0x43d   :  { %v8248_v56 = vld [vmem:[#allocation2 + $0x898] sm:$0xf]  ;;  %v7993_v16 = vor.u32 %v10933_v4, %v7992_v2  ;;  %6171 = vmatpush.bf16.msra.mxu0 %v7737_v62 }
 0x43e   :  { %v10997_v20 = vld [vmem:[#allocation2 + $0x8b4] sm:$0xf0] }
 0x43f   :  { %v8504_v58 = vld [vmem:[#allocation2 + $0xa98] sm:$0xf]  ;;  %v8249_v7 = vor.u32 %v10997_v20, %v8248_v56  ;;  %6184 = vmatpush.bf16.msra.mxu1 %v7993_v16 }
 0x440   :  { %v11061_v59 = vld [vmem:[#allocation2 + $0xab4] sm:$0xf0] }
 0x441   :  { %v7704_v8 = vld [vmem:[#allocation2 + $0x458] sm:$0xf]  ;;  %v8505_v11 = vor.u32 %v11061_v59, %v8504_v58  ;;  %6197 = vmatpush.bf16.msra.mxu2 %v8249_v7 }
 0x442   :  { %v10861_v9 = vld [vmem:[#allocation2 + $0x474] sm:$0xf0] }
 0x443   :  { %v7960_v10 = vld [vmem:[#allocation2 + $0x658] sm:$0xf]  ;;  %v7705_v31 = vor.u32 %v10861_v9, %v7704_v8  ;;  %6210 = vmatpush.bf16.msra.mxu3 %v8505_v11 }
 0x444   :  { %v10925_v13 = vld [vmem:[#allocation2 + $0x674] sm:$0xf0] }
 0x445   :  { %v8216_v14 = vld [vmem:[#allocation2 + $0x858] sm:$0xf]  ;;  %v7961_v28 = vor.u32 %v10925_v13, %v7960_v10  ;;  %6172 = vmatpush.bf16.msra.mxu0 %v7705_v31 }
 0x446   :  { %v10989_v18 = vld [vmem:[#allocation2 + $0x874] sm:$0xf0] }
 0x447   :  { %v8472_v17 = vld [vmem:[#allocation2 + $0xa58] sm:$0xf]  ;;  %v8217_v29 = vor.u32 %v10989_v18, %v8216_v14  ;;  %6185 = vmatpush.bf16.msra.mxu1 %v7961_v28 }
 0x448   :  { %v11053_v21 = vld [vmem:[#allocation2 + $0xa74] sm:$0xf0] }
 0x449   :  { %v7672_v22 = vld [vmem:[#allocation2 + $0x418] sm:$0xf]  ;;  %v8473_v32 = vor.u32 %v11053_v21, %v8472_v17  ;;  %6198 = vmatpush.bf16.msra.mxu2 %v8217_v29 }
 0x44a   :  { %v10853_v25 = vld [vmem:[#allocation2 + $0x434] sm:$0xf0] }
 0x44b   :  { %v7928_v37 = vld [vmem:[#allocation2 + $0x618] sm:$0xf]  ;;  %v7673_v48 = vor.u32 %v10853_v25, %v7672_v22  ;;  %6211 = vmatpush.bf16.msra.mxu3 %v8473_v32 }
 0x44c   :  { %v10917_v30 = vld [vmem:[#allocation2 + $0x634] sm:$0xf0] }
 0x44d   :  { %v8184_v6 = vld [vmem:[#allocation2 + $0x818] sm:$0xf]  ;;  %v7929_v52 = vor.u32 %v10917_v30, %v7928_v37  ;;  %6173 = vmatpush.bf16.msra.mxu0 %v7673_v48  ;;  %v11951_v48 = vld [vmem:[#allocation5] sm:$0xff] }
 0x44e   :  { %v10981_v26 = vld [vmem:[#allocation2 + $0x834] sm:$0xf0] }
 0x44f   :  { %v8440_v50 = vld [vmem:[#allocation2 + $0xa18] sm:$0xf]  ;;  %v8185_v2 = vor.u32 %v10981_v26, %v8184_v6  ;;  %6186 = vmatpush.bf16.msra.mxu1 %v7929_v52 }
 0x450   :  { %v11045_v46 = vld [vmem:[#allocation2 + $0xa34] sm:$0xf0]  ;;  %6174 = vmatmul.bf16.vlgmr.msra.gmra.mxu0 %v11778_v35 }
 0x451   :  { %v8920_v38 = vld [vmem:[#allocation2 + $0xdd8] sm:$0xf]  ;;  %v8441_v4 = vor.u32 %v11045_v46, %v8440_v50  ;;  %6199 = vmatpush.bf16.msra.mxu2 %v8185_v2 }
 0x452   :  { %v11165_v41 = vld [vmem:[#allocation2 + $0xdf4] sm:$0xf0]  ;;  %6187 = vmatmul.bf16.vlgmr.msra.gmra.mxu1 %v11782_v42 }
 0x453   :  { %v9176_v45 = vld [vmem:[#allocation2 + $0xfd8] sm:$0xf]  ;;  %v8921_v56 = vor.u32 %v11165_v41, %v8920_v38  ;;  %6212 = vmatpush.bf16.msra.mxu3 %v8441_v4  ;;  %v5967_v41 = vpop.f32.mrf.mxu0 }
 0x454   :  { %v11229_v49 = vld [vmem:[#allocation2 + $0xff4] sm:$0xf0]  ;;  %6200 = vmatmul.bf16.vlgmr.msra.gmra.mxu2 %v11798_v39 }
 0x455   :  { %v9432_v53 = vld [vmem:[#allocation2 + $0x11d8] sm:$0xf]  ;;  %v9177_v20 = vor.u32 %v11229_v49, %v9176_v45  ;;  %6218 = vmatpush.bf16.msrb.mxu0 %v8921_v56  ;;  %v955_v49 = vperm.slane %v11951_v48, 5  ;;  %v5980_v56 = vpop.f32.mrf.mxu1 }
 0x456   :  { %v11293_v51 = vld [vmem:[#allocation2 + $0x11f4] sm:$0xf0]  ;;  %6213 = vmatmul.bf16.vlgmr.msra.gmra.mxu3 %v11802_v44 }
 0x457   :  { %v9688_v54 = vld [vmem:[#allocation2 + $0x13d8] sm:$0xf]  ;;  %v9433_v63 = vor.u32 %v11293_v51, %v9432_v53  ;;  %6231 = vmatpush.bf16.msrb.mxu1 %v9177_v20  ;;  %v11955_v53 = vadd.f32 %v5967_v41, %v11945_v3 }
 0x458   :  { %v11357_v55 = vld [vmem:[#allocation2 + $0x13f4] sm:$0xf0] }
 0x459   :  { %v8888_v57 = vld [vmem:[#allocation2 + $0xd98] sm:$0xf]  ;;  %v9689_v61 = vor.u32 %v11357_v55, %v9688_v54  ;;  %6244 = vmatpush.bf16.msrb.mxu2 %v9433_v63 }
 0x45a   :  { %v11157_v58 = vld [vmem:[#allocation2 + $0xdb4] sm:$0xf0] }
 0x45b   :  { %v9144_v59 = vld [vmem:[#allocation2 + $0xf98] sm:$0xf]  ;;  %v8889_v9 = vor.u32 %v11157_v58, %v8888_v57  ;;  %6257 = vmatpush.bf16.msrb.mxu3 %v9689_v61 }
 0x45c   :  { %v11221_v62 = vld [vmem:[#allocation2 + $0xfb4] sm:$0xf0] }
 0x45d   :  { %v9400_v1 = vld [vmem:[#allocation2 + $0x1198] sm:$0xf]  ;;  %v9145_v10 = vor.u32 %v11221_v62, %v9144_v59  ;;  %6219 = vmatpush.bf16.msrb.mxu0 %v8889_v9  ;;  %v5981_v62 = vadd.f32 %v5980_v56, %v955_v49 }
 0x45e   :  { %v11285_v16 = vld [vmem:[#allocation2 + $0x11b4] sm:$0xf0] }
 0x45f   :  { %v9656_v7 = vld [vmem:[#allocation2 + $0x1398] sm:$0xf]  ;;  %v9401_v11 = vor.u32 %v11285_v16, %v9400_v1  ;;  %6232 = vmatpush.bf16.msrb.mxu1 %v9145_v10 }
 0x460   :  { %v11349_v8 = vld [vmem:[#allocation2 + $0x13b4] sm:$0xf0] }
 0x461   :  { %v8856_v13 = vld [vmem:[#allocation2 + $0xd58] sm:$0xf]  ;;  %v9657_v17 = vor.u32 %v11349_v8, %v9656_v7  ;;  %6245 = vmatpush.bf16.msrb.mxu2 %v9401_v11 }
 0x462   :  { %v11149_v14 = vld [vmem:[#allocation2 + $0xd74] sm:$0xf0] }
 0x463   :  { %v9112_v18 = vld [vmem:[#allocation2 + $0xf58] sm:$0xf]  ;;  %v8857_v29 = vor.u32 %v11149_v14, %v8856_v13  ;;  %6258 = vmatpush.bf16.msrb.mxu3 %v9657_v17  ;;  %v6006_v17 = vpop.f32.mrf.mxu3 }
 0x464   :  { %v11213_v21 = vld [vmem:[#allocation2 + $0xf74] sm:$0xf0] }
 0x465   :  { %v9368_v31 = vld [vmem:[#allocation2 + $0x1158] sm:$0xf]  ;;  %v9113_v37 = vor.u32 %v11213_v21, %v9112_v18  ;;  %6220 = vmatpush.bf16.msrb.mxu0 %v8857_v29  ;;  %v5993_v18 = vpop.f32.mrf.mxu2 }
 0x466   :  { %v11277_v22 = vld [vmem:[#allocation2 + $0x1174] sm:$0xf0] }
 0x467   :  { %v9624_v25 = vld [vmem:[#allocation2 + $0x1358] sm:$0xf]  ;;  %v9369_v30 = vor.u32 %v11277_v22, %v9368_v31  ;;  %6233 = vmatpush.bf16.msrb.mxu1 %v9113_v37  ;;  %v5994_v22 = vadd.f32 %v5993_v18, %v5981_v62 }
 0x468   :  { %v11341_v28 = vld [vmem:[#allocation2 + $0x1374] sm:$0xf0] }
 0x469   :  { %v8824_v6 = vld [vmem:[#allocation2 + $0xd18] sm:$0xf]  ;;  %v9625_v50 = vor.u32 %v11341_v28, %v9624_v25  ;;  %6246 = vmatpush.bf16.msrb.mxu2 %v9369_v30  ;;  %v5969_v25 = vpop.f32.mrf.mxu0 }
 0x46a   :  { %v11141_v32 = vld [vmem:[#allocation2 + $0xd34] sm:$0xf0] }
 0x46b   :  { %v9080_v26 = vld [vmem:[#allocation2 + $0xf18] sm:$0xf]  ;;  %v8825_v51 = vor.u32 %v11141_v32, %v8824_v6  ;;  %6259 = vmatpush.bf16.msrb.mxu3 %v9625_v50  ;;  %v5982_v50 = vpop.f32.mrf.mxu1 }
 0x46c   :  { %v11205_v46 = vld [vmem:[#allocation2 + $0xf34] sm:$0xf0]  ;;  %v7354_v50 = vld [vmem:[#allocation2 + $0x1b8] sm:$0xf0] }
 0x46d   :  { %v9336_v33 = vld [vmem:[#allocation2 + $0x1118] sm:$0xf]  ;;  %v9081_v52 = vor.u32 %v11205_v46, %v9080_v26  ;;  %6221 = vmatpush.bf16.msrb.mxu0 %v8825_v51  ;;  %v11957_v26 = vadd.f32 %v6006_v17, %v5994_v22 }
 0x46e   :  { %v11269_v38 = vld [vmem:[#allocation2 + $0x1134] sm:$0xf0] }
 0x46f   :  { %v9592_v45 = vld [vmem:[#allocation2 + $0x1318] sm:$0xf]  ;;  %v9337_v2 = vor.u32 %v11269_v38, %v9336_v33  ;;  %6234 = vmatpush.bf16.msrb.mxu1 %v9081_v52 }
 0x470   :  { %v11333_v47 = vld [vmem:[#allocation2 + $0x1334] sm:$0xf0] }
 0x471   :  { %v8792_v54 = vld [vmem:[#allocation2 + $0xcd8] sm:$0xf]  ;;  %v9593_v20 = vor.u32 %v11333_v47, %v9592_v45  ;;  %6247 = vmatpush.bf16.msrb.mxu2 %v9337_v2 }
 0x472   :  { %v11133_v55 = vld [vmem:[#allocation2 + $0xcf4] sm:$0xf0] }
 0x473   :  { %v9048_v4 = vld [vmem:[#allocation2 + $0xed8] sm:$0xf]  ;;  %v8793_v3 = vor.u32 %v11133_v55, %v8792_v54  ;;  %6260 = vmatpush.bf16.msrb.mxu3 %v9593_v20 }
 0x474   :  { %v11197_v63 = vld [vmem:[#allocation2 + $0xef4] sm:$0xf0] }
 0x475   :  { %v9304_v57 = vld [vmem:[#allocation2 + $0x10d8] sm:$0xf]  ;;  %v9049_v1 = vor.u32 %v11197_v63, %v9048_v4  ;;  %6222 = vmatpush.bf16.msrb.mxu0 %v8793_v3 }
 0x476   :  { %v11261_v58 = vld [vmem:[#allocation2 + $0x10f4] sm:$0xf0] }
 0x477   :  { %v9560_v59 = vld [vmem:[#allocation2 + $0x12d8] sm:$0xf]  ;;  %v9305_v16 = vor.u32 %v11261_v58, %v9304_v57  ;;  %6235 = vmatpush.bf16.msrb.mxu1 %v9049_v1 }
 0x478   :  { %v11325_v61 = vld [vmem:[#allocation2 + $0x12f4] sm:$0xf0] }
 0x479   :  { %v8760_v7 = vld [vmem:[#allocation2 + $0xc98] sm:$0xf]  ;;  %v9561_v10 = vor.u32 %v11325_v61, %v9560_v59  ;;  %6248 = vmatpush.bf16.msrb.mxu2 %v9305_v16  ;;  %v5995_v59 = vpop.f32.mrf.mxu2  ;;  %v6008_v61 = vpop.f32.mrf.mxu3 }
 0x47a   :  { %v11125_v8 = vld [vmem:[#allocation2 + $0xcb4] sm:$0xf0] }
 0x47b   :  { %v9016_v9 = vld [vmem:[#allocation2 + $0xe98] sm:$0xf]  ;;  %v8761_v28 = vor.u32 %v11125_v8, %v8760_v7  ;;  %6261 = vmatpush.bf16.msrb.mxu3 %v9561_v10 }
 0x47c   :  { %v11189_v11 = vld [vmem:[#allocation2 + $0xeb4] sm:$0xf0] }
 0x47d   :  { %v9272_v13 = vld [vmem:[#allocation2 + $0x1098] sm:$0xf]  ;;  %v9017_v29 = vor.u32 %v11189_v11, %v9016_v9  ;;  %6223 = vmatpush.bf16.msrb.mxu0 %v8761_v28 }
 0x47e   :  { %v11253_v14 = vld [vmem:[#allocation2 + $0x10b4] sm:$0xf0] }
 0x47f   :  { %v9528_v21 = vld [vmem:[#allocation2 + $0x1298] sm:$0xf]  ;;  %v9273_v37 = vor.u32 %v11253_v14, %v9272_v13  ;;  %6236 = vmatpush.bf16.msrb.mxu1 %v9017_v29  ;;  %v10777_v13 = vld [vmem:[#allocation2 + $0x1dc] sm:$0xf] }
 0x480   :  { %v11317_v31 = vld [vmem:[#allocation2 + $0x12b4] sm:$0xf0]  ;;  %v7386_v14 = vld [vmem:[#allocation2 + $0x1f8] sm:$0xf0] }
 0x481   :  { %v8728_v30 = vld [vmem:[#allocation2 + $0xc58] sm:$0xf]  ;;  %v9529_v46 = vor.u32 %v11317_v31, %v9528_v21  ;;  %6249 = vmatpush.bf16.msrb.mxu2 %v9273_v37  ;;  %v7389_v29 = vor.u32 %v10777_v13, %v7386_v14 }
 0x482   :  { %v11117_v6 = vld [vmem:[#allocation2 + $0xc74] sm:$0xf0] }
 0x483   :  { %v8984_v32 = vld [vmem:[#allocation2 + $0xe58] sm:$0xf]  ;;  %v8729_v49 = vor.u32 %v11117_v6, %v8728_v30  ;;  %6262 = vmatpush.bf16.msrb.mxu3 %v9529_v46 }
 0x484   :  { %v11181_v33 = vld [vmem:[#allocation2 + $0xe74] sm:$0xf0] }
 0x485   :  { %v9240_v38 = vld [vmem:[#allocation2 + $0x1058] sm:$0xf]  ;;  %v8985_v2 = vor.u32 %v11181_v33, %v8984_v32  ;;  %6224 = vmatpush.bf16.msrb.mxu0 %v8729_v49  ;;  %v10769_v32 = vld [vmem:[#allocation2 + $0x19c] sm:$0xf] }
 0x486   :  { %v11245_v41 = vld [vmem:[#allocation2 + $0x1074] sm:$0xf0]  ;;  %v7357_v49 = vor.u32 %v10769_v32, %v7354_v50 }
 0x487   :  { %v9496_v45 = vld [vmem:[#allocation2 + $0x1258] sm:$0xf]  ;;  %v9241_v54 = vor.u32 %v11245_v41, %v9240_v38  ;;  %6237 = vmatpush.bf16.msrb.mxu1 %v8985_v2 }
 0x488   :  { %v11309_v47 = vld [vmem:[#allocation2 + $0x1274] sm:$0xf0] }
 0x489   :  { %v8696_v51 = vld [vmem:[#allocation2 + $0xc18] sm:$0xf]  ;;  %v9497_v20 = vor.u32 %v11309_v47, %v9496_v45  ;;  %6250 = vmatpush.bf16.msrb.mxu2 %v9241_v54  ;;  %v10761_v54 = vld [vmem:[#allocation2 + $0x15c] sm:$0xf] }
 0x48a   :  { %v11109_v52 = vld [vmem:[#allocation2 + $0xc34] sm:$0xf0] }
 0x48b   :  { %v8952_v55 = vld [vmem:[#allocation2 + $0xe18] sm:$0xf]  ;;  %v8697_v16 = vor.u32 %v11109_v52, %v8696_v51  ;;  %6263 = vmatpush.bf16.msrb.mxu3 %v9497_v20 }
 0x48c   :  { %v11173_v4 = vld [vmem:[#allocation2 + $0xe34] sm:$0xf0] }
 0x48d   :  { %v9208_v56 = vld [vmem:[#allocation2 + $0x1018] sm:$0xf]  ;;  %v8953_v10 = vor.u32 %v11173_v4, %v8952_v55  ;;  %6225 = vmatpush.bf16.msrb.mxu0 %v8697_v16  ;;  %v7322_v55 = vld [vmem:[#allocation2 + $0x178] sm:$0xf0] }
 0x48e   :  { %v11237_v63 = vld [vmem:[#allocation2 + $0x1034] sm:$0xf0]  ;;  %v7325_v59 = vor.u32 %v10761_v54, %v7322_v55  ;;  %v7290_v16 = vld [vmem:[#allocation2 + $0x138] sm:$0xf0] }
 0x48f   :  { %v9464_v57 = vld [vmem:[#allocation2 + $0x1218] sm:$0xf]  ;;  %v9209_v11 = vor.u32 %v11237_v63, %v9208_v56  ;;  %6238 = vmatpush.bf16.msrb.mxu1 %v8953_v10 }
 0x490   :  { %v11301_v58 = vld [vmem:[#allocation2 + $0x1234] sm:$0xf0]  ;;  %6226 = vmatmul.bf16.vlgmr.msrb.gmra.mxu0 %v11796_v34 }
 0x491   :  { %v9944_v62 = vld [vmem:[#allocation2 + $0x15d8] sm:$0xf]  ;;  %v9465_v18 = vor.u32 %v11301_v58, %v9464_v57  ;;  %6251 = vmatpush.bf16.msrb.mxu2 %v9209_v11 }
 0x492   :  { %v11421_v3 = vld [vmem:[#allocation2 + $0x15f4] sm:$0xf0]  ;;  %6239 = vmatmul.bf16.vlgmr.msrb.gmra.mxu1 %v11800_v40 }
 0x493   :  { %v10200_v1 = vld [vmem:[#allocation2 + $0x17d8] sm:$0xf]  ;;  %v9945_v17 = vor.u32 %v11421_v3, %v9944_v62  ;;  %6264 = vmatpush.bf16.msrb.mxu3 %v9465_v18 }
 0x494   :  { %v11485_v7 = vld [vmem:[#allocation2 + $0x17f4] sm:$0xf0]  ;;  %6252 = vmatmul.bf16.vlgmr.msrb.gmra.mxu2 %v11808_v19 }
 0x495   :  { %v10456_v8 = vld [vmem:[#allocation2 + $0x19d8] sm:$0xf]  ;;  %v10201_v21 = vor.u32 %v11485_v7, %v10200_v1  ;;  %6270 = vmatpush.bf16.msra.mxu0 %v9945_v17  ;;  %v10753_v1 = vld [vmem:[#allocation2 + $0x11c] sm:$0xf]  ;;  %v6032_v17 = vpop.f32.mrf.mxu1 }
 0x496   :  { %v11549_v9 = vld [vmem:[#allocation2 + $0x19f4] sm:$0xf0]  ;;  %6265 = vmatmul.bf16.vlgmr.msrb.gmra.mxu3 %v11812_v24 }
 0x497   :  { %v10457_v31 = vor.u32 %v11549_v9, %v10456_v8  ;;  %v9912_v22 = vld [vmem:[#allocation2 + $0x1598] sm:$0xf]  ;;  %6283 = vmatpush.bf16.msra.mxu1 %v10201_v21  ;;  %6309 = vmatpush.bf16.msra.mxu3 %v7389_v29  ;;  %v6019_v8 = vpop.f32.mrf.mxu0  ;;  %v7293_v21 = vor.u32 %v10753_v1, %v7290_v16  ;;  %v7258_v29 = vld [vmem:[#allocation2 + $0xf8] sm:$0xf0] }
 0x498   :  { %v11413_v25 = vld [vmem:[#allocation2 + $0x15b4] sm:$0xf0]  ;;  %v6020_v18 = vadd.f32 %v6019_v8, %v11957_v26  ;;  %v10729_v16 = vld [vmem:[#allocation2 + $0x5c] sm:$0xf] }
 0x499   :  { %v10168_v28 = vld [vmem:[#allocation2 + $0x1798] sm:$0xf]  ;;  %v9913_v46 = vor.u32 %v11413_v25, %v9912_v22  ;;  %6296 = vmatpush.bf16.msra.mxu2 %v10457_v31 }
 0x49a   :  { %v11477_v37 = vld [vmem:[#allocation2 + $0x17b4] sm:$0xf0] }
 0x49b   :  { %v10424_v30 = vld [vmem:[#allocation2 + $0x1998] sm:$0xf]  ;;  %v10169_v33 = vor.u32 %v11477_v37, %v10168_v28  ;;  %6271 = vmatpush.bf16.msra.mxu0 %v9913_v46  ;;  %6310 = vmatpush.bf16.msra.mxu3 %v7357_v49  ;;  %v10745_v28 = vld [vmem:[#allocation2 + $0xdc] sm:$0xf]  ;;  %v6033_v37 = vadd.f32 %v6032_v17, %v6020_v18 }
 0x49c   :  { %v11541_v6 = vld [vmem:[#allocation2 + $0x19b4] sm:$0xf0]  ;;  %v7261_v26 = vor.u32 %v10745_v28, %v7258_v29  ;;  %v7162_v28 = vld [vmem:[#allocation2 + $0x38] sm:$0xf0] }
 0x49d   :  { %v10425_v38 = vor.u32 %v11541_v6, %v10424_v30  ;;  %v9880_v41 = vld [vmem:[#allocation2 + $0x1558] sm:$0xf]  ;;  %6284 = vmatpush.bf16.msra.mxu1 %v10169_v33 }
 0x49e   :  { %v11405_v45 = vld [vmem:[#allocation2 + $0x1574] sm:$0xf0] }
 0x49f   :  { %v10136_v47 = vld [vmem:[#allocation2 + $0x1758] sm:$0xf]  ;;  %v9881_v4 = vor.u32 %v11405_v45, %v9880_v41  ;;  %6297 = vmatpush.bf16.msra.mxu2 %v10425_v38  ;;  %6311 = vmatpush.bf16.msra.mxu3 %v7325_v59  ;;  %v6045_v38 = vpop.f32.mrf.mxu2  ;;  %v6034_v59 = vpop.f32.mrf.mxu1 }
 0x4a0   :  { %v11469_v51 = vld [vmem:[#allocation2 + $0x1774] sm:$0xf0]  ;;  %v6046_v49 = vadd.f32 %v6045_v38, %v6033_v37  ;;  %v10841_v37 = vld [vmem:[#allocation2 + $0x3dc] sm:$0xf] }
 0x4a1   :  { %v10392_v52 = vld [vmem:[#allocation2 + $0x1958] sm:$0xf]  ;;  %v10137_v56 = vor.u32 %v11469_v51, %v10136_v47  ;;  %6272 = vmatpush.bf16.msra.mxu0 %v9881_v4  ;;  %v6058_v51 = vpop.f32.mrf.mxu3  ;;  %v6021_v4 = vpop.f32.mrf.mxu0  ;;  %v8378_v59 = vld [vmem:[#allocation2 + $0x9b8] sm:$0xf0] }
 0x4a2   :  { %v11533_v2 = vld [vmem:[#allocation2 + $0x1974] sm:$0xf0]  ;;  %v11964_v55 = vadd.f32 %v6058_v51, %v6046_v49  ;;  %v10897_v4 = vld [vmem:[#allocation2 + $0x59c] sm:$0xf] }
 0x4a3   :  { %v10393_v20 = vor.u32 %v11533_v2, %v10392_v52  ;;  %v9848_v63 = vld [vmem:[#allocation2 + $0x1518] sm:$0xf]  ;;  %6285 = vmatpush.bf16.msra.mxu1 %v10137_v56  ;;  %6312 = vmatpush.bf16.msra.mxu3 %v7293_v21  ;;  %v10737_v52 = vld [vmem:[#allocation2 + $0x9c] sm:$0xf] }
 0x4a4   :  { %v11397_v57 = vld [vmem:[#allocation2 + $0x1534] sm:$0xf0]  ;;  %v7226_v2 = vld [vmem:[#allocation2 + $0xb8] sm:$0xf0] }
 0x4a5   :  { %v10104_v58 = vld [vmem:[#allocation2 + $0x1718] sm:$0xf]  ;;  %v9849_v7 = vor.u32 %v11397_v57, %v9848_v63  ;;  %6298 = vmatpush.bf16.msra.mxu2 %v10393_v20 }
 0x4a6   :  { %v11461_v61 = vld [vmem:[#allocation2 + $0x1734] sm:$0xf0] }
 0x4a7   :  { %v10360_v62 = vld [vmem:[#allocation2 + $0x1918] sm:$0xf]  ;;  %v10105_v9 = vor.u32 %v11461_v61, %v10104_v58  ;;  %6273 = vmatpush.bf16.msra.mxu0 %v9849_v7  ;;  %6313 = vmatpush.bf16.msra.mxu3 %v7261_v26  ;;  %v7229_v61 = vor.u32 %v10737_v52, %v7226_v2  ;;  %v7194_v7 = vld [vmem:[#allocation2 + $0x78] sm:$0xf0]  ;;  %v6047_v21 = vpop.f32.mrf.mxu2 }
 0x4a8   :  { %v11525_v3 = vld [vmem:[#allocation2 + $0x1934] sm:$0xf0]  ;;  %v10833_v2 = vld [vmem:[#allocation2 + $0x39c] sm:$0xf] }
 0x4a9   :  { %v10361_v10 = vor.u32 %v11525_v3, %v10360_v62  ;;  %v9816_v11 = vld [vmem:[#allocation2 + $0x14d8] sm:$0xf]  ;;  %6286 = vmatpush.bf16.msra.mxu1 %v10105_v9  ;;  %v6060_v29 = vpop.f32.mrf.mxu3 }
 0x4aa   :  { %v11389_v13 = vld [vmem:[#allocation2 + $0x14f4] sm:$0xf0]  ;;  %v7802_v29 = vld [vmem:[#allocation2 + $0x538] sm:$0xf0] }
 0x4ab   :  { %v10072_v14 = vld [vmem:[#allocation2 + $0x16d8] sm:$0xf]  ;;  %v9817_v30 = vor.u32 %v11389_v13, %v9816_v11  ;;  %6299 = vmatpush.bf16.msra.mxu2 %v10361_v10  ;;  %6314 = vmatpush.bf16.msra.mxu3 %v7229_v61 }
 0x4ac   :  { %v11453_v31 = vld [vmem:[#allocation2 + $0x16f4] sm:$0xf0] }
 0x4ad   :  { %v10328_v22 = vld [vmem:[#allocation2 + $0x18d8] sm:$0xf]  ;;  %v10073_v6 = vor.u32 %v11453_v31, %v10072_v14  ;;  %6274 = vmatpush.bf16.msra.mxu0 %v9817_v30  ;;  %v7197_v31 = vor.u32 %v10729_v16, %v7194_v7  ;;  %v7642_v30 = vld [vmem:[#allocation2 + $0x3f8] sm:$0xf0] }
 0x4ae   :  { %v11517_v25 = vld [vmem:[#allocation2 + $0x18f4] sm:$0xf0]  ;;  %v7645_v49 = vor.u32 %v10841_v37, %v7642_v30  ;;  %v7578_v16 = vld [vmem:[#allocation2 + $0x378] sm:$0xf0] }
 0x4af   :  { %v10329_v32 = vor.u32 %v11517_v25, %v10328_v22  ;;  %v9784_v50 = vld [vmem:[#allocation2 + $0x1498] sm:$0xf]  ;;  %6287 = vmatpush.bf16.msra.mxu1 %v10073_v6  ;;  %v10721_v25 = vld [vmem:[#allocation2 + $0x1c] sm:$0xf]  ;;  %6315 = vmatpush.bf16.msra.mxu3 %v7197_v31 }
 0x4b0   :  { %v11381_v46 = vld [vmem:[#allocation2 + $0x14b4] sm:$0xf0]  ;;  %v10905_v6 = vld [vmem:[#allocation2 + $0x5dc] sm:$0xf] }
 0x4b1   :  { %v10040_v33 = vld [vmem:[#allocation2 + $0x1698] sm:$0xf]  ;;  %v9785_v54 = vor.u32 %v11381_v46, %v9784_v50  ;;  %6300 = vmatpush.bf16.msra.mxu2 %v10329_v32  ;;  %v7898_v50 = vld [vmem:[#allocation2 + $0x5f8] sm:$0xf0] }
 0x4b2   :  { %v11445_v41 = vld [vmem:[#allocation2 + $0x16b4] sm:$0xf0]  ;;  %v10969_v46 = vld [vmem:[#allocation2 + $0x7dc] sm:$0xf]  ;;  %v7901_v51 = vor.u32 %v10905_v6, %v7898_v50  ;;  %v6071_v6 = vpop.f32.mrf.mxu0 }
 0x4b3   :  { %v10296_v45 = vld [vmem:[#allocation2 + $0x1898] sm:$0xf]  ;;  %v10041_v56 = vor.u32 %v11445_v41, %v10040_v33  ;;  %6275 = vmatpush.bf16.msra.mxu0 %v9785_v54  ;;  %v8154_v33 = vld [vmem:[#allocation2 + $0x7f8] sm:$0xf0] }
 0x4b4   :  { %v11509_v47 = vld [vmem:[#allocation2 + $0x18b4] sm:$0xf0]  ;;  %v11033_v41 = vld [vmem:[#allocation2 + $0x9dc] sm:$0xf]  ;;  %v8157_v52 = vor.u32 %v10969_v46, %v8154_v33  ;;  %v6072_v46 = vadd.f32 %v6071_v6, %v11964_v55 }
 0x4b5   :  { %v10297_v20 = vor.u32 %v11509_v47, %v10296_v45  ;;  %v9752_v63 = vld [vmem:[#allocation2 + $0x1458] sm:$0xf]  ;;  %6288 = vmatpush.bf16.msra.mxu1 %v10041_v56  ;;  %v8410_v45 = vld [vmem:[#allocation2 + $0x9f8] sm:$0xf0]  ;;  %v7165_v47 = vor.u32 %v10721_v25, %v7162_v28 }
 0x4b6   :  { %v11373_v57 = vld [vmem:[#allocation2 + $0x1474] sm:$0xf0]  ;;  %v7610_v54 = vld [vmem:[#allocation2 + $0x3b8] sm:$0xf0]  ;;  %v8413_v56 = vor.u32 %v11033_v41, %v8410_v45 }
 0x4b7   :  { %v10008_v58 = vld [vmem:[#allocation2 + $0x1658] sm:$0xf]  ;;  %v9753_v8 = vor.u32 %v11373_v57, %v9752_v63  ;;  %6301 = vmatpush.bf16.msra.mxu2 %v10297_v20  ;;  %v7866_v20 = vld [vmem:[#allocation2 + $0x5b8] sm:$0xf0]  ;;  %6316 = vmatpush.bf16.msra.mxu3 %v7165_v47  ;;  %v7613_v61 = vor.u32 %v10833_v2, %v7610_v54 }
 0x4b8   :  { %v11437_v62 = vld [vmem:[#allocation2 + $0x1674] sm:$0xf0]  ;;  %v10961_v63 = vld [vmem:[#allocation2 + $0x79c] sm:$0xf] }
 0x4b9   :  { %v10264_v3 = vld [vmem:[#allocation2 + $0x1858] sm:$0xf]  ;;  %v10009_v11 = vor.u32 %v11437_v62, %v10008_v58  ;;  %6276 = vmatpush.bf16.msra.mxu0 %v9753_v8  ;;  %v8122_v57 = vld [vmem:[#allocation2 + $0x7b8] sm:$0xf0]  ;;  %v7869_v62 = vor.u32 %v10897_v4, %v7866_v20 }
 0x4ba   :  { %v11501_v1 = vld [vmem:[#allocation2 + $0x1874] sm:$0xf0]  ;;  %v11025_v58 = vld [vmem:[#allocation2 + $0x99c] sm:$0xf]  ;;  %6317 = vmatmul.bf16.vlgmr.msra.gmra.mxu3 %v11780_v36  ;;  %v6084_v36 = vpop.f32.mrf.mxu1 }
 0x4bb   :  { %v9720_v9 = vld [vmem:[#allocation2 + $0x1418] sm:$0xf]  ;;  %v10265_v13 = vor.u32 %v11501_v1, %v10264_v3  ;;  %6289 = vmatpush.bf16.msra.mxu1 %v10009_v11  ;;  %v8125_v3 = vor.u32 %v10961_v63, %v8122_v57  ;;  %v10825_v1 = vld [vmem:[#allocation2 + $0x35c] sm:$0xf]  ;;  %6361 = vmatpush.bf16.msrb.mxu3 %v8413_v56  ;;  %v8381_v8 = vor.u32 %v11025_v58, %v8378_v59 }
 0x4bc   :  { %v11365_v10 = vld [vmem:[#allocation2 + $0x1434] sm:$0xf0]  ;;  %v10889_v7 = vld [vmem:[#allocation2 + $0x55c] sm:$0xf] }
 0x4bd   :  { %v9976_v14 = vld [vmem:[#allocation2 + $0x1618] sm:$0xf]  ;;  %v9721_v32 = vor.u32 %v11365_v10, %v9720_v9  ;;  %6302 = vmatpush.bf16.msra.mxu2 %v10265_v13  ;;  %v7834_v9 = vld [vmem:[#allocation2 + $0x578] sm:$0xf0] }
 0x4be   :  { %v11429_v18 = vld [vmem:[#allocation2 + $0x1634] sm:$0xf0]  ;;  %v10953_v10 = vld [vmem:[#allocation2 + $0x75c] sm:$0xf] }
 0x4bf   :  { %v10232_v17 = vld [vmem:[#allocation2 + $0x1818] sm:$0xf]  ;;  %v9977_v38 = vor.u32 %v11429_v18, %v9976_v14  ;;  %6277 = vmatpush.bf16.msra.mxu0 %v9721_v32  ;;  %v8090_v11 = vld [vmem:[#allocation2 + $0x778] sm:$0xf0]  ;;  %v7581_v18 = vor.u32 %v10825_v1, %v7578_v16  ;;  %6362 = vmatpush.bf16.msrb.mxu3 %v8381_v8  ;;  %v6110_v8 = vpop.f32.mrf.mxu3 }
 0x4c0   :  { %v11493_v22 = vld [vmem:[#allocation2 + $0x1834] sm:$0xf0]  ;;  %v11017_v13 = vld [vmem:[#allocation2 + $0x95c] sm:$0xf]  ;;  %v8093_v21 = vor.u32 %v10953_v10, %v8090_v11  ;;  %v6073_v11 = vpop.f32.mrf.mxu0 }
 0x4c1   :  { %v10233_v26 = vor.u32 %v11493_v22, %v10232_v17  ;;  %6290 = vmatpush.bf16.msra.mxu1 %v9977_v38  ;;  %v8346_v14 = vld [vmem:[#allocation2 + $0x978] sm:$0xf0]  ;;  %v7837_v17 = vor.u32 %v10889_v7, %v7834_v9 }
 0x4c2   :  { %6278 = vmatmul.bf16.vlgmr.msra.gmra.mxu0 %v11810_v23  ;;  %v10817_v31 = vld [vmem:[#allocation2 + $0x31c] sm:$0xf]  ;;  %v8349_v28 = vor.u32 %v11017_v13, %v8346_v14  ;;  %v6086_v14 = vpop.f32.mrf.mxu1 }
 0x4c3   :  { %6303 = vmatpush.bf16.msra.mxu2 %v10233_v26  ;;  %6322 = vmatpush.bf16.msrb.mxu0 %v7645_v49  ;;  %v7546_v22 = vld [vmem:[#allocation2 + $0x338] sm:$0xf0] }
 0x4c4   :  { %6291 = vmatmul.bf16.vlgmr.msra.gmra.mxu1 %v11814_v27  ;;  %v10881_v25 = vld [vmem:[#allocation2 + $0x51c] sm:$0xf]  ;;  %v7549_v33 = vor.u32 %v10817_v31, %v7546_v22  ;;  %6363 = vmatpush.bf16.msrb.mxu3 %v8349_v28 }
 0x4c5   :  { %6335 = vmatpush.bf16.msrb.mxu1 %v7901_v51  ;;  %v10945_v37 = vld [vmem:[#allocation2 + $0x71c] sm:$0xf]  ;;  %v7805_v38 = vor.u32 %v10881_v25, %v7802_v29  ;;  %v6085_v51 = vadd.f32 %v6084_v36, %v6072_v46 }
 0x4c6   :  { %6304 = vmatmul.bf16.vlgmr.msra.gmra.mxu2 %v11820_v12  ;;  %v8058_v30 = vld [vmem:[#allocation2 + $0x738] sm:$0xf0] }
 0x4c7   :  { %6348 = vmatpush.bf16.msrb.mxu2 %v8157_v52  ;;  %6323 = vmatpush.bf16.msrb.mxu0 %v7613_v61  ;;  %v11009_v32 = vld [vmem:[#allocation2 + $0x91c] sm:$0xf]  ;;  %v8061_v26 = vor.u32 %v10945_v37, %v8058_v30 }
 0x4c8   :  { %v8314_v50 = vld [vmem:[#allocation2 + $0x938] sm:$0xf0] }
 0x4c9   :  { %6336 = vmatpush.bf16.msrb.mxu1 %v7869_v62  ;;  %v10809_v41 = vld [vmem:[#allocation2 + $0x2dc] sm:$0xf]  ;;  %v8317_v49 = vor.u32 %v11009_v32, %v8314_v50  ;;  %v6097_v62 = vpop.f32.mrf.mxu2 }
 0x4ca   :  { %v7514_v45 = vld [vmem:[#allocation2 + $0x2f8] sm:$0xf0]  ;;  %v6098_v7 = vadd.f32 %v6097_v62, %v6085_v51 }
 0x4cb   :  { %6349 = vmatpush.bf16.msrb.mxu2 %v8125_v3  ;;  %6324 = vmatpush.bf16.msrb.mxu0 %v7581_v18  ;;  %v10873_v47 = vld [vmem:[#allocation2 + $0x4dc] sm:$0xf]  ;;  %v7517_v20 = vor.u32 %v10809_v41, %v7514_v45 }
 0x4cc   :  { %v7770_v52 = vld [vmem:[#allocation2 + $0x4f8] sm:$0xf0]  ;;  %6364 = vmatpush.bf16.msrb.mxu3 %v8317_v49  ;;  %v11971_v18 = vadd.f32 %v6110_v8, %v6098_v7 }
 0x4cd   :  { %6337 = vmatpush.bf16.msrb.mxu1 %v7837_v17  ;;  %v10937_v2 = vld [vmem:[#allocation2 + $0x6dc] sm:$0xf]  ;;  %v7773_v55 = vor.u32 %v10873_v47, %v7770_v52 }
 0x4ce   :  { %v8026_v54 = vld [vmem:[#allocation2 + $0x6f8] sm:$0xf0] }
 0x4cf   :  { %6350 = vmatpush.bf16.msrb.mxu2 %v8093_v21  ;;  %v11001_v4 = vld [vmem:[#allocation2 + $0x8dc] sm:$0xf]  ;;  %6325 = vmatpush.bf16.msrb.mxu0 %v7549_v33  ;;  %v8029_v63 = vor.u32 %v10937_v2, %v8026_v54 }
 0x4d0   :  { %v8282_v56 = vld [vmem:[#allocation2 + $0x8f8] sm:$0xf0] }
 0x4d1   :  { %6338 = vmatpush.bf16.msrb.mxu1 %v7805_v38  ;;  %v10801_v57 = vld [vmem:[#allocation2 + $0x29c] sm:$0xf]  ;;  %v8285_v61 = vor.u32 %v11001_v4, %v8282_v56  ;;  %v6099_v2 = vpop.f32.mrf.mxu2 }
 0x4d2   :  { %v7482_v58 = vld [vmem:[#allocation2 + $0x2b8] sm:$0xf0] }
 0x4d3   :  { %6351 = vmatpush.bf16.msrb.mxu2 %v8061_v26  ;;  %v10865_v59 = vld [vmem:[#allocation2 + $0x49c] sm:$0xf]  ;;  %6326 = vmatpush.bf16.msrb.mxu0 %v7517_v20  ;;  %v7485_v13 = vor.u32 %v10801_v57, %v7482_v58  ;;  %v6112_v20 = vpop.f32.mrf.mxu3 }
 0x4d4   :  { %v7738_v3 = vld [vmem:[#allocation2 + $0x4b8] sm:$0xf0]  ;;  %6365 = vmatpush.bf16.msrb.mxu3 %v8285_v61 }
 0x4d5   :  { %v10929_v1 = vld [vmem:[#allocation2 + $0x69c] sm:$0xf]  ;;  %6339 = vmatpush.bf16.msrb.mxu1 %v7773_v55  ;;  %v7741_v17 = vor.u32 %v10865_v59, %v7738_v3 }
 0x4d6   :  { %v7994_v16 = vld [vmem:[#allocation2 + $0x6b8] sm:$0xf0] }
 0x4d7   :  { %v10993_v9 = vld [vmem:[#allocation2 + $0x89c] sm:$0xf]  ;;  %6352 = vmatpush.bf16.msrb.mxu2 %v8029_v63  ;;  %v7997_v21 = vor.u32 %v10929_v1, %v7994_v16  ;;  %6327 = vmatpush.bf16.msrb.mxu0 %v7485_v13 }
 0x4d8   :  { %v8250_v10 = vld [vmem:[#allocation2 + $0x8b8] sm:$0xf0] }
 0x4d9   :  { %v10793_v31 = vld [vmem:[#allocation2 + $0x25c] sm:$0xf]  ;;  %v8253_v28 = vor.u32 %v10993_v9, %v8250_v10  ;;  %6340 = vmatpush.bf16.msrb.mxu1 %v7741_v17 }
 0x4da   :  { %v7450_v22 = vld [vmem:[#allocation2 + $0x278] sm:$0xf0] }
 0x4db   :  { %v10857_v25 = vld [vmem:[#allocation2 + $0x45c] sm:$0xf]  ;;  %v7453_v50 = vor.u32 %v10793_v31, %v7450_v22  ;;  %6353 = vmatpush.bf16.msrb.mxu2 %v7997_v21  ;;  %6366 = vmatpush.bf16.msrb.mxu3 %v8253_v28 }
 0x4dc   :  { %v7706_v29 = vld [vmem:[#allocation2 + $0x478] sm:$0xf0] }
 0x4dd   :  { %v10921_v37 = vld [vmem:[#allocation2 + $0x65c] sm:$0xf]  ;;  %v7709_v36 = vor.u32 %v10857_v25, %v7706_v29  ;;  %6328 = vmatpush.bf16.msrb.mxu0 %v7453_v50 }
 0x4de   :  { %v7962_v30 = vld [vmem:[#allocation2 + $0x678] sm:$0xf0] }
 0x4df   :  { %v10985_v6 = vld [vmem:[#allocation2 + $0x85c] sm:$0xf]  ;;  %v7965_v38 = vor.u32 %v10921_v37, %v7962_v30  ;;  %6341 = vmatpush.bf16.msrb.mxu1 %v7709_v36 }
 0x4e0   :  { %v8218_v32 = vld [vmem:[#allocation2 + $0x878] sm:$0xf0] }
 0x4e1   :  { %v10785_v46 = vld [vmem:[#allocation2 + $0x21c] sm:$0xf]  ;;  %v8221_v47 = vor.u32 %v10985_v6, %v8218_v32  ;;  %6354 = vmatpush.bf16.msrb.mxu2 %v7965_v38 }
 0x4e2   :  { %v7418_v33 = vld [vmem:[#allocation2 + $0x238] sm:$0xf0] }
 0x4e3   :  { %v10849_v26 = vld [vmem:[#allocation2 + $0x41c] sm:$0xf]  ;;  %v7421_v55 = vor.u32 %v10785_v46, %v7418_v33  ;;  %6367 = vmatpush.bf16.msrb.mxu3 %v8221_v47 }
 0x4e4   :  { %v7674_v41 = vld [vmem:[#allocation2 + $0x438] sm:$0xf0] }
 0x4e5   :  { %v10913_v45 = vld [vmem:[#allocation2 + $0x61c] sm:$0xf]  ;;  %v7677_v59 = vor.u32 %v10849_v26, %v7674_v41  ;;  %6329 = vmatpush.bf16.msrb.mxu0 %v7421_v55 }
 0x4e6   :  { %v7930_v49 = vld [vmem:[#allocation2 + $0x638] sm:$0xf0] }
 0x4e7   :  { %v10977_v51 = vld [vmem:[#allocation2 + $0x81c] sm:$0xf]  ;;  %v7933_v61 = vor.u32 %v10913_v45, %v7930_v49  ;;  %6342 = vmatpush.bf16.msrb.mxu1 %v7677_v59 }
 0x4e8   :  { %v8186_v52 = vld [vmem:[#allocation2 + $0x838] sm:$0xf0]  ;;  %6330 = vmatmul.bf16.vlgmr.msrb.gmra.mxu0 %v11784_v43 }
 0x4e9   :  { %v11097_v54 = vld [vmem:[#allocation2 + $0xbdc] sm:$0xf]  ;;  %v8189_v1 = vor.u32 %v10977_v51, %v8186_v52  ;;  %6355 = vmatpush.bf16.msrb.mxu2 %v7933_v61 }
 0x4ea   :  { %v8666_v4 = vld [vmem:[#allocation2 + $0xbf8] sm:$0xf0]  ;;  %6343 = vmatmul.bf16.vlgmr.msrb.gmra.mxu1 %v11778_v35  ;;  %v6136_v35 = vpop.f32.mrf.mxu1 }
 0x4eb   :  { %v11161_v56 = vld [vmem:[#allocation2 + $0xddc] sm:$0xf]  ;;  %v8669_v16 = vor.u32 %v11097_v54, %v8666_v4  ;;  %6368 = vmatpush.bf16.msrb.mxu3 %v8189_v1  ;;  %v6123_v4 = vpop.f32.mrf.mxu0 }
 0x4ec   :  { %v8922_v63 = vld [vmem:[#allocation2 + $0xdf8] sm:$0xf0]  ;;  %6356 = vmatmul.bf16.vlgmr.msrb.gmra.mxu2 %v11782_v42 }
 0x4ed   :  { %v11225_v57 = vld [vmem:[#allocation2 + $0xfdc] sm:$0xf]  ;;  %v8925_v7 = vor.u32 %v11161_v56, %v8922_v63  ;;  %6374 = vmatpush.bf16.msra.mxu0 %v8669_v16 }
 0x4ee   :  { %v9178_v58 = vld [vmem:[#allocation2 + $0xff8] sm:$0xf0]  ;;  %6369 = vmatmul.bf16.vlgmr.msrb.gmra.mxu3 %v11798_v39  ;;  %v6124_v39 = vadd.f32 %v6123_v4, %v11971_v18  ;;  %v956_v18 = vperm.slane %v11951_v48, 6 }
 0x4ef   :  { %v11289_v62 = vld [vmem:[#allocation2 + $0x11dc] sm:$0xf]  ;;  %v9181_v8 = vor.u32 %v11225_v57, %v9178_v58  ;;  %6387 = vmatpush.bf16.msra.mxu1 %v8925_v7 }
 0x4f0   :  { %v9434_v3 = vld [vmem:[#allocation2 + $0x11f8] sm:$0xf0] }
 0x4f1   :  { %v11089_v9 = vld [vmem:[#allocation2 + $0xb9c] sm:$0xf]  ;;  %v9437_v13 = vor.u32 %v11289_v62, %v9434_v3  ;;  %6400 = vmatpush.bf16.msra.mxu2 %v9181_v8  ;;  %v11978_v62 = vadd.f32 %v6136_v35, %v6124_v39 }
 0x4f2   :  { %v8634_v10 = vld [vmem:[#allocation2 + $0xbb8] sm:$0xf0] }
 0x4f3   :  { %v11153_v11 = vld [vmem:[#allocation2 + $0xd9c] sm:$0xf]  ;;  %v8637_v25 = vor.u32 %v11089_v9, %v8634_v10  ;;  %6413 = vmatpush.bf16.msra.mxu3 %v9437_v13  ;;  %v6125_v48 = vpop.f32.mrf.mxu0 }
 0x4f4   :  { %v8890_v14 = vld [vmem:[#allocation2 + $0xdb8] sm:$0xf0] }
 0x4f5   :  { %v11217_v17 = vld [vmem:[#allocation2 + $0xf9c] sm:$0xf]  ;;  %v8893_v28 = vor.u32 %v11153_v11, %v8890_v14  ;;  %6375 = vmatpush.bf16.msra.mxu0 %v8637_v25 }
 0x4f6   :  { %v9146_v21 = vld [vmem:[#allocation2 + $0xfb8] sm:$0xf0] }
 0x4f7   :  { %v11281_v31 = vld [vmem:[#allocation2 + $0x119c] sm:$0xf]  ;;  %v9149_v29 = vor.u32 %v11217_v17, %v9146_v21  ;;  %6388 = vmatpush.bf16.msra.mxu1 %v8893_v28  ;;  %v6149_v28 = vpop.f32.mrf.mxu2 }
 0x4f8   :  { %v9402_v22 = vld [vmem:[#allocation2 + $0x11b8] sm:$0xf0] }
 0x4f9   :  { %v11081_v37 = vld [vmem:[#allocation2 + $0xb5c] sm:$0xf]  ;;  %v9405_v32 = vor.u32 %v11281_v31, %v9402_v22  ;;  %6401 = vmatpush.bf16.msra.mxu2 %v9149_v29 }
 0x4fa   :  { %v8602_v30 = vld [vmem:[#allocation2 + $0xb78] sm:$0xf0] }
 0x4fb   :  { %v11145_v6 = vld [vmem:[#allocation2 + $0xd5c] sm:$0xf]  ;;  %v8605_v26 = vor.u32 %v11081_v37, %v8602_v30  ;;  %6414 = vmatpush.bf16.msra.mxu3 %v9405_v32  ;;  %v6150_v30 = vadd.f32 %v6149_v28, %v956_v18 }
 0x4fc   :  { %v8858_v50 = vld [vmem:[#allocation2 + $0xd78] sm:$0xf0] }
 0x4fd   :  { %v11209_v46 = vld [vmem:[#allocation2 + $0xf5c] sm:$0xf]  ;;  %v8861_v41 = vor.u32 %v11145_v6, %v8858_v50  ;;  %6376 = vmatpush.bf16.msra.mxu0 %v8605_v26  ;;  %v6162_v6 = vpop.f32.mrf.mxu3  ;;  %v6138_v50 = vpop.f32.mrf.mxu1 }
 0x4fe   :  { %v9114_v33 = vld [vmem:[#allocation2 + $0xf78] sm:$0xf0] }
 0x4ff   :  { %v11273_v36 = vld [vmem:[#allocation2 + $0x115c] sm:$0xf]  ;;  %v9117_v45 = vor.u32 %v11209_v46, %v9114_v33  ;;  %6389 = vmatpush.bf16.msra.mxu1 %v8861_v41  ;;  %v11981_v41 = vadd.f32 %v6162_v6, %v6150_v30 }
 0x500   :  { %v9370_v38 = vld [vmem:[#allocation2 + $0x1178] sm:$0xf0] }
 0x501   :  { %v11073_v47 = vld [vmem:[#allocation2 + $0xb1c] sm:$0xf]  ;;  %v9373_v51 = vor.u32 %v11273_v36, %v9370_v38  ;;  %6402 = vmatpush.bf16.msra.mxu2 %v9117_v45 }
 0x502   :  { %v8570_v49 = vld [vmem:[#allocation2 + $0xb38] sm:$0xf0] }
 0x503   :  { %v11137_v42 = vld [vmem:[#allocation2 + $0xd1c] sm:$0xf]  ;;  %v8573_v20 = vor.u32 %v11073_v47, %v8570_v49  ;;  %6415 = vmatpush.bf16.msra.mxu3 %v9373_v51 }
 0x504   :  { %v8826_v52 = vld [vmem:[#allocation2 + $0xd38] sm:$0xf0] }
 0x505   :  { %v11201_v2 = vld [vmem:[#allocation2 + $0xf1c] sm:$0xf]  ;;  %v8829_v55 = vor.u32 %v11137_v42, %v8826_v52  ;;  %6377 = vmatpush.bf16.msra.mxu0 %v8573_v20 }
 0x506   :  { %v9082_v54 = vld [vmem:[#allocation2 + $0xf38] sm:$0xf0] }
 0x507   :  { %v11265_v43 = vld [vmem:[#allocation2 + $0x111c] sm:$0xf]  ;;  %v9085_v63 = vor.u32 %v11201_v2, %v9082_v54  ;;  %6390 = vmatpush.bf16.msra.mxu1 %v8829_v55 }
 0x508   :  { %v9338_v56 = vld [vmem:[#allocation2 + $0x1138] sm:$0xf0] }
 0x509   :  { %v11065_v57 = vld [vmem:[#allocation2 + $0xadc] sm:$0xf]  ;;  %v9341_v61 = vor.u32 %v11265_v43, %v9338_v56  ;;  %6403 = vmatpush.bf16.msra.mxu2 %v9085_v63 }
 0x50a   :  { %v8538_v58 = vld [vmem:[#allocation2 + $0xaf8] sm:$0xf0] }
 0x50b   :  { %v11129_v59 = vld [vmem:[#allocation2 + $0xcdc] sm:$0xf]  ;;  %v8541_v9 = vor.u32 %v11065_v57, %v8538_v58  ;;  %6416 = vmatpush.bf16.msra.mxu3 %v9341_v61 }
 0x50c   :  { %v8794_v3 = vld [vmem:[#allocation2 + $0xcf8] sm:$0xf0] }
 0x50d   :  { %v11193_v1 = vld [vmem:[#allocation2 + $0xedc] sm:$0xf]  ;;  %v8797_v10 = vor.u32 %v11129_v59, %v8794_v3  ;;  %6378 = vmatpush.bf16.msra.mxu0 %v8541_v9  ;;  %v6151_v59 = vpop.f32.mrf.mxu2 }
 0x50e   :  { %v9050_v16 = vld [vmem:[#allocation2 + $0xef8] sm:$0xf0] }
 0x50f   :  { %v11257_v7 = vld [vmem:[#allocation2 + $0x10dc] sm:$0xf]  ;;  %v9053_v11 = vor.u32 %v11193_v1, %v9050_v16  ;;  %6391 = vmatpush.bf16.msra.mxu1 %v8797_v10  ;;  %v6164_v16 = vpop.f32.mrf.mxu3 }
 0x510   :  { %v9306_v8 = vld [vmem:[#allocation2 + $0x10f8] sm:$0xf0]  ;;  %v11989_v16 = vpop.f32.mrf.mxu1 }
 0x511   :  { %v11057_v13 = vld [vmem:[#allocation2 + $0xa9c] sm:$0xf]  ;;  %v9309_v21 = vor.u32 %v11257_v7, %v9306_v8  ;;  %6404 = vmatpush.bf16.msra.mxu2 %v9053_v11 }
 0x512   :  { %v8506_v14 = vld [vmem:[#allocation2 + $0xab8] sm:$0xf0] }
 0x513   :  { %v11121_v17 = vld [vmem:[#allocation2 + $0xc9c] sm:$0xf]  ;;  %v8509_v32 = vor.u32 %v11057_v13, %v8506_v14  ;;  %6417 = vmatpush.bf16.msra.mxu3 %v9309_v21 }
 0x514   :  { %v8762_v31 = vld [vmem:[#allocation2 + $0xcb8] sm:$0xf0] }
 0x515   :  { %v11185_v22 = vld [vmem:[#allocation2 + $0xe9c] sm:$0xf]  ;;  %v8765_v46 = vor.u32 %v11121_v17, %v8762_v31  ;;  %6379 = vmatpush.bf16.msra.mxu0 %v8509_v32 }
 0x516   :  { %v9018_v25 = vld [vmem:[#allocation2 + $0xeb8] sm:$0xf0] }
 0x517   :  { %v11249_v29 = vld [vmem:[#allocation2 + $0x109c] sm:$0xf]  ;;  %v9021_v33 = vor.u32 %v11185_v22, %v9018_v25  ;;  %6392 = vmatpush.bf16.msra.mxu1 %v8765_v46 }
 0x518   :  { %v9274_v37 = vld [vmem:[#allocation2 + $0x10b8] sm:$0xf0] }
 0x519   :  { %v11049_v36 = vld [vmem:[#allocation2 + $0xa5c] sm:$0xf]  ;;  %v9277_v45 = vor.u32 %v11249_v29, %v9274_v37  ;;  %6405 = vmatpush.bf16.msra.mxu2 %v9021_v33 }
 0x51a   :  { %v8474_v38 = vld [vmem:[#allocation2 + $0xa78] sm:$0xf0] }
 0x51b   :  { %v11113_v26 = vld [vmem:[#allocation2 + $0xc5c] sm:$0xf]  ;;  %v8477_v2 = vor.u32 %v11049_v36, %v8474_v38  ;;  %6418 = vmatpush.bf16.msra.mxu3 %v9277_v45 }
 0x51c   :  { %v8730_v47 = vld [vmem:[#allocation2 + $0xc78] sm:$0xf0] }
 0x51d   :  { %v11177_v49 = vld [vmem:[#allocation2 + $0xe5c] sm:$0xf]  ;;  %v8733_v43 = vor.u32 %v11113_v26, %v8730_v47  ;;  %6380 = vmatpush.bf16.msra.mxu0 %v8477_v2 }
 0x51e   :  { %v8986_v42 = vld [vmem:[#allocation2 + $0xe78] sm:$0xf0] }
 0x51f   :  { %v11241_v51 = vld [vmem:[#allocation2 + $0x105c] sm:$0xf]  ;;  %v8989_v56 = vor.u32 %v11177_v49, %v8986_v42  ;;  %6393 = vmatpush.bf16.msra.mxu1 %v8733_v43 }
 0x520   :  { %v9242_v52 = vld [vmem:[#allocation2 + $0x1078] sm:$0xf0] }
 0x521   :  { %v11041_v54 = vld [vmem:[#allocation2 + $0xa1c] sm:$0xf]  ;;  %v9245_v55 = vor.u32 %v11241_v51, %v9242_v52  ;;  %6406 = vmatpush.bf16.msra.mxu2 %v8989_v56 }
 0x522   :  { %v8442_v4 = vld [vmem:[#allocation2 + $0xa38] sm:$0xf0] }
 0x523   :  { %v11105_v39 = vld [vmem:[#allocation2 + $0xc1c] sm:$0xf]  ;;  %v8445_v7 = vor.u32 %v11041_v54, %v8442_v4  ;;  %6419 = vmatpush.bf16.msra.mxu3 %v9245_v55 }
 0x524   :  { %v8698_v20 = vld [vmem:[#allocation2 + $0xc38] sm:$0xf0] }
 0x525   :  { %v11169_v35 = vld [vmem:[#allocation2 + $0xe1c] sm:$0xf]  ;;  %v8701_v10 = vor.u32 %v11105_v39, %v8698_v20  ;;  %6381 = vmatpush.bf16.msra.mxu0 %v8445_v7 }
 0x526   :  { %v8954_v63 = vld [vmem:[#allocation2 + $0xe38] sm:$0xf0] }
 0x527   :  { %v11233_v57 = vld [vmem:[#allocation2 + $0x101c] sm:$0xf]  ;;  %v8957_v11 = vor.u32 %v11169_v35, %v8954_v63  ;;  %6394 = vmatpush.bf16.msra.mxu1 %v8701_v10 }
 0x528   :  { %v9210_v58 = vld [vmem:[#allocation2 + $0x1038] sm:$0xf0]  ;;  %6382 = vmatmul.bf16.vlgmr.msra.gmra.mxu0 %v11802_v44 }
 0x529   :  { %v11353_v61 = vld [vmem:[#allocation2 + $0x13dc] sm:$0xf]  ;;  %v9213_v17 = vor.u32 %v11233_v57, %v9210_v58  ;;  %6407 = vmatpush.bf16.msra.mxu2 %v8957_v11  ;;  %v11987_v58 = vpop.f32.mrf.mxu0 }
 0x52a   :  { %v9690_v3 = vld [vmem:[#allocation2 + $0x13f8] sm:$0xf0]  ;;  %6395 = vmatmul.bf16.vlgmr.msra.gmra.mxu1 %v11796_v34 }
 0x52b   :  { %v11417_v1 = vld [vmem:[#allocation2 + $0x15dc] sm:$0xf]  ;;  %v9693_v21 = vor.u32 %v11353_v61, %v9690_v3  ;;  %6420 = vmatpush.bf16.msra.mxu3 %v9213_v17 }
 0x52c   :  { %v9946_v8 = vld [vmem:[#allocation2 + $0x15f8] sm:$0xf0]  ;;  %6408 = vmatmul.bf16.vlgmr.msra.gmra.mxu2 %v11800_v40 }
 0x52d   :  { %v11481_v18 = vld [vmem:[#allocation2 + $0x17dc] sm:$0xf]  ;;  %v9949_v31 = vor.u32 %v11417_v1, %v9946_v8  ;;  %6426 = vmatpush.bf16.msrb.mxu0 %v9693_v21 }
 0x52e   :  { %v10202_v9 = vld [vmem:[#allocation2 + $0x17f8] sm:$0xf0]  ;;  %6421 = vmatmul.bf16.vlgmr.msra.gmra.mxu3 %v11808_v19 }
 0x52f   :  { %v11545_v13 = vld [vmem:[#allocation2 + $0x19dc] sm:$0xf]  ;;  %v10205_v22 = vor.u32 %v11481_v18, %v10202_v9  ;;  %6439 = vmatpush.bf16.msrb.mxu1 %v9949_v31 }
 0x530   :  { %v10458_v14 = vld [vmem:[#allocation2 + $0x19f8] sm:$0xf0] }
 0x531   :  { %v11345_v25 = vld [vmem:[#allocation2 + $0x139c] sm:$0xf]  ;;  %v10461_v37 = vor.u32 %v11545_v13, %v10458_v14  ;;  %6452 = vmatpush.bf16.msrb.mxu2 %v10205_v22 }
 0x532   :  { %v9658_v28 = vld [vmem:[#allocation2 + $0x13b8] sm:$0xf0] }
 0x533   :  { %v11409_v29 = vld [vmem:[#allocation2 + $0x159c] sm:$0xf]  ;;  %v9661_v46 = vor.u32 %v11345_v25, %v9658_v28  ;;  %6465 = vmatpush.bf16.msrb.mxu3 %v10461_v37  ;;  %v11991_v25 = vpop.f32.mrf.mxu2 }
 0x534   :  { %v9914_v30 = vld [vmem:[#allocation2 + $0x15b8] sm:$0xf0] }
 0x535   :  { %v11473_v6 = vld [vmem:[#allocation2 + $0x179c] sm:$0xf]  ;;  %v9917_v33 = vor.u32 %v11409_v29, %v9914_v30  ;;  %6427 = vmatpush.bf16.msrb.mxu0 %v9661_v46  ;;  %v6177_v46 = vpop.f32.mrf.mxu0 }
 0x536   :  { %v10170_v48 = vld [vmem:[#allocation2 + $0x17b8] sm:$0xf0] }
 0x537   :  { %v11537_v32 = vld [vmem:[#allocation2 + $0x199c] sm:$0xf]  ;;  %v10173_v36 = vor.u32 %v11473_v6, %v10170_v48  ;;  %6440 = vmatpush.bf16.msrb.mxu1 %v9917_v33  ;;  %v11993_v6 = vpop.f32.mrf.mxu3 }
 0x538   :  { %v10426_v50 = vld [vmem:[#allocation2 + $0x19b8] sm:$0xf0] }
 0x539   :  { %v11337_v38 = vld [vmem:[#allocation2 + $0x135c] sm:$0xf]  ;;  %v10429_v47 = vor.u32 %v11537_v32, %v10426_v50  ;;  %6453 = vmatpush.bf16.msrb.mxu2 %v10173_v36 }
 0x53a   :  { %v9626_v26 = vld [vmem:[#allocation2 + $0x1378] sm:$0xf0] }
 0x53b   :  { %v11401_v45 = vld [vmem:[#allocation2 + $0x155c] sm:$0xf]  ;;  %v9629_v54 = vor.u32 %v11337_v38, %v9626_v26  ;;  %6466 = vmatpush.bf16.msrb.mxu3 %v10429_v47  ;;  %v6190_v47 = vpop.f32.mrf.mxu1 }
 0x53c   :  { %v9882_v49 = vld [vmem:[#allocation2 + $0x1578] sm:$0xf0]  ;;  %v11568_v47 = vld [vmem:[%s12220_s3 + $0x90] sm:$0xff] }
 0x53d   :  { %v11465_v42 = vld [vmem:[#allocation2 + $0x175c] sm:$0xf]  ;;  %v9885_v4 = vor.u32 %v11401_v45, %v9882_v49  ;;  %6428 = vmatpush.bf16.msrb.mxu0 %v9629_v54 }
 0x53e   :  { %v10138_v51 = vld [vmem:[#allocation2 + $0x1778] sm:$0xf0] }
 0x53f   :  { %v11529_v52 = vld [vmem:[#allocation2 + $0x195c] sm:$0xf]  ;;  %v10141_v43 = vor.u32 %v11465_v42, %v10138_v51  ;;  %6441 = vmatpush.bf16.msrb.mxu1 %v9885_v4 }
 0x540   :  { %v10394_v2 = vld [vmem:[#allocation2 + $0x1978] sm:$0xf0] }
 0x541   :  { %v11329_v56 = vld [vmem:[#allocation2 + $0x131c] sm:$0xf]  ;;  %v10397_v20 = vor.u32 %v11529_v52, %v10394_v2  ;;  %6454 = vmatpush.bf16.msrb.mxu2 %v10141_v43 }
 0x542   :  { %v9594_v44 = vld [vmem:[#allocation2 + $0x1338] sm:$0xf0] }
 0x543   :  { %v11393_v39 = vld [vmem:[#allocation2 + $0x151c] sm:$0xf]  ;;  %v9597_v57 = vor.u32 %v11329_v56, %v9594_v44  ;;  %6467 = vmatpush.bf16.msrb.mxu3 %v10397_v20 }
 0x544   :  { %v9850_v35 = vld [vmem:[#allocation2 + $0x1538] sm:$0xf0] }
 0x545   :  { %v11457_v55 = vld [vmem:[#allocation2 + $0x171c] sm:$0xf]  ;;  %v9853_v19 = vor.u32 %v11393_v39, %v9850_v35  ;;  %6429 = vmatpush.bf16.msrb.mxu0 %v9597_v57  ;;  %v6203_v35 = vpop.f32.mrf.mxu2  ;;  %v6216_v57 = vpop.f32.mrf.mxu3 }
 0x546   :  { %v10106_v40 = vld [vmem:[#allocation2 + $0x1738] sm:$0xf0]  ;;  %v11589_v35 = vld [vmem:[%s12220_s3 + $0x138] sm:$0xff] }
 0x547   :  { %v11521_v63 = vld [vmem:[#allocation2 + $0x191c] sm:$0xf]  ;;  %v10109_v59 = vor.u32 %v11457_v55, %v10106_v40  ;;  %6442 = vmatpush.bf16.msrb.mxu1 %v9853_v19 }
 0x548   :  { %v10362_v34 = vld [vmem:[#allocation2 + $0x1938] sm:$0xf0] }
 0x549   :  { %v11321_v61 = vld [vmem:[#allocation2 + $0x12dc] sm:$0xf]  ;;  %v10365_v7 = vor.u32 %v11521_v63, %v10362_v34  ;;  %6455 = vmatpush.bf16.msrb.mxu2 %v10109_v59 }
 0x54a   :  { %v9562_v3 = vld [vmem:[#allocation2 + $0x12f8] sm:$0xf0] }
 0x54b   :  { %v11385_v1 = vld [vmem:[#allocation2 + $0x14dc] sm:$0xf]  ;;  %v9565_v13 = vor.u32 %v11321_v61, %v9562_v3  ;;  %6468 = vmatpush.bf16.msrb.mxu3 %v10365_v7 }
 0x54c   :  { %v9818_v8 = vld [vmem:[#allocation2 + $0x14f8] sm:$0xf0] }
 0x54d   :  { %v11449_v18 = vld [vmem:[#allocation2 + $0x16dc] sm:$0xf]  ;;  %v9821_v14 = vor.u32 %v11385_v1, %v9818_v8  ;;  %6430 = vmatpush.bf16.msrb.mxu0 %v9565_v13  ;;  %v11557_v8 = vld [vmem:[%s12220_s3 + $0x38] sm:$0xff]  ;;  %v11564_v13 = vld [vmem:[%s12220_s3 + $0x70] sm:$0xff]  ;;  %v12063_v46 = vpop.f32.mrf.mxu2 }
 0x54e   :  { %v10074_v9 = vld [vmem:[#allocation2 + $0x16f8] sm:$0xf0] }
 0x54f   :  { %v11513_v10 = vld [vmem:[#allocation2 + $0x18dc] sm:$0xf]  ;;  %v10077_v17 = vor.u32 %v11449_v18, %v10074_v9  ;;  %6443 = vmatpush.bf16.msrb.mxu1 %v9821_v14  ;;  %v11565_v18 = vld [vmem:[%s12220_s3 + $0x78] sm:$0xff]  ;;  %v11572_v14 = vld [vmem:[%s12220_s3 + $0xb0] sm:$0xff] }
 0x550   :  { %v10330_v11 = vld [vmem:[#allocation2 + $0x18f8] sm:$0xf0]  ;;  %v11573_v9 = vld [vmem:[%s12220_s3 + $0xb8] sm:$0xff] }
 0x551   :  { %v11313_v21 = vld [vmem:[#allocation2 + $0x129c] sm:$0xf]  ;;  %v10333_v28 = vor.u32 %v11513_v10, %v10330_v11  ;;  %6456 = vmatpush.bf16.msrb.mxu2 %v10077_v17  ;;  %v11581_v10 = vld [vmem:[%s12220_s3 + $0xf8] sm:$0xff]  ;;  %v11556_v11 = vld [vmem:[%s12220_s3 + $0x30] sm:$0xff] }
 0x552   :  { %v9530_v31 = vld [vmem:[#allocation2 + $0x12b8] sm:$0xf0]  ;;  %v11580_v17 = vld [vmem:[%s12220_s3 + $0xf0] sm:$0xff] }
 0x553   :  { %v11377_v22 = vld [vmem:[#allocation2 + $0x149c] sm:$0xf]  ;;  %v9533_v50 = vor.u32 %v11313_v21, %v9530_v31  ;;  %6469 = vmatpush.bf16.msrb.mxu3 %v10333_v28  ;;  %v11555_v21 = vld [vmem:[%s12220_s3 + $0x28] sm:$0xff] }
 0x554   :  { %v9786_v29 = vld [vmem:[#allocation2 + $0x14b8] sm:$0xf0]  ;;  %v11571_v31 = vld [vmem:[%s12220_s3 + $0xa8] sm:$0xff] }
 0x555   :  { %v11441_v37 = vld [vmem:[#allocation2 + $0x169c] sm:$0xf]  ;;  %v9789_v33 = vor.u32 %v11377_v22, %v9786_v29  ;;  %6431 = vmatpush.bf16.msrb.mxu0 %v9533_v50  ;;  %v12040_v22 = vpop.f32.mrf.mxu1  ;;  %v11577_v50 = vld [vmem:[%s12220_s3 + $0xd8] sm:$0xff] }
 0x556   :  { %v10042_v30 = vld [vmem:[#allocation2 + $0x16b8] sm:$0xf0] }
 0x557   :  { %v11505_v48 = vld [vmem:[#allocation2 + $0x189c] sm:$0xf]  ;;  %v10045_v36 = vor.u32 %v11441_v37, %v10042_v30  ;;  %6444 = vmatpush.bf16.msrb.mxu1 %v9789_v33  ;;  %v11553_v30 = vld [vmem:[%s12220_s3 + $0x18] sm:$0xff]  ;;  %v12065_v33 = vpop.f32.mrf.mxu3 }
 0x558   :  { %v10298_v32 = vld [vmem:[#allocation2 + $0x18b8] sm:$0xf0] }
 0x559   :  { %v11305_v38 = vld [vmem:[#allocation2 + $0x125c] sm:$0xf]  ;;  %v10301_v49 = vor.u32 %v11505_v48, %v10298_v32  ;;  %6457 = vmatpush.bf16.msrb.mxu2 %v10045_v36  ;;  %v11561_v48 = vld [vmem:[%s12220_s3 + $0x58] sm:$0xff] }
 0x55a   :  { %v9498_v26 = vld [vmem:[#allocation2 + $0x1278] sm:$0xf0]  ;;  %v11569_v32 = vld [vmem:[%s12220_s3 + $0x98] sm:$0xff] }
 0x55b   :  { %v11369_v45 = vld [vmem:[#allocation2 + $0x145c] sm:$0xf]  ;;  %v9501_v4 = vor.u32 %v11305_v38, %v9498_v26  ;;  %6470 = vmatpush.bf16.msrb.mxu3 %v10301_v49  ;;  %v11552_v38 = vld [vmem:[%s12220_s3 + $0x10] sm:$0xff] }
 0x55c   :  { %v9754_v42 = vld [vmem:[#allocation2 + $0x1478] sm:$0xf0]  ;;  %v11576_v49 = vld [vmem:[%s12220_s3 + $0xd0] sm:$0xff] }
 0x55d   :  { %v11433_v51 = vld [vmem:[#allocation2 + $0x165c] sm:$0xf]  ;;  %v9757_v43 = vor.u32 %v11369_v45, %v9754_v42  ;;  %6432 = vmatpush.bf16.msrb.mxu0 %v9501_v4  ;;  %v6242_v26 = vpop.f32.mrf.mxu1  ;;  %v11560_v45 = vld [vmem:[%s12220_s3 + $0x50] sm:$0xff]  ;;  %v6176_v42 = vadd.f32 %v11987_v58, %v11981_v41  ;;  %v11575_v41 = vld [vmem:[%s12220_s3 + $0xc8] sm:$0xff]  ;;  %v6255_v58 = vpop.f32.mrf.mxu2 }
 0x55e   :  { %v10010_v52 = vld [vmem:[#allocation2 + $0x1678] sm:$0xf0] }
 0x55f   :  { %v11497_v2 = vld [vmem:[#allocation2 + $0x185c] sm:$0xf]  ;;  %v10013_v56 = vor.u32 %v11433_v51, %v10010_v52  ;;  %6445 = vmatpush.bf16.msrb.mxu1 %v9757_v43  ;;  %v11551_v51 = vld [vmem:[%s12220_s3 + $0x8] sm:$0xff]  ;;  %v6189_v4 = vadd.f32 %v11989_v16, %v6176_v42  ;;  %v6483_v42 = vmax.f32 %v11978_v62, 0.0 }
 0x560   :  { %v10266_v54 = vld [vmem:[#allocation2 + $0x1878] sm:$0xf0]  ;;  %v11559_v52 = vld [vmem:[%s12220_s3 + $0x48] sm:$0xff] }
 0x561   :  { %v11297_v44 = vld [vmem:[#allocation2 + $0x121c] sm:$0xf]  ;;  %v10269_v55 = vor.u32 %v11497_v2, %v10266_v54  ;;  %6458 = vmatpush.bf16.msrb.mxu2 %v10013_v56  ;;  %v11567_v2 = vld [vmem:[%s12220_s3 + $0x88] sm:$0xff]  ;;  %v6268_v54 = vpop.f32.mrf.mxu3 }
 0x562   :  { %v9466_v39 = vld [vmem:[#allocation2 + $0x1238] sm:$0xf0] }
 0x563   :  { %v11361_v20 = vld [vmem:[#allocation2 + $0x141c] sm:$0xf]  ;;  %v9469_v61 = vor.u32 %v11297_v44, %v9466_v39  ;;  %6471 = vmatpush.bf16.msrb.mxu3 %v10269_v55  ;;  %v6478_v39 = vmax.f32 %v11852_v15, 0.0  ;;  %v6480_v55 = vmax.f32 %v11898_v0, 0.0  ;;  %v11605_v15 = vld [vmem:[%s12220_s3 + $0x1b8] sm:$0xff]  ;;  %v11588_v0 = vld [vmem:[%s12220_s3 + $0x130] sm:$0xff] }
 0x564   :  { %v9722_v40 = vld [vmem:[#allocation2 + $0x1438] sm:$0xf0] }
 0x565   :  { %v11425_v63 = vld [vmem:[#allocation2 + $0x161c] sm:$0xf]  ;;  %v9725_v3 = vor.u32 %v11361_v20, %v9722_v40  ;;  %6433 = vmatpush.bf16.msrb.mxu0 %v9469_v61  ;;  %v6479_v20 = vmax.f32 %v11875_v60, 0.0  ;;  %v6481_v40 = vmax.f32 %v11924_v5, 0.0  ;;  %v6202_v60 = vadd.f32 %v11991_v25, %v6189_v4  ;;  %v11604_v25 = vld [vmem:[%s12220_s3 + $0x1b0] sm:$0xff] }
 0x566   :  { %v9978_v34 = vld [vmem:[#allocation2 + $0x1638] sm:$0xf0]  ;;  %v6488_v5 = vpack.c.bf16 %v6480_v55, %v6480_v55  ;;  %v11624_v55 = vld [vmem:[#allocation5] sm:$0xff] }
 0x567   :  { %v11489_v19 = vld [vmem:[#allocation2 + $0x181c] sm:$0xf]  ;;  %v9981_v1 = vor.u32 %v11425_v63, %v9978_v34  ;;  %6446 = vmatpush.bf16.msrb.mxu1 %v9725_v3  ;;  %v11597_v63 = vld [vmem:[%s12220_s3 + $0x178] sm:$0xff]  ;;  %v6486_v34 = vpack.c.bf16 %v6478_v39, %v6478_v39  ;;  %v6487_v57 = vpack.c.bf16 %v6479_v20, %v6479_v20  ;;  %v6215_v61 = vadd.f32 %v11993_v6, %v6202_v60  ;;  %v11603_v6 = vld [vmem:[%s12220_s3 + $0x1a8] sm:$0xff] }
 0x568   :  { %v10234_v59 = vld [vmem:[#allocation2 + $0x1838] sm:$0xf0]  ;;  %6434 = vmatmul.bf16.vlgmr.msrb.gmra.mxu0 %v11812_v24  ;;  %v11563_v24 = vld [vmem:[%s12220_s3 + $0x68] sm:$0xff] }
 0x569   :  { %v10237_v7 = vor.u32 %v11489_v19, %v10234_v59  ;;  %6459 = vmatpush.bf16.msrb.mxu2 %v9981_v1  ;;  %7010 = vmatpush.bf16.msra.mxu0 %v11557_v8  ;;  %v11562_v28 = vld [vmem:[%s12220_s3 + $0x60] sm:$0xff]  ;;  %v6489_v19 = vpack.c.bf16 %v6481_v40, %v6481_v40  ;;  %v11596_v59 = vld [vmem:[%s12220_s3 + $0x170] sm:$0xff]  ;;  %v11587_v1 = vld [vmem:[%s12220_s3 + $0x128] sm:$0xff]  ;;  %v957_v40 = vperm.slane %v11624_v55, 7 }
 0x56a   :  { %6447 = vmatmul.bf16.vlgmr.msrb.gmra.mxu1 %v11810_v23  ;;  %v11579_v23 = vld [vmem:[%s12220_s3 + $0xe8] sm:$0xff]  ;;  %v11570_v29 = vld [vmem:[%s12220_s3 + $0xa0] sm:$0xff] }
 0x56b   :  { %6472 = vmatpush.bf16.msrb.mxu3 %v10237_v7  ;;  %7023 = vmatpush.bf16.msra.mxu1 %v11565_v18  ;;  %v11578_v37 = vld [vmem:[%s12220_s3 + $0xe0] sm:$0xff]  ;;  %v11595_v7 = vld [vmem:[%s12220_s3 + $0x168] sm:$0xff] }
 0x56c   :  { %6460 = vmatmul.bf16.vlgmr.msrb.gmra.mxu2 %v11814_v27  ;;  %v12035_v27 = vpop.f32.mrf.mxu0  ;;  %v11550_v43 = vld [vmem:[%s12220_s3] sm:$0xff]  ;;  %v11611_v20 = vld [vmem:[%s12220_s3 + $0x1e8] sm:$0xff] }
 0x56d   :  { %7036 = vmatpush.bf16.msra.mxu2 %v11573_v9  ;;  %7011 = vmatpush.bf16.msra.mxu0 %v11556_v11  ;;  %v11558_v56 = vld [vmem:[%s12220_s3 + $0x40] sm:$0xff]  ;;  %v6228_v3 = vadd.f32 %v12035_v27, %v6215_v61  ;;  %v6318_v27 = vpop.f32.mrf.mxu3 }
 0x56e   :  { %6473 = vmatmul.bf16.vlgmr.msrb.gmra.mxu3 %v11820_v12  ;;  %v11554_v12 = vld [vmem:[%s12220_s3 + $0x20] sm:$0xff] }
 0x56f   :  { %7049 = vmatpush.bf16.msra.mxu3 %v11581_v10  ;;  %7024 = vmatpush.bf16.msra.mxu1 %v11564_v13  ;;  %v11566_v44 = vld [vmem:[%s12220_s3 + $0x80] sm:$0xff]  ;;  %v6241_v18 = vadd.f32 %v12040_v22, %v6228_v3  ;;  %v6292_v10 = vpop.f32.mrf.mxu1 }
 0x570   :  { %v11574_v16 = vld [vmem:[%s12220_s3 + $0xc0] sm:$0xff] }
 0x571   :  { %7037 = vmatpush.bf16.msra.mxu2 %v11572_v14  ;;  %7012 = vmatpush.bf16.msra.mxu0 %v11555_v21  ;;  %v11586_v9 = vld [vmem:[%s12220_s3 + $0x120] sm:$0xff]  ;;  %v6254_v14 = vadd.f32 %v12063_v46, %v6241_v18  ;;  %v11593_v21 = vld [vmem:[%s12220_s3 + $0x158] sm:$0xff]  ;;  %v11599_v46 = vld [vmem:[%s12220_s3 + $0x188] sm:$0xff] }
 0x572   :  { %v11594_v11 = vld [vmem:[%s12220_s3 + $0x160] sm:$0xff] }
 0x573   :  { %7050 = vmatpush.bf16.msra.mxu3 %v11580_v17  ;;  %7025 = vmatpush.bf16.msra.mxu1 %v11563_v24  ;;  %v11602_v13 = vld [vmem:[%s12220_s3 + $0x1a0] sm:$0xff]  ;;  %v11585_v17 = vld [vmem:[%s12220_s3 + $0x118] sm:$0xff] }
 0x574   :  { %v6229_v36 = vpop.f32.mrf.mxu0  ;;  %v11601_v24 = vld [vmem:[%s12220_s3 + $0x198] sm:$0xff]  ;;  %v11582_v26 = vld [vmem:[%s12220_s3 + $0x100] sm:$0xff] }
 0x575   :  { %7038 = vmatpush.bf16.msra.mxu2 %v11571_v31  ;;  %7013 = vmatpush.bf16.msra.mxu0 %v11554_v12  ;;  %v6267_v31 = vadd.f32 %v12065_v33, %v6254_v14 }
 0x577   :  { %7051 = vmatpush.bf16.msra.mxu3 %v11579_v23  ;;  %7026 = vmatpush.bf16.msra.mxu1 %v11562_v28  ;;  %v6305_v23 = vpop.f32.mrf.mxu2  ;;  %v11584_v28 = vld [vmem:[%s12220_s3 + $0x110] sm:$0xff] }
 0x579   :  { %7039 = vmatpush.bf16.msra.mxu2 %v11570_v29  ;;  %7014 = vmatpush.bf16.msra.mxu0 %v11553_v30  ;;  %v6294_v29 = vpop.f32.mrf.mxu1  ;;  %v11600_v30 = vld [vmem:[%s12220_s3 + $0x190] sm:$0xff] }
 0x57b   :  { %7052 = vmatpush.bf16.msra.mxu3 %v11578_v37  ;;  %7027 = vmatpush.bf16.msra.mxu1 %v11561_v48  ;;  %v11592_v37 = vld [vmem:[%s12220_s3 + $0x150] sm:$0xff] }
 0x57c   :  { %v6279_v8 = vpop.f32.mrf.mxu0 }
 0x57d   :  { %7040 = vmatpush.bf16.msra.mxu2 %v11569_v32  ;;  %7015 = vmatpush.bf16.msra.mxu0 %v11552_v38  ;;  %v6280_v22 = vadd.f32 %v6279_v8, %v6267_v31  ;;  %v11583_v32 = vld [vmem:[%s12220_s3 + $0x108] sm:$0xff]  ;;  %v6320_v38 = vpop.f32.mrf.mxu3 }
 0x57f   :  { %7053 = vmatpush.bf16.msra.mxu3 %v11577_v50  ;;  %7028 = vmatpush.bf16.msra.mxu1 %v11560_v45  ;;  %v6293_v48 = vadd.f32 %v6292_v10, %v6280_v22  ;;  %v11591_v50 = vld [vmem:[%s12220_s3 + $0x148] sm:$0xff]  ;;  %v6307_v36 = vpop.f32.mrf.mxu2  ;;  %v6482_v45 = vmax.f32 %v11955_v53, 0.0 }
 0x581   :  { %7041 = vmatpush.bf16.msra.mxu2 %v11568_v47  ;;  %7016 = vmatpush.bf16.msra.mxu0 %v11551_v51  ;;  %v6306_v33 = vadd.f32 %v6305_v23, %v6293_v48  ;;  %v11590_v47 = vld [vmem:[%s12220_s3 + $0x140] sm:$0xff]  ;;  %v6344_v58 = vpop.f32.mrf.mxu1 }
 0x583   :  { %7054 = vmatpush.bf16.msra.mxu3 %v11576_v49  ;;  %7029 = vmatpush.bf16.msra.mxu1 %v11559_v52  ;;  %v11598_v49 = vld [vmem:[%s12220_s3 + $0x180] sm:$0xff]  ;;  %v6484_v51 = vmax.f32 %v6306_v33, 0.0  ;;  %v6490_v52 = vpack.c.bf16 %v6482_v45, %v6482_v45 }
 0x584   :  { %v6281_v12 = vpop.f32.mrf.mxu0 }
 0x585   :  { %7042 = vmatpush.bf16.msra.mxu2 %v11567_v2  ;;  %7017 = vmatpush.bf16.msra.mxu0 %v11550_v43  ;;  %v6491_v2 = vpack.c.bf16 %v6483_v42, %v6483_v42  ;;  %v6370_v4 = vpop.f32.mrf.mxu3  ;;  %v11613_v43 = vld [vmem:[%s12220_s3 + $0x1f8] sm:$0xff] }
 0x587   :  { %7055 = vmatpush.bf16.msra.mxu3 %v11575_v41  ;;  %7030 = vmatpush.bf16.msra.mxu1 %v11558_v56  ;;  %v6492_v41 = vpack.c.bf16 %v6484_v51, %v6484_v51  ;;  %v6357_v54 = vpop.f32.mrf.mxu2 }
 0x588   :  { %7018 = vmatmul.bf16.vlgmr.msra.gmra.mxu0 %v6486_v34  ;;  %v11608_v34 = vld [vmem:[%s12220_s3 + $0x1d0] sm:$0xff] }
 0x589   :  { %7043 = vmatpush.bf16.msra.mxu2 %v11566_v44  ;;  %7062 = vmatpush.bf16.msrb.mxu0 %v11589_v35  ;;  %v6346_v62 = vpop.f32.mrf.mxu1  ;;  %v11612_v44 = vld [vmem:[%s12220_s3 + $0x1f0] sm:$0xff]  ;;  %v11610_v35 = vld [vmem:[%s12220_s3 + $0x1e0] sm:$0xff] }
 0x58a   :  { %7031 = vmatmul.bf16.vlgmr.msra.gmra.mxu1 %v6487_v57  ;;  %v6319_v57 = vadd.f32 %v6318_v27, %v957_v40 }
 0x58b   :  { %7056 = vmatpush.bf16.msra.mxu3 %v11574_v16  ;;  %7075 = vmatpush.bf16.msrb.mxu1 %v11597_v63  ;;  %v11609_v63 = vld [vmem:[%s12220_s3 + $0x1d8] sm:$0xff] }
 0x58c   :  { %7044 = vmatmul.bf16.vlgmr.msra.gmra.mxu2 %v6488_v5  ;;  %v6331_v53 = vpop.f32.mrf.mxu0  ;;  %v11607_v5 = vld [vmem:[%s12220_s3 + $0x1c8] sm:$0xff] }
 0x58d   :  { %7088 = vmatpush.bf16.msrb.mxu2 %v11605_v15  ;;  %7063 = vmatpush.bf16.msrb.mxu0 %v11588_v0  ;;  %v6372_v16 = vpop.f32.mrf.mxu3  ;;  %v6332_v0 = vadd.f32 %v6331_v53, %v6319_v57 }
 0x58e   :  { %7057 = vmatmul.bf16.vlgmr.msra.gmra.mxu3 %v6489_v19 }
 0x58f   :  { %7076 = vmatpush.bf16.msrb.mxu1 %v11596_v59  ;;  %7101 = vmatpush.bf16.msrb.mxu3 %v11613_v43  ;;  %v6359_v39 = vpop.f32.mrf.mxu2  ;;  %v6345_v3 = vadd.f32 %v6344_v58, %v6332_v0 }
 0x591   :  { %7089 = vmatpush.bf16.msrb.mxu2 %v11604_v25  ;;  %7064 = vmatpush.bf16.msrb.mxu0 %v11587_v1  ;;  %v11606_v1 = vld [vmem:[%s12220_s3 + $0x1c0] sm:$0xff]  ;;  %s11732_s3 = smov [#allocation8]  }
 0x592   :  { %s7121_s26 = sshll.u32 %s11732_s3, 4  ;;  %s7122_s26 = int_to_ptr.vmem [resolvable:$true] %s7121_s26 }
 0x593   :  { %7077 = vmatpush.bf16.msrb.mxu1 %v11595_v7  ;;  %7102 = vmatpush.bf16.msrb.mxu3 %v11612_v44  ;;  %v6358_v7 = vadd.f32 %v6357_v54, %v6345_v3 }
 0x594   :  { %v6333_v56 = vpop.f32.mrf.mxu0 }
 0x595   :  { %7090 = vmatpush.bf16.msrb.mxu2 %v11603_v6  ;;  %7065 = vmatpush.bf16.msrb.mxu0 %v11586_v9  ;;  %v6371_v18 = vadd.f32 %v6370_v4, %v6358_v7 }
 0x597   :  { %7078 = vmatpush.bf16.msrb.mxu1 %v11594_v11  ;;  %7103 = vmatpush.bf16.msrb.mxu3 %v11611_v20 }
 0x599   :  { %7091 = vmatpush.bf16.msrb.mxu2 %v11602_v13  ;;  %7066 = vmatpush.bf16.msrb.mxu0 %v11585_v17 }
 0x59b   :  { %7079 = vmatpush.bf16.msrb.mxu1 %v11593_v21  ;;  %7104 = vmatpush.bf16.msrb.mxu3 %v11610_v35 }
 0x59d   :  { %7092 = vmatpush.bf16.msrb.mxu2 %v11601_v24  ;;  %7067 = vmatpush.bf16.msrb.mxu0 %v11584_v28 }
 0x59f   :  { %7080 = vmatpush.bf16.msrb.mxu1 %v11592_v37  ;;  %7105 = vmatpush.bf16.msrb.mxu3 %v11609_v63 }
 0x5a1   :  { %7093 = vmatpush.bf16.msrb.mxu2 %v11600_v30  ;;  %7068 = vmatpush.bf16.msrb.mxu0 %v11583_v32  ;;  %v11620_v32 = vld [vmem:[#allocation7] ss:$0 sm:$0xff] }
 0x5a3   :  { %7081 = vmatpush.bf16.msrb.mxu1 %v11591_v50  ;;  %7106 = vmatpush.bf16.msrb.mxu3 %v11608_v34 }
 0x5a5   :  { %7094 = vmatpush.bf16.msrb.mxu2 %v11599_v46  ;;  %7069 = vmatpush.bf16.msrb.mxu0 %v11582_v26  ;;  %v6383_v15 = vpop.f32.mrf.mxu0 }
 0x5a6   :  { %v6384_v9 = vadd.f32 %v6383_v15, %v6371_v18 }
 0x5a7   :  { %7082 = vmatpush.bf16.msrb.mxu1 %v11590_v47  ;;  %v6396_v60 = vpop.f32.mrf.mxu1  ;;  %7107 = vmatpush.bf16.msrb.mxu3 %v11607_v5 }
 0x5a8   :  { %7070 = vmatmul.bf16.vlgmr.msrb.gmra.mxu0 %v6490_v52  ;;  %v6397_v10 = vadd.f32 %v6396_v60, %v6384_v9 }
 0x5a9   :  { %7095 = vmatpush.bf16.msrb.mxu2 %v11598_v49 }
 0x5aa   :  { %7083 = vmatmul.bf16.vlgmr.msrb.gmra.mxu1 %v6491_v2 }
 0x5ab   :  { %7108 = vmatpush.bf16.msrb.mxu3 %v11606_v1 }
 0x5ac   :  { %7096 = vmatmul.bf16.vlgmr.msrb.gmra.mxu2 %v6492_v41 }
 0x5ad   :  { %v6385_v25 = vpop.f32.mrf.mxu0 }
 0x5af   :  { %v6409_v19 = vpop.f32.mrf.mxu2  ;;  %v6398_v61 = vpop.f32.mrf.mxu1 }
 0x5b0   :  { %v6410_v11 = vadd.f32 %v6409_v19, %v6397_v10 }
 0x5b1   :  { %v6422_v59 = vpop.f32.mrf.mxu3 }
 0x5b2   :  { %v6423_v13 = vadd.f32 %v6422_v59, %v6410_v11 }
 0x5b7   :  { %v6411_v6 = vpop.f32.mrf.mxu2 }
 0x5b9   :  { %v6424_v8 = vpop.f32.mrf.mxu3 }
 0x5e5   :  { %v6435_v14 = vpop.f32.mrf.mxu0 }
 0x5e6   :  { %v6436_v21 = vadd.f32 %v6435_v14, %v6423_v13 }
 0x5e7   :  { %v6448_v17 = vpop.f32.mrf.mxu1 }
 0x5e8   :  { %v6449_v24 = vadd.f32 %v6448_v17, %v6436_v21 }
 0x5ed   :  { %v6437_v12 = vpop.f32.mrf.mxu0 }
 0x5ef   :  { %v6461_v31 = vpop.f32.mrf.mxu2  ;;  %v6450_v22 = vpop.f32.mrf.mxu1 }
 0x5f0   :  { %v6462_v23 = vadd.f32 %v6461_v31, %v6449_v24 }
 0x5f1   :  { %v6474_v27 = vpop.f32.mrf.mxu3 }
 0x5f2   :  { %v6475_v28 = vadd.f32 %v6474_v27, %v6462_v23 }
 0x5f4   :  { %v6485_v29 = vmax.f32 %v6475_v28, 0.0 }
 0x5f6   :  { %v6493_v37 = vpack.c.bf16 %v6485_v29, %v6485_v29 }
 0x5f7   :  { %v6463_v30 = vpop.f32.mrf.mxu2 }
 0x5f8   :  { %7109 = vmatmul.bf16.vlgmr.msrb.gmra.mxu3 %v6493_v37 }
 0x5f9   :  { %v6476_v48 = vpop.f32.mrf.mxu3 }
 0x605   :  { %v7019_v50 = vpop.f32.mrf.mxu0 }
 0x606   :  { %v7020_v33 = vadd.f32 %v11620_v32, %v7019_v50 }
 0x607   :  { %v7032_v46 = vpop.f32.mrf.mxu1 }
 0x608   :  { %v7033_v36 = vadd.f32 %v7032_v46, %v7020_v33 }
 0x60d   :  { %v7021_v47 = vpop.f32.mrf.mxu0 }
 0x60f   :  { %v7045_v38 = vpop.f32.mrf.mxu2  ;;  %v7034_v49 = vpop.f32.mrf.mxu1 }
 0x610   :  { %v7046_v45 = vadd.f32 %v7045_v38, %v7033_v36 }
 0x611   :  { %v7058_v26 = vpop.f32.mrf.mxu3 }
 0x612   :  { %v7059_v42 = vadd.f32 %v7058_v26, %v7046_v45 }
 0x617   :  { %v7047_v51 = vpop.f32.mrf.mxu2 }
 0x619   :  { %v7060_v52 = vpop.f32.mrf.mxu3 }
 0x625   :  { %v7071_v2 = vpop.f32.mrf.mxu0 }
 0x626   :  { %v7072_v41 = vadd.f32 %v7071_v2, %v7059_v42 }
 0x627   :  { %v7084_v53 = vpop.f32.mrf.mxu1 }
 0x628   :  { %v7085_v58 = vadd.f32 %v7084_v53, %v7072_v41 }
 0x62d   :  { %v7073_v43 = vpop.f32.mrf.mxu0 }
 0x62f   :  { %v7097_v54 = vpop.f32.mrf.mxu2  ;;  %v7086_v56 = vpop.f32.mrf.mxu1 }
 0x630   :  { %v7098_v4 = vadd.f32 %v7097_v54, %v7085_v58 }
 0x637   :  { %v7099_v62 = vpop.f32.mrf.mxu2 }
 0x67b   :  { %v7110_v44 = vpop.f32.mrf.mxu3 }
 0x67c   :  { %v7111_v39 = vadd.f32 %v7110_v44, %v7098_v4 }
 0x67e   :  { %7115 = vst.msk [vmem:[#allocation8] sm:$0x3] %vm7114_vm0, %v7111_v39 }
 0x67f   :  { %7126 = dma.vmem_to_hbm [thread:$0]  %s7122_s26, 32, %s7124_s29, [#allocation4]  }
 0x683   :  { %v7112_v20 = vpop.f32.mrf.mxu3 }
 0x684   :  { %11725 = dma.done.wait [#allocation4], 32  }
 0x685   :  { %11726 = vsyncadd [#allocation4], 4294967264 }
 0x686   :  { %7131 = vsyncpa [#allocation3], 1 }
 0x687   :  { %7132 = vsyncpa [#allocation6], 1 }
 0x688   :  { %7133 = vsyncpa [#allocation4], 1 }

</bundles_post_ra>
